<compile_context>
chip_gen: v7x
topology: tpu7x:2x2x1
jax: 0.10.0
libtpu: 0.0.40
codegen_flags: <defaults>
</compile_context>

<pallas_src>
import functools

import numpy as np

import jax
import jax.numpy as jnp
from jax import lax
from jax.experimental import pallas as pl
from jax.experimental.pallas import tpu as pltpu


# ---------------------------------------------------------------------------
# Small helpers
# ---------------------------------------------------------------------------
def _round_up(v, m):
    return (v + m - 1) // m * m


def _pad_to(a, axis, size):
    pads = [(0, 0)] * a.ndim
    pads[axis] = (0, size - a.shape[axis])
    return jnp.pad(a, pads)


def _phys_bytes(shape, dtype):
    """Rough physical VMEM footprint of an array (lane dim padded to 128)."""
    dt = np.dtype(dtype)
    packing = max(1, 4 // dt.itemsize)
    s = list(shape)
    s[-1] = _round_up(s[-1], 128)
    if len(s) >= 2:
        s[-2] = _round_up(s[-2], 8 * packing)
    return int(np.prod(s)) * dt.itemsize


def _geometry(in_ch, out_ch, H, W):
    Cinp = _round_up(max(in_ch, 1), 8)      # contraction lanes (multiple of 8, not 128)
    Cop = _round_up(max(out_ch, 1), 8)      # output lanes
    Wp = W + 8                              # padded row pitch (zero halo columns)
    c0 = 4                                  # image column offset inside the pitch
    OFF = _round_up(Wp + 1, 16)             # interior row offset in the flat conv buffer
    Rt = OFF + H * Wp + _round_up(Wp + 1, 16)   # total rows of the flat conv buffer
    return dict(C=in_ch, H=H, W=W, Cinp=Cinp, Cop=Cop, Wp=Wp, c0=c0, OFF=OFF, Rt=Rt)


# ---------------------------------------------------------------------------
# Fused Pallas kernel: LN1+ReLU -> conv3x3 -> LN2+ReLU -> conv3x3 -> avgpool
#                      (+ avgpool -> conv1x1 shortcut), one sample per grid step.
# ---------------------------------------------------------------------------
def _res_block_down_kernel(
    x_ref,                 # (1, H, Wp, Cinp)     f32  NHWC input, zero halo cols / pad lanes
    g1_ref, b1_ref,        # (H*Wp, Cinp)         f32  LN1 affine (zeros at padding positions)
    g2_ref, b2_ref,        # (H*Wp, Cinp)         f32  LN2 affine
    w1_ref,                # (9, Cinp, Cinp)      bf16 conv1 3x3 taps
    c1b_ref,               # (1, Cinp)            f32  conv1 bias
    w2_ref,                # (9, Cinp, Cop)       bf16 conv2 3x3 taps
    c2b_ref,               # (1, Cop)             f32  conv2 bias
    wsc_ref,               # (Cinp, Cop)          bf16 shortcut 1x1 weights
    scb_ref,               # (1, Cop)             f32  shortcut bias
    o_ref,                 # (1, H//2, W//2, Cop) f32  output block
    hp_ref,                # scratch (Rt, Cinp)   f32  flat zero-bordered conv input buffer
    *, C, H, W, Wp, c0, OFF,
):
    Cinp = x_ref.shape[-1]
    Cop = o_ref.shape[-1]
    HWp = H * Wp
    Rt = hp_ref.shape[0]
    inv_d = 1.0 / float(C * H * W)               # LN normalizes over the REAL C*H*W
    n_pad = float(HWp * Cinp - H * W * C)        # exact-zero (padding) entries per LN input

    # Re-zero only the border rows of the scratch (the H*Wp interior rows are fully
    # rewritten by every conv prologue below).  Done every step so it stays correct
    # under megacore partitioning of the parallel batch axis.
    hp_ref[0:OFF, :] = jnp.zeros((OFF, Cinp), hp_ref.dtype)
    hp_ref[OFF + HWp:Rt, :] = jnp.zeros((Rt - OFF - HWp, Cinp), hp_ref.dtype)

    x = x_ref[0].reshape(HWp, Cinp)              # (H*Wp, Cinp) f32, zeros at padding

    def ln_relu(v, gamma, beta):
        # v has exact zeros at every padding position, so the mean over the real
        # C*H*W elements is sum(v)*inv_d; the padded entries' (0-mean)^2 contribution
        # to the centered sum of squares is removed exactly (two-pass variance).
        mean = jnp.sum(v, keepdims=True) * inv_d                         # (1, 1)
        d = v - mean
        var = (jnp.sum(d * d, keepdims=True) - n_pad * mean * mean) * inv_d
        rstd = lax.rsqrt(var + 1e-5)
        # gamma/beta are zero at padding positions -> output is exactly zero there,
        # which the conv halo columns and the next LN's statistics rely on.
        return jnp.maximum(d * rstd * gamma + beta, 0.0)

    def conv3x3(h, w_taps_ref):
        # h: (H*Wp, Cinp) f32 with zero halo columns.  One contiguous aligned store
        # into the zero-bordered flat buffer, then 9 *contiguous* row-slab reads at
        # offsets (dh-1)*Wp + (dw-1): bf16 MXU operands, f32 accumulation, no
        # materialized strided slices.
        hp_ref[OFF:OFF + HWp, :] = h
        acc = None
        for dh in range(3):
            for dw in range(3):
                start = OFF + (dh - 1) * Wp + (dw - 1)
                a = hp_ref[start:start + HWp, :].astype(jnp.bfloat16)
                p = jnp.dot(a, w_taps_ref[dh * 3 + dw],
                            preferred_element_type=jnp.float32)
                acc = p if acc is None else acc + p
        return acc                                                       # (H*Wp, cout) f32

    def pool2x2(v):
        # AvgPool2d(2) over the valid image region of a (H*Wp, cdim) tensor laid out
        # on the (H, Wp) padded grid -> (H//2, W//2, cdim).  Pure VPU adds (no GEMM).
        cdim = v.shape[-1]
        t = v.reshape(H // 2, 2 * Wp, cdim)
        tv = t[:, :Wp, :] + t[:, Wp:, :]                 # vertical pair sum
        t2 = tv.reshape(H // 2, Wp // 2, 2, cdim)
        th = t2[:, :, 0, :] + t2[:, :, 1, :]             # horizontal pair sum
        return th[:, c0 // 2:c0 // 2 + W // 2, :] * 0.25

    # ---- block branch ----
    h1 = ln_relu(x, g1_ref[...], b1_ref[...])
    y1 = conv3x3(h1, w1_ref) + c1b_ref[...]              # conv1: Cin -> Cin

    # Outputs at the halo columns of the padded grid are garbage (they read real
    # neighbours); zero them before the LN2 statistics.
    col = lax.broadcasted_iota(jnp.int32, (H, Wp, Cinp), 1).reshape(HWp, Cinp)
    y1 = jnp.where(jnp.logical_and(col >= c0, col < c0 + W), y1, 0.0)

    h2 = ln_relu(y1, g2_ref[...], b2_ref[...])
    y2 = conv3x3(h2, w2_ref)                             # conv2: Cin -> Cout (no bias yet)
    blk = pool2x2(y2) + c2b_ref[...]                     # bias after pool (identical, 4x cheaper)

    # ---- shortcut branch: avgpool(2) -> 1x1 conv ----
    xs = pool2x2(x).reshape((H // 2) * (W // 2), Cinp)
    sc = jnp.dot(xs.astype(jnp.bfloat16), wsc_ref[...],
                 preferred_element_type=jnp.float32) + scb_ref[...]

    o_ref[0] = blk + sc.reshape(H // 2, W // 2, Cop)


# ---------------------------------------------------------------------------
# Host-side wrapper
# ---------------------------------------------------------------------------
def residual_block_down(x_nchw, kparams, out_ch):
    """Forward pass of ResidualBlock(resample='down'). x: (N, C, H, W) f32 (NCHW)."""
    N, C, H, W = x_nchw.shape
    g = kparams["geom"]
    assert (C, H, W) == (g["C"], g["H"], g["W"])
    assert H % 2 == 0 and W % 2 == 0
    Cinp, Cop, Wp, c0, OFF, Rt = g["Cinp"], g["Cop"], g["Wp"], g["c0"], g["OFF"], g["Rt"]
    Ho, Wo = H // 2, W // 2

    # Single layout change at the PyTorch-facing boundary: NCHW -> NHWC with the zero
    # conv-halo columns and an 8-lane channel round-up baked in (no 128x zero padding).
    x = jnp.transpose(x_nchw, (0, 2, 3, 1))
    x = jnp.pad(x, ((0, 0), (0, 0), (c0, Wp - c0 - W), (0, Cinp - C)))

    kernel = functools.partial(
        _res_block_down_kernel, C=C, H=H, W=W, Wp=Wp, c0=c0, OFF=OFF)

    # VMEM budget from the actual (double-buffered) blocks + scratch, capped below the
    # physical VMEM of this chip generation.
    blk_bytes = (
        _phys_bytes((1, H, Wp, Cinp), jnp.float32)
        + 4 * _phys_bytes((H * Wp, Cinp), jnp.float32)
        + _phys_bytes((9, Cinp, Cinp), jnp.bfloat16)
        + _phys_bytes((9, Cinp, Cop), jnp.bfloat16)
        + _phys_bytes((Cinp, Cop), jnp.bfloat16)
        + _phys_bytes((1, Cinp), jnp.float32)
        + 2 * _phys_bytes((1, Cop), jnp.float32)
        + _phys_bytes((1, Ho, Wo, Cop), jnp.float32)
    )
    scratch_bytes = _phys_bytes((Rt, Cinp), jnp.float32)
    needed = 2 * blk_bytes + scratch_bytes + (4 << 20)
    try:
        phys = int(getattr(pltpu.get_tpu_info(), "vmem_capacity_bytes", 64 << 20))
    except Exception:  # noqa: BLE001 - be robust to API / backend differences
        phys = 64 << 20
    vmem_limit = int(min(max(needed, 16 << 20), phys - (8 << 20)))

    out = pl.pallas_call(
        kernel,
        out_shape=jax.ShapeDtypeStruct((N, Ho, Wo, Cop), jnp.float32),
        grid=(N,),
        in_specs=[
            pl.BlockSpec((1, H, Wp, Cinp), lambda n: (n, 0, 0, 0)),   # x
            pl.BlockSpec((H * Wp, Cinp), lambda n: (0, 0)),           # ln1 gamma
            pl.BlockSpec((H * Wp, Cinp), lambda n: (0, 0)),           # ln1 beta
            pl.BlockSpec((H * Wp, Cinp), lambda n: (0, 0)),           # ln2 gamma
            pl.BlockSpec((H * Wp, Cinp), lambda n: (0, 0)),           # ln2 beta
            pl.BlockSpec((9, Cinp, Cinp), lambda n: (0, 0, 0)),       # conv1 weights
            pl.BlockSpec((1, Cinp), lambda n: (0, 0)),                # conv1 bias
            pl.BlockSpec((9, Cinp, Cop), lambda n: (0, 0, 0)),        # conv2 weights
            pl.BlockSpec((1, Cop), lambda n: (0, 0)),                 # conv2 bias
            pl.BlockSpec((Cinp, Cop), lambda n: (0, 0)),              # shortcut weights
            pl.BlockSpec((1, Cop), lambda n: (0, 0)),                 # shortcut bias
        ],
        out_specs=pl.BlockSpec((1, Ho, Wo, Cop), lambda n: (n, 0, 0, 0)),
        scratch_shapes=[pltpu.VMEM((Rt, Cinp), jnp.float32)],
        compiler_params=pltpu.CompilerParams(
            dimension_semantics=("parallel",),    # batch samples are independent
            vmem_limit_bytes=vmem_limit,
        ),
    )(x, kparams["g1"], kparams["b1"], kparams["g2"], kparams["b2"],
      kparams["w1"], kparams["c1b"], kparams["w2"], kparams["c2b"],
      kparams["wsc"], kparams["scb"])

    # Drop channel padding, back to NCHW at the boundary.
    return jnp.transpose(out[..., :out_ch], (0, 3, 1, 2))


# ---------------------------------------------------------------------------
# Parameter init (PyTorch-equivalent shapes, synthetic) + one-time kernel repack
# ---------------------------------------------------------------------------
def init_params(key, in_ch, out_ch, input_dim, k=3):
    def conv_init(kk, kh, kw, ci, co):
        fan_in = kh * kw * ci
        bound = 1.0 / (fan_in ** 0.5)
        wk, bk = jax.random.split(kk)
        w = jax.random.uniform(wk, (kh, kw, ci, co), jnp.float32, -bound, bound)
        b = jax.random.uniform(bk, (co,), jnp.float32, -bound, bound)
        return w, b

    k_sc, k1, k2, kg1, kb1, kg2, kb2 = jax.random.split(key, 7)
    w_sc, b_sc = conv_init(k_sc, 1, 1, in_ch, out_ch)
    w1, b1 = conv_init(k1, k, k, in_ch, in_ch)
    w2, b2 = conv_init(k2, k, k, in_ch, out_ch)
    D = in_ch * input_dim * input_dim
    return dict(
        w_sc=w_sc, b_sc=b_sc, w1=w1, b1=b1, w2=w2, b2=b2,
        ln1_g=1.0 + 0.1 * jax.random.normal(kg1, (D,), jnp.float32),
        ln1_b=0.1 * jax.random.normal(kb1, (D,), jnp.float32),
        ln2_g=1.0 + 0.1 * jax.random.normal(kg2, (D,), jnp.float32),
        ln2_b=0.1 * jax.random.normal(kb2, (D,), jnp.float32),
    )


def prepare_params(params, in_ch, out_ch, input_dim):
    """One-time repack into kernel-friendly, padded layouts."""
    H = W = input_dim
    g = _geometry(in_ch, out_ch, H, W)
    Cinp, Cop, Wp, c0 = g["Cinp"], g["Cop"], g["Wp"], g["c0"]

    def prep_w3(w, co_pad):                              # (3,3,ci,co) -> (9, Cinp, co_pad) bf16
        w = _pad_to(_pad_to(w, 2, Cinp), 3, co_pad)
        return w.reshape(9, Cinp, co_pad).astype(jnp.bfloat16)

    def prep_ln(p):                                      # (C*H*W,) NCHW order -> (H*Wp, Cinp)
        p = p.reshape(in_ch, H, W).transpose(1, 2, 0)    # -> (H, W, C)
        p = _pad_to(p, 2, Cinp)                          # pad channels
        p = jnp.pad(p, ((0, 0), (c0, Wp - c0 - W), (0, 0)))   # zero halo columns
        return p.reshape(H * Wp, Cinp).astype(jnp.float32)

    def prep_b(b, c_pad):
        return _pad_to(b, 0, c_pad).reshape(1, c_pad).astype(jnp.float32)

    return dict(
        geom=g,
        g1=prep_ln(params["ln1_g"]), b1=prep_ln(params["ln1_b"]),
        g2=prep_ln(params["ln2_g"]), b2=prep_ln(params["ln2_b"]),
        w1=prep_w3(params["w1"], Cinp), c1b=prep_b(params["b1"], Cinp),
        w2=prep_w3(params["w2"], Cop), c2b=prep_b(params["b2"], Cop),
        wsc=_pad_to(_pad_to(params["w_sc"].reshape(in_ch, out_ch), 0, Cinp), 1, Cop
                    ).astype(jnp.bfloat16),
        scb=prep_b(params["b_sc"], Cop),
    )


# ---------------------------------------------------------------------------
# Pure-JAX NCHW reference (f32) mirroring the PyTorch module
# ---------------------------------------------------------------------------
def reference_forward(x, params, eps=1e-5):
    def layernorm(v, gamma, beta):
        n = v.shape[0]
        vf = v.reshape(n, -1)
        m = jnp.mean(vf, axis=1, keepdims=True)
        var = jnp.mean((vf - m) ** 2, axis=1, keepdims=True)
        vn = (vf - m) * lax.rsqrt(var + eps)
        return (vn * gamma.reshape(1, -1) + beta.reshape(1, -1)).reshape(v.shape)

    def conv(v, w, b, pad):
        wt = jnp.transpose(w, (3, 2, 0, 1))              # (co, ci, kh, kw)
        out = lax.conv_general_dilated(
            v, wt, window_strides=(1, 1), padding=[(pad, pad), (pad, pad)],
            dimension_numbers=("NCHW", "OIHW", "NCHW"))
        return out + b.reshape(1, -1, 1, 1)

    def avgpool2(v):
        n, c, h, w = v.shape
        return jnp.mean(v.reshape(n, c, h // 2, 2, w // 2, 2), axis=(3, 5))

    sc = conv(avgpool2(x), params["w_sc"], params["b_sc"], 0)
    h = jax.nn.relu(layernorm(x, params["ln1_g"], params["ln1_b"]))
    h = conv(h, params["w1"], params["b1"], 1)
    h = jax.nn.relu(layernorm(h, params["ln2_g"], params["ln2_b"]))
    h = conv(h, params["w2"], params["b2"], 1)
    return sc + avgpool2(h)


if __name__ == "__main__":
    batch, in_ch, out_ch, input_dim = 2, 4, 8, 16
    key = jax.random.PRNGKey(0)
    pkey, xkey = jax.random.split(key)
    params = init_params(pkey, in_ch, out_ch, input_dim)
    kp = prepare_params(params, in_ch, out_ch, input_dim)
    x = jax.random.normal(xkey, (batch, in_ch, input_dim, input_dim), jnp.float32)

    fwd = jax.jit(functools.partial(residual_block_down, kparams=kp, out_ch=out_ch))
    out = fwd(x)
    jax.block_until_ready(out)

    assert out.shape == (batch, out_ch, input_dim // 2, input_dim // 2), out.shape
    assert out.dtype == jnp.float32
    assert bool(jnp.all(jnp.isfinite(out)))

    # Loose sanity check vs the f32 reference (kernel uses bf16 MXU operands).
    ref = reference_forward(x, params)
    max_err = float(jnp.max(jnp.abs(out - ref)))
    assert max_err < 1e-1, f"max abs error vs reference: {max_err}"

    print("KERNEL_OK")
</pallas_src>

<mosaic_0001>
module attributes {stable_mosaic.version = 11 : i64} {
  func.func @_res_block_down_kernel(%arg0: i32, %arg1: memref<1x16x24x8xf32, #tpu.memory_space<vmem>>, %arg2: memref<384x8xf32, #tpu.memory_space<vmem>>, %arg3: memref<384x8xf32, #tpu.memory_space<vmem>>, %arg4: memref<384x8xf32, #tpu.memory_space<vmem>>, %arg5: memref<384x8xf32, #tpu.memory_space<vmem>>, %arg6: memref<9x8x8xbf16, #tpu.memory_space<vmem>>, %arg7: memref<1x8xf32, #tpu.memory_space<vmem>>, %arg8: memref<9x8x8xbf16, #tpu.memory_space<vmem>>, %arg9: memref<1x8xf32, #tpu.memory_space<vmem>>, %arg10: memref<8x8xbf16, #tpu.memory_space<vmem>>, %arg11: memref<1x8xf32, #tpu.memory_space<vmem>>, %arg12: memref<1x8x8x8xf32, #tpu.memory_space<vmem>>, %arg13: memref<448x8xf32, #tpu.memory_space<vmem>>) attributes {dimension_semantics = [#tpu.dimension_semantics<parallel>], iteration_bounds = array<i64: 2>, scalar_prefetch = 0 : i64, scratch_operands = 1 : i64, tpu.core_type = #tpu.core_type<tc>, window_params = [{transform_indices = @transform_0, window_bounds = array<i64: 1, 16, 24, 8>}, {pipeline_mode = #tpu.pipeline_mode<synchronous>, transform_indices = @transform_1, window_bounds = array<i64: 384, 8>}, {pipeline_mode = #tpu.pipeline_mode<synchronous>, transform_indices = @transform_2, window_bounds = array<i64: 384, 8>}, {pipeline_mode = #tpu.pipeline_mode<synchronous>, transform_indices = @transform_3, window_bounds = array<i64: 384, 8>}, {pipeline_mode = #tpu.pipeline_mode<synchronous>, transform_indices = @transform_4, window_bounds = array<i64: 384, 8>}, {pipeline_mode = #tpu.pipeline_mode<synchronous>, transform_indices = @transform_5, window_bounds = array<i64: 9, 8, 8>}, {pipeline_mode = #tpu.pipeline_mode<synchronous>, transform_indices = @transform_6, window_bounds = array<i64: 1, 8>}, {pipeline_mode = #tpu.pipeline_mode<synchronous>, transform_indices = @transform_7, window_bounds = array<i64: 9, 8, 8>}, {pipeline_mode = #tpu.pipeline_mode<synchronous>, transform_indices = @transform_8, window_bounds = array<i64: 1, 8>}, {pipeline_mode = #tpu.pipeline_mode<synchronous>, transform_indices = @transform_9, window_bounds = array<i64: 8, 8>}, {pipeline_mode = #tpu.pipeline_mode<synchronous>, transform_indices = @transform_10, window_bounds = array<i64: 1, 8>}, {transform_indices = @transform_11, window_bounds = array<i64: 1, 8, 8, 8>}]} {
    %cst = arith.constant 0.000000e+00 : f32
    %0 = vector.broadcast %cst : f32 to vector<32x8xf32>
    %c0 = arith.constant 0 : index
    %c0_0 = arith.constant 0 : index
    %1 = vector.load %arg13[%c0, %c0_0] : memref<448x8xf32, #tpu.memory_space<vmem>>, vector<32x8xf32>
    tpu.vector_store %arg13[%c0, %c0_0], %0 {strides = array<i32>} : memref<448x8xf32, #tpu.memory_space<vmem>>, vector<32x8xf32>,
    %cst_1 = arith.constant 0.000000e+00 : f32
    %2 = vector.broadcast %cst_1 : f32 to vector<32x8xf32>
    %c416 = arith.constant 416 : index
    %c0_2 = arith.constant 0 : index
    %3 = vector.load %arg13[%c416, %c0_2] : memref<448x8xf32, #tpu.memory_space<vmem>>, vector<32x8xf32>
    tpu.vector_store %arg13[%c416, %c0_2], %2 {strides = array<i32>} : memref<448x8xf32, #tpu.memory_space<vmem>>, vector<32x8xf32>,
    %c0_3 = arith.constant 0 : index
    %c0_4 = arith.constant 0 : index
    %c0_5 = arith.constant 0 : index
    %c0_6 = arith.constant 0 : index
    %4 = vector.load %arg1[%c0_3, %c0_4, %c0_5, %c0_6] : memref<1x16x24x8xf32, #tpu.memory_space<vmem>>, vector<1x16x24x8xf32>
    %5 = vector.shape_cast %4 : vector<1x16x24x8xf32> to vector<16x24x8xf32>
    %6 = vector.shape_cast %5 : vector<16x24x8xf32> to vector<384x8xf32>
    %c0_7 = arith.constant 0 : index
    %c0_8 = arith.constant 0 : index
    %7 = vector.load %arg2[%c0_7, %c0_8] : memref<384x8xf32, #tpu.memory_space<vmem>>, vector<384x8xf32>
    %c0_9 = arith.constant 0 : index
    %c0_10 = arith.constant 0 : index
    %8 = vector.load %arg3[%c0_9, %c0_10] : memref<384x8xf32, #tpu.memory_space<vmem>>, vector<384x8xf32>
    %9 = vector.shape_cast %6 : vector<384x8xf32> to vector<1x384x8xf32>
    %cst_11 = arith.constant dense<0.000000e+00> : vector<1xf32>
    %10 = vector.multi_reduction <add>, %9, %cst_11 [1, 2] : vector<1x384x8xf32> to vector<1xf32>
    %11 = vector.shape_cast %10 : vector<1xf32> to vector<1x1x1xf32>
    %12 = vector.extract %11[0, 0, 0] : f32 from vector<1x1x1xf32>
    %13 = vector.broadcast %12 : f32 to vector<1x1xf32>
    %cst_12 = arith.constant 9.765625E-4 : f32
    %14 = vector.broadcast %cst_12 : f32 to vector<1x1xf32>
    %15 = arith.mulf %13, %14 : vector<1x1xf32>
    %16 = vector.broadcast %15 : vector<1x1xf32> to vector<384x8xf32>
    %17 = arith.subf %6, %16 : vector<384x8xf32>
    %18 = arith.mulf %17, %17 : vector<384x8xf32>
    %19 = vector.shape_cast %18 : vector<384x8xf32> to vector<1x384x8xf32>
    %cst_13 = arith.constant dense<0.000000e+00> : vector<1xf32>
    %20 = vector.multi_reduction <add>, %19, %cst_13 [1, 2] : vector<1x384x8xf32> to vector<1xf32>
    %21 = vector.shape_cast %20 : vector<1xf32> to vector<1x1x1xf32>
    %22 = vector.extract %21[0, 0, 0] : f32 from vector<1x1x1xf32>
    %23 = vector.broadcast %22 : f32 to vector<1x1xf32>
    %cst_14 = arith.constant 2.048000e+03 : f32
    %24 = vector.broadcast %cst_14 : f32 to vector<1x1xf32>
    %25 = arith.mulf %24, %15 : vector<1x1xf32>
    %26 = arith.mulf %25, %15 : vector<1x1xf32>
    %27 = arith.subf %23, %26 : vector<1x1xf32>
    %cst_15 = arith.constant 9.765625E-4 : f32
    %28 = vector.broadcast %cst_15 : f32 to vector<1x1xf32>
    %29 = arith.mulf %27, %28 : vector<1x1xf32>
    %cst_16 = arith.constant 9.99999974E-6 : f32
    %30 = vector.broadcast %cst_16 : f32 to vector<1x1xf32>
    %31 = arith.addf %29, %30 : vector<1x1xf32>
    %32 = math.rsqrt %31 : vector<1x1xf32>
    %33 = vector.broadcast %32 : vector<1x1xf32> to vector<384x8xf32>
    %34 = arith.mulf %17, %33 : vector<384x8xf32>
    %35 = arith.mulf %34, %7 : vector<384x8xf32>
    %36 = arith.addf %35, %8 : vector<384x8xf32>
    %cst_17 = arith.constant 0.000000e+00 : f32
    %37 = vector.broadcast %cst_17 : f32 to vector<384x8xf32>
    %38 = arith.maximumf %36, %37 : vector<384x8xf32>
    %c32 = arith.constant 32 : index
    %c0_18 = arith.constant 0 : index
    %39 = vector.load %arg13[%c32, %c0_18] : memref<448x8xf32, #tpu.memory_space<vmem>>, vector<384x8xf32>
    tpu.vector_store %arg13[%c32, %c0_18], %38 {strides = array<i32>} : memref<448x8xf32, #tpu.memory_space<vmem>>, vector<384x8xf32>,
    %c7 = arith.constant 7 : index
    %c0_19 = arith.constant 0 : index
    %40 = vector.load %arg13[%c7, %c0_19] : memref<448x8xf32, #tpu.memory_space<vmem>>, vector<384x8xf32>
    %41 = arith.truncf %40 : vector<384x8xf32> to vector<384x8xbf16>
    %c0_20 = arith.constant 0 : index
    %c0_21 = arith.constant 0 : index
    %c0_22 = arith.constant 0 : index
    %42 = vector.load %arg6[%c0_20, %c0_21, %c0_22] : memref<9x8x8xbf16, #tpu.memory_space<vmem>>, vector<1x8x8xbf16>
    %43 = vector.shape_cast %42 : vector<1x8x8xbf16> to vector<8x8xbf16>
    %cst_23 = arith.constant dense<0.000000e+00> : vector<384x8xf32>
    %44 = tpu.matmul %41, %43, %cst_23 {dimension_numbers = #tpu.dot_dimension_numbers<[1], [0], [0], [1], [0, 0, 1, 1], [], []>} : vector<384x8xbf16>, vector<8x8xbf16>, vector<384x8xf32> -> vector<384x8xf32>
    %c8 = arith.constant 8 : index
    %c0_24 = arith.constant 0 : index
    %45 = vector.load %arg13[%c8, %c0_24] : memref<448x8xf32, #tpu.memory_space<vmem>>, vector<384x8xf32>
    %46 = arith.truncf %45 : vector<384x8xf32> to vector<384x8xbf16>
    %c1 = arith.constant 1 : index
    %c0_25 = arith.constant 0 : index
    %c0_26 = arith.constant 0 : index
    %47 = vector.load %arg6[%c1, %c0_25, %c0_26] : memref<9x8x8xbf16, #tpu.memory_space<vmem>>, vector<1x8x8xbf16>
    %48 = vector.shape_cast %47 : vector<1x8x8xbf16> to vector<8x8xbf16>
    %cst_27 = arith.constant dense<0.000000e+00> : vector<384x8xf32>
    %49 = tpu.matmul %46, %48, %cst_27 {dimension_numbers = #tpu.dot_dimension_numbers<[1], [0], [0], [1], [0, 0, 1, 1], [], []>} : vector<384x8xbf16>, vector<8x8xbf16>, vector<384x8xf32> -> vector<384x8xf32>
    %50 = arith.addf %44, %49 : vector<384x8xf32>
    %c9 = arith.constant 9 : index
    %c0_28 = arith.constant 0 : index
    %51 = vector.load %arg13[%c9, %c0_28] : memref<448x8xf32, #tpu.memory_space<vmem>>, vector<384x8xf32>
    %52 = arith.truncf %51 : vector<384x8xf32> to vector<384x8xbf16>
    %c2 = arith.constant 2 : index
    %c0_29 = arith.constant 0 : index
    %c0_30 = arith.constant 0 : index
    %53 = vector.load %arg6[%c2, %c0_29, %c0_30] : memref<9x8x8xbf16, #tpu.memory_space<vmem>>, vector<1x8x8xbf16>
    %54 = vector.shape_cast %53 : vector<1x8x8xbf16> to vector<8x8xbf16>
    %cst_31 = arith.constant dense<0.000000e+00> : vector<384x8xf32>
    %55 = tpu.matmul %52, %54, %cst_31 {dimension_numbers = #tpu.dot_dimension_numbers<[1], [0], [0], [1], [0, 0, 1, 1], [], []>} : vector<384x8xbf16>, vector<8x8xbf16>, vector<384x8xf32> -> vector<384x8xf32>
    %56 = arith.addf %50, %55 : vector<384x8xf32>
    %c31 = arith.constant 31 : index
    %c0_32 = arith.constant 0 : index
    %57 = vector.load %arg13[%c31, %c0_32] : memref<448x8xf32, #tpu.memory_space<vmem>>, vector<384x8xf32>
    %58 = arith.truncf %57 : vector<384x8xf32> to vector<384x8xbf16>
    %c3 = arith.constant 3 : index
    %c0_33 = arith.constant 0 : index
    %c0_34 = arith.constant 0 : index
    %59 = vector.load %arg6[%c3, %c0_33, %c0_34] : memref<9x8x8xbf16, #tpu.memory_space<vmem>>, vector<1x8x8xbf16>
    %60 = vector.shape_cast %59 : vector<1x8x8xbf16> to vector<8x8xbf16>
    %cst_35 = arith.constant dense<0.000000e+00> : vector<384x8xf32>
    %61 = tpu.matmul %58, %60, %cst_35 {dimension_numbers = #tpu.dot_dimension_numbers<[1], [0], [0], [1], [0, 0, 1, 1], [], []>} : vector<384x8xbf16>, vector<8x8xbf16>, vector<384x8xf32> -> vector<384x8xf32>
    %62 = arith.addf %56, %61 : vector<384x8xf32>
    %c32_36 = arith.constant 32 : index
    %c0_37 = arith.constant 0 : index
    %63 = vector.load %arg13[%c32_36, %c0_37] : memref<448x8xf32, #tpu.memory_space<vmem>>, vector<384x8xf32>
    %64 = arith.truncf %63 : vector<384x8xf32> to vector<384x8xbf16>
    %c4 = arith.constant 4 : index
    %c0_38 = arith.constant 0 : index
    %c0_39 = arith.constant 0 : index
    %65 = vector.load %arg6[%c4, %c0_38, %c0_39] : memref<9x8x8xbf16, #tpu.memory_space<vmem>>, vector<1x8x8xbf16>
    %66 = vector.shape_cast %65 : vector<1x8x8xbf16> to vector<8x8xbf16>
    %cst_40 = arith.constant dense<0.000000e+00> : vector<384x8xf32>
    %67 = tpu.matmul %64, %66, %cst_40 {dimension_numbers = #tpu.dot_dimension_numbers<[1], [0], [0], [1], [0, 0, 1, 1], [], []>} : vector<384x8xbf16>, vector<8x8xbf16>, vector<384x8xf32> -> vector<384x8xf32>
    %68 = arith.addf %62, %67 : vector<384x8xf32>
    %c33 = arith.constant 33 : index
    %c0_41 = arith.constant 0 : index
    %69 = vector.load %arg13[%c33, %c0_41] : memref<448x8xf32, #tpu.memory_space<vmem>>, vector<384x8xf32>
    %70 = arith.truncf %69 : vector<384x8xf32> to vector<384x8xbf16>
    %c5 = arith.constant 5 : index
    %c0_42 = arith.constant 0 : index
    %c0_43 = arith.constant 0 : index
    %71 = vector.load %arg6[%c5, %c0_42, %c0_43] : memref<9x8x8xbf16, #tpu.memory_space<vmem>>, vector<1x8x8xbf16>
    %72 = vector.shape_cast %71 : vector<1x8x8xbf16> to vector<8x8xbf16>
    %cst_44 = arith.constant dense<0.000000e+00> : vector<384x8xf32>
    %73 = tpu.matmul %70, %72, %cst_44 {dimension_numbers = #tpu.dot_dimension_numbers<[1], [0], [0], [1], [0, 0, 1, 1], [], []>} : vector<384x8xbf16>, vector<8x8xbf16>, vector<384x8xf32> -> vector<384x8xf32>
    %74 = arith.addf %68, %73 : vector<384x8xf32>
    %c55 = arith.constant 55 : index
    %c0_45 = arith.constant 0 : index
    %75 = vector.load %arg13[%c55, %c0_45] : memref<448x8xf32, #tpu.memory_space<vmem>>, vector<384x8xf32>
    %76 = arith.truncf %75 : vector<384x8xf32> to vector<384x8xbf16>
    %c6 = arith.constant 6 : index
    %c0_46 = arith.constant 0 : index
    %c0_47 = arith.constant 0 : index
    %77 = vector.load %arg6[%c6, %c0_46, %c0_47] : memref<9x8x8xbf16, #tpu.memory_space<vmem>>, vector<1x8x8xbf16>
    %78 = vector.shape_cast %77 : vector<1x8x8xbf16> to vector<8x8xbf16>
    %cst_48 = arith.constant dense<0.000000e+00> : vector<384x8xf32>
    %79 = tpu.matmul %76, %78, %cst_48 {dimension_numbers = #tpu.dot_dimension_numbers<[1], [0], [0], [1], [0, 0, 1, 1], [], []>} : vector<384x8xbf16>, vector<8x8xbf16>, vector<384x8xf32> -> vector<384x8xf32>
    %80 = arith.addf %74, %79 : vector<384x8xf32>
    %c56 = arith.constant 56 : index
    %c0_49 = arith.constant 0 : index
    %81 = vector.load %arg13[%c56, %c0_49] : memref<448x8xf32, #tpu.memory_space<vmem>>, vector<384x8xf32>
    %82 = arith.truncf %81 : vector<384x8xf32> to vector<384x8xbf16>
    %c7_50 = arith.constant 7 : index
    %c0_51 = arith.constant 0 : index
    %c0_52 = arith.constant 0 : index
    %83 = vector.load %arg6[%c7_50, %c0_51, %c0_52] : memref<9x8x8xbf16, #tpu.memory_space<vmem>>, vector<1x8x8xbf16>
    %84 = vector.shape_cast %83 : vector<1x8x8xbf16> to vector<8x8xbf16>
    %cst_53 = arith.constant dense<0.000000e+00> : vector<384x8xf32>
    %85 = tpu.matmul %82, %84, %cst_53 {dimension_numbers = #tpu.dot_dimension_numbers<[1], [0], [0], [1], [0, 0, 1, 1], [], []>} : vector<384x8xbf16>, vector<8x8xbf16>, vector<384x8xf32> -> vector<384x8xf32>
    %86 = arith.addf %80, %85 : vector<384x8xf32>
    %c57 = arith.constant 57 : index
    %c0_54 = arith.constant 0 : index
    %87 = vector.load %arg13[%c57, %c0_54] : memref<448x8xf32, #tpu.memory_space<vmem>>, vector<384x8xf32>
    %88 = arith.truncf %87 : vector<384x8xf32> to vector<384x8xbf16>
    %c8_55 = arith.constant 8 : index
    %c0_56 = arith.constant 0 : index
    %c0_57 = arith.constant 0 : index
    %89 = vector.load %arg6[%c8_55, %c0_56, %c0_57] : memref<9x8x8xbf16, #tpu.memory_space<vmem>>, vector<1x8x8xbf16>
    %90 = vector.shape_cast %89 : vector<1x8x8xbf16> to vector<8x8xbf16>
    %cst_58 = arith.constant dense<0.000000e+00> : vector<384x8xf32>
    %91 = tpu.matmul %88, %90, %cst_58 {dimension_numbers = #tpu.dot_dimension_numbers<[1], [0], [0], [1], [0, 0, 1, 1], [], []>} : vector<384x8xbf16>, vector<8x8xbf16>, vector<384x8xf32> -> vector<384x8xf32>
    %92 = arith.addf %86, %91 : vector<384x8xf32>
    %c0_59 = arith.constant 0 : index
    %c0_60 = arith.constant 0 : index
    %93 = vector.load %arg7[%c0_59, %c0_60] : memref<1x8xf32, #tpu.memory_space<vmem>>, vector<1x8xf32>
    %94 = vector.broadcast %93 : vector<1x8xf32> to vector<384x8xf32>
    %95 = arith.addf %92, %94 : vector<384x8xf32>
    %96 = tpu.iota {dimensions = array<i32: 1>} : vector<16x24x8xi32>
    %97 = vector.shape_cast %96 : vector<16x24x8xi32> to vector<384x8xi32>
    %c4_i32 = arith.constant 4 : i32
    %98 = vector.broadcast %c4_i32 : i32 to vector<384x8xi32>
    %99 = arith.cmpi sge, %97, %98 : vector<384x8xi32>
    %c20_i32 = arith.constant 20 : i32
    %100 = vector.broadcast %c20_i32 : i32 to vector<384x8xi32>
    %101 = arith.cmpi slt, %97, %100 : vector<384x8xi32>
    %102 = arith.andi %99, %101 : vector<384x8xi1>
    %cst_61 = arith.constant 0.000000e+00 : f32
    %103 = vector.broadcast %cst_61 : f32 to vector<384x8xf32>
    %104 = arith.select %102, %95, %103 : vector<384x8xi1>, vector<384x8xf32>
    %c0_62 = arith.constant 0 : index
    %c0_63 = arith.constant 0 : index
    %105 = vector.load %arg4[%c0_62, %c0_63] : memref<384x8xf32, #tpu.memory_space<vmem>>, vector<384x8xf32>
    %c0_64 = arith.constant 0 : index
    %c0_65 = arith.constant 0 : index
    %106 = vector.load %arg5[%c0_64, %c0_65] : memref<384x8xf32, #tpu.memory_space<vmem>>, vector<384x8xf32>
    %107 = vector.shape_cast %104 : vector<384x8xf32> to vector<1x384x8xf32>
    %cst_66 = arith.constant dense<0.000000e+00> : vector<1xf32>
    %108 = vector.multi_reduction <add>, %107, %cst_66 [1, 2] : vector<1x384x8xf32> to vector<1xf32>
    %109 = vector.shape_cast %108 : vector<1xf32> to vector<1x1x1xf32>
    %110 = vector.extract %109[0, 0, 0] : f32 from vector<1x1x1xf32>
    %111 = vector.broadcast %110 : f32 to vector<1x1xf32>
    %cst_67 = arith.constant 9.765625E-4 : f32
    %112 = vector.broadcast %cst_67 : f32 to vector<1x1xf32>
    %113 = arith.mulf %111, %112 : vector<1x1xf32>
    %114 = vector.broadcast %113 : vector<1x1xf32> to vector<384x8xf32>
    %115 = arith.subf %104, %114 : vector<384x8xf32>
    %116 = arith.mulf %115, %115 : vector<384x8xf32>
    %117 = vector.shape_cast %116 : vector<384x8xf32> to vector<1x384x8xf32>
    %cst_68 = arith.constant dense<0.000000e+00> : vector<1xf32>
    %118 = vector.multi_reduction <add>, %117, %cst_68 [1, 2] : vector<1x384x8xf32> to vector<1xf32>
    %119 = vector.shape_cast %118 : vector<1xf32> to vector<1x1x1xf32>
    %120 = vector.extract %119[0, 0, 0] : f32 from vector<1x1x1xf32>
    %121 = vector.broadcast %120 : f32 to vector<1x1xf32>
    %cst_69 = arith.constant 2.048000e+03 : f32
    %122 = vector.broadcast %cst_69 : f32 to vector<1x1xf32>
    %123 = arith.mulf %122, %113 : vector<1x1xf32>
    %124 = arith.mulf %123, %113 : vector<1x1xf32>
    %125 = arith.subf %121, %124 : vector<1x1xf32>
    %cst_70 = arith.constant 9.765625E-4 : f32
    %126 = vector.broadcast %cst_70 : f32 to vector<1x1xf32>
    %127 = arith.mulf %125, %126 : vector<1x1xf32>
    %cst_71 = arith.constant 9.99999974E-6 : f32
    %128 = vector.broadcast %cst_71 : f32 to vector<1x1xf32>
    %129 = arith.addf %127, %128 : vector<1x1xf32>
    %130 = math.rsqrt %129 : vector<1x1xf32>
    %131 = vector.broadcast %130 : vector<1x1xf32> to vector<384x8xf32>
    %132 = arith.mulf %115, %131 : vector<384x8xf32>
    %133 = arith.mulf %132, %105 : vector<384x8xf32>
    %134 = arith.addf %133, %106 : vector<384x8xf32>
    %cst_72 = arith.constant 0.000000e+00 : f32
    %135 = vector.broadcast %cst_72 : f32 to vector<384x8xf32>
    %136 = arith.maximumf %134, %135 : vector<384x8xf32>
    %c32_73 = arith.constant 32 : index
    %c0_74 = arith.constant 0 : index
    %137 = vector.load %arg13[%c32_73, %c0_74] : memref<448x8xf32, #tpu.memory_space<vmem>>, vector<384x8xf32>
    tpu.vector_store %arg13[%c32_73, %c0_74], %136 {strides = array<i32>} : memref<448x8xf32, #tpu.memory_space<vmem>>, vector<384x8xf32>,
    %c7_75 = arith.constant 7 : index
    %c0_76 = arith.constant 0 : index
    %138 = vector.load %arg13[%c7_75, %c0_76] : memref<448x8xf32, #tpu.memory_space<vmem>>, vector<384x8xf32>
    %139 = arith.truncf %138 : vector<384x8xf32> to vector<384x8xbf16>
    %c0_77 = arith.constant 0 : index
    %c0_78 = arith.constant 0 : index
    %c0_79 = arith.constant 0 : index
    %140 = vector.load %arg8[%c0_77, %c0_78, %c0_79] : memref<9x8x8xbf16, #tpu.memory_space<vmem>>, vector<1x8x8xbf16>
    %141 = vector.shape_cast %140 : vector<1x8x8xbf16> to vector<8x8xbf16>
    %cst_80 = arith.constant dense<0.000000e+00> : vector<384x8xf32>
    %142 = tpu.matmul %139, %141, %cst_80 {dimension_numbers = #tpu.dot_dimension_numbers<[1], [0], [0], [1], [0, 0, 1, 1], [], []>} : vector<384x8xbf16>, vector<8x8xbf16>, vector<384x8xf32> -> vector<384x8xf32>
    %c8_81 = arith.constant 8 : index
    %c0_82 = arith.constant 0 : index
    %143 = vector.load %arg13[%c8_81, %c0_82] : memref<448x8xf32, #tpu.memory_space<vmem>>, vector<384x8xf32>
    %144 = arith.truncf %143 : vector<384x8xf32> to vector<384x8xbf16>
    %c1_83 = arith.constant 1 : index
    %c0_84 = arith.constant 0 : index
    %c0_85 = arith.constant 0 : index
    %145 = vector.load %arg8[%c1_83, %c0_84, %c0_85] : memref<9x8x8xbf16, #tpu.memory_space<vmem>>, vector<1x8x8xbf16>
    %146 = vector.shape_cast %145 : vector<1x8x8xbf16> to vector<8x8xbf16>
    %cst_86 = arith.constant dense<0.000000e+00> : vector<384x8xf32>
    %147 = tpu.matmul %144, %146, %cst_86 {dimension_numbers = #tpu.dot_dimension_numbers<[1], [0], [0], [1], [0, 0, 1, 1], [], []>} : vector<384x8xbf16>, vector<8x8xbf16>, vector<384x8xf32> -> vector<384x8xf32>
    %148 = arith.addf %142, %147 : vector<384x8xf32>
    %c9_87 = arith.constant 9 : index
    %c0_88 = arith.constant 0 : index
    %149 = vector.load %arg13[%c9_87, %c0_88] : memref<448x8xf32, #tpu.memory_space<vmem>>, vector<384x8xf32>
    %150 = arith.truncf %149 : vector<384x8xf32> to vector<384x8xbf16>
    %c2_89 = arith.constant 2 : index
    %c0_90 = arith.constant 0 : index
    %c0_91 = arith.constant 0 : index
    %151 = vector.load %arg8[%c2_89, %c0_90, %c0_91] : memref<9x8x8xbf16, #tpu.memory_space<vmem>>, vector<1x8x8xbf16>
    %152 = vector.shape_cast %151 : vector<1x8x8xbf16> to vector<8x8xbf16>
    %cst_92 = arith.constant dense<0.000000e+00> : vector<384x8xf32>
    %153 = tpu.matmul %150, %152, %cst_92 {dimension_numbers = #tpu.dot_dimension_numbers<[1], [0], [0], [1], [0, 0, 1, 1], [], []>} : vector<384x8xbf16>, vector<8x8xbf16>, vector<384x8xf32> -> vector<384x8xf32>
    %154 = arith.addf %148, %153 : vector<384x8xf32>
    %c31_93 = arith.constant 31 : index
    %c0_94 = arith.constant 0 : index
    %155 = vector.load %arg13[%c31_93, %c0_94] : memref<448x8xf32, #tpu.memory_space<vmem>>, vector<384x8xf32>
    %156 = arith.truncf %155 : vector<384x8xf32> to vector<384x8xbf16>
    %c3_95 = arith.constant 3 : index
    %c0_96 = arith.constant 0 : index
    %c0_97 = arith.constant 0 : index
    %157 = vector.load %arg8[%c3_95, %c0_96, %c0_97] : memref<9x8x8xbf16, #tpu.memory_space<vmem>>, vector<1x8x8xbf16>
    %158 = vector.shape_cast %157 : vector<1x8x8xbf16> to vector<8x8xbf16>
    %cst_98 = arith.constant dense<0.000000e+00> : vector<384x8xf32>
    %159 = tpu.matmul %156, %158, %cst_98 {dimension_numbers = #tpu.dot_dimension_numbers<[1], [0], [0], [1], [0, 0, 1, 1], [], []>} : vector<384x8xbf16>, vector<8x8xbf16>, vector<384x8xf32> -> vector<384x8xf32>
    %160 = arith.addf %154, %159 : vector<384x8xf32>
    %c32_99 = arith.constant 32 : index
    %c0_100 = arith.constant 0 : index
    %161 = vector.load %arg13[%c32_99, %c0_100] : memref<448x8xf32, #tpu.memory_space<vmem>>, vector<384x8xf32>
    %162 = arith.truncf %161 : vector<384x8xf32> to vector<384x8xbf16>
    %c4_101 = arith.constant 4 : index
    %c0_102 = arith.constant 0 : index
    %c0_103 = arith.constant 0 : index
    %163 = vector.load %arg8[%c4_101, %c0_102, %c0_103] : memref<9x8x8xbf16, #tpu.memory_space<vmem>>, vector<1x8x8xbf16>
    %164 = vector.shape_cast %163 : vector<1x8x8xbf16> to vector<8x8xbf16>
    %cst_104 = arith.constant dense<0.000000e+00> : vector<384x8xf32>
    %165 = tpu.matmul %162, %164, %cst_104 {dimension_numbers = #tpu.dot_dimension_numbers<[1], [0], [0], [1], [0, 0, 1, 1], [], []>} : vector<384x8xbf16>, vector<8x8xbf16>, vector<384x8xf32> -> vector<384x8xf32>
    %166 = arith.addf %160, %165 : vector<384x8xf32>
    %c33_105 = arith.constant 33 : index
    %c0_106 = arith.constant 0 : index
    %167 = vector.load %arg13[%c33_105, %c0_106] : memref<448x8xf32, #tpu.memory_space<vmem>>, vector<384x8xf32>
    %168 = arith.truncf %167 : vector<384x8xf32> to vector<384x8xbf16>
    %c5_107 = arith.constant 5 : index
    %c0_108 = arith.constant 0 : index
    %c0_109 = arith.constant 0 : index
    %169 = vector.load %arg8[%c5_107, %c0_108, %c0_109] : memref<9x8x8xbf16, #tpu.memory_space<vmem>>, vector<1x8x8xbf16>
    %170 = vector.shape_cast %169 : vector<1x8x8xbf16> to vector<8x8xbf16>
    %cst_110 = arith.constant dense<0.000000e+00> : vector<384x8xf32>
    %171 = tpu.matmul %168, %170, %cst_110 {dimension_numbers = #tpu.dot_dimension_numbers<[1], [0], [0], [1], [0, 0, 1, 1], [], []>} : vector<384x8xbf16>, vector<8x8xbf16>, vector<384x8xf32> -> vector<384x8xf32>
    %172 = arith.addf %166, %171 : vector<384x8xf32>
    %c55_111 = arith.constant 55 : index
    %c0_112 = arith.constant 0 : index
    %173 = vector.load %arg13[%c55_111, %c0_112] : memref<448x8xf32, #tpu.memory_space<vmem>>, vector<384x8xf32>
    %174 = arith.truncf %173 : vector<384x8xf32> to vector<384x8xbf16>
    %c6_113 = arith.constant 6 : index
    %c0_114 = arith.constant 0 : index
    %c0_115 = arith.constant 0 : index
    %175 = vector.load %arg8[%c6_113, %c0_114, %c0_115] : memref<9x8x8xbf16, #tpu.memory_space<vmem>>, vector<1x8x8xbf16>
    %176 = vector.shape_cast %175 : vector<1x8x8xbf16> to vector<8x8xbf16>
    %cst_116 = arith.constant dense<0.000000e+00> : vector<384x8xf32>
    %177 = tpu.matmul %174, %176, %cst_116 {dimension_numbers = #tpu.dot_dimension_numbers<[1], [0], [0], [1], [0, 0, 1, 1], [], []>} : vector<384x8xbf16>, vector<8x8xbf16>, vector<384x8xf32> -> vector<384x8xf32>
    %178 = arith.addf %172, %177 : vector<384x8xf32>
    %c56_117 = arith.constant 56 : index
    %c0_118 = arith.constant 0 : index
    %179 = vector.load %arg13[%c56_117, %c0_118] : memref<448x8xf32, #tpu.memory_space<vmem>>, vector<384x8xf32>
    %180 = arith.truncf %179 : vector<384x8xf32> to vector<384x8xbf16>
    %c7_119 = arith.constant 7 : index
    %c0_120 = arith.constant 0 : index
    %c0_121 = arith.constant 0 : index
    %181 = vector.load %arg8[%c7_119, %c0_120, %c0_121] : memref<9x8x8xbf16, #tpu.memory_space<vmem>>, vector<1x8x8xbf16>
    %182 = vector.shape_cast %181 : vector<1x8x8xbf16> to vector<8x8xbf16>
    %cst_122 = arith.constant dense<0.000000e+00> : vector<384x8xf32>
    %183 = tpu.matmul %180, %182, %cst_122 {dimension_numbers = #tpu.dot_dimension_numbers<[1], [0], [0], [1], [0, 0, 1, 1], [], []>} : vector<384x8xbf16>, vector<8x8xbf16>, vector<384x8xf32> -> vector<384x8xf32>
    %184 = arith.addf %178, %183 : vector<384x8xf32>
    %c57_123 = arith.constant 57 : index
    %c0_124 = arith.constant 0 : index
    %185 = vector.load %arg13[%c57_123, %c0_124] : memref<448x8xf32, #tpu.memory_space<vmem>>, vector<384x8xf32>
    %186 = arith.truncf %185 : vector<384x8xf32> to vector<384x8xbf16>
    %c8_125 = arith.constant 8 : index
    %c0_126 = arith.constant 0 : index
    %c0_127 = arith.constant 0 : index
    %187 = vector.load %arg8[%c8_125, %c0_126, %c0_127] : memref<9x8x8xbf16, #tpu.memory_space<vmem>>, vector<1x8x8xbf16>
    %188 = vector.shape_cast %187 : vector<1x8x8xbf16> to vector<8x8xbf16>
    %cst_128 = arith.constant dense<0.000000e+00> : vector<384x8xf32>
    %189 = tpu.matmul %186, %188, %cst_128 {dimension_numbers = #tpu.dot_dimension_numbers<[1], [0], [0], [1], [0, 0, 1, 1], [], []>} : vector<384x8xbf16>, vector<8x8xbf16>, vector<384x8xf32> -> vector<384x8xf32>
    %190 = arith.addf %184, %189 : vector<384x8xf32>
    %191 = vector.shape_cast %190 : vector<384x8xf32> to vector<8x48x8xf32>
    %192 = vector.extract_strided_slice %191 {offsets = [0, 0, 0], sizes = [8, 24, 8], strides = [1, 1, 1]} : vector<8x48x8xf32> to vector<8x24x8xf32>
    %193 = vector.extract_strided_slice %191 {offsets = [0, 24, 0], sizes = [8, 24, 8], strides = [1, 1, 1]} : vector<8x48x8xf32> to vector<8x24x8xf32>
    %194 = arith.addf %192, %193 : vector<8x24x8xf32>
    %195 = vector.shape_cast %194 : vector<8x24x8xf32> to vector<8x12x2x8xf32>
    %196 = vector.extract_strided_slice %195 {offsets = [0, 0, 0, 0], sizes = [8, 12, 1, 8], strides = [1, 1, 1, 1]} : vector<8x12x2x8xf32> to vector<8x12x1x8xf32>
    %197 = vector.shape_cast %196 : vector<8x12x1x8xf32> to vector<8x12x8xf32>
    %198 = vector.extract_strided_slice %195 {offsets = [0, 0, 1, 0], sizes = [8, 12, 1, 8], strides = [1, 1, 1, 1]} : vector<8x12x2x8xf32> to vector<8x12x1x8xf32>
    %199 = vector.shape_cast %198 : vector<8x12x1x8xf32> to vector<8x12x8xf32>
    %200 = arith.addf %197, %199 : vector<8x12x8xf32>
    %201 = vector.extract_strided_slice %200 {offsets = [0, 2, 0], sizes = [8, 8, 8], strides = [1, 1, 1]} : vector<8x12x8xf32> to vector<8x8x8xf32>
    %cst_129 = arith.constant 2.500000e-01 : f32
    %202 = vector.broadcast %cst_129 : f32 to vector<8x8x8xf32>
    %203 = arith.mulf %201, %202 : vector<8x8x8xf32>
    %c0_130 = arith.constant 0 : index
    %c0_131 = arith.constant 0 : index
    %204 = vector.load %arg9[%c0_130, %c0_131] : memref<1x8xf32, #tpu.memory_space<vmem>>, vector<1x8xf32>
    %205 = vector.shape_cast %204 : vector<1x8xf32> to vector<1x1x8xf32>
    %206 = vector.broadcast %205 : vector<1x1x8xf32> to vector<8x8x8xf32>
    %207 = arith.addf %203, %206 : vector<8x8x8xf32>
    %208 = vector.shape_cast %6 : vector<384x8xf32> to vector<8x48x8xf32>
    %209 = vector.extract_strided_slice %208 {offsets = [0, 0, 0], sizes = [8, 24, 8], strides = [1, 1, 1]} : vector<8x48x8xf32> to vector<8x24x8xf32>
    %210 = vector.extract_strided_slice %208 {offsets = [0, 24, 0], sizes = [8, 24, 8], strides = [1, 1, 1]} : vector<8x48x8xf32> to vector<8x24x8xf32>
    %211 = arith.addf %209, %210 : vector<8x24x8xf32>
    %212 = vector.shape_cast %211 : vector<8x24x8xf32> to vector<8x12x2x8xf32>
    %213 = vector.extract_strided_slice %212 {offsets = [0, 0, 0, 0], sizes = [8, 12, 1, 8], strides = [1, 1, 1, 1]} : vector<8x12x2x8xf32> to vector<8x12x1x8xf32>
    %214 = vector.shape_cast %213 : vector<8x12x1x8xf32> to vector<8x12x8xf32>
    %215 = vector.extract_strided_slice %212 {offsets = [0, 0, 1, 0], sizes = [8, 12, 1, 8], strides = [1, 1, 1, 1]} : vector<8x12x2x8xf32> to vector<8x12x1x8xf32>
    %216 = vector.shape_cast %215 : vector<8x12x1x8xf32> to vector<8x12x8xf32>
    %217 = arith.addf %214, %216 : vector<8x12x8xf32>
    %218 = vector.extract_strided_slice %217 {offsets = [0, 2, 0], sizes = [8, 8, 8], strides = [1, 1, 1]} : vector<8x12x8xf32> to vector<8x8x8xf32>
    %cst_132 = arith.constant 2.500000e-01 : f32
    %219 = vector.broadcast %cst_132 : f32 to vector<8x8x8xf32>
    %220 = arith.mulf %218, %219 : vector<8x8x8xf32>
    %221 = vector.shape_cast %220 : vector<8x8x8xf32> to vector<64x8xf32>
    %222 = arith.truncf %221 : vector<64x8xf32> to vector<64x8xbf16>
    %c0_133 = arith.constant 0 : index
    %c0_134 = arith.constant 0 : index
    %223 = vector.load %arg10[%c0_133, %c0_134] : memref<8x8xbf16, #tpu.memory_space<vmem>>, vector<8x8xbf16>
    %cst_135 = arith.constant dense<0.000000e+00> : vector<64x8xf32>
    %224 = tpu.matmul %222, %223, %cst_135 {dimension_numbers = #tpu.dot_dimension_numbers<[1], [0], [0], [1], [0, 0, 1, 1], [], []>} : vector<64x8xbf16>, vector<8x8xbf16>, vector<64x8xf32> -> vector<64x8xf32>
    %c0_136 = arith.constant 0 : index
    %c0_137 = arith.constant 0 : index
    %225 = vector.load %arg11[%c0_136, %c0_137] : memref<1x8xf32, #tpu.memory_space<vmem>>, vector<1x8xf32>
    %226 = vector.broadcast %225 : vector<1x8xf32> to vector<64x8xf32>
    %227 = arith.addf %224, %226 : vector<64x8xf32>
    %228 = vector.shape_cast %227 : vector<64x8xf32> to vector<8x8x8xf32>
    %229 = arith.addf %207, %228 : vector<8x8x8xf32>
    %c0_138 = arith.constant 0 : index
    %c0_139 = arith.constant 0 : index
    %c0_140 = arith.constant 0 : index
    %c0_141 = arith.constant 0 : index
    %230 = vector.load %arg12[%c0_138, %c0_139, %c0_140, %c0_141] : memref<1x8x8x8xf32, #tpu.memory_space<vmem>>, vector<1x8x8x8xf32>
    %231 = vector.shape_cast %230 : vector<1x8x8x8xf32> to vector<8x8x8xf32>
    %232 = vector.shape_cast %229 : vector<8x8x8xf32> to vector<1x8x8x8xf32>
    tpu.vector_store %arg12[%c0_138, %c0_139, %c0_140, %c0_141], %232 {strides = array<i32>} : memref<1x8x8x8xf32, #tpu.memory_space<vmem>>, vector<1x8x8x8xf32>,
    return
  }
  func.func @transform_0(%arg0: i32) -> (i32, i32, i32, i32) {
    %c0_i32 = arith.constant 0 : i32
    %c0_i32_0 = arith.constant 0 : i32
    %c0_i32_1 = arith.constant 0 : i32
    %c0_i32_2 = arith.constant 0 : i32
    return %arg0, %c0_i32, %c0_i32_0, %c0_i32_1 : i32, i32, i32, i32
  }
  func.func @transform_1(%arg0: i32) -> (i32, i32) {
    %c0_i32 = arith.constant 0 : i32
    %c0_i32_0 = arith.constant 0 : i32
    %c0_i32_1 = arith.constant 0 : i32
    return %c0_i32, %c0_i32_0 : i32, i32
  }
  func.func @transform_2(%arg0: i32) -> (i32, i32) {
    %c0_i32 = arith.constant 0 : i32
    %c0_i32_0 = arith.constant 0 : i32
    %c0_i32_1 = arith.constant 0 : i32
    return %c0_i32, %c0_i32_0 : i32, i32
  }
  func.func @transform_3(%arg0: i32) -> (i32, i32) {
    %c0_i32 = arith.constant 0 : i32
    %c0_i32_0 = arith.constant 0 : i32
    %c0_i32_1 = arith.constant 0 : i32
    return %c0_i32, %c0_i32_0 : i32, i32
  }
  func.func @transform_4(%arg0: i32) -> (i32, i32) {
    %c0_i32 = arith.constant 0 : i32
    %c0_i32_0 = arith.constant 0 : i32
    %c0_i32_1 = arith.constant 0 : i32
    return %c0_i32, %c0_i32_0 : i32, i32
  }
  func.func @transform_5(%arg0: i32) -> (i32, i32, i32) {
    %c0_i32 = arith.constant 0 : i32
    %c0_i32_0 = arith.constant 0 : i32
    %c0_i32_1 = arith.constant 0 : i32
    %c0_i32_2 = arith.constant 0 : i32
    return %c0_i32, %c0_i32_0, %c0_i32_1 : i32, i32, i32
  }
  func.func @transform_6(%arg0: i32) -> (i32, i32) {
    %c0_i32 = arith.constant 0 : i32
    %c0_i32_0 = arith.constant 0 : i32
    %c0_i32_1 = arith.constant 0 : i32
    return %c0_i32, %c0_i32_0 : i32, i32
  }
  func.func @transform_7(%arg0: i32) -> (i32, i32, i32) {
    %c0_i32 = arith.constant 0 : i32
    %c0_i32_0 = arith.constant 0 : i32
    %c0_i32_1 = arith.constant 0 : i32
    %c0_i32_2 = arith.constant 0 : i32
    return %c0_i32, %c0_i32_0, %c0_i32_1 : i32, i32, i32
  }
  func.func @transform_8(%arg0: i32) -> (i32, i32) {
    %c0_i32 = arith.constant 0 : i32
    %c0_i32_0 = arith.constant 0 : i32
    %c0_i32_1 = arith.constant 0 : i32
    return %c0_i32, %c0_i32_0 : i32, i32
  }
  func.func @transform_9(%arg0: i32) -> (i32, i32) {
    %c0_i32 = arith.constant 0 : i32
    %c0_i32_0 = arith.constant 0 : i32
    %c0_i32_1 = arith.constant 0 : i32
    return %c0_i32, %c0_i32_0 : i32, i32
  }
  func.func @transform_10(%arg0: i32) -> (i32, i32) {
    %c0_i32 = arith.constant 0 : i32
    %c0_i32_0 = arith.constant 0 : i32
    %c0_i32_1 = arith.constant 0 : i32
    return %c0_i32, %c0_i32_0 : i32, i32
  }
  func.func @transform_11(%arg0: i32) -> (i32, i32, i32, i32) {
    %c0_i32 = arith.constant 0 : i32
    %c0_i32_0 = arith.constant 0 : i32
    %c0_i32_1 = arith.constant 0 : i32
    %c0_i32_2 = arith.constant 0 : i32
    return %arg0, %c0_i32, %c0_i32_0, %c0_i32_1 : i32, i32, i32, i32
  }
}

</mosaic_0001>

<bundles_post_ra>
// kernel: residual_block_down.1
= control target key start
LH: loop header
LB: loop body
LE: loop exit
PB: predicated region body
PF: predicated region fallthrough
CT: control target
= control target key end

     0   :  { %s14814_s17 = smov 0   ;;  %s20579_s0 = inlined_call_operand.vmem [shape: f32[2,16,24,8], index: 0, kind: input, shape index: {}]   ;;  %s20580_s1 = inlined_call_operand.vmem [shape: f32[384,8], index: 1, kind: input, shape index: {}]   ;;  %s20581_s2 = inlined_call_operand.vmem [shape: f32[384,8], index: 2, kind: input, shape index: {}]   ;;  %s20582_s3 = inlined_call_operand.vmem [shape: f32[384,8], index: 3, kind: input, shape index: {}]   ;;  %s20583_s4 = inlined_call_operand.vmem [shape: f32[384,8], index: 4, kind: input, shape index: {}]   ;;  %s20584_s5 = inlined_call_operand.vmem [shape: bf16[9,8,8], index: 5, kind: input, shape index: {}]   ;;  %s20585_s6 = inlined_call_operand.vmem [shape: f32[1,8], index: 6, kind: input, shape index: {}]   ;;  %s20586_s7 = inlined_call_operand.vmem [shape: bf16[9,8,8], index: 7, kind: input, shape index: {}]   ;;  %s20587_s8 = inlined_call_operand.vmem [shape: f32[1,8], index: 8, kind: input, shape index: {}]   ;;  %s20588_s9 = inlined_call_operand.vmem [shape: bf16[8,8], index: 9, kind: input, shape index: {}]   ;;  %s20589_s10 = inlined_call_operand.vmem [shape: f32[1,8], index: 10, kind: input, shape index: {}]   ;;  %s20590_s11 = inlined_call_operand.vmem [shape: f32[2,8,8,8], index: 11, kind: output, shape index: {}]  }
   0x1 LB: > { %s11923_s18 = sadd.s32 4294967295, %s14750_s17   ;;  %p11927_p0 = scmp.ge.s32.totalorder %s14750_s17, 1  ;;  %s14750_s17 = sphi %s14814_s17, %s21_s17  }
   0x2   : > { %p337_p1 = scmp.lt.s32.totalorder %s14750_s17, 3 }
   0x4   : > { %p338_p2 = pnand %p11927_p0, %p337_p1 }
   0x6   : > { %341 = sbr.rel (%p338_p2) target bundleno = 3526 (0xdc6), region = 64 }
   0xd   : > { %p377_p3 = scmp.lt.s32.totalorder %s11923_s18, 1  ;;  %vm388_vm0 = vcmask 64512   ;;  %vm1313_vm1 = vcmask 1043456   ;;  %vm10970_vm4 = vcmask 1041409   ;;  %vm10973_vm5 = vcmask 1042434  }
   0xe   : > { %vm10976_vm6 = vcmask 1043459   ;;  %vm10979_vm7 = vcmask 1044484   ;;  %vm10982_vm8 = vcmask 1045509   ;;  %vm10985_vm9 = vcmask 1046534  }
   0xf   : > { %s21751_s18 = smov (!%p377_p3, %s11923_s18), 1  ;;  %vm10988_vm10 = vcmask 1047559  }
  0x10   : > { %s14672_s19 = smul.u32 384, %s21751_s18  ;;  %s12516_s21 = sshll.u32 %s21751_s18, 6 }
  0x11   : > { %s20103_s24 = scalar_lea.vmem %s20590_s11, %s12516_s21 }
  0x12   : > { %s14828_s22 = scalar_lea.vmem %s20579_s0, %s14672_s19 }
  0x13   : > { %v14831_v0 = vld [vmem:[%s14828_s22] sm:$0xff]  ;;  %v14834_v1 = vld [vmem:[%s14828_s22 + $0x8] sm:$0xff]  ;;  %v14837_v2 = vld [vmem:[%s14828_s22 + $0x10] sm:$0xff] }
  0x14   : > { %v14840_v3 = vld [vmem:[%s14828_s22 + $0x18] sm:$0xff]  ;;  %v541_v4 = vsel %vm388_vm0, %v14831_v0, 0.0  ;;  %v542_v5 = vsel %vm388_vm0, %v14834_v1, 0.0  ;;  %v544_v6 = vsel %vm388_vm0, %v14837_v2, 0.0  ;;  %v14849_v7 = vld [vmem:[%s14828_s22 + $0x20] sm:$0xff]  ;;  %v14854_v10 = vld [vmem:[%s14828_s22 + $0x28] sm:$0xff] }
  0x15   : > { %v543_v8 = vadd.f32 %v542_v5, %v541_v4  ;;  %v546_v9 = vsel %vm388_vm0, %v14840_v3, 0.0  ;;  %v548_v12 = vsel %vm388_vm0, %v14849_v7, 0.0  ;;  %v14859_v13 = vld [vmem:[%s14828_s22 + $0x30] sm:$0xff]  ;;  %v550_v15 = vsel %vm388_vm0, %v14854_v10, 0.0  ;;  %v14864_v16 = vld [vmem:[%s14828_s22 + $0x38] sm:$0xff]  ;;  %v14869_v19 = vld [vmem:[%s14828_s22 + $0x40] sm:$0xff] }
  0x16   : > { %v552_v18 = vsel %vm388_vm0, %v14859_v13, 0.0  ;;  %v554_v21 = vsel %vm388_vm0, %v14864_v16, 0.0  ;;  %v14874_v22 = vld [vmem:[%s14828_s22 + $0x48] sm:$0xff]  ;;  %v556_v24 = vsel %vm388_vm0, %v14869_v19, 0.0  ;;  %v14879_v25 = vld [vmem:[%s14828_s22 + $0x50] sm:$0xff]  ;;  %v14884_v28 = vld [vmem:[%s14828_s22 + $0x58] sm:$0xff] }
  0x17   : > { %v545_v11 = vadd.f32 %v544_v6, %v543_v8  ;;  %v558_v27 = vsel %vm388_vm0, %v14874_v22, 0.0  ;;  %v560_v30 = vsel %vm388_vm0, %v14879_v25, 0.0  ;;  %v14889_v31 = vld [vmem:[%s14828_s22 + $0x60] sm:$0xff]  ;;  %v562_v33 = vsel %vm388_vm0, %v14884_v28, 0.0  ;;  %v14894_v34 = vld [vmem:[%s14828_s22 + $0x68] sm:$0xff]  ;;  %v14899_v37 = vld [vmem:[%s14828_s22 + $0x70] sm:$0xff] }
  0x18   : > { %v564_v36 = vsel %vm388_vm0, %v14889_v31, 0.0  ;;  %v566_v39 = vsel %vm388_vm0, %v14894_v34, 0.0  ;;  %v14904_v40 = vld [vmem:[%s14828_s22 + $0x78] sm:$0xff]  ;;  %v568_v42 = vsel %vm388_vm0, %v14899_v37, 0.0  ;;  %v14909_v43 = vld [vmem:[%s14828_s22 + $0x80] sm:$0xff]  ;;  %v14914_v46 = vld [vmem:[%s14828_s22 + $0x88] sm:$0xff] }
  0x19   : > { %v547_v14 = vadd.f32 %v546_v9, %v545_v11  ;;  %v570_v45 = vsel %vm388_vm0, %v14904_v40, 0.0  ;;  %v572_v48 = vsel %vm388_vm0, %v14909_v43, 0.0  ;;  %v14919_v49 = vld [vmem:[%s14828_s22 + $0x90] sm:$0xff]  ;;  %v574_v51 = vsel %vm388_vm0, %v14914_v46, 0.0  ;;  %v14924_v52 = vld [vmem:[%s14828_s22 + $0x98] sm:$0xff]  ;;  %v14929_v55 = vld [vmem:[%s14828_s22 + $0xa0] sm:$0xff] }
  0x1a   : > { %v576_v54 = vsel %vm388_vm0, %v14919_v49, 0.0  ;;  %v578_v57 = vsel %vm388_vm0, %v14924_v52, 0.0  ;;  %v14934_v58 = vld [vmem:[%s14828_s22 + $0xa8] sm:$0xff]  ;;  %v580_v60 = vsel %vm388_vm0, %v14929_v55, 0.0  ;;  %v14939_v61 = vld [vmem:[%s14828_s22 + $0xb0] sm:$0xff]  ;;  %v14944_v4 = vld [vmem:[%s14828_s22 + $0xb8] sm:$0xff] }
  0x1b   : > { %v549_v17 = vadd.f32 %v548_v12, %v547_v14  ;;  %v582_v63 = vsel %vm388_vm0, %v14934_v58, 0.0  ;;  %v584_v6 = vsel %vm388_vm0, %v14939_v61, 0.0  ;;  %v14949_v8 = vld [vmem:[%s14828_s22 + $0xc0] sm:$0xff]  ;;  %v586_v11 = vsel %vm388_vm0, %v14944_v4, 0.0  ;;  %v14954_v12 = vld [vmem:[%s14828_s22 + $0xc8] sm:$0xff] }
  0x1d   : > { %v551_v20 = vadd.f32 %v550_v15, %v549_v17  ;;  %v588_v15 = vsel %vm388_vm0, %v14949_v8, 0.0  ;;  %v14959_v17 = vld [vmem:[%s14828_s22 + $0xd0] sm:$0xff] }
  0x1f   : > { %v553_v23 = vadd.f32 %v552_v18, %v551_v20  ;;  %v590_v20 = vsel %vm388_vm0, %v14954_v12, 0.0 }
  0x21   : > { %v555_v26 = vadd.f32 %v554_v21, %v553_v23  ;;  %v14964_v21 = vld [vmem:[%s14828_s22 + $0xd8] sm:$0xff] }
  0x23   : > { %v557_v29 = vadd.f32 %v556_v24, %v555_v26  ;;  %v592_v24 = vsel %vm388_vm0, %v14959_v17, 0.0  ;;  %v14969_v26 = vld [vmem:[%s14828_s22 + $0xe0] sm:$0xff] }
  0x25   : > { %v559_v32 = vadd.f32 %v558_v27, %v557_v29  ;;  %v594_v29 = vsel %vm388_vm0, %v14964_v21, 0.0 }
  0x27   : > { %v561_v35 = vadd.f32 %v560_v30, %v559_v32  ;;  %v14974_v30 = vld [vmem:[%s14828_s22 + $0xe8] sm:$0xff] }
  0x29   : > { %v563_v38 = vadd.f32 %v562_v33, %v561_v35  ;;  %v596_v33 = vsel %vm388_vm0, %v14969_v26, 0.0  ;;  %v14979_v35 = vld [vmem:[%s14828_s22 + $0xf0] sm:$0xff] }
  0x2b   : > { %v565_v41 = vadd.f32 %v564_v36, %v563_v38  ;;  %v598_v38 = vsel %vm388_vm0, %v14974_v30, 0.0 }
  0x2d   : > { %v567_v44 = vadd.f32 %v566_v39, %v565_v41  ;;  %v14984_v39 = vld [vmem:[%s14828_s22 + $0xf8] sm:$0xff] }
  0x2f   : > { %v569_v47 = vadd.f32 %v568_v42, %v567_v44  ;;  %v600_v42 = vsel %vm388_vm0, %v14979_v35, 0.0  ;;  %v14989_v44 = vld [vmem:[%s14828_s22 + $0x100] sm:$0xff] }
  0x31   : > { %v571_v50 = vadd.f32 %v570_v45, %v569_v47  ;;  %v602_v47 = vsel %vm388_vm0, %v14984_v39, 0.0 }
  0x33   : > { %v573_v53 = vadd.f32 %v572_v48, %v571_v50  ;;  %v14994_v48 = vld [vmem:[%s14828_s22 + $0x108] sm:$0xff] }
  0x35   : > { %v575_v56 = vadd.f32 %v574_v51, %v573_v53  ;;  %v604_v51 = vsel %vm388_vm0, %v14989_v44, 0.0  ;;  %v14999_v53 = vld [vmem:[%s14828_s22 + $0x110] sm:$0xff] }
  0x37   : > { %v577_v59 = vadd.f32 %v576_v54, %v575_v56  ;;  %v606_v56 = vsel %vm388_vm0, %v14994_v48, 0.0 }
  0x39   : > { %v579_v62 = vadd.f32 %v578_v57, %v577_v59  ;;  %v15004_v57 = vld [vmem:[%s14828_s22 + $0x118] sm:$0xff] }
  0x3b   : > { %v581_v5 = vadd.f32 %v580_v60, %v579_v62  ;;  %v608_v60 = vsel %vm388_vm0, %v14999_v53, 0.0  ;;  %v15009_v62 = vld [vmem:[%s14828_s22 + $0x120] sm:$0xff] }
  0x3d   : > { %v583_v9 = vadd.f32 %v582_v63, %v581_v5  ;;  %v610_v5 = vsel %vm388_vm0, %v15004_v57, 0.0 }
  0x3f   : > { %v585_v14 = vadd.f32 %v584_v6, %v583_v9  ;;  %v15014_v6 = vld [vmem:[%s14828_s22 + $0x128] sm:$0xff] }
  0x41   : > { %v587_v18 = vadd.f32 %v586_v11, %v585_v14  ;;  %v612_v11 = vsel %vm388_vm0, %v15009_v62, 0.0  ;;  %v15019_v14 = vld [vmem:[%s14828_s22 + $0x130] sm:$0xff] }
  0x43   : > { %v589_v23 = vadd.f32 %v588_v15, %v587_v18  ;;  %v614_v18 = vsel %vm388_vm0, %v15014_v6, 0.0 }
  0x45   : > { %v591_v27 = vadd.f32 %v590_v20, %v589_v23  ;;  %v15024_v20 = vld [vmem:[%s14828_s22 + $0x138] sm:$0xff] }
  0x47   : > { %v593_v32 = vadd.f32 %v592_v24, %v591_v27  ;;  %v616_v24 = vsel %vm388_vm0, %v15019_v14, 0.0  ;;  %v15029_v27 = vld [vmem:[%s14828_s22 + $0x140] sm:$0xff] }
  0x49   : > { %v595_v36 = vadd.f32 %v594_v29, %v593_v32  ;;  %v618_v32 = vsel %vm388_vm0, %v15024_v20, 0.0 }
  0x4b   : > { %v597_v41 = vadd.f32 %v596_v33, %v595_v36  ;;  %v15034_v33 = vld [vmem:[%s14828_s22 + $0x148] sm:$0xff] }
  0x4d   : > { %v599_v45 = vadd.f32 %v598_v38, %v597_v41  ;;  %v620_v38 = vsel %vm388_vm0, %v15029_v27, 0.0  ;;  %v15039_v41 = vld [vmem:[%s14828_s22 + $0x150] sm:$0xff] }
  0x4f   : > { %v601_v50 = vadd.f32 %v600_v42, %v599_v45  ;;  %v622_v45 = vsel %vm388_vm0, %v15034_v33, 0.0 }
  0x51   : > { %v603_v54 = vadd.f32 %v602_v47, %v601_v50  ;;  %v15044_v47 = vld [vmem:[%s14828_s22 + $0x158] sm:$0xff] }
  0x53   : > { %v605_v59 = vadd.f32 %v604_v51, %v603_v54  ;;  %v624_v51 = vsel %vm388_vm0, %v15039_v41, 0.0  ;;  %v15049_v54 = vld [vmem:[%s14828_s22 + $0x160] sm:$0xff] }
  0x55   : > { %v607_v63 = vadd.f32 %v606_v56, %v605_v59  ;;  %v626_v59 = vsel %vm388_vm0, %v15044_v47, 0.0 }
  0x57   : > { %v609_v9 = vadd.f32 %v608_v60, %v607_v63  ;;  %v15054_v60 = vld [vmem:[%s14828_s22 + $0x168] sm:$0xff] }
  0x59   : > { %v611_v15 = vadd.f32 %v610_v5, %v609_v9  ;;  %v628_v5 = vsel %vm388_vm0, %v15049_v54, 0.0  ;;  %v15059_v9 = vld [vmem:[%s14828_s22 + $0x170] sm:$0xff] }
  0x5b   : > { %v613_v23 = vadd.f32 %v612_v11, %v611_v15  ;;  %v630_v15 = vsel %vm388_vm0, %v15054_v60, 0.0 }
  0x5d   : > { %v615_v29 = vadd.f32 %v614_v18, %v613_v23  ;;  %v15064_v18 = vld [vmem:[%s14828_s22 + $0x178] sm:$0xff] }
  0x5f   : > { %v617_v36 = vadd.f32 %v616_v24, %v615_v29  ;;  %v632_v24 = vsel %vm388_vm0, %v15059_v9, 0.0 }
  0x61   : > { %v619_v42 = vadd.f32 %v618_v32, %v617_v36  ;;  %v634_v32 = vsel %vm388_vm0, %v15064_v18, 0.0 }
  0x63   : > { %v621_v50 = vadd.f32 %v620_v38, %v619_v42 }
  0x65   : > { %v623_v56 = vadd.f32 %v622_v45, %v621_v50 }
  0x67   : > { %v625_v63 = vadd.f32 %v624_v51, %v623_v56 }
  0x69   : > { %v627_v11 = vadd.f32 %v626_v59, %v625_v63 }
  0x6b   : > { %v629_v23 = vadd.f32 %v628_v5, %v627_v11 }
  0x6d   : > { %v631_v29 = vadd.f32 %v630_v15, %v629_v23 }
  0x6f   : > { %v633_v36 = vadd.f32 %v632_v24, %v631_v29 }
  0x71   : > { %v635_v38 = vadd.f32 %v634_v32, %v633_v36 }
  0x73   : > { %636 = vadd.xlane.f32.xlu0 %v635_v38 }
 0x100   : > { %v637_v42 = vpop.xlane.xlu0 %636 }
 0x101   : > { %v638_v45 = vrot.slane %v637_v42, 4 }
 0x103   : > { %v639_v50 = vadd.f32 %v638_v45, %v637_v42 }
 0x105   : > { %v640_v51 = vrot.slane %v639_v50, 2 }
 0x107   : > { %v641_v56 = vadd.f32 %v640_v51, %v639_v50 }
 0x109   : > { %v642_v59 = vrot.slane %v641_v56, 1 }
 0x10b   : > { %v643_v63 = vadd.f32 %v642_v59, %v641_v56 }
 0x10d   : > { %14673 = vpush %v643_v63 }
 0x13e   : > { %s14674_s23 = spop %14673 }
 0x13f   : > { %v645_v5 = vstv %s14674_s23 }
 0x140   : > { %v15070_v11 = vmul.f32 0.0009765625, %v645_v5 }
 0x142   : > { %v15074_v15 = vsub.f32 %v14831_v0, %v15070_v11  ;;  %v15078_v23 = vsub.f32 %v14834_v1, %v15070_v11  ;;  %v15082_v24 = vsub.f32 %v14837_v2, %v15070_v11  ;;  %v15086_v29 = vsub.f32 %v14840_v3, %v15070_v11 }
 0x143   : > { %v15094_v0 = vsub.f32 %v14849_v7, %v15070_v11  ;;  %v15100_v2 = vsub.f32 %v14854_v10, %v15070_v11  ;;  %v15108_v50 = vsub.f32 %v14859_v13, %v15070_v11  ;;  %v15115_v10 = vsub.f32 %v14864_v16, %v15070_v11 }
 0x144   : > { %v695_v32 = vmul.f32 %v15074_v15, %v15074_v15  ;;  %v696_v36 = vmul.f32 %v15078_v23, %v15078_v23  ;;  %v697_v1 = vmul.f32 %v15082_v24, %v15082_v24  ;;  %v698_v3 = vmul.f32 %v15086_v29, %v15086_v29 }
 0x145   : > { %v699_v7 = vmul.f32 %v15094_v0, %v15094_v0  ;;  %v700_v59 = vmul.f32 %v15100_v2, %v15100_v2  ;;  %v15122_v13 = vsub.f32 %v14869_v19, %v15070_v11  ;;  %v15129_v16 = vsub.f32 %v14874_v22, %v15070_v11 }
 0x146   : > { %v743_v38 = vsel %vm388_vm0, %v695_v32, 0.0  ;;  %v744_v42 = vsel %vm388_vm0, %v696_v36, 0.0  ;;  %v746_v51 = vsel %vm388_vm0, %v697_v1, 0.0  ;;  %v748_v63 = vsel %vm388_vm0, %v698_v3, 0.0 }
 0x147   : > { %v745_v45 = vadd.f32 %v744_v42, %v743_v38  ;;  %v701_v32 = vmul.f32 %v15108_v50, %v15108_v50  ;;  %v750_v36 = vsel %vm388_vm0, %v699_v7, 0.0  ;;  %v702_v38 = vmul.f32 %v15115_v10, %v15115_v10 }
 0x148   : > { %v752_v3 = vsel %vm388_vm0, %v700_v59, 0.0  ;;  %v15136_v19 = vsub.f32 %v14879_v25, %v15070_v11  ;;  %v15143_v22 = vsub.f32 %v14884_v28, %v15070_v11  ;;  %v15150_v25 = vsub.f32 %v14889_v31, %v15070_v11 }
 0x149   : > { %v747_v56 = vadd.f32 %v746_v51, %v745_v45  ;;  %v703_v45 = vmul.f32 %v15122_v13, %v15122_v13  ;;  %v754_v7 = vsel %vm388_vm0, %v701_v32, 0.0  ;;  %v756_v59 = vsel %vm388_vm0, %v702_v38, 0.0 }
 0x14a   : > { %v15157_v28 = vsub.f32 %v14894_v34, %v15070_v11  ;;  %v15164_v31 = vsub.f32 %v14899_v37, %v15070_v11  ;;  %v15171_v34 = vsub.f32 %v14904_v40, %v15070_v11  ;;  %v15178_v37 = vsub.f32 %v14909_v43, %v15070_v11 }
 0x14b   : > { %v749_v5 = vadd.f32 %v748_v63, %v747_v56  ;;  %v704_v56 = vmul.f32 %v15129_v16, %v15129_v16  ;;  %v758_v32 = vsel %vm388_vm0, %v703_v45, 0.0  ;;  %v15185_v40 = vsub.f32 %v14914_v46, %v15070_v11 }
 0x14c   : > { %20941 = vst [vmem:[#allocation3_spill] sm:$0xff] %v15157_v28  ;;  %20942 = vst [vmem:[#allocation4_spill] sm:$0xff] %v15164_v31  ;;  %v15192_v43 = vsub.f32 %v14919_v49, %v15070_v11  ;;  %v15199_v46 = vsub.f32 %v14924_v52, %v15070_v11  ;;  %v15206_v49 = vsub.f32 %v14929_v55, %v15070_v11 }
 0x14d   : > { %v751_v1 = vadd.f32 %v750_v36, %v749_v5  ;;  %v705_v5 = vmul.f32 %v15136_v19, %v15136_v19  ;;  %v760_v38 = vsel %vm388_vm0, %v704_v56, 0.0  ;;  %20943 = vst [vmem:[#allocation5_spill] sm:$0xff] %v15171_v34  ;;  %20944 = vst [vmem:[#allocation6_spill] sm:$0xff] %v15178_v37  ;;  %v15213_v52 = vsub.f32 %v14934_v58, %v15070_v11 }
 0x14e   : > { %20945 = vst [vmem:[#allocation7_spill] sm:$0xff] %v15185_v40  ;;  %20946 = vst [vmem:[#allocation8_spill] sm:$0xff] %v15192_v43  ;;  %v15220_v55 = vsub.f32 %v14939_v61, %v15070_v11  ;;  %v15227_v58 = vsub.f32 %v14944_v4, %v15070_v11  ;;  %v15234_v61 = vsub.f32 %v14949_v8, %v15070_v11 }
 0x14f   : > { %v753_v42 = vadd.f32 %v752_v3, %v751_v1  ;;  %v706_v1 = vmul.f32 %v15143_v22, %v15143_v22  ;;  %v762_v45 = vsel %vm388_vm0, %v705_v5, 0.0  ;;  %20947 = vst [vmem:[#allocation9_spill] sm:$0xff] %v15199_v46  ;;  %20948 = vst [vmem:[#allocation10_spill] sm:$0xff] %v15206_v49  ;;  %v15241_v4 = vsub.f32 %v14954_v12, %v15070_v11 }
 0x150   : > { %20949 = vst [vmem:[#allocation11_spill] sm:$0xff] %v15213_v52  ;;  %20950 = vst [vmem:[#allocation12_spill] sm:$0xff] %v15220_v55  ;;  %v15248_v8 = vsub.f32 %v14959_v17, %v15070_v11  ;;  %v15255_v12 = vsub.f32 %v14964_v21, %v15070_v11  ;;  %v15262_v17 = vsub.f32 %v14969_v26, %v15070_v11 }
 0x151   : > { %v755_v51 = vadd.f32 %v754_v7, %v753_v42  ;;  %v707_v42 = vmul.f32 %v15150_v25, %v15150_v25  ;;  %v764_v56 = vsel %vm388_vm0, %v706_v1, 0.0  ;;  %20951 = vst [vmem:[#allocation13_spill] sm:$0xff] %v15227_v58  ;;  %20952 = vst [vmem:[#allocation14_spill] sm:$0xff] %v15234_v61  ;;  %v15269_v21 = vsub.f32 %v14974_v30, %v15070_v11 }
 0x152   : > { %20953 = vst [vmem:[#allocation15_spill] sm:$0xff] %v15241_v4  ;;  %20954 = vst [vmem:[#allocation16_spill] sm:$0xff] %v15248_v8  ;;  %v15276_v26 = vsub.f32 %v14979_v35, %v15070_v11  ;;  %v15283_v30 = vsub.f32 %v14984_v39, %v15070_v11  ;;  %v15290_v35 = vsub.f32 %v14989_v44, %v15070_v11 }
 0x153   : > { %v757_v63 = vadd.f32 %v756_v59, %v755_v51  ;;  %v708_v51 = vmul.f32 %v15157_v28, %v15157_v28  ;;  %v766_v5 = vsel %vm388_vm0, %v707_v42, 0.0  ;;  %20955 = vst [vmem:[#allocation17_spill] sm:$0xff] %v15255_v12  ;;  %v15297_v39 = vsub.f32 %v14994_v48, %v15070_v11 }
 0x154   : > { %20956 = vst [vmem:[#allocation18_spill] sm:$0xff] %v15283_v30  ;;  %v15304_v44 = vsub.f32 %v14999_v53, %v15070_v11  ;;  %v15311_v48 = vsub.f32 %v15004_v57, %v15070_v11  ;;  %v15318_v53 = vsub.f32 %v15009_v62, %v15070_v11  ;;  %v15325_v57 = vsub.f32 %v15014_v6, %v15070_v11 }
 0x155   : > { %v759_v36 = vadd.f32 %v758_v32, %v757_v63  ;;  %v709_v63 = vmul.f32 %v15164_v31, %v15164_v31  ;;  %v768_v1 = vsel %vm388_vm0, %v708_v51, 0.0  ;;  %v15332_v62 = vsub.f32 %v15019_v14, %v15070_v11 }
 0x156   : > { %v15339_v6 = vsub.f32 %v15024_v20, %v15070_v11  ;;  %v15346_v14 = vsub.f32 %v15029_v27, %v15070_v11  ;;  %v15353_v20 = vsub.f32 %v15034_v33, %v15070_v11  ;;  %v15360_v27 = vsub.f32 %v15039_v41, %v15070_v11 }
 0x157   : > { %v761_v3 = vadd.f32 %v760_v38, %v759_v36  ;;  %v710_v36 = vmul.f32 %v15171_v34, %v15171_v34  ;;  %v770_v42 = vsel %vm388_vm0, %v709_v63, 0.0  ;;  %v15367_v33 = vsub.f32 %v15044_v47, %v15070_v11 }
 0x158   : > { %v15374_v41 = vsub.f32 %v15049_v54, %v15070_v11  ;;  %v15381_v47 = vsub.f32 %v15054_v60, %v15070_v11  ;;  %v15388_v54 = vsub.f32 %v15059_v9, %v15070_v11  ;;  %v15395_v60 = vsub.f32 %v15064_v18, %v15070_v11 }
 0x159   : > { %v763_v7 = vadd.f32 %v762_v45, %v761_v3  ;;  %v711_v3 = vmul.f32 %v15178_v37, %v15178_v37  ;;  %v772_v51 = vsel %vm388_vm0, %v710_v36, 0.0 }
 0x15a   : > { %v741_v9 = vmul.f32 %v15388_v54, %v15388_v54 }
 0x15b   : > { %v765_v59 = vadd.f32 %v764_v56, %v763_v7  ;;  %v712_v7 = vmul.f32 %v15185_v40, %v15185_v40  ;;  %v774_v63 = vsel %vm388_vm0, %v711_v3, 0.0 }
 0x15c   : > { %v834_v18 = vsel %vm388_vm0, %v741_v9, 0.0 }
 0x15d   : > { %v767_v32 = vadd.f32 %v766_v5, %v765_v59  ;;  %v713_v59 = vmul.f32 %v15192_v43, %v15192_v43  ;;  %v776_v36 = vsel %vm388_vm0, %v712_v7, 0.0 }
 0x15f   : > { %v769_v38 = vadd.f32 %v768_v1, %v767_v32  ;;  %v714_v32 = vmul.f32 %v15199_v46, %v15199_v46  ;;  %v778_v3 = vsel %vm388_vm0, %v713_v59, 0.0  ;;  %v529_v46 = vld [vmem:[%s20581_s2 + $0x120] sm:$0xff] }
 0x161   : > { %v771_v45 = vadd.f32 %v770_v42, %v769_v38  ;;  %v715_v38 = vmul.f32 %v15206_v49, %v15206_v49  ;;  %v780_v7 = vsel %vm388_vm0, %v714_v32, 0.0  ;;  %v528_v49 = vld [vmem:[%s20581_s2 + $0x118] sm:$0xff] }
 0x163   : > { %v773_v56 = vadd.f32 %v772_v51, %v771_v45  ;;  %v716_v45 = vmul.f32 %v15213_v52, %v15213_v52  ;;  %v782_v59 = vsel %vm388_vm0, %v715_v38, 0.0  ;;  %v527_v52 = vld [vmem:[%s20581_s2 + $0x110] sm:$0xff] }
 0x165   : > { %v775_v5 = vadd.f32 %v774_v63, %v773_v56  ;;  %v717_v56 = vmul.f32 %v15220_v55, %v15220_v55  ;;  %v784_v32 = vsel %vm388_vm0, %v716_v45, 0.0 }
 0x167   : > { %v777_v1 = vadd.f32 %v776_v36, %v775_v5  ;;  %v718_v5 = vmul.f32 %v15227_v58, %v15227_v58  ;;  %v786_v38 = vsel %vm388_vm0, %v717_v56, 0.0  ;;  %v525_v58 = vld [vmem:[%s20581_s2 + $0x100] sm:$0xff] }
 0x169   : > { %v779_v42 = vadd.f32 %v778_v3, %v777_v1  ;;  %v719_v1 = vmul.f32 %v15234_v61, %v15234_v61  ;;  %v788_v45 = vsel %vm388_vm0, %v718_v5, 0.0  ;;  %v492_v61 = vld [vmem:[%s20580_s1 + $0x178] sm:$0xff] }
 0x16b   : > { %v781_v51 = vadd.f32 %v780_v7, %v779_v42  ;;  %v720_v42 = vmul.f32 %v15241_v4, %v15241_v4  ;;  %v790_v56 = vsel %vm388_vm0, %v719_v1, 0.0 }
 0x16d   : > { %v783_v63 = vadd.f32 %v782_v59, %v781_v51  ;;  %v721_v51 = vmul.f32 %v15248_v8, %v15248_v8  ;;  %v792_v5 = vsel %vm388_vm0, %v720_v42, 0.0 }
 0x16f   : > { %v785_v36 = vadd.f32 %v784_v32, %v783_v63  ;;  %v722_v63 = vmul.f32 %v15255_v12, %v15255_v12  ;;  %v794_v1 = vsel %vm388_vm0, %v721_v51, 0.0 }
 0x171   : > { %v787_v3 = vadd.f32 %v786_v38, %v785_v36  ;;  %v723_v36 = vmul.f32 %v15262_v17, %v15262_v17  ;;  %v796_v42 = vsel %vm388_vm0, %v722_v63, 0.0 }
 0x173   : > { %v789_v7 = vadd.f32 %v788_v45, %v787_v3  ;;  %v724_v3 = vmul.f32 %v15269_v21, %v15269_v21  ;;  %v798_v51 = vsel %vm388_vm0, %v723_v36, 0.0 }
 0x175   : > { %v791_v59 = vadd.f32 %v790_v56, %v789_v7  ;;  %v725_v7 = vmul.f32 %v15276_v26, %v15276_v26  ;;  %v800_v63 = vsel %vm388_vm0, %v724_v3, 0.0 }
 0x177   : > { %v793_v32 = vadd.f32 %v792_v5, %v791_v59  ;;  %v726_v59 = vmul.f32 %v15283_v30, %v15283_v30  ;;  %v802_v36 = vsel %vm388_vm0, %v725_v7, 0.0 }
 0x179   : > { %v795_v38 = vadd.f32 %v794_v1, %v793_v32  ;;  %v727_v32 = vmul.f32 %v15290_v35, %v15290_v35  ;;  %v804_v3 = vsel %vm388_vm0, %v726_v59, 0.0 }
 0x17b   : > { %v797_v45 = vadd.f32 %v796_v42, %v795_v38  ;;  %v728_v38 = vmul.f32 %v15297_v39, %v15297_v39  ;;  %v806_v7 = vsel %vm388_vm0, %v727_v32, 0.0 }
 0x17d   : > { %v799_v56 = vadd.f32 %v798_v51, %v797_v45  ;;  %v729_v45 = vmul.f32 %v15304_v44, %v15304_v44  ;;  %v808_v59 = vsel %vm388_vm0, %v728_v38, 0.0 }
 0x17f   : > { %v801_v5 = vadd.f32 %v800_v63, %v799_v56  ;;  %v730_v56 = vmul.f32 %v15311_v48, %v15311_v48  ;;  %v810_v32 = vsel %vm388_vm0, %v729_v45, 0.0 }
 0x181   : > { %v803_v1 = vadd.f32 %v802_v36, %v801_v5  ;;  %v731_v5 = vmul.f32 %v15318_v53, %v15318_v53  ;;  %v812_v38 = vsel %vm388_vm0, %v730_v56, 0.0 }
 0x183   : > { %v805_v42 = vadd.f32 %v804_v3, %v803_v1  ;;  %v732_v1 = vmul.f32 %v15325_v57, %v15325_v57  ;;  %v814_v45 = vsel %vm388_vm0, %v731_v5, 0.0 }
 0x185   : > { %v807_v51 = vadd.f32 %v806_v7, %v805_v42  ;;  %v733_v42 = vmul.f32 %v15332_v62, %v15332_v62  ;;  %v816_v56 = vsel %vm388_vm0, %v732_v1, 0.0 }
 0x187   : > { %v809_v63 = vadd.f32 %v808_v59, %v807_v51  ;;  %v734_v51 = vmul.f32 %v15339_v6, %v15339_v6  ;;  %v818_v5 = vsel %vm388_vm0, %v733_v42, 0.0 }
 0x189   : > { %v811_v36 = vadd.f32 %v810_v32, %v809_v63  ;;  %v735_v63 = vmul.f32 %v15346_v14, %v15346_v14  ;;  %v820_v1 = vsel %vm388_vm0, %v734_v51, 0.0 }
 0x18b   : > { %v813_v3 = vadd.f32 %v812_v38, %v811_v36  ;;  %v736_v36 = vmul.f32 %v15353_v20, %v15353_v20  ;;  %v822_v42 = vsel %vm388_vm0, %v735_v63, 0.0 }
 0x18d   : > { %v815_v7 = vadd.f32 %v814_v45, %v813_v3  ;;  %v737_v3 = vmul.f32 %v15360_v27, %v15360_v27  ;;  %v824_v51 = vsel %vm388_vm0, %v736_v36, 0.0 }
 0x18f   : > { %v817_v59 = vadd.f32 %v816_v56, %v815_v7  ;;  %v738_v7 = vmul.f32 %v15367_v33, %v15367_v33  ;;  %v826_v63 = vsel %vm388_vm0, %v737_v3, 0.0  ;;  %v742_v3 = vmul.f32 %v15395_v60, %v15395_v60 }
 0x191   : > { %v819_v32 = vadd.f32 %v818_v5, %v817_v59  ;;  %v739_v59 = vmul.f32 %v15374_v41, %v15374_v41  ;;  %v828_v36 = vsel %vm388_vm0, %v738_v7, 0.0  ;;  %v11931_v7 = vld [vmem:[%s20584_s5 + $0x4] sm:$0xf] }
 0x192   : > { %14652 = vmatprep.subr.msk.bf16.mxu0 %vm1313_vm1, %v11931_v7  ;;  %14653 = vmatprep.subr.msk.bf16.mxu1 %vm1313_vm1, %v11931_v7 }
 0x193   : > { %v821_v38 = vadd.f32 %v820_v1, %v819_v32  ;;  %v740_v32 = vmul.f32 %v15381_v47, %v15381_v47 }
 0x195   : > { %v823_v45 = vadd.f32 %v822_v42, %v821_v38  ;;  %v830_v38 = vsel %vm388_vm0, %v739_v59, 0.0  ;;  %v1166_v59 = vld [vmem:[%s20584_s5] sm:$0xf] }
 0x197   : > { %v825_v56 = vadd.f32 %v824_v51, %v823_v45  ;;  %v832_v45 = vsel %vm388_vm0, %v740_v32, 0.0  ;;  %v14752_v32 = vmov 0.0  }
 0x198   : > { %390 = vst.msk [vmem:[#allocation2 + $0x8] sm:$0xff] %vm388_vm0, %v14752_v32  ;;  %391 = vst.msk [vmem:[#allocation2 + $0x10] sm:$0xff] %vm388_vm0, %v14752_v32 }
 0x199   : > { %v827_v5 = vadd.f32 %v826_v63, %v825_v56  ;;  %v836_v63 = vsel %vm388_vm0, %v742_v3, 0.0  ;;  %389 = vst.msk [vmem:[#allocation2] sm:$0xff] %vm388_vm0, %v14752_v32  ;;  %392 = vst.msk [vmem:[#allocation2 + $0x18] sm:$0xff] %vm388_vm0, %v14752_v32 }
 0x19a   : > { %393 = vst.msk [vmem:[#allocation2 + $0x1a0] sm:$0xff] %vm388_vm0, %v14752_v32  ;;  %394 = vst.msk [vmem:[#allocation2 + $0x1a8] sm:$0xff] %vm388_vm0, %v14752_v32 }
 0x19b   : > { %v829_v1 = vadd.f32 %v828_v36, %v827_v5  ;;  %v1315_v5 = vsel %vm1313_vm1, %v11931_v7, 0  ;;  %395 = vst.msk [vmem:[#allocation2 + $0x1b0] sm:$0xff] %vm388_vm0, %v14752_v32  ;;  %396 = vst.msk [vmem:[#allocation2 + $0x1b8] sm:$0xff] %vm388_vm0, %v14752_v32 }
 0x19c   : > { %12973 = vmatpush3.bf16.msra.mxu0 %v1315_v5  ;;  %13883 = vmatpush3.bf16.msra.mxu1 %v1315_v5 }
 0x19d   : > { %v831_v42 = vadd.f32 %v830_v38, %v829_v1  ;;  %14654 = vmatprep.subr.msk.bf16.mxu0 %vm1313_vm1, %v1166_v59 }
 0x19f   : > { %v833_v51 = vadd.f32 %v832_v45, %v831_v42  ;;  %v1168_v36 = vld [vmem:[#allocation2 + $0x10] sm:$0xff] }
 0x1a1   : > { %v835_v56 = vadd.f32 %v834_v18, %v833_v51 }
 0x1a3   : > { %v837_v12 = vadd.f32 %v836_v63, %v835_v56  ;;  %v848_v56 = vmul.f32 2048.0, %v15070_v11 }
 0x1a5   : > { %838 = vadd.xlane.f32.xlu0 %v837_v12  ;;  %v1167_v12 = vld [vmem:[#allocation2 + $0x8] sm:$0xff]  ;;  %v849_v63 = vmul.f32 %v848_v56, %v15070_v11  ;;  %v15442_v11 = vsel %vm1313_vm1, %v1166_v59, 0  ;;  %v484_v56 = vld [vmem:[%s20580_s1 + $0x138] sm:$0xff] }
 0x1a6   : > { %v1215_v1 = vpack.c.bf16 %v1168_v36, %v1167_v12  ;;  %v477_v36 = vld [vmem:[%s20580_s1 + $0x100] sm:$0xff]  ;;  %20958 = vst [vmem:[#allocation20_spill] sm:$0xff] %v15442_v11 }
 0x1a8   : > { %12974 = vmatprep.mubr.msk.bf16.mxu0 %vm388_vm0, %v1215_v1  ;;  %v478_v1 = vld [vmem:[%s20580_s1 + $0x108] sm:$0xff] }
 0x232   : > { %v839_v9 = vpop.xlane.xlu0 %838 }
 0x233   : > { %v840_v38 = vrot.slane %v839_v9, 4 }
 0x235   : > { %v841_v42 = vadd.f32 %v840_v38, %v839_v9  ;;  %v480_v38 = vld [vmem:[%s20580_s1 + $0x118] sm:$0xff] }
 0x237   : > { %v842_v3 = vrot.slane %v841_v42, 2 }
 0x239   : > { %v843_v45 = vadd.f32 %v842_v3, %v841_v42  ;;  %v481_v42 = vld [vmem:[%s20580_s1 + $0x120] sm:$0xff] }
 0x23b   : > { %v844_v51 = vrot.slane %v843_v45, 1 }
 0x23d   : > { %v845_v18 = vadd.f32 %v844_v51, %v843_v45 }
 0x23f   : > { %14675 = vpush %v845_v18  ;;  %v483_v18 = vld [vmem:[%s20580_s1 + $0x130] sm:$0xff] }
 0x270   : > { %s14676_s28 = spop %14675 }
 0x271   : > { %v847_v7 = vstv %s14676_s28 }
 0x272   : > { %v850_v5 = vsub.f32 %v847_v7, %v849_v63  ;;  %v486_v7 = vld [vmem:[%s20580_s1 + $0x148] sm:$0xff] }
 0x274   : > { %v851_v32 = vmul.f32 0.0009765625, %v850_v5  ;;  %v487_v5 = vld [vmem:[%s20580_s1 + $0x150] sm:$0xff] }
 0x276   : > { %v852_v8 = vadd.f32 1e-05, %v851_v32 }
 0x278   : > { %14691 = vrsqrt.f32 %v852_v8  ;;  %v479_v8 = vld [vmem:[%s20580_s1 + $0x110] sm:$0xff] }
 0x282   : > { %v15429_v12 = vpop.eup %14691 }
 0x283   : > { %v15439_v9 = vmul.f32 %v15429_v12, %v15262_v17  ;;  %v482_v17 = vld [vmem:[%s20580_s1 + $0x128] sm:$0xff]  ;;  %v15458_v59 = vmul.f32 %v15429_v12, %v15269_v21  ;;  %v15462_v3 = vmul.f32 %v15429_v12, %v15276_v26  ;;  %v886_v45 = vmul.f32 %v15429_v12, %v15290_v35  ;;  %v485_v21 = vld [vmem:[%s20580_s1 + $0x140] sm:$0xff] }
 0x284   : > { %v887_v51 = vmul.f32 %v15429_v12, %v15297_v39  ;;  %v888_v26 = vmul.f32 %v15429_v12, %v15304_v44  ;;  %v889_v35 = vmul.f32 %v15429_v12, %v15311_v48  ;;  %v890_v39 = vmul.f32 %v15429_v12, %v15318_v53  ;;  %v488_v44 = vld [vmem:[%s20580_s1 + $0x158] sm:$0xff] }
 0x285   : > { %20957 = vst [vmem:[#allocation19_spill] sm:$0xff] %v15439_v9  ;;  %20959 = vst [vmem:[#allocation21_spill] sm:$0xff] %v15458_v59  ;;  %v891_v63 = vmul.f32 %v15429_v12, %v15325_v57  ;;  %v892_v48 = vmul.f32 %v15429_v12, %v15332_v62  ;;  %v893_v53 = vmul.f32 %v15429_v12, %v15339_v6  ;;  %v489_v59 = vld [vmem:[%s20580_s1 + $0x160] sm:$0xff]  ;;  %v490_v9 = vld [vmem:[%s20580_s1 + $0x168] sm:$0xff] }
 0x286   : > { %20960 = vst [vmem:[#allocation22_spill] sm:$0xff] %v15462_v3  ;;  %v894_v57 = vmul.f32 %v15429_v12, %v15346_v14  ;;  %v895_v32 = vmul.f32 %v15429_v12, %v15353_v20  ;;  %v491_v62 = vld [vmem:[%s20580_s1 + $0x170] sm:$0xff]  ;;  %v896_v6 = vmul.f32 %v15429_v12, %v15360_v27  ;;  %v897_v14 = vmul.f32 %v15429_v12, %v15367_v33  ;;  %v526_v27 = vld [vmem:[%s20581_s2 + $0x108] sm:$0xff] }
 0x287   : > { %v898_v20 = vmul.f32 %v15429_v12, %v15374_v41  ;;  %v899_v4 = vmul.f32 %v15429_v12, %v15381_v47  ;;  %v900_v33 = vmul.f32 %v15429_v12, %v15388_v54  ;;  %v901_v41 = vmul.f32 %v15429_v12, %v15395_v60  ;;  %v530_v60 = vld [vmem:[%s20581_s2 + $0x128] sm:$0xff] }
 0x288   : > { %v934_v55 = vmul.f32 %v886_v45, %v477_v36  ;;  %v935_v47 = vmul.f32 %v887_v51, %v478_v1  ;;  %v936_v43 = vmul.f32 %v888_v26, %v479_v8  ;;  %v937_v11 = vmul.f32 %v889_v35, %v480_v38  ;;  %v531_v36 = vld [vmem:[%s20581_s2 + $0x130] sm:$0xff]  ;;  %v532_v1 = vld [vmem:[%s20581_s2 + $0x138] sm:$0xff]  ;;  %v533_v8 = vld [vmem:[%s20581_s2 + $0x140] sm:$0xff] }
 0x289   : > { %v938_v54 = vmul.f32 %v890_v39, %v481_v42  ;;  %v939_v40 = vmul.f32 %v891_v63, %v482_v17  ;;  %v940_v45 = vmul.f32 %v892_v48, %v483_v18  ;;  %v941_v51 = vmul.f32 %v893_v53, %v484_v56  ;;  %v534_v38 = vld [vmem:[%s20581_s2 + $0x148] sm:$0xff]  ;;  %v535_v42 = vld [vmem:[%s20581_s2 + $0x150] sm:$0xff]  ;;  %v536_v18 = vld [vmem:[%s20581_s2 + $0x158] sm:$0xff] }
 0x28a   : > { %v942_v3 = vmul.f32 %v894_v57, %v485_v21  ;;  %v943_v30 = vmul.f32 %v895_v32, %v486_v7  ;;  %v944_v17 = vmul.f32 %v896_v6, %v487_v5  ;;  %v945_v26 = vmul.f32 %v897_v14, %v488_v44  ;;  %v537_v56 = vld [vmem:[%s20581_s2 + $0x160] sm:$0xff]  ;;  %v538_v21 = vld [vmem:[%s20581_s2 + $0x168] sm:$0xff] }
 0x28b   : > { %v946_v35 = vmul.f32 %v898_v20, %v489_v59  ;;  %v947_v39 = vmul.f32 %v899_v4, %v490_v9  ;;  %v948_v63 = vmul.f32 %v900_v33, %v491_v62  ;;  %v949_v7 = vmul.f32 %v901_v41, %v492_v61  ;;  %v539_v4 = vld [vmem:[%s20581_s2 + $0x170] sm:$0xff]  ;;  %v540_v9 = vld [vmem:[%s20581_s2 + $0x178] sm:$0xff] }
 0x28c   : > { %v982_v48 = vadd.f32 %v934_v55, %v525_v58  ;;  %v983_v53 = vadd.f32 %v935_v47, %v526_v27  ;;  %v984_v59 = vadd.f32 %v936_v43, %v527_v52  ;;  %v985_v5 = vadd.f32 %v937_v11, %v528_v49  ;;  %v445_v52 = vld [vmem:[%s20580_s1] sm:$0xff] }
 0x28d   : > { %v986_v44 = vadd.f32 %v938_v54, %v529_v46  ;;  %v987_v57 = vadd.f32 %v939_v40, %v530_v60  ;;  %v988_v32 = vadd.f32 %v940_v45, %v531_v36  ;;  %v989_v6 = vadd.f32 %v941_v51, %v532_v1  ;;  %v493_v36 = vld [vmem:[%s20581_s2] sm:$0xff]  ;;  %v447_v1 = vld [vmem:[%s20580_s1 + $0x10] sm:$0xff] }
 0x28e   : > { %v990_v14 = vadd.f32 %v942_v3, %v533_v8  ;;  %v991_v20 = vadd.f32 %v943_v30, %v534_v38  ;;  %v992_v62 = vadd.f32 %v944_v17, %v535_v42  ;;  %v993_v61 = vadd.f32 %v945_v26, %v536_v18  ;;  %v446_v30 = vld [vmem:[%s20580_s1 + $0x8] sm:$0xff]  ;;  %v451_v26 = vld [vmem:[%s20580_s1 + $0x30] sm:$0xff] }
 0x28f   : > { %v994_v55 = vadd.f32 %v946_v35, %v537_v56  ;;  %v995_v58 = vadd.f32 %v947_v39, %v538_v21  ;;  %v996_v27 = vadd.f32 %v948_v63, %v539_v4  ;;  %v997_v33 = vadd.f32 %v949_v7, %v540_v9  ;;  %v450_v8 = vld [vmem:[%s20580_s1 + $0x28] sm:$0xff]  ;;  %v452_v4 = vld [vmem:[%s20580_s1 + $0x38] sm:$0xff] }
 0x290   : > { %v1030_v41 = vmax.f32 %v982_v48, 0.0  ;;  %v1031_v47 = vmax.f32 %v983_v53, 0.0  ;;  %v1032_v37 = vmax.f32 %v984_v59, 0.0  ;;  %v1033_v34 = vmax.f32 %v985_v5, 0.0  ;;  %v499_v48 = vld [vmem:[%s20581_s2 + $0x30] sm:$0xff] }
 0x291   : > { %v1034_v31 = vmax.f32 %v986_v44, 0.0  ;;  %v1035_v28 = vmax.f32 %v987_v57, 0.0  ;;  %v1036_v43 = vmax.f32 %v988_v32, 0.0  ;;  %v1037_v49 = vmax.f32 %v989_v6, 0.0  ;;  %v453_v6 = vld [vmem:[%s20580_s1 + $0x40] sm:$0xff] }
 0x292   : > { %v1038_v46 = vmax.f32 %v990_v14, 0.0  ;;  %v1039_v40 = vmax.f32 %v991_v20, 0.0  ;;  %1078 = vst.msk [vmem:[#allocation2 + $0x120] sm:$0xff] %vm388_vm0, %v1030_v41  ;;  %1079 = vst.msk [vmem:[#allocation2 + $0x128] sm:$0xff] %vm388_vm0, %v1031_v47  ;;  %v1040_v11 = vmax.f32 %v992_v62, 0.0  ;;  %v1041_v3 = vmax.f32 %v993_v61, 0.0 }
 0x293   : > { %v1042_v54 = vmax.f32 %v994_v55, 0.0  ;;  %v1043_v60 = vmax.f32 %v995_v58, 0.0  ;;  %1080 = vst.msk [vmem:[#allocation2 + $0x130] sm:$0xff] %vm388_vm0, %v1032_v37  ;;  %1081 = vst.msk [vmem:[#allocation2 + $0x138] sm:$0xff] %vm388_vm0, %v1033_v34  ;;  %v1044_v45 = vmax.f32 %v996_v27, 0.0  ;;  %v1045_v51 = vmax.f32 %v997_v33, 0.0 }
 0x294   : > { %1082 = vst.msk [vmem:[#allocation2 + $0x140] sm:$0xff] %vm388_vm0, %v1034_v31  ;;  %1083 = vst.msk [vmem:[#allocation2 + $0x148] sm:$0xff] %vm388_vm0, %v1035_v28  ;;  %v854_v28 = vmul.f32 %v15429_v12, %v15074_v15  ;;  %v855_v31 = vmul.f32 %v15429_v12, %v15078_v23  ;;  %v448_v34 = vld [vmem:[%s20580_s1 + $0x18] sm:$0xff]  ;;  %v449_v37 = vld [vmem:[%s20580_s1 + $0x20] sm:$0xff]  ;;  %v856_v38 = vmul.f32 %v15429_v12, %v15082_v24 }
 0x295   : > { %1084 = vst.msk [vmem:[#allocation2 + $0x150] sm:$0xff] %vm388_vm0, %v1036_v43  ;;  %1085 = vst.msk [vmem:[#allocation2 + $0x158] sm:$0xff] %vm388_vm0, %v1037_v49  ;;  %v494_v15 = vld [vmem:[%s20581_s2 + $0x8] sm:$0xff]  ;;  %v495_v23 = vld [vmem:[%s20581_s2 + $0x10] sm:$0xff]  ;;  %v857_v42 = vmul.f32 %v15429_v12, %v15086_v29  ;;  %v858_v17 = vmul.f32 %v15429_v12, %v15094_v0  ;;  %v859_v35 = vmul.f32 %v15429_v12, %v15100_v2 }
 0x296   : > { %1086 = vst.msk [vmem:[#allocation2 + $0x160] sm:$0xff] %vm388_vm0, %v1038_v46  ;;  %1087 = vst.msk [vmem:[#allocation2 + $0x168] sm:$0xff] %vm388_vm0, %v1039_v40  ;;  %v902_v39 = vmul.f32 %v854_v28, %v445_v52  ;;  %v903_v18 = vmul.f32 %v855_v31, %v446_v30  ;;  %v496_v24 = vld [vmem:[%s20581_s2 + $0x18] sm:$0xff]  ;;  %v497_v29 = vld [vmem:[%s20581_s2 + $0x20] sm:$0xff]  ;;  %v860_v2 = vmul.f32 %v15429_v12, %v15108_v50 }
 0x297   : > { %1088 = vst.msk [vmem:[#allocation2 + $0x170] sm:$0xff] %vm388_vm0, %v1040_v11  ;;  %1089 = vst.msk [vmem:[#allocation2 + $0x178] sm:$0xff] %vm388_vm0, %v1041_v3  ;;  %v498_v0 = vld [vmem:[%s20581_s2 + $0x28] sm:$0xff]  ;;  %v861_v56 = vmul.f32 %v15429_v12, %v15115_v10  ;;  %v904_v21 = vmul.f32 %v856_v38, %v447_v1  ;;  %v905_v63 = vmul.f32 %v857_v42, %v448_v34  ;;  %v500_v14 = vld [vmem:[%s20581_s2 + $0x38] sm:$0xff] }
 0x298   : > { %1090 = vst.msk [vmem:[#allocation2 + $0x180] sm:$0xff] %vm388_vm0, %v1042_v54  ;;  %1091 = vst.msk [vmem:[#allocation2 + $0x188] sm:$0xff] %vm388_vm0, %v1043_v60  ;;  %v906_v7 = vmul.f32 %v858_v17, %v449_v37  ;;  %v907_v53 = vmul.f32 %v859_v35, %v450_v8  ;;  %v950_v9 = vadd.f32 %v902_v39, %v493_v36  ;;  %v501_v55 = vld [vmem:[%s20581_s2 + $0x40] sm:$0xff]  ;;  %v454_v58 = vld [vmem:[%s20580_s1 + $0x48] sm:$0xff] }
 0x299   : > { %1092 = vst.msk [vmem:[#allocation2 + $0x190] sm:$0xff] %vm388_vm0, %v1044_v45  ;;  %1093 = vst.msk [vmem:[#allocation2 + $0x198] sm:$0xff] %vm388_vm0, %v1045_v51  ;;  %v951_v59 = vadd.f32 %v903_v18, %v494_v15  ;;  %v908_v5 = vmul.f32 %v860_v2, %v451_v26  ;;  %v862_v50 = vmul.f32 %v15429_v12, %v15122_v13  ;;  %v455_v27 = vld [vmem:[%s20580_s1 + $0x50] sm:$0xff]  ;;  %v456_v46 = vld [vmem:[%s20580_s1 + $0x58] sm:$0xff] }
 0x29a   : > { %v952_v44 = vadd.f32 %v904_v21, %v495_v23  ;;  %v953_v10 = vadd.f32 %v905_v63, %v496_v24  ;;  %v954_v57 = vadd.f32 %v906_v7, %v497_v29  ;;  %v955_v32 = vadd.f32 %v907_v53, %v498_v0  ;;  %v502_v45 = vld [vmem:[%s20581_s2 + $0x48] sm:$0xff]  ;;  %v503_v51 = vld [vmem:[%s20581_s2 + $0x50] sm:$0xff]  ;;  %v457_v28 = vld [vmem:[%s20580_s1 + $0x60] sm:$0xff] }
 0x29b   : > { %v998_v20 = vmax.f32 %v950_v9, 0.0  ;;  %v999_v62 = vmax.f32 %v951_v59, 0.0  ;;  %v956_v61 = vadd.f32 %v908_v5, %v499_v48  ;;  %v909_v13 = vmul.f32 %v861_v56, %v452_v4  ;;  %v504_v15 = vld [vmem:[%s20581_s2 + $0x58] sm:$0xff]  ;;  %v505_v42 = vld [vmem:[%s20581_s2 + $0x60] sm:$0xff]  ;;  %v506_v2 = vld [vmem:[%s20581_s2 + $0x68] sm:$0xff] }
 0x29c   : > { %v1000_v41 = vmax.f32 %v952_v44, 0.0  ;;  %v1001_v47 = vmax.f32 %v953_v10, 0.0  ;;  %v1002_v43 = vmax.f32 %v954_v57, 0.0  ;;  %v1003_v49 = vmax.f32 %v955_v32, 0.0  ;;  %v20961_v26 = vld [vmem:[#allocation3_spill] sm:$0xff]  ;;  %v460_v18 = vld [vmem:[%s20580_s1 + $0x78] sm:$0xff] }
 0x29d   : > { %v1211_v33 = vld [vmem:[#allocation2 + $0x168] sm:$0xff]  ;;  %1046 = vst.msk [vmem:[#allocation2 + $0x20] sm:$0xff] %vm388_vm0, %v998_v20  ;;  %1047 = vst.msk [vmem:[#allocation2 + $0x28] sm:$0xff] %vm388_vm0, %v999_v62  ;;  %v1004_v11 = vmax.f32 %v956_v61, 0.0  ;;  %v910_v3 = vmul.f32 %v862_v50, %v453_v6  ;;  %v957_v54 = vadd.f32 %v909_v13, %v500_v14  ;;  %v863_v60 = vmul.f32 %v15429_v12, %v15129_v16  ;;  %v507_v56 = vld [vmem:[%s20581_s2 + $0x70] sm:$0xff] }
 0x29e   : > { %v1212_v40 = vld [vmem:[#allocation2 + $0x170] sm:$0xff]  ;;  %v1213_v52 = vld [vmem:[#allocation2 + $0x178] sm:$0xff]  ;;  %1048 = vst.msk [vmem:[#allocation2 + $0x30] sm:$0xff] %vm388_vm0, %v1000_v41  ;;  %1049 = vst.msk [vmem:[#allocation2 + $0x38] sm:$0xff] %vm388_vm0, %v1001_v47  ;;  %v864_v16 = vmul.f32 %v15429_v12, %v15136_v19  ;;  %v865_v31 = vmul.f32 %v15429_v12, %v15143_v22  ;;  %v866_v23 = vmul.f32 %v15429_v12, %v15150_v25 }
 0x29f   : > { %v1214_v30 = vld [vmem:[#allocation2 + $0x180] sm:$0xff]  ;;  %v1237_v36 = vpack.c.bf16 %v1212_v40, %v1211_v33  ;;  %1050 = vst.msk [vmem:[#allocation2 + $0x40] sm:$0xff] %vm388_vm0, %v1002_v43  ;;  %1051 = vst.msk [vmem:[#allocation2 + $0x48] sm:$0xff] %vm388_vm0, %v1003_v49  ;;  %v958_v34 = vadd.f32 %v910_v3, %v501_v55  ;;  %v1005_v37 = vmax.f32 %v957_v54, 0.0  ;;  %v911_v8 = vmul.f32 %v863_v60, %v454_v58  ;;  %v458_v19 = vld [vmem:[%s20580_s1 + $0x68] sm:$0xff] }
 0x2a0   : > { %v1238_v1 = vpack.c.bf16 %v1214_v30, %v1213_v52  ;;  %1052 = vst.msk [vmem:[#allocation2 + $0x50] sm:$0xff] %vm388_vm0, %v1004_v11  ;;  %v459_v22 = vld [vmem:[%s20580_s1 + $0x70] sm:$0xff]  ;;  %v912_v38 = vmul.f32 %v864_v16, %v455_v27  ;;  %v913_v17 = vmul.f32 %v865_v31, %v456_v46  ;;  %v867_v35 = vmul.f32 %v15429_v12, %v20961_v26  ;;  %v20962_v25 = vld [vmem:[#allocation4_spill] sm:$0xff]  ;;  %v1169_v7 = vld [vmem:[#allocation2 + $0x18] sm:$0xff] }
 0x2a1   : > { %13018 = vmatprep.mubr.msk.bf16.mxu1 %vm388_vm0, %v1237_v36  ;;  %v868_v39 = vmul.f32 %v15429_v12, %v20962_v25  ;;  %v1006_v24 = vmax.f32 %v958_v34, 0.0  ;;  %1053 = vst.msk [vmem:[#allocation2 + $0x58] sm:$0xff] %vm388_vm0, %v1005_v37  ;;  %v959_v29 = vadd.f32 %v911_v8, %v502_v45  ;;  %v914_v0 = vmul.f32 %v866_v23, %v457_v28  ;;  %v20963_v21 = vld [vmem:[#allocation5_spill] sm:$0xff]  ;;  %v461_v59 = vld [vmem:[%s20580_s1 + $0x80] sm:$0xff]  ;;  %v508_v5 = vld [vmem:[%s20581_s2 + $0x78] sm:$0xff] }
 0x2a2   : > { %13019 = vmatmul.mubr.msk.bf16.vlgmr.msra.gmra.mrb[0].mxu1 %vm388_vm0, %v1238_v1  ;;  %v869_v63 = vmul.f32 %v15429_v12, %v20963_v21  ;;  %v960_v48 = vadd.f32 %v912_v38, %v503_v51  ;;  %v961_v53 = vadd.f32 %v913_v17, %v504_v15  ;;  %v915_v4 = vmul.f32 %v867_v35, %v458_v19  ;;  %v475_v50 = vld [vmem:[%s20580_s1 + $0xf0] sm:$0xff]  ;;  %v20964_v57 = vld [vmem:[#allocation6_spill] sm:$0xff]  ;;  %v509_v58 = vld [vmem:[%s20581_s2 + $0x80] sm:$0xff] }
 0x2a3   : > { %v916_v9 = vmul.f32 %v868_v39, %v459_v22  ;;  %1054 = vst.msk [vmem:[#allocation2 + $0x60] sm:$0xff] %vm388_vm0, %v1006_v24  ;;  %v1007_v44 = vmax.f32 %v959_v29, 0.0  ;;  %v962_v10 = vadd.f32 %v914_v0, %v505_v42  ;;  %v870_v32 = vmul.f32 %v15429_v12, %v20964_v57  ;;  %v462_v49 = vld [vmem:[%s20580_s1 + $0x88] sm:$0xff]  ;;  %v20965_v46 = vld [vmem:[#allocation18_spill] sm:$0xff]  ;;  %v463_v3 = vld [vmem:[%s20580_s1 + $0x90] sm:$0xff] }
 0x2a4   : > { %v917_v6 = vmul.f32 %v869_v63, %v460_v18  ;;  %v1170_v14 = vld [vmem:[#allocation2 + $0x20] sm:$0xff]  ;;  %v1171_v20 = vld [vmem:[#allocation2 + $0x28] sm:$0xff]  ;;  %v1008_v62 = vmax.f32 %v960_v48, 0.0  ;;  %v1009_v61 = vmax.f32 %v961_v53, 0.0  ;;  %v963_v55 = vadd.f32 %v915_v4, %v506_v2  ;;  %v20966_v36 = vld [vmem:[#allocation22_spill] sm:$0xff] }
 0x2a5   : > { %v964_v13 = vadd.f32 %v916_v9, %v507_v56  ;;  %v1216_v27 = vpack.c.bf16 %v1170_v14, %v1169_v7  ;;  %v1172_v33 = vld [vmem:[#allocation2 + $0x30] sm:$0xff]  ;;  %1055 = vst.msk [vmem:[#allocation2 + $0x68] sm:$0xff] %vm388_vm0, %v1007_v44  ;;  %v1010_v41 = vmax.f32 %v962_v10, 0.0  ;;  %v918_v47 = vmul.f32 %v870_v32, %v461_v59  ;;  %v510_v54 = vld [vmem:[%s20581_s2 + $0x88] sm:$0xff]  ;;  %v20967_v16 = vld [vmem:[#allocation7_spill] sm:$0xff] }
 0x2a6   : > { %v965_v43 = vadd.f32 %v917_v6, %v508_v5  ;;  %v15746_v40 = vmul.f32 %v15429_v12, %v20965_v46  ;;  %v1217_v52 = vpack.c.bf16 %v1172_v33, %v1171_v20  ;;  %1056 = vst.msk [vmem:[#allocation2 + $0x70] sm:$0xff] %vm388_vm0, %v1008_v62  ;;  %1057 = vst.msk [vmem:[#allocation2 + $0x78] sm:$0xff] %vm388_vm0, %v1009_v61  ;;  %v1011_v30 = vmax.f32 %v963_v55, 0.0  ;;  %v15759_v60 = vld [vmem:[%s20584_s5 + $0x8] sm:$0xf]  ;;  %v464_v31 = vld [vmem:[%s20580_s1 + $0x98] sm:$0xff] }
 0x2a7   : > { %v1012_v11 = vmax.f32 %v964_v13, 0.0  ;;  %v15762_v1 = vmul.f32 %v20966_v36, %v475_v50  ;;  %12975 = vmatmul.mubr.msk.bf16.vlgmr.msra.gmra.mrb[0].mxu0 %vm388_vm0, %v1216_v27  ;;  %1058 = vst.msk [vmem:[#allocation2 + $0x80] sm:$0xff] %vm388_vm0, %v1010_v41  ;;  %v966_v45 = vadd.f32 %v918_v47, %v509_v58  ;;  %v871_v28 = vmul.f32 %v15429_v12, %v20967_v16  ;;  %v465_v34 = vld [vmem:[%s20580_s1 + $0xa0] sm:$0xff]  ;;  %v466_v37 = vld [vmem:[%s20580_s1 + $0xa8] sm:$0xff]  ;;  %v1173_v15 = vld [vmem:[#allocation2 + $0x38] sm:$0xff] }
 0x2a8   : > { %v1013_v51 = vmax.f32 %v965_v43, 0.0  ;;  %v20968_v8 = vld [vmem:[#allocation20_spill] sm:$0xff]  ;;  %12978 = vmatprep.mubr.msk.bf16.mxu0 %vm388_vm0, %v1217_v52  ;;  %v1174_v23 = vld [vmem:[#allocation2 + $0x40] sm:$0xff]  ;;  %1059 = vst.msk [vmem:[#allocation2 + $0x88] sm:$0xff] %vm388_vm0, %v1011_v30  ;;  %v20970_v38 = vld [vmem:[#allocation9_spill] sm:$0xff] }
 0x2a9   : > { %13023 = vmatpush3.bf16.msra.mxu0 %v20968_v8  ;;  %1060 = vst.msk [vmem:[#allocation2 + $0x90] sm:$0xff] %vm388_vm0, %v1012_v11  ;;  %v20969_v19 = vld [vmem:[#allocation8_spill] sm:$0xff]  ;;  %v873_v42 = vmul.f32 %v15429_v12, %v20970_v38  ;;  %v20971_v17 = vld [vmem:[#allocation10_spill] sm:$0xff]  ;;  %v467_v35 = vld [vmem:[%s20580_s1 + $0xb0] sm:$0xff]  ;;  %v1014_v25 = vmax.f32 %v966_v45, 0.0  ;;  %v919_v18 = vmul.f32 %v871_v28, %v462_v49  ;;  %v1218_v50 = vpack.c.bf16 %v1174_v23, %v1173_v15 }
 0x2aa   : > { %v872_v22 = vmul.f32 %v15429_v12, %v20969_v19  ;;  %v874_v26 = vmul.f32 %v15429_v12, %v20971_v17  ;;  %1061 = vst.msk [vmem:[#allocation2 + $0x98] sm:$0xff] %vm388_vm0, %v1013_v51  ;;  %v511_v39 = vld [vmem:[%s20581_s2 + $0x90] sm:$0xff]  ;;  %v512_v24 = vld [vmem:[%s20581_s2 + $0x98] sm:$0xff]  ;;  %v513_v29 = vld [vmem:[%s20581_s2 + $0xa0] sm:$0xff]  ;;  %14655 = vmatprep.subr.msk.bf16.mxu0 %vm1313_vm1, %v15759_v60 }
 0x2ab   : > { %v20972_v0 = vld [vmem:[#allocation11_spill] sm:$0xff]  ;;  %v20973_v56 = vld [vmem:[#allocation12_spill] sm:$0xff]  ;;  %v921_v7 = vmul.f32 %v873_v42, %v464_v31  ;;  %v515_v4 = vld [vmem:[%s20581_s2 + $0xb0] sm:$0xff]  ;;  %1062 = vst.msk [vmem:[#allocation2 + $0xa0] sm:$0xff] %vm388_vm0, %v1014_v25  ;;  %v967_v57 = vadd.f32 %v919_v18, %v510_v54 }
 0x2ac   : > { %v875_v2 = vmul.f32 %v15429_v12, %v20972_v0  ;;  %v876_v21 = vmul.f32 %v15429_v12, %v20973_v56  ;;  %v920_v63 = vmul.f32 %v872_v22, %v463_v3  ;;  %v922_v48 = vmul.f32 %v874_v26, %v465_v34  ;;  %v514_v53 = vld [vmem:[%s20581_s2 + $0xa8] sm:$0xff]  ;;  %v468_v9 = vld [vmem:[%s20580_s1 + $0xb8] sm:$0xff]  ;;  %v20974_v59 = vld [vmem:[#allocation13_spill] sm:$0xff] }
 0x2ad   : > { %v877_v5 = vmul.f32 %v15429_v12, %v20974_v59  ;;  %v1175_v44 = vld [vmem:[#allocation2 + $0x48] sm:$0xff]  ;;  %v1176_v10 = vld [vmem:[#allocation2 + $0x50] sm:$0xff]  ;;  %v969_v20 = vadd.f32 %v921_v7, %v512_v24  ;;  %v469_v61 = vld [vmem:[%s20580_s1 + $0xc0] sm:$0xff]  ;;  %v1015_v27 = vmax.f32 %v967_v57, 0.0 }
 0x2ae   : > { %v923_v32 = vmul.f32 %v875_v2, %v466_v37  ;;  %v924_v6 = vmul.f32 %v876_v21, %v467_v35  ;;  %v968_v14 = vadd.f32 %v920_v63, %v511_v39  ;;  %v970_v62 = vadd.f32 %v922_v48, %v513_v29  ;;  %v20975_v55 = vld [vmem:[#allocation14_spill] sm:$0xff]  ;;  %v517_v11 = vld [vmem:[%s20581_s2 + $0xc0] sm:$0xff]  ;;  %v474_v54 = vld [vmem:[%s20580_s1 + $0xe8] sm:$0xff] }
 0x2af   : > { %v878_v13 = vmul.f32 %v15429_v12, %v20975_v55  ;;  %v476_v58 = vld [vmem:[%s20580_s1 + $0xf8] sm:$0xff]  ;;  %v925_v43 = vmul.f32 %v877_v5, %v468_v9  ;;  %v1219_v49 = vpack.c.bf16 %v1176_v10, %v1175_v44  ;;  %v1017_v52 = vmax.f32 %v969_v20, 0.0  ;;  %v473_v3 = vld [vmem:[%s20580_s1 + $0xe0] sm:$0xff]  ;;  %12979 = vmatmul.mubr.msk.bf16.gmra.mrb[4].mxu0 %vm388_vm0, %v1218_v50  ;;  %1063 = vst.msk [vmem:[#allocation2 + $0xa8] sm:$0xff] %vm388_vm0, %v1015_v27  ;;  %v470_v16 = vld [vmem:[%s20580_s1 + $0xc8] sm:$0xff] }
 0x2b0   : > { %v971_v33 = vadd.f32 %v923_v32, %v514_v53  ;;  %v972_v41 = vadd.f32 %v924_v6, %v515_v4  ;;  %v516_v47 = vld [vmem:[%s20581_s2 + $0xb8] sm:$0xff]  ;;  %v1016_v46 = vmax.f32 %v968_v14, 0.0  ;;  %v1018_v30 = vmax.f32 %v970_v62, 0.0  ;;  %v471_v28 = vld [vmem:[%s20580_s1 + $0xd0] sm:$0xff]  ;;  %v518_v8 = vld [vmem:[%s20581_s2 + $0xc8] sm:$0xff] }
 0x2b1   : > { %v926_v51 = vmul.f32 %v878_v13, %v469_v61  ;;  %v523_v31 = vld [vmem:[%s20581_s2 + $0xf0] sm:$0xff]  ;;  %v933_v34 = vmul.f32 %v15746_v40, %v476_v58  ;;  %12982 = vmatprep.mubr.msk.bf16.mxu0 %vm388_vm0, %v1219_v49  ;;  %1065 = vst.msk [vmem:[#allocation2 + $0xb8] sm:$0xff] %vm388_vm0, %v1017_v52  ;;  %v973_v37 = vadd.f32 %v925_v43, %v516_v47  ;;  %v20976_v15 = vld [vmem:[#allocation15_spill] sm:$0xff]  ;;  %v20977_v19 = vld [vmem:[#allocation16_spill] sm:$0xff] }
 0x2b2   : > { %v1019_v36 = vmax.f32 %v971_v33, 0.0  ;;  %v1020_v45 = vmax.f32 %v972_v41, 0.0  ;;  %1064 = vst.msk [vmem:[#allocation2 + $0xb0] sm:$0xff] %vm388_vm0, %v1016_v46  ;;  %1066 = vst.msk [vmem:[#allocation2 + $0xc0] sm:$0xff] %vm388_vm0, %v1018_v30  ;;  %v879_v23 = vmul.f32 %v15429_v12, %v20976_v15  ;;  %v880_v22 = vmul.f32 %v15429_v12, %v20977_v19  ;;  %v472_v40 = vld [vmem:[%s20580_s1 + $0xd8] sm:$0xff]  ;;  %v521_v38 = vld [vmem:[%s20581_s2 + $0xe0] sm:$0xff] }
 0x2b3   : > { %v974_v42 = vadd.f32 %v926_v51, %v517_v11  ;;  %v519_v17 = vld [vmem:[%s20581_s2 + $0xd0] sm:$0xff]  ;;  %v520_v26 = vld [vmem:[%s20581_s2 + $0xd8] sm:$0xff]  ;;  %v20979_v39 = vld [vmem:[#allocation19_spill] sm:$0xff]  ;;  %v1021_v21 = vmax.f32 %v973_v37, 0.0  ;;  %v980_v48 = vadd.f32 %v15762_v1, %v523_v31 }
 0x2b4   : > { %1067 = vst.msk [vmem:[#allocation2 + $0xc8] sm:$0xff] %vm388_vm0, %v1019_v36  ;;  %1068 = vst.msk [vmem:[#allocation2 + $0xd0] sm:$0xff] %vm388_vm0, %v1020_v45  ;;  %v20978_v35 = vld [vmem:[#allocation17_spill] sm:$0xff]  ;;  %v930_v18 = vmul.f32 %v20979_v39, %v473_v3  ;;  %v522_v24 = vld [vmem:[%s20581_s2 + $0xe8] sm:$0xff]  ;;  %v927_v63 = vmul.f32 %v879_v23, %v470_v16  ;;  %v928_v7 = vmul.f32 %v880_v22, %v471_v28 }
 0x2b5   : > { %v881_v25 = vmul.f32 %v15429_v12, %v20978_v35  ;;  %v20980_v29 = vld [vmem:[#allocation21_spill] sm:$0xff]  ;;  %v1177_v2 = vld [vmem:[#allocation2 + $0x58] sm:$0xff]  ;;  %v1178_v56 = vld [vmem:[#allocation2 + $0x60] sm:$0xff]  ;;  %v1022_v9 = vmax.f32 %v974_v42, 0.0  ;;  %1069 = vst.msk [vmem:[#allocation2 + $0xd8] sm:$0xff] %vm388_vm0, %v1021_v21  ;;  %v1028_v57 = vmax.f32 %v980_v48, 0.0 }
 0x2b6   : > { %v931_v0 = vmul.f32 %v20980_v29, %v474_v54  ;;  %v524_v53 = vld [vmem:[%s20581_s2 + $0xf8] sm:$0xff]  ;;  %v1179_v12 = vld [vmem:[#allocation2 + $0x68] sm:$0xff]  ;;  %v1180_v4 = vld [vmem:[#allocation2 + $0x70] sm:$0xff]  ;;  %v978_v5 = vadd.f32 %v930_v18, %v521_v38  ;;  %v975_v50 = vadd.f32 %v927_v63, %v518_v8  ;;  %v976_v44 = vadd.f32 %v928_v7, %v519_v17 }
 0x2b7   : > { %v929_v59 = vmul.f32 %v881_v25, %v472_v40  ;;  %v1220_v32 = vpack.c.bf16 %v1178_v56, %v1177_v2  ;;  %1070 = vst.msk [vmem:[#allocation2 + $0xe0] sm:$0xff] %vm388_vm0, %v1022_v9  ;;  %v981_v14 = vadd.f32 %v933_v34, %v524_v53  ;;  %v1221_v20 = vpack.c.bf16 %v1180_v4, %v1179_v12  ;;  %v1181_v27 = vld [vmem:[#allocation2 + $0x78] sm:$0xff]  ;;  %v1182_v33 = vld [vmem:[#allocation2 + $0x80] sm:$0xff]  ;;  %v15897_v41 = vld [vmem:[#allocation2 + $0x88] sm:$0xff] }
 0x2b8   : > { %v979_v10 = vadd.f32 %v931_v0, %v522_v24  ;;  %v1026_v1 = vmax.f32 %v978_v5, 0.0  ;;  %v1023_v62 = vmax.f32 %v975_v50, 0.0  ;;  %v1024_v61 = vmax.f32 %v976_v44, 0.0  ;;  %1076 = vst.msk [vmem:[#allocation2 + $0x110] sm:$0xff] %vm388_vm0, %v1028_v57  ;;  %v15899_v47 = vld [vmem:[#allocation2 + $0x90] sm:$0xff]  ;;  %v15905_v46 = vld [vmem:[#allocation2 + $0x98] sm:$0xff] }
 0x2b9   : > { %v977_v6 = vadd.f32 %v929_v59, %v520_v26  ;;  %12983 = vmatmul.mubr.msk.bf16.gmra.mrb[8].mxu0 %vm388_vm0, %v1220_v32  ;;  %v1029_v58 = vmax.f32 %v981_v14, 0.0  ;;  %v1222_v43 = vpack.c.bf16 %v1182_v33, %v1181_v27  ;;  %v1223_v49 = vpack.c.bf16 %v15899_v47, %v15897_v41  ;;  %v15907_v52 = vld [vmem:[#allocation2 + $0xa0] sm:$0xff]  ;;  %v15909_v30 = vld [vmem:[#allocation2 + $0xa8] sm:$0xff]  ;;  %v15911_v11 = vld [vmem:[#allocation2 + $0xb0] sm:$0xff] }
 0x2ba   : > { %v1027_v55 = vmax.f32 %v979_v10, 0.0  ;;  %1074 = vst.msk [vmem:[#allocation2 + $0x100] sm:$0xff] %vm388_vm0, %v1026_v1  ;;  %12986 = vmatprep.mubr.msk.bf16.mxu0 %vm388_vm0, %v1221_v20  ;;  %1071 = vst.msk [vmem:[#allocation2 + $0xe8] sm:$0xff] %vm388_vm0, %v1023_v62  ;;  %v1224_v3 = vpack.c.bf16 %v15907_v52, %v15905_v46  ;;  %v1225_v54 = vpack.c.bf16 %v15911_v11, %v15909_v30  ;;  %v15919_v36 = vld [vmem:[#allocation2 + $0xb8] sm:$0xff]  ;;  %v15921_v45 = vld [vmem:[#allocation2 + $0xc0] sm:$0xff]  ;;  %v1989_v32 = vsel %vm1313_vm1, %v15759_v60, 0 }
 0x2bb   : > { %v1025_v13 = vmax.f32 %v977_v6, 0.0  ;;  %1072 = vst.msk [vmem:[#allocation2 + $0xf0] sm:$0xff] %vm388_vm0, %v1024_v61  ;;  %1077 = vst.msk [vmem:[#allocation2 + $0x118] sm:$0xff] %vm388_vm0, %v1029_v58  ;;  %v15923_v51 = vld [vmem:[#allocation2 + $0xc8] sm:$0xff]  ;;  %v15925_v16 = vld [vmem:[#allocation2 + $0xd0] sm:$0xff]  ;;  %v1226_v28 = vpack.c.bf16 %v15921_v45, %v15919_v36 }
 0x2bc   : > { %1075 = vst.msk [vmem:[#allocation2 + $0x108] sm:$0xff] %vm388_vm0, %v1027_v55  ;;  %20981 = vst [vmem:[#allocation3_spill] sm:$0xff] %v15919_v36  ;;  %v1227_v31 = vpack.c.bf16 %v15925_v16, %v15923_v51  ;;  %v15933_v34 = vld [vmem:[#allocation2 + $0xd8] sm:$0xff]  ;;  %v15963_v25 = vld [vmem:[#allocation2 + $0x120] sm:$0xff] }
 0x2bd   : > { %1073 = vst.msk [vmem:[#allocation2 + $0xf8] sm:$0xff] %vm388_vm0, %v1025_v13  ;;  %20982 = vst [vmem:[#allocation4_spill] sm:$0xff] %v15921_v45  ;;  %v15965_v39 = vld [vmem:[#allocation2 + $0x128] sm:$0xff]  ;;  %v15967_v18 = vld [vmem:[#allocation2 + $0x130] sm:$0xff] }
 0x2be   : > { %20983 = vst [vmem:[#allocation5_spill] sm:$0xff] %v15923_v51  ;;  %20984 = vst [vmem:[#allocation6_spill] sm:$0xff] %v15925_v16  ;;  %v15935_v37 = vld [vmem:[#allocation2 + $0xe0] sm:$0xff]  ;;  %v1233_v29 = vpack.c.bf16 %v15967_v18, %v15965_v39  ;;  %v15975_v0 = vld [vmem:[#allocation2 + $0x138] sm:$0xff] }
 0x2bf   : > { %20985 = vst [vmem:[#allocation18_spill] sm:$0xff] %v15933_v34  ;;  %20986 = vst [vmem:[#allocation22_spill] sm:$0xff] %v15935_v37  ;;  %v1228_v23 = vpack.c.bf16 %v15935_v37, %v15933_v34  ;;  %v15953_v42 = vld [vmem:[#allocation2 + $0x110] sm:$0xff]  ;;  %v15977_v2 = vld [vmem:[#allocation2 + $0x140] sm:$0xff] }
 0x2c0   : > { %20992 = vst [vmem:[#allocation11_spill] sm:$0xff] %v15953_v42  ;;  %20994 = vst [vmem:[#allocation13_spill] sm:$0xff] %v15963_v25  ;;  %v15979_v56 = vld [vmem:[#allocation2 + $0x148] sm:$0xff]  ;;  %v15981_v21 = vld [vmem:[#allocation2 + $0x150] sm:$0xff]  ;;  %v1234_v63 = vpack.c.bf16 %v15977_v2, %v15975_v0 }
 0x2c1   : > { %12987 = vmatmul.mubr.msk.bf16.gmra.mrb[12].mxu0 %vm388_vm0, %v1222_v43  ;;  %v15937_v8 = vld [vmem:[#allocation2 + $0xe8] sm:$0xff]  ;;  %v15949_v40 = vld [vmem:[#allocation2 + $0x100] sm:$0xff]  ;;  %20995 = vst [vmem:[#allocation14_spill] sm:$0xff] %v15965_v39  ;;  %20996 = vst [vmem:[#allocation15_spill] sm:$0xff] %v15967_v18  ;;  %v1235_v7 = vpack.c.bf16 %v15981_v21, %v15979_v56 }
 0x2c2   : > { %12990 = vmatprep.mubr.msk.bf16.mxu0 %vm388_vm0, %v1223_v49  ;;  %20987 = vst [vmem:[#allocation7_spill] sm:$0xff] %v15937_v8  ;;  %v15939_v15 = vld [vmem:[#allocation2 + $0xf0] sm:$0xff]  ;;  %20990 = vst [vmem:[#allocation9_spill] sm:$0xff] %v15949_v40  ;;  %v15961_v35 = vld [vmem:[#allocation2 + $0x118] sm:$0xff] }
 0x2c3   : > { %20988 = vst [vmem:[#allocation20_spill] sm:$0xff] %v15939_v15  ;;  %v1229_v19 = vpack.c.bf16 %v15939_v15, %v15937_v8  ;;  %v15951_v38 = vld [vmem:[#allocation2 + $0x108] sm:$0xff]  ;;  %20993 = vst [vmem:[#allocation12_spill] sm:$0xff] %v15961_v35  ;;  %v1232_v24 = vpack.c.bf16 %v15963_v25, %v15961_v35  ;;  %v15989_v12 = vld [vmem:[#allocation2 + $0x158] sm:$0xff] }
 0x2c4   : > { %v15947_v22 = vld [vmem:[#allocation2 + $0xf8] sm:$0xff]  ;;  %20991 = vst [vmem:[#allocation10_spill] sm:$0xff] %v15951_v38  ;;  %v1231_v26 = vpack.c.bf16 %v15953_v42, %v15951_v38  ;;  %20997 = vst [vmem:[#allocation16_spill] sm:$0xff] %v15975_v0  ;;  %v1094_v48 = vld [vmem:[#allocation2 + $0x7] sm:$0xff] }
 0x2c5   : > { %20989 = vst [vmem:[#allocation8_spill] sm:$0xff] %v15947_v22  ;;  %v1230_v17 = vpack.c.bf16 %v15949_v40, %v15947_v22  ;;  %20998 = vst [vmem:[#allocation17_spill] sm:$0xff] %v15977_v2  ;;  %v1095_v53 = vld [vmem:[#allocation2 + $0xf] sm:$0xff]  ;;  %v15991_v4 = vld [vmem:[#allocation2 + $0x160] sm:$0xff] }
 0x2c6   : > { %20999 = vst [vmem:[#allocation19_spill] sm:$0xff] %v15979_v56  ;;  %21000 = vst [vmem:[#allocation21_spill] sm:$0xff] %v15981_v21  ;;  %v1142_v9 = vpack.c.bf16 %v1095_v53, %v1094_v48  ;;  %v1236_v59 = vpack.c.bf16 %v15991_v4, %v15989_v12  ;;  %v1096_v5 = vld [vmem:[#allocation2 + $0x17] sm:$0xff]  ;;  %v15997_v50 = vld [vmem:[#allocation2 + $0x1f] sm:$0xff] }
 0x2c7   : > { %21001 = vst [vmem:[#allocation23_spill] sm:$0xff] %v15989_v12  ;;  %21002 = vst [vmem:[#allocation24_spill] sm:$0xff] %v15991_v4  ;;  %v15999_v44 = vld [vmem:[#allocation2 + $0x27] sm:$0xff]  ;;  %v16001_v10 = vld [vmem:[#allocation2 + $0x2f] sm:$0xff]  ;;  %v1143_v57 = vpack.c.bf16 %v15997_v50, %v1096_v5 }
 0x2c8   : > { %v1144_v6 = vpack.c.bf16 %v16001_v10, %v15999_v44  ;;  %v16011_v1 = vld [vmem:[%s20584_s5 + $0xc] sm:$0xf]  ;;  %v16017_v14 = vld [vmem:[#allocation2 + $0x37] sm:$0xff]  ;;  %v16019_v20 = vld [vmem:[#allocation2 + $0x3f] sm:$0xff] }
 0x2c9   : > { %12991 = vmatmul.mubr.msk.bf16.gmra.mrb[16].mxu0 %vm388_vm0, %v1224_v3  ;;  %v16021_v60 = vld [vmem:[#allocation2 + $0x47] sm:$0xff]  ;;  %v16023_v62 = vld [vmem:[#allocation2 + $0x4f] sm:$0xff]  ;;  %v16027_v61 = vpack.c.bf16 %v16019_v20, %v16017_v14  ;;  %v16037_v13 = vld [vmem:[#allocation2 + $0x57] sm:$0xff] }
 0x2ca   : > { %12994 = vmatprep.mubr.msk.bf16.mxu0 %vm388_vm0, %v1225_v54  ;;  %v16031_v55 = vpack.c.bf16 %v16023_v62, %v16021_v60  ;;  %v16039_v58 = vld [vmem:[#allocation2 + $0x5f] sm:$0xff]  ;;  %v16041_v27 = vld [vmem:[#allocation2 + $0x67] sm:$0xff]  ;;  %v16043_v33 = vld [vmem:[#allocation2 + $0x6f] sm:$0xff] }
 0x2cb   : > { %21003 = vst [vmem:[#allocation25_spill] sm:$0xff] %v16027_v61  ;;  %v16047_v43 = vpack.c.bf16 %v16039_v58, %v16037_v13  ;;  %v16051_v49 = vpack.c.bf16 %v16043_v33, %v16041_v27  ;;  %v16057_v3 = vld [vmem:[#allocation2 + $0x77] sm:$0xff]  ;;  %v16059_v54 = vld [vmem:[#allocation2 + $0x7f] sm:$0xff]  ;;  %v16161_v4 = vld [vmem:[#allocation2 + $0x127] sm:$0xff] }
 0x2cc   : > { %21004 = vst [vmem:[#allocation26_spill] sm:$0xff] %v16031_v55  ;;  %v16097_v48 = vld [vmem:[#allocation2 + $0xb7] sm:$0xff]  ;;  %v16099_v53 = vld [vmem:[#allocation2 + $0xbf] sm:$0xff]  ;;  %v16163_v12 = vld [vmem:[#allocation2 + $0x12f] sm:$0xff] }
 0x2cd   : > { %21005 = vst [vmem:[#allocation27_spill] sm:$0xff] %v16047_v43  ;;  %21006 = vst [vmem:[#allocation28_spill] sm:$0xff] %v16051_v49  ;;  %v16107_v5 = vpack.c.bf16 %v16099_v53, %v16097_v48  ;;  %v16171_v56 = vpack.c.bf16 %v16163_v12, %v16161_v4  ;;  %v16181_v2 = vld [vmem:[#allocation2 + $0x147] sm:$0xff]  ;;  %v16183_v0 = vld [vmem:[#allocation2 + $0x14f] sm:$0xff] }
 0x2ce   : > { %v16191_v39 = vpack.c.bf16 %v16183_v0, %v16181_v2  ;;  %v16201_v25 = vld [vmem:[#allocation2 + $0x167] sm:$0xff]  ;;  %v16203_v35 = vld [vmem:[#allocation2 + $0x16f] sm:$0xff]  ;;  %v16217_v40 = vld [vmem:[#allocation2 + $0x177] sm:$0xff] }
 0x2cf   : > { %21011 = vst [vmem:[#allocation33_spill] sm:$0xff] %v16107_v5  ;;  %21018 = vst [vmem:[#allocation40_spill] sm:$0xff] %v16171_v56  ;;  %v16211_v38 = vpack.c.bf16 %v16203_v35, %v16201_v25  ;;  %v16219_v22 = vld [vmem:[#allocation2 + $0x17f] sm:$0xff]  ;;  %v16232_v34 = vld [vmem:[#allocation2 + $0x31] sm:$0xff] }
 0x2d0   : > { %21020 = vst [vmem:[#allocation42_spill] sm:$0xff] %v16191_v39  ;;  %v16223_v8 = vpack.c.bf16 %v16219_v22, %v16217_v40  ;;  %v16228_v37 = vld [vmem:[#allocation2 + $0x21] sm:$0xff]  ;;  %21026 = vst [vmem:[#allocation48_spill] sm:$0xff] %v16232_v34  ;;  %v16268_v51 = vld [vmem:[#allocation2 + $0x71] sm:$0xff] }
 0x2d1   : > { %12995 = vmatmul.mubr.msk.bf16.gmra.mrb[20].mxu0 %vm388_vm0, %v1226_v28  ;;  %v16061_v28 = vld [vmem:[#allocation2 + $0x87] sm:$0xff]  ;;  %21022 = vst [vmem:[#allocation44_spill] sm:$0xff] %v16211_v38  ;;  %21024 = vst [vmem:[#allocation46_spill] sm:$0xff] %v16228_v37 }
 0x2d2   : > { %12998 = vmatprep.mubr.msk.bf16.mxu0 %vm388_vm0, %v1227_v31  ;;  %v16063_v31 = vld [vmem:[#allocation2 + $0x8f] sm:$0xff]  ;;  %21023 = vst [vmem:[#allocation45_spill] sm:$0xff] %v16223_v8  ;;  %21034 = vst [vmem:[#allocation56_spill] sm:$0xff] %v16268_v51  ;;  %v16300_v36 = vld [vmem:[#allocation2 + $0xa1] sm:$0xff] }
 0x2d3   : > { %21043 = vst [vmem:[#allocation65_spill] sm:$0xff] %v16300_v36 }
 0x2d9   : > { %12999 = vmatmul.mubr.msk.bf16.gmra.mrb[24].mxu0 %vm388_vm0, %v1228_v23  ;;  %v16067_v23 = vpack.c.bf16 %v16059_v54, %v16057_v3 }
 0x2da   : > { %13002 = vmatprep.mubr.msk.bf16.mxu0 %vm388_vm0, %v1229_v19  ;;  %v16071_v19 = vpack.c.bf16 %v16063_v31, %v16061_v28 }
 0x2db   : > { %21007 = vst [vmem:[#allocation29_spill] sm:$0xff] %v16067_v23 }
 0x2dc   : > { %21008 = vst [vmem:[#allocation30_spill] sm:$0xff] %v16071_v19 }
 0x2e1   : > { %13003 = vmatmul.mubr.msk.bf16.gmra.mrb[28].mxu0 %vm388_vm0, %v1230_v17  ;;  %v16077_v17 = vld [vmem:[#allocation2 + $0x97] sm:$0xff] }
 0x2e2   : > { %13006 = vmatprep.mubr.msk.bf16.mxu0 %vm388_vm0, %v1231_v26  ;;  %v16079_v26 = vld [vmem:[#allocation2 + $0x9f] sm:$0xff] }
 0x2e9   : > { %13007 = vmatmul.mubr.msk.bf16.gmra.mrb[32].mxu0 %vm388_vm0, %v1232_v24  ;;  %v16081_v24 = vld [vmem:[#allocation2 + $0xa7] sm:$0xff] }
 0x2ea   : > { %13010 = vmatprep.mubr.msk.bf16.mxu0 %vm388_vm0, %v1233_v29  ;;  %v16083_v29 = vld [vmem:[#allocation2 + $0xaf] sm:$0xff] }
 0x2f1   : > { %13011 = vmatmul.mubr.msk.bf16.gmra.mrb[36].mxu0 %vm388_vm0, %v1234_v63  ;;  %v16087_v63 = vpack.c.bf16 %v16079_v26, %v16077_v17 }
 0x2f2   : > { %13014 = vmatprep.mubr.msk.bf16.mxu0 %vm388_vm0, %v1235_v7  ;;  %v16091_v7 = vpack.c.bf16 %v16083_v29, %v16081_v24 }
 0x2f3   : > { %21009 = vst [vmem:[#allocation31_spill] sm:$0xff] %v16087_v63 }
 0x2f4   : > { %21010 = vst [vmem:[#allocation32_spill] sm:$0xff] %v16091_v7 }
 0x2f9   : > { %13015 = vmatmul.mubr.msk.bf16.gmra.mrb[40].mxu0 %vm388_vm0, %v1236_v59  ;;  %v16103_v59 = vld [vmem:[#allocation2 + $0xcf] sm:$0xff] }
 0x2fa   : > { %13024 = vmatprep.mubr.msk.bf16.mxu0 %vm388_vm0, %v1142_v9  ;;  %v16101_v9 = vld [vmem:[#allocation2 + $0xc7] sm:$0xff] }
 0x301   : > { %13025 = vmatmul.mubr.msk.bf16.vlgmr.msra.gmra.mrb[0].mxu0 %vm388_vm0, %v1143_v57  ;;  %v16111_v57 = vpack.c.bf16 %v16103_v59, %v16101_v9 }
 0x302   : > { %13073 = vmatpush3.bf16.msra.mxu0 %v1989_v32  ;;  %13028 = vmatprep.mubr.msk.bf16.mxu0 %vm388_vm0, %v1144_v6  ;;  %v16117_v32 = vld [vmem:[#allocation2 + $0xd7] sm:$0xff]  ;;  %v16119_v6 = vld [vmem:[#allocation2 + $0xdf] sm:$0xff] }
 0x303   : > { %14656 = vmatprep.subr.msk.bf16.mxu0 %vm1313_vm1, %v16011_v1  ;;  %21012 = vst [vmem:[#allocation34_spill] sm:$0xff] %v16111_v57 }
 0x309   : > { %13029 = vmatmul.mubr.msk.bf16.gmra.mrb[4].mxu0 %vm388_vm0, %v16027_v61 }
 0x30a   : > { %13032 = vmatprep.mubr.msk.bf16.mxu0 %vm388_vm0, %v16031_v55 }
 0x311   : > { %13033 = vmatmul.mubr.msk.bf16.gmra.mrb[8].mxu0 %vm388_vm0, %v16047_v43  ;;  %v16143_v43 = vld [vmem:[#allocation2 + $0x10f] sm:$0xff] }
 0x312   : > { %13036 = vmatprep.mubr.msk.bf16.mxu0 %vm388_vm0, %v16051_v49  ;;  %v16141_v49 = vld [vmem:[#allocation2 + $0x107] sm:$0xff] }
 0x313   : > { %v16151_v61 = vpack.c.bf16 %v16143_v43, %v16141_v49 }
 0x315   : > { %21016 = vst [vmem:[#allocation38_spill] sm:$0xff] %v16151_v61 }
 0x319   : > { %13037 = vmatmul.mubr.msk.bf16.gmra.mrb[12].mxu0 %vm388_vm0, %v16067_v23 }
 0x31a   : > { %13040 = vmatprep.mubr.msk.bf16.mxu0 %vm388_vm0, %v16071_v19  ;;  %v16127_v19 = vpack.c.bf16 %v16119_v6, %v16117_v32 }
 0x31c   : > { %21013 = vst [vmem:[#allocation35_spill] sm:$0xff] %v16127_v19 }
 0x321   : > { %13041 = vmatmul.mubr.msk.bf16.gmra.mrb[16].mxu0 %vm388_vm0, %v16087_v63  ;;  %v16123_v63 = vld [vmem:[#allocation2 + $0xef] sm:$0xff] }
 0x322   : > { %13044 = vmatprep.mubr.msk.bf16.mxu0 %vm388_vm0, %v16091_v7  ;;  %v16121_v7 = vld [vmem:[#allocation2 + $0xe7] sm:$0xff] }
 0x323   : > { %v16131_v23 = vpack.c.bf16 %v16123_v63, %v16121_v7 }
 0x325   : > { %21014 = vst [vmem:[#allocation36_spill] sm:$0xff] %v16131_v23 }
 0x329   : > { %13045 = vmatmul.mubr.msk.bf16.gmra.mrb[20].mxu0 %vm388_vm0, %v16107_v5  ;;  %v16139_v5 = vld [vmem:[#allocation2 + $0xff] sm:$0xff] }
 0x32a   : > { %13048 = vmatprep.mubr.msk.bf16.mxu0 %vm388_vm0, %v16111_v57  ;;  %v16137_v57 = vld [vmem:[#allocation2 + $0xf7] sm:$0xff] }
 0x32b   : > { %v16147_v55 = vpack.c.bf16 %v16139_v5, %v16137_v57 }
 0x32d   : > { %21015 = vst [vmem:[#allocation37_spill] sm:$0xff] %v16147_v55 }
 0x331   : > { %13049 = vmatmul.mubr.msk.bf16.gmra.mrb[24].mxu0 %vm388_vm0, %v16127_v19  ;;  %v16159_v19 = vld [vmem:[#allocation2 + $0x11f] sm:$0xff] }
 0x332   : > { %13052 = vmatprep.mubr.msk.bf16.mxu0 %vm388_vm0, %v16131_v23  ;;  %v16157_v23 = vld [vmem:[#allocation2 + $0x117] sm:$0xff] }
 0x333   : > { %v16167_v21 = vpack.c.bf16 %v16159_v19, %v16157_v23 }
 0x335   : > { %21017 = vst [vmem:[#allocation39_spill] sm:$0xff] %v16167_v21 }
 0x339   : > { %13053 = vmatmul.mubr.msk.bf16.gmra.mrb[28].mxu0 %vm388_vm0, %v16147_v55  ;;  %v16179_v55 = vld [vmem:[#allocation2 + $0x13f] sm:$0xff] }
 0x33a   : > { %13056 = vmatprep.mubr.msk.bf16.mxu0 %vm388_vm0, %v16151_v61  ;;  %v16177_v61 = vld [vmem:[#allocation2 + $0x137] sm:$0xff] }
 0x33b   : > { %v16187_v18 = vpack.c.bf16 %v16179_v55, %v16177_v61 }
 0x33d   : > { %21019 = vst [vmem:[#allocation41_spill] sm:$0xff] %v16187_v18 }
 0x341   : > { %13057 = vmatmul.mubr.msk.bf16.gmra.mrb[32].mxu0 %vm388_vm0, %v16167_v21  ;;  %v16199_v21 = vld [vmem:[#allocation2 + $0x15f] sm:$0xff] }
 0x342   : > { %13060 = vmatprep.mubr.msk.bf16.mxu0 %vm388_vm0, %v16171_v56  ;;  %v16197_v56 = vld [vmem:[#allocation2 + $0x157] sm:$0xff] }
 0x343   : > { %v16207_v42 = vpack.c.bf16 %v16199_v21, %v16197_v56 }
 0x345   : > { %21021 = vst [vmem:[#allocation43_spill] sm:$0xff] %v16207_v42 }
 0x349   : > { %13061 = vmatmul.mubr.msk.bf16.gmra.mrb[36].mxu0 %vm388_vm0, %v16187_v18  ;;  %v1843_v18 = vld [vmem:[#allocation2 + $0x11] sm:$0xff] }
 0x34a   : > { %13064 = vmatprep.mubr.msk.bf16.mxu0 %vm388_vm0, %v16191_v39  ;;  %v1842_v39 = vld [vmem:[#allocation2 + $0x9] sm:$0xff] }
 0x34b   : > { %v1890_v15 = vpack.c.bf16 %v1843_v18, %v1842_v39  ;;  %v2411_v39 = vsel %vm1313_vm1, %v16011_v1, 0  ;;  %v16252_v1 = vld [vmem:[#allocation2 + $0x49] sm:$0xff] }
 0x34c   : > { %21029 = vst [vmem:[#allocation51_spill] sm:$0xff] %v16252_v1 }
 0x351   : > { %13065 = vmatmul.mubr.msk.bf16.gmra.mrb[40].mxu0 %vm388_vm0, %v16207_v42  ;;  %v1844_v42 = vld [vmem:[#allocation2 + $0x19] sm:$0xff] }
 0x352   : > { %13068 = vmatprep.mubr.msk.bf16.mxu0 %vm388_vm0, %v16211_v38  ;;  %v16230_v38 = vld [vmem:[#allocation2 + $0x29] sm:$0xff]  ;;  %v1891_v16 = vpack.c.bf16 %v16228_v37, %v1844_v42  ;;  %v16250_v42 = vld [vmem:[#allocation2 + $0x41] sm:$0xff] }
 0x353   : > { %21025 = vst [vmem:[#allocation47_spill] sm:$0xff] %v16230_v38  ;;  %v1892_v18 = vpack.c.bf16 %v16232_v34, %v16230_v38  ;;  %21028 = vst [vmem:[#allocation50_spill] sm:$0xff] %v16250_v42  ;;  %v16254_v34 = vld [vmem:[#allocation2 + $0x51] sm:$0xff]  ;;  %v16266_v37 = vld [vmem:[#allocation2 + $0x69] sm:$0xff] }
 0x354   : > { %21030 = vst [vmem:[#allocation52_spill] sm:$0xff] %v16254_v34  ;;  %21033 = vst [vmem:[#allocation55_spill] sm:$0xff] %v16266_v37 }
 0x359   : > { %13069 = vmatmul.mubr.msk.bf16.gmra.mrb[44].mxu0 %vm388_vm0, %v16223_v8  ;;  %v16242_v8 = vld [vmem:[%s20584_s5 + $0x10] sm:$0xf] }
 0x35a   : > { %13074 = vmatprep.mubr.msk.bf16.mxu0 %vm388_vm0, %v1890_v15  ;;  %v16248_v15 = vld [vmem:[#allocation2 + $0x39] sm:$0xff] }
 0x35b   : > { %21027 = vst [vmem:[#allocation49_spill] sm:$0xff] %v16248_v15  ;;  %v1893_v38 = vpack.c.bf16 %v16250_v42, %v16248_v15  ;;  %v1896_v42 = vpack.c.bf16 %v16268_v51, %v16266_v37  ;;  %v16298_v37 = vld [vmem:[#allocation2 + $0x99] sm:$0xff] }
 0x35c   : > { %21042 = vst [vmem:[#allocation64_spill] sm:$0xff] %v16298_v37 }
 0x361   : > { %13075 = vmatmul.mubr.msk.bf16.vlgmr.msra.gmra.mrb[0].mxu0 %vm388_vm0, %v1891_v16  ;;  %v1894_v16 = vpack.c.bf16 %v16254_v34, %v16252_v1  ;;  %v16280_v34 = vld [vmem:[#allocation2 + $0x89] sm:$0xff]  ;;  %v16282_v1 = vld [vmem:[#allocation2 + $0x91] sm:$0xff] }
 0x362   : > { %13123 = vmatpush3.bf16.msra.mxu0 %v2411_v39  ;;  %13078 = vmatprep.mubr.msk.bf16.mxu0 %vm388_vm0, %v1892_v18  ;;  %v16262_v39 = vld [vmem:[#allocation2 + $0x59] sm:$0xff]  ;;  %v16264_v18 = vld [vmem:[#allocation2 + $0x61] sm:$0xff]  ;;  %21036 = vst [vmem:[#allocation58_spill] sm:$0xff] %v16280_v34  ;;  %21037 = vst [vmem:[#allocation59_spill] sm:$0xff] %v16282_v1 }
 0x363   : > { %14657 = vmatprep.subr.msk.bf16.mxu0 %vm1313_vm1, %v16242_v8  ;;  %21031 = vst [vmem:[#allocation53_spill] sm:$0xff] %v16262_v39  ;;  %21032 = vst [vmem:[#allocation54_spill] sm:$0xff] %v16264_v18  ;;  %v1895_v45 = vpack.c.bf16 %v16264_v18, %v16262_v39 }
 0x369   : > { %13079 = vmatmul.mubr.msk.bf16.gmra.mrb[4].mxu0 %vm388_vm0, %v1893_v38  ;;  %v16276_v38 = vld [vmem:[#allocation2 + $0x79] sm:$0xff] }
 0x36a   : > { %13082 = vmatprep.mubr.msk.bf16.mxu0 %vm388_vm0, %v1894_v16  ;;  %v16278_v16 = vld [vmem:[#allocation2 + $0x81] sm:$0xff] }
 0x36b   : > { %21035 = vst [vmem:[#allocation57_spill] sm:$0xff] %v16278_v16  ;;  %v1897_v18 = vpack.c.bf16 %v16278_v16, %v16276_v38  ;;  %v16304_v16 = vld [vmem:[#allocation2 + $0xb1] sm:$0xff] }
 0x36c   : > { %21045 = vst [vmem:[#allocation67_spill] sm:$0xff] %v16304_v16 }
 0x371   : > { %13083 = vmatmul.mubr.msk.bf16.gmra.mrb[8].mxu0 %vm388_vm0, %v1895_v45  ;;  %v1898_v45 = vpack.c.bf16 %v16282_v1, %v16280_v34  ;;  %v16318_v1 = vld [vmem:[#allocation2 + $0xd1] sm:$0xff] }
 0x372   : > { %13086 = vmatprep.mubr.msk.bf16.mxu0 %vm388_vm0, %v1896_v42  ;;  %21049 = vst [vmem:[#allocation71_spill] sm:$0xff] %v16318_v1 }
 0x375   : > { %v16284_v15 = vpop.f32.mrb[0].mxu1 }
 0x376   : > { %21038 = vst [vmem:[#allocation60_spill] sm:$0xff] %v16284_v15  ;;  %v16288_v39 = vpop.f32.mrb[1].mxu1  ;;  %v16302_v15 = vld [vmem:[#allocation2 + $0xa9] sm:$0xff] }
 0x377   : > { %21039 = vst [vmem:[#allocation61_spill] sm:$0xff] %v16288_v39  ;;  %v16292_v51 = vpop.f32.mrb[2].mxu1  ;;  %21044 = vst [vmem:[#allocation66_spill] sm:$0xff] %v16302_v15  ;;  %v1899_v39 = vpack.c.bf16 %v16300_v36, %v16298_v37 }
 0x378   : > { %21040 = vst [vmem:[#allocation62_spill] sm:$0xff] %v16292_v51  ;;  %v16295_v42 = vpop.f32.mrb[3].mxu1  ;;  %v1900_v51 = vpack.c.bf16 %v16304_v16, %v16302_v15  ;;  %v16330_v16 = vld [vmem:[#allocation2 + $0xe9] sm:$0xff]  ;;  %v16332_v15 = vld [vmem:[#allocation2 + $0xf1] sm:$0xff] }
 0x379   : > { %13087 = vmatmul.mubr.msk.bf16.gmra.mrb[12].mxu0 %vm388_vm0, %v1897_v18  ;;  %21041 = vst [vmem:[#allocation63_spill] sm:$0xff] %v16295_v42  ;;  %v16312_v18 = vld [vmem:[#allocation2 + $0xb9] sm:$0xff]  ;;  %v16316_v42 = vld [vmem:[#allocation2 + $0xc9] sm:$0xff]  ;;  %21052 = vst [vmem:[#allocation74_spill] sm:$0xff] %v16330_v16 }
 0x37a   : > { %13090 = vmatprep.mubr.msk.bf16.mxu0 %vm388_vm0, %v1898_v45  ;;  %21046 = vst [vmem:[#allocation68_spill] sm:$0xff] %v16312_v18  ;;  %v16314_v45 = vld [vmem:[#allocation2 + $0xc1] sm:$0xff]  ;;  %21048 = vst [vmem:[#allocation70_spill] sm:$0xff] %v16316_v42  ;;  %v1902_v36 = vpack.c.bf16 %v16318_v1, %v16316_v42  ;;  %v16344_v1 = vld [vmem:[#allocation2 + $0x109] sm:$0xff] }
 0x37b   : > { %21047 = vst [vmem:[#allocation69_spill] sm:$0xff] %v16314_v45  ;;  %v1901_v34 = vpack.c.bf16 %v16314_v45, %v16312_v18  ;;  %21053 = vst [vmem:[#allocation75_spill] sm:$0xff] %v16332_v15  ;;  %v1904_v45 = vpack.c.bf16 %v16332_v15, %v16330_v16  ;;  %v16346_v42 = vld [vmem:[#allocation2 + $0x111] sm:$0xff]  ;;  %v16358_v15 = vld [vmem:[#allocation2 + $0x129] sm:$0xff] }
 0x37c   : > { %21056 = vst [vmem:[#allocation78_spill] sm:$0xff] %v16344_v1  ;;  %21057 = vst [vmem:[#allocation79_spill] sm:$0xff] %v16346_v42  ;;  %v16360_v16 = vld [vmem:[#allocation2 + $0x131] sm:$0xff] }
 0x37d   : > { %21060 = vst [vmem:[#allocation82_spill] sm:$0xff] %v16358_v15  ;;  %21061 = vst [vmem:[#allocation83_spill] sm:$0xff] %v16360_v16 }
 0x381   : > { %13091 = vmatmul.mubr.msk.bf16.gmra.mrb[16].mxu0 %vm388_vm0, %v1899_v39  ;;  %v16326_v39 = vld [vmem:[#allocation2 + $0xd9] sm:$0xff] }
 0x382   : > { %13094 = vmatprep.mubr.msk.bf16.mxu0 %vm388_vm0, %v1900_v51  ;;  %21050 = vst [vmem:[#allocation72_spill] sm:$0xff] %v16326_v39  ;;  %v16328_v51 = vld [vmem:[#allocation2 + $0xe1] sm:$0xff] }
 0x383   : > { %21051 = vst [vmem:[#allocation73_spill] sm:$0xff] %v16328_v51  ;;  %v1903_v37 = vpack.c.bf16 %v16328_v51, %v16326_v39  ;;  %v1906_v51 = vpack.c.bf16 %v16346_v42, %v16344_v1  ;;  %v16372_v42 = vld [vmem:[#allocation2 + $0x149] sm:$0xff]  ;;  %v16374_v1 = vld [vmem:[#allocation2 + $0x151] sm:$0xff] }
 0x384   : > { %21063 = vst [vmem:[#allocation85_spill] sm:$0xff] %v16372_v42  ;;  %21064 = vst [vmem:[#allocation86_spill] sm:$0xff] %v16374_v1 }
 0x389   : > { %13095 = vmatmul.mubr.msk.bf16.gmra.mrb[20].mxu0 %vm388_vm0, %v1901_v34  ;;  %v16340_v34 = vld [vmem:[#allocation2 + $0xf9] sm:$0xff] }
 0x38a   : > { %13098 = vmatprep.mubr.msk.bf16.mxu0 %vm388_vm0, %v1902_v36  ;;  %21054 = vst [vmem:[#allocation76_spill] sm:$0xff] %v16340_v34  ;;  %v16342_v36 = vld [vmem:[#allocation2 + $0x101] sm:$0xff] }
 0x38b   : > { %21055 = vst [vmem:[#allocation77_spill] sm:$0xff] %v16342_v36  ;;  %v1905_v18 = vpack.c.bf16 %v16342_v36, %v16340_v34  ;;  %v1908_v36 = vpack.c.bf16 %v16360_v16, %v16358_v15  ;;  %v16386_v16 = vld [vmem:[#allocation2 + $0x169] sm:$0xff]  ;;  %v16388_v15 = vld [vmem:[#allocation2 + $0x171] sm:$0xff] }
 0x38c   : > { %21065 = vst [vmem:[#allocation87_spill] sm:$0xff] %v16388_v15 }
 0x391   : > { %13099 = vmatmul.mubr.msk.bf16.gmra.mrb[24].mxu0 %vm388_vm0, %v1903_v37  ;;  %v16354_v37 = vld [vmem:[#allocation2 + $0x119] sm:$0xff] }
 0x392   : > { %13102 = vmatprep.mubr.msk.bf16.mxu0 %vm388_vm0, %v1904_v45  ;;  %21058 = vst [vmem:[#allocation80_spill] sm:$0xff] %v16354_v37  ;;  %v16356_v45 = vld [vmem:[#allocation2 + $0x121] sm:$0xff] }
 0x393   : > { %21059 = vst [vmem:[#allocation81_spill] sm:$0xff] %v16356_v45  ;;  %v1907_v39 = vpack.c.bf16 %v16356_v45, %v16354_v37  ;;  %v1910_v45 = vpack.c.bf16 %v16374_v1, %v16372_v42  ;;  %v2312_v42 = vpack.c.bf16 %v15999_v44, %v15997_v50  ;;  %v2315_v50 = vpack.c.bf16 %v16037_v13, %v16023_v62 }
 0x394   : > { %v2317_v44 = vpack.c.bf16 %v16057_v3, %v16043_v33  ;;  %v2322_v62 = vpack.c.bf16 %v16101_v9, %v16099_v53  ;;  %v2323_v13 = vpack.c.bf16 %v16117_v32, %v16103_v59  ;;  %v2326_v33 = vpack.c.bf16 %v16141_v49, %v16139_v5  ;;  %v16521_v59 = vld [vmem:[#allocation2 + $0x70] sm:$0xff]  ;;  %v16523_v5 = vld [vmem:[#allocation2 + $0x78] sm:$0xff] }
 0x395   : > { %v2327_v3 = vpack.c.bf16 %v16157_v23, %v16143_v43  ;;  %v2330_v49 = vpack.c.bf16 %v16181_v2, %v16179_v55  ;;  %v2331_v43 = vpack.c.bf16 %v16197_v56, %v16183_v0  ;;  %v16480_v0 = vld [vmem:[#allocation2 + $0x18f] sm:$0xff]  ;;  %v16482_v56 = vld [vmem:[#allocation2 + $0x197] sm:$0xff]  ;;  %v2739_v32 = vpack.c.bf16 %v16523_v5, %v16521_v59 }
 0x396   : > { %v16492_v23 = vld [vmem:[#allocation2 + $0x48] sm:$0xff] }
 0x399   : > { %13103 = vmatmul.mubr.msk.bf16.gmra.mrb[28].mxu0 %vm388_vm0, %v1905_v18  ;;  %v16368_v18 = vld [vmem:[#allocation2 + $0x139] sm:$0xff] }
 0x39a   : > { %13106 = vmatprep.mubr.msk.bf16.mxu0 %vm388_vm0, %v1906_v51  ;;  %v16370_v51 = vld [vmem:[#allocation2 + $0x141] sm:$0xff] }
 0x39b   : > { %21062 = vst [vmem:[#allocation84_spill] sm:$0xff] %v16370_v51  ;;  %v1909_v34 = vpack.c.bf16 %v16370_v51, %v16368_v18  ;;  %v1912_v51 = vpack.c.bf16 %v16388_v15, %v16386_v16  ;;  %v2313_v15 = vpack.c.bf16 %v16017_v14, %v16001_v10  ;;  %v2318_v10 = vpack.c.bf16 %v16061_v28, %v16059_v54 }
 0x39c   : > { %v2319_v14 = vpack.c.bf16 %v16077_v17, %v16063_v31  ;;  %v2328_v54 = vpack.c.bf16 %v16161_v4, %v16159_v19  ;;  %v2329_v28 = vpack.c.bf16 %v16177_v61, %v16163_v12  ;;  %v2332_v4 = vpack.c.bf16 %v16201_v25, %v16199_v21  ;;  %v16472_v31 = vld [vmem:[#allocation2 + $0x187] sm:$0xff] }
 0x39d   : > { %v2333_v12 = vpack.c.bf16 %v16217_v40, %v16203_v35  ;;  %v2334_v2 = vpack.c.bf16 %v16472_v31, %v16219_v22  ;;  %v2686_v25 = vld [vmem:[#allocation2 + $0x20] sm:$0xff]  ;;  %v2687_v21 = vld [vmem:[#allocation2 + $0x28] sm:$0xff]  ;;  %v2335_v61 = vpack.c.bf16 %v16482_v56, %v16480_v0  ;;  %v2688_v40 = vld [vmem:[#allocation2 + $0x30] sm:$0xff] }
 0x39e   : > { %v2734_v55 = vpack.c.bf16 %v2687_v21, %v2686_v25  ;;  %v16488_v22 = vld [vmem:[#allocation2 + $0x38] sm:$0xff]  ;;  %v16490_v35 = vld [vmem:[#allocation2 + $0x40] sm:$0xff]  ;;  %v21086_v25 = vld [vmem:[#allocation21_spill] sm:$0xff] }
 0x39f   : > { %v2735_v19 = vpack.c.bf16 %v16488_v22, %v2688_v40  ;;  %v21087_v21 = vld [vmem:[#allocation23_spill] sm:$0xff] }
 0x3a1   : > { %13107 = vmatmul.mubr.msk.bf16.gmra.mrb[32].mxu0 %vm388_vm0, %v1907_v39  ;;  %v16382_v39 = vld [vmem:[#allocation2 + $0x159] sm:$0xff] }
 0x3a2   : > { %13110 = vmatprep.mubr.msk.bf16.mxu0 %vm388_vm0, %v1908_v36  ;;  %v16384_v36 = vld [vmem:[#allocation2 + $0x161] sm:$0xff] }
 0x3a3   : > { %v1911_v37 = vpack.c.bf16 %v16384_v36, %v16382_v39 }
 0x3a9   : > { %13111 = vmatmul.mubr.msk.bf16.gmra.mrb[36].mxu0 %vm388_vm0, %v1909_v34  ;;  %v16396_v34 = vld [vmem:[#allocation2 + $0x179] sm:$0xff] }
 0x3aa   : > { %13114 = vmatprep.mubr.msk.bf16.mxu0 %vm388_vm0, %v1910_v45  ;;  %v16398_v45 = vld [vmem:[#allocation2 + $0x181] sm:$0xff] }
 0x3ab   : > { %21066 = vst [vmem:[#allocation88_spill] sm:$0xff] %v16398_v45  ;;  %v1913_v1 = vpack.c.bf16 %v16398_v45, %v16396_v34  ;;  %v12055_v45 = vld [vmem:[%s20584_s5 + $0x14] sm:$0xf] }
 0x3ac   : > { %v3255_v17 = vsel %vm1313_vm1, %v12055_v45, 0 }
 0x3b1   : > { %13115 = vmatmul.mubr.msk.bf16.gmra.mrb[40].mxu0 %vm388_vm0, %v1911_v37  ;;  %v2833_v37 = vsel %vm1313_vm1, %v16242_v8, 0  ;;  %v2316_v8 = vpack.c.bf16 %v16041_v27, %v16039_v58  ;;  %v2324_v58 = vpack.c.bf16 %v16121_v7, %v16119_v6  ;;  %v2325_v27 = vpack.c.bf16 %v16137_v57, %v16123_v63  ;;  %v16509_v63 = vld [vmem:[#allocation2 + $0x58] sm:$0xff]  ;;  %v16511_v7 = vld [vmem:[#allocation2 + $0x60] sm:$0xff] }
 0x3b2   : > { %13118 = vmatprep.mubr.msk.bf16.mxu0 %vm388_vm0, %v1912_v51  ;;  %v2314_v51 = vpack.c.bf16 %v16021_v60, %v16019_v20  ;;  %v2320_v20 = vpack.c.bf16 %v16081_v24, %v16079_v26  ;;  %v2321_v60 = vpack.c.bf16 %v16097_v48, %v16083_v29  ;;  %v2736_v26 = vpack.c.bf16 %v16492_v23, %v16490_v35  ;;  %v16501_v24 = vld [vmem:[%s20584_s5 + $0x18] sm:$0xf]  ;;  %v16507_v29 = vld [vmem:[#allocation2 + $0x50] sm:$0xff]  ;;  %v16513_v48 = vld [vmem:[#allocation2 + $0x68] sm:$0xff] }
 0x3b3   : > { %v2737_v53 = vpack.c.bf16 %v16509_v63, %v16507_v29  ;;  %v2738_v9 = vpack.c.bf16 %v16513_v48, %v16511_v7  ;;  %v16525_v57 = vld [vmem:[#allocation2 + $0x80] sm:$0xff] }
 0x3b4   : > { %v2740_v6 = vpack.c.bf16 %v15897_v41, %v16525_v57 }
 0x3b9   : > { %13119 = vmatmul.mubr.msk.bf16.gmra.mrb[44].mxu0 %vm388_vm0, %v1913_v1  ;;  %v2742_v1 = vpack.c.bf16 %v15909_v30, %v15907_v52  ;;  %v21074_v30 = vld [vmem:[#allocation20_spill] sm:$0xff] }
 0x3ba   : > { %13124 = vmatprep.mubr.msk.bf16.mxu0 %vm388_vm0, %v2312_v42  ;;  %v21067_v42 = vld [vmem:[#allocation3_spill] sm:$0xff] }
 0x3c1   : > { %13125 = vmatmul.mubr.msk.bf16.vlgmr.msra.gmra.mrb[0].mxu0 %vm388_vm0, %v2313_v15  ;;  %v2741_v15 = vpack.c.bf16 %v15905_v46, %v15899_v47  ;;  %v21072_v46 = vld [vmem:[#allocation22_spill] sm:$0xff] }
 0x3c2   : > { %13173 = vmatpush3.bf16.msra.mxu0 %v2833_v37  ;;  %13128 = vmatprep.mubr.msk.bf16.mxu0 %vm388_vm0, %v2314_v51  ;;  %v21068_v37 = vld [vmem:[#allocation4_spill] sm:$0xff]  ;;  %v21069_v51 = vld [vmem:[#allocation5_spill] sm:$0xff] }
 0x3c3   : > { %14658 = vmatprep.subr.msk.bf16.mxu0 %vm1313_vm1, %v12055_v45  ;;  %v2743_v45 = vpack.c.bf16 %v21067_v42, %v15911_v11  ;;  %v2744_v41 = vpack.c.bf16 %v21069_v51, %v21068_v37  ;;  %v21089_v42 = vld [vmem:[#allocation46_spill] sm:$0xff]  ;;  %v21091_v51 = vld [vmem:[#allocation48_spill] sm:$0xff] }
 0x3c9   : > { %13129 = vmatmul.mubr.msk.bf16.gmra.mrb[4].mxu0 %vm388_vm0, %v2315_v50  ;;  %v21070_v50 = vld [vmem:[#allocation6_spill] sm:$0xff] }
 0x3ca   : > { %13132 = vmatprep.mubr.msk.bf16.mxu0 %vm388_vm0, %v2316_v8  ;;  %v21071_v8 = vld [vmem:[#allocation18_spill] sm:$0xff] }
 0x3cb   : > { %v2745_v47 = vpack.c.bf16 %v21071_v8, %v21070_v50  ;;  %v3677_v8 = vsel %vm1313_vm1, %v16501_v24, 0 }
 0x3d1   : > { %13133 = vmatmul.mubr.msk.bf16.gmra.mrb[8].mxu0 %vm388_vm0, %v2317_v44  ;;  %v21073_v44 = vld [vmem:[#allocation7_spill] sm:$0xff] }
 0x3d2   : > { %13136 = vmatprep.mubr.msk.bf16.mxu0 %vm388_vm0, %v2318_v10  ;;  %v2746_v52 = vpack.c.bf16 %v21073_v44, %v21072_v46  ;;  %v21075_v10 = vld [vmem:[#allocation8_spill] sm:$0xff]  ;;  %v21094_v46 = vld [vmem:[#allocation51_spill] sm:$0xff] }
 0x3d3   : > { %v2747_v11 = vpack.c.bf16 %v21075_v10, %v21074_v30  ;;  %v21095_v30 = vld [vmem:[#allocation52_spill] sm:$0xff]  ;;  %v21096_v10 = vld [vmem:[#allocation53_spill] sm:$0xff] }
 0x3d9   : > { %13137 = vmatmul.mubr.msk.bf16.gmra.mrb[12].mxu0 %vm388_vm0, %v2319_v14  ;;  %v21076_v14 = vld [vmem:[#allocation9_spill] sm:$0xff] }
 0x3da   : > { %13140 = vmatprep.mubr.msk.bf16.mxu0 %vm388_vm0, %v2320_v20  ;;  %v21077_v20 = vld [vmem:[#allocation10_spill] sm:$0xff] }
 0x3e1   : > { %13141 = vmatmul.mubr.msk.bf16.gmra.mrb[16].mxu0 %vm388_vm0, %v2321_v60  ;;  %v2748_v60 = vpack.c.bf16 %v21077_v20, %v21076_v14  ;;  %v21097_v14 = vld [vmem:[#allocation54_spill] sm:$0xff]  ;;  %v21098_v20 = vld [vmem:[#allocation55_spill] sm:$0xff] }
 0x3e2   : > { %13144 = vmatprep.mubr.msk.bf16.mxu0 %vm388_vm0, %v2322_v62  ;;  %v21078_v62 = vld [vmem:[#allocation11_spill] sm:$0xff] }
 0x3e9   : > { %13145 = vmatmul.mubr.msk.bf16.gmra.mrb[20].mxu0 %vm388_vm0, %v2323_v13  ;;  %v21079_v13 = vld [vmem:[#allocation12_spill] sm:$0xff] }
 0x3ea   : > { %13148 = vmatprep.mubr.msk.bf16.mxu0 %vm388_vm0, %v2324_v58  ;;  %v2749_v58 = vpack.c.bf16 %v21079_v13, %v21078_v62  ;;  %v21100_v13 = vld [vmem:[#allocation57_spill] sm:$0xff] }
 0x3f1   : > { %13149 = vmatmul.mubr.msk.bf16.gmra.mrb[24].mxu0 %vm388_vm0, %v2325_v27  ;;  %v21080_v27 = vld [vmem:[#allocation13_spill] sm:$0xff] }
 0x3f2   : > { %13152 = vmatprep.mubr.msk.bf16.mxu0 %vm388_vm0, %v2326_v33  ;;  %v21081_v33 = vld [vmem:[#allocation14_spill] sm:$0xff] }
 0x3f9   : > { %13153 = vmatmul.mubr.msk.bf16.gmra.mrb[28].mxu0 %vm388_vm0, %v2327_v3  ;;  %v2750_v3 = vpack.c.bf16 %v21081_v33, %v21080_v27  ;;  %v21102_v33 = vld [vmem:[#allocation59_spill] sm:$0xff] }
 0x3fa   : > { %13156 = vmatprep.mubr.msk.bf16.mxu0 %vm388_vm0, %v2328_v54  ;;  %v21082_v54 = vld [vmem:[#allocation15_spill] sm:$0xff] }
 0x401   : > { %13157 = vmatmul.mubr.msk.bf16.gmra.mrb[32].mxu0 %vm388_vm0, %v2329_v28  ;;  %v21083_v28 = vld [vmem:[#allocation16_spill] sm:$0xff] }
 0x402   : > { %13160 = vmatprep.mubr.msk.bf16.mxu0 %vm388_vm0, %v2330_v49  ;;  %v2751_v49 = vpack.c.bf16 %v21083_v28, %v21082_v54  ;;  %v21104_v28 = vld [vmem:[#allocation65_spill] sm:$0xff] }
 0x409   : > { %13161 = vmatmul.mubr.msk.bf16.gmra.mrb[36].mxu0 %vm388_vm0, %v2331_v43  ;;  %v21084_v43 = vld [vmem:[#allocation17_spill] sm:$0xff] }
 0x40a   : > { %13164 = vmatprep.mubr.msk.bf16.mxu0 %vm388_vm0, %v2332_v4  ;;  %v21085_v4 = vld [vmem:[#allocation19_spill] sm:$0xff] }
 0x411   : > { %13165 = vmatmul.mubr.msk.bf16.gmra.mrb[40].mxu0 %vm388_vm0, %v2333_v12  ;;  %v2752_v12 = vpack.c.bf16 %v21085_v4, %v21084_v43  ;;  %v21106_v4 = vld [vmem:[#allocation67_spill] sm:$0xff] }
 0x412   : > { %13168 = vmatprep.mubr.msk.bf16.mxu0 %vm388_vm0, %v2334_v2  ;;  %v16569_v2 = vld [vmem:[#allocation2 + $0x168] sm:$0xff] }
 0x419   : > { %13169 = vmatmul.mubr.msk.bf16.gmra.mrb[44].mxu0 %vm388_vm0, %v2335_v61  ;;  %v2753_v61 = vpack.c.bf16 %v21087_v21, %v21086_v25  ;;  %v21108_v25 = vld [vmem:[#allocation69_spill] sm:$0xff]  ;;  %v21109_v21 = vld [vmem:[#allocation70_spill] sm:$0xff] }
 0x41a   : > { %13174 = vmatprep.mubr.msk.bf16.mxu0 %vm388_vm0, %v2734_v55  ;;  %v21088_v55 = vld [vmem:[#allocation24_spill] sm:$0xff] }
 0x41b   : > { %v2754_v40 = vpack.c.bf16 %v16569_v2, %v21088_v55  ;;  %v21110_v55 = vld [vmem:[#allocation71_spill] sm:$0xff] }
 0x421   : > { %13175 = vmatmul.mubr.msk.bf16.vlgmr.msra.gmra.mrb[0].mxu0 %vm388_vm0, %v2735_v19  ;;  %v16577_v19 = vld [vmem:[#allocation2 + $0x170] sm:$0xff] }
 0x422   : > { %13223 = vmatpush3.bf16.msra.mxu0 %v3255_v17  ;;  %13178 = vmatprep.mubr.msk.bf16.mxu0 %vm388_vm0, %v2736_v26  ;;  %v16579_v17 = vld [vmem:[#allocation2 + $0x178] sm:$0xff]  ;;  %v16581_v26 = vld [vmem:[#allocation2 + $0x180] sm:$0xff] }
 0x423   : > { %14659 = vmatprep.subr.msk.bf16.mxu0 %vm1313_vm1, %v16501_v24  ;;  %v3160_v24 = vpack.c.bf16 %v21098_v20, %v21097_v14  ;;  %v21122_v14 = vld [vmem:[#allocation83_spill] sm:$0xff] }
 0x424   : > { %v3173_v20 = vpack.c.bf16 %v16368_v18, %v21122_v14  ;;  %v21126_v18 = vld [vmem:[#allocation87_spill] sm:$0xff] }
 0x429   : > { %13179 = vmatmul.mubr.msk.bf16.gmra.mrb[4].mxu0 %vm388_vm0, %v2737_v53  ;;  %v16583_v53 = vld [vmem:[#allocation2 + $0x188] sm:$0xff] }
 0x42a   : > { %13182 = vmatprep.mubr.msk.bf16.mxu0 %vm388_vm0, %v2738_v9  ;;  %v2755_v9 = vpack.c.bf16 %v16579_v17, %v16577_v19 }
 0x431   : > { %13183 = vmatmul.mubr.msk.bf16.gmra.mrb[8].mxu0 %vm388_vm0, %v2739_v32  ;;  %v2756_v32 = vpack.c.bf16 %v16583_v53, %v16581_v26 }
 0x432   : > { %13186 = vmatprep.mubr.msk.bf16.mxu0 %vm388_vm0, %v2740_v6  ;;  %v16591_v6 = vld [vmem:[#allocation2 + $0x190] sm:$0xff] }
 0x439   : > { %13187 = vmatmul.mubr.msk.bf16.gmra.mrb[12].mxu0 %vm388_vm0, %v2741_v15  ;;  %v16593_v15 = vld [vmem:[#allocation2 + $0x198] sm:$0xff] }
 0x43a   : > { %13190 = vmatprep.mubr.msk.bf16.mxu0 %vm388_vm0, %v2742_v1  ;;  %v2757_v1 = vpack.c.bf16 %v16593_v15, %v16591_v6 }
 0x441   : > { %13191 = vmatmul.mubr.msk.bf16.gmra.mrb[16].mxu0 %vm388_vm0, %v2743_v45  ;;  %v21090_v45 = vld [vmem:[#allocation47_spill] sm:$0xff] }
 0x442   : > { %13194 = vmatprep.mubr.msk.bf16.mxu0 %vm388_vm0, %v2744_v41  ;;  %v3156_v37 = vpack.c.bf16 %v21090_v45, %v21089_v42  ;;  %v21092_v41 = vld [vmem:[#allocation49_spill] sm:$0xff]  ;;  %v21114_v45 = vld [vmem:[#allocation75_spill] sm:$0xff] }
 0x443   : > { %v3157_v50 = vpack.c.bf16 %v21092_v41, %v21091_v51  ;;  %v21116_v41 = vld [vmem:[#allocation77_spill] sm:$0xff] }
 0x449   : > { %13195 = vmatmul.mubr.msk.bf16.gmra.mrb[20].mxu0 %vm388_vm0, %v2745_v47  ;;  %v21093_v47 = vld [vmem:[#allocation50_spill] sm:$0xff] }
 0x44a   : > { %13198 = vmatprep.mubr.msk.bf16.mxu0 %vm388_vm0, %v2746_v52  ;;  %v3158_v44 = vpack.c.bf16 %v21094_v46, %v21093_v47  ;;  %v12105_v52 = vld [vmem:[%s20584_s5 + $0x1c] sm:$0xf]  ;;  %v21118_v47 = vld [vmem:[#allocation79_spill] sm:$0xff]  ;;  %v21119_v46 = vld [vmem:[#allocation80_spill] sm:$0xff] }
 0x451   : > { %13199 = vmatmul.mubr.msk.bf16.gmra.mrb[24].mxu0 %vm388_vm0, %v2747_v11  ;;  %v3159_v11 = vpack.c.bf16 %v21096_v10, %v21095_v30  ;;  %v21120_v30 = vld [vmem:[#allocation81_spill] sm:$0xff]  ;;  %v21121_v10 = vld [vmem:[#allocation82_spill] sm:$0xff] }
 0x452   : > { %13202 = vmatprep.mubr.msk.bf16.mxu0 %vm388_vm0, %v2748_v60  ;;  %v21099_v60 = vld [vmem:[#allocation56_spill] sm:$0xff] }
 0x453   : > { %v3161_v62 = vpack.c.bf16 %v16276_v38, %v21099_v60  ;;  %v21124_v60 = vld [vmem:[#allocation85_spill] sm:$0xff] }
 0x459   : > { %13203 = vmatmul.mubr.msk.bf16.gmra.mrb[28].mxu0 %vm388_vm0, %v2749_v58  ;;  %v21101_v58 = vld [vmem:[#allocation58_spill] sm:$0xff] }
 0x45a   : > { %13206 = vmatprep.mubr.msk.bf16.mxu0 %vm388_vm0, %v2750_v3  ;;  %v3162_v27 = vpack.c.bf16 %v21101_v58, %v21100_v13  ;;  %v21103_v3 = vld [vmem:[#allocation64_spill] sm:$0xff]  ;;  %v21125_v13 = vld [vmem:[#allocation86_spill] sm:$0xff] }
 0x45b   : > { %v3163_v54 = vpack.c.bf16 %v21103_v3, %v21102_v33  ;;  %v3175_v58 = vpack.c.bf16 %v16382_v39, %v21125_v13  ;;  %v16667_v33 = vld [vmem:[#allocation2 + $0x189] sm:$0xff]  ;;  %v3177_v3 = vpack.c.bf16 %v16396_v34, %v21126_v18  ;;  %v16675_v39 = vld [vmem:[#allocation2 + $0x191] sm:$0xff]  ;;  %v4099_v34 = vsel %vm1313_vm1, %v12105_v52, 0 }
 0x45c   : > { %v3967_v13 = vld [vmem:[#allocation2 + $0xb0] sm:$0xff]  ;;  %v3972_v18 = vld [vmem:[#allocation2 + $0xd8] sm:$0xff] }
 0x461   : > { %13207 = vmatmul.mubr.msk.bf16.gmra.mrb[32].mxu0 %vm388_vm0, %v2751_v49  ;;  %v21105_v49 = vld [vmem:[#allocation66_spill] sm:$0xff] }
 0x462   : > { %13210 = vmatprep.mubr.msk.bf16.mxu0 %vm388_vm0, %v2752_v12  ;;  %v3164_v43 = vpack.c.bf16 %v21105_v49, %v21104_v28  ;;  %v21107_v12 = vld [vmem:[#allocation68_spill] sm:$0xff]  ;;  %v16677_v49 = vld [vmem:[#allocation2 + $0x199] sm:$0xff] }
 0x463   : > { %v3165_v38 = vpack.c.bf16 %v21107_v12, %v21106_v4  ;;  %v21129_v4 = vld [vmem:[#allocation26_spill] sm:$0xff]  ;;  %v21130_v12 = vld [vmem:[#allocation27_spill] sm:$0xff] }
 0x469   : > { %13211 = vmatmul.mubr.msk.bf16.gmra.mrb[36].mxu0 %vm388_vm0, %v2753_v61  ;;  %v3166_v61 = vpack.c.bf16 %v21109_v21, %v21108_v25  ;;  %v21132_v25 = vld [vmem:[#allocation29_spill] sm:$0xff]  ;;  %v21134_v21 = vld [vmem:[#allocation31_spill] sm:$0xff] }
 0x46a   : > { %13214 = vmatprep.mubr.msk.bf16.mxu0 %vm388_vm0, %v2754_v40  ;;  %v21111_v40 = vld [vmem:[#allocation72_spill] sm:$0xff] }
 0x471   : > { %13215 = vmatmul.mubr.msk.bf16.gmra.mrb[40].mxu0 %vm388_vm0, %v2755_v9  ;;  %v3167_v9 = vpack.c.bf16 %v21111_v40, %v21110_v55  ;;  %v21136_v55 = vld [vmem:[#allocation33_spill] sm:$0xff]  ;;  %v21137_v40 = vld [vmem:[#allocation34_spill] sm:$0xff] }
 0x472   : > { %13218 = vmatprep.mubr.msk.bf16.mxu0 %vm388_vm0, %v2756_v32  ;;  %v21112_v32 = vld [vmem:[#allocation73_spill] sm:$0xff] }
 0x479   : > { %13219 = vmatmul.mubr.msk.bf16.gmra.mrb[44].mxu0 %vm388_vm0, %v2757_v1  ;;  %v21113_v1 = vld [vmem:[#allocation74_spill] sm:$0xff] }
 0x47a   : > { %13224 = vmatprep.mubr.msk.bf16.mxu0 %vm388_vm0, %v3156_v37  ;;  %v3168_v42 = vpack.c.bf16 %v21113_v1, %v21112_v32  ;;  %v21115_v37 = vld [vmem:[#allocation76_spill] sm:$0xff]  ;;  %v21140_v1 = vld [vmem:[#allocation37_spill] sm:$0xff] }
 0x47b   : > { %v3169_v51 = vpack.c.bf16 %v21115_v37, %v21114_v45  ;;  %v21139_v32 = vld [vmem:[#allocation36_spill] sm:$0xff]  ;;  %v21142_v45 = vld [vmem:[#allocation39_spill] sm:$0xff] }
 0x47c   : > { %v21143_v37 = vld [vmem:[#allocation40_spill] sm:$0xff] }
 0x481   : > { %13225 = vmatmul.mubr.msk.bf16.vlgmr.msra.gmra.mrb[0].mxu0 %vm388_vm0, %v3157_v50  ;;  %v21117_v50 = vld [vmem:[#allocation78_spill] sm:$0xff] }
 0x482   : > { %13273 = vmatpush3.bf16.msra.mxu0 %v3677_v8  ;;  %13228 = vmatprep.mubr.msk.bf16.mxu0 %vm388_vm0, %v3158_v44  ;;  %v3170_v8 = vpack.c.bf16 %v21117_v50, %v21116_v41  ;;  %v3171_v44 = vpack.c.bf16 %v21119_v46, %v21118_v47  ;;  %v21145_v41 = vld [vmem:[#allocation42_spill] sm:$0xff]  ;;  %v21146_v50 = vld [vmem:[#allocation43_spill] sm:$0xff]  ;;  %v21148_v47 = vld [vmem:[#allocation45_spill] sm:$0xff] }
 0x483   : > { %14660 = vmatprep.subr.msk.bf16.mxu0 %vm1313_vm1, %v12105_v52  ;;  %v21133_v52 = vld [vmem:[#allocation30_spill] sm:$0xff] }
 0x484   : > { %v3575_v46 = vld [vmem:[#allocation2 + $0x19f] sm:$0xff] }
 0x489   : > { %13229 = vmatmul.mubr.msk.bf16.gmra.mrb[4].mxu0 %vm388_vm0, %v3159_v11  ;;  %v3172_v11 = vpack.c.bf16 %v21121_v10, %v21120_v30  ;;  %v3600_v30 = vpack.c.bf16 %v3575_v46, %v16482_v56  ;;  %v3576_v10 = vld [vmem:[#allocation2 + $0x1a7] sm:$0xff]  ;;  %v4003_v56 = vpack.c.bf16 %v16521_v59, %v16513_v48  ;;  %v3968_v48 = vld [vmem:[#allocation2 + $0xb8] sm:$0xff]  ;;  %v4019_v46 = vpack.c.bf16 %v16577_v19, %v16569_v2 }
 0x48a   : > { %13232 = vmatprep.mubr.msk.bf16.mxu0 %vm388_vm0, %v3160_v24  ;;  %v21123_v24 = vld [vmem:[#allocation84_spill] sm:$0xff]  ;;  %v3969_v59 = vld [vmem:[#allocation2 + $0xc0] sm:$0xff] }
 0x48b   : > { %v4374_v19 = vld [vmem:[#allocation2 + $0x39] sm:$0xff] }
 0x491   : > { %13233 = vmatmul.mubr.msk.bf16.gmra.mrb[8].mxu0 %vm388_vm0, %v3161_v62  ;;  %v3174_v62 = vpack.c.bf16 %v21124_v60, %v21123_v24  ;;  %v4001_v24 = vpack.c.bf16 %v16507_v29, %v16492_v23  ;;  %v3963_v23 = vld [vmem:[#allocation2 + $0x90] sm:$0xff]  ;;  %v3964_v29 = vld [vmem:[#allocation2 + $0x98] sm:$0xff]  ;;  %v3965_v60 = vld [vmem:[#allocation2 + $0xa0] sm:$0xff] }
 0x492   : > { %13236 = vmatprep.mubr.msk.bf16.mxu0 %vm388_vm0, %v3162_v27  ;;  %v3176_v27 = vpack.c.bf16 %v16386_v16, %v16384_v36  ;;  %v3179_v16 = vpack.c.bf16 %v16677_v49, %v16675_v39  ;;  %v21128_v36 = vld [vmem:[#allocation25_spill] sm:$0xff] }
 0x499   : > { %13237 = vmatmul.mubr.msk.bf16.gmra.mrb[12].mxu0 %vm388_vm0, %v3163_v54  ;;  %v21127_v54 = vld [vmem:[#allocation88_spill] sm:$0xff] }
 0x49a   : > { %13240 = vmatprep.mubr.msk.bf16.mxu0 %vm388_vm0, %v3164_v43  ;;  %v3178_v28 = vpack.c.bf16 %v16667_v33, %v21127_v54  ;;  %v12130_v43 = vld [vmem:[%s20584_s5 + $0x20] sm:$0xf] }
 0x4a1   : > { %13241 = vmatmul.mubr.msk.bf16.gmra.mrb[16].mxu0 %vm388_vm0, %v3165_v38  ;;  %v21131_v38 = vld [vmem:[#allocation28_spill] sm:$0xff] }
 0x4a2   : > { %13244 = vmatprep.mubr.msk.bf16.mxu0 %vm388_vm0, %v3166_v61  ;;  %v21135_v61 = vld [vmem:[#allocation32_spill] sm:$0xff] }
 0x4a9   : > { %13245 = vmatmul.mubr.msk.bf16.gmra.mrb[20].mxu0 %vm388_vm0, %v3167_v9  ;;  %v21138_v9 = vld [vmem:[#allocation35_spill] sm:$0xff] }
 0x4aa   : > { %13248 = vmatprep.mubr.msk.bf16.mxu0 %vm388_vm0, %v3168_v42  ;;  %v21141_v42 = vld [vmem:[#allocation38_spill] sm:$0xff] }
 0x4b1   : > { %13249 = vmatmul.mubr.msk.bf16.gmra.mrb[24].mxu0 %vm388_vm0, %v3169_v51  ;;  %v21144_v51 = vld [vmem:[#allocation41_spill] sm:$0xff] }
 0x4b2   : > { %13252 = vmatprep.mubr.msk.bf16.mxu0 %vm388_vm0, %v3170_v8  ;;  %v21147_v8 = vld [vmem:[#allocation44_spill] sm:$0xff] }
 0x4b9   : > { %13253 = vmatmul.mubr.msk.bf16.gmra.mrb[28].mxu0 %vm388_vm0, %v3171_v44  ;;  %v3599_v44 = vpack.c.bf16 %v16480_v0, %v16472_v31  ;;  %v4521_v31 = vsel %vm1313_vm1, %v12130_v43, 0  ;;  %v4002_v0 = vpack.c.bf16 %v16511_v7, %v16509_v63  ;;  %v4006_v7 = vpack.c.bf16 %v3965_v60, %v3964_v29 }
 0x4ba   : > { %13256 = vmatprep.mubr.msk.bf16.mxu0 %vm388_vm0, %v3172_v11  ;;  %v3577_v11 = vld [vmem:[#allocation2 + $0x1af] sm:$0xff] }
 0x4bb   : > { %v3601_v14 = vpack.c.bf16 %v3577_v11, %v3576_v10  ;;  %v4021_v10 = vpack.c.bf16 %v16591_v6, %v16583_v53  ;;  %v4379_v53 = vld [vmem:[#allocation2 + $0x61] sm:$0xff] }
 0x4c1   : > { %13257 = vmatmul.mubr.msk.bf16.gmra.mrb[32].mxu0 %vm388_vm0, %v3173_v20  ;;  %v4000_v20 = vpack.c.bf16 %v16490_v35, %v16488_v22  ;;  %v4004_v22 = vpack.c.bf16 %v16525_v57, %v16523_v5  ;;  %v3962_v35 = vld [vmem:[#allocation2 + $0x88] sm:$0xff]  ;;  %v4008_v5 = vpack.c.bf16 %v3969_v59, %v3968_v48 }
 0x4c2   : > { %13260 = vmatprep.mubr.msk.bf16.mxu0 %vm388_vm0, %v3174_v62  ;;  %v4005_v63 = vpack.c.bf16 %v3963_v23, %v3962_v35  ;;  %v3966_v62 = vld [vmem:[#allocation2 + $0xa8] sm:$0xff]  ;;  %v4382_v35 = vld [vmem:[#allocation2 + $0x79] sm:$0xff] }
 0x4c3   : > { %v3970_v57 = vld [vmem:[#allocation2 + $0xc8] sm:$0xff] }
 0x4c4   : > { %v4383_v23 = vld [vmem:[#allocation2 + $0x81] sm:$0xff] }
 0x4c5   : > { %v4426_v60 = vpack.c.bf16 %v4383_v23, %v4382_v35 }
 0x4c9   : > { %13261 = vmatmul.mubr.msk.bf16.gmra.mrb[36].mxu0 %vm388_vm0, %v3175_v58  ;;  %v4007_v58 = vpack.c.bf16 %v3967_v13, %v3966_v62  ;;  %v4386_v62 = vld [vmem:[#allocation2 + $0x99] sm:$0xff]  ;;  %v4387_v13 = vld [vmem:[#allocation2 + $0xa1] sm:$0xff] }
 0x4ca   : > { %13264 = vmatprep.mubr.msk.bf16.mxu0 %vm388_vm0, %v3176_v27  ;;  %v3971_v27 = vld [vmem:[#allocation2 + $0xd0] sm:$0xff]  ;;  %v4428_v59 = vpack.c.bf16 %v4387_v13, %v4386_v62 }
 0x4cb   : > { %v4009_v54 = vpack.c.bf16 %v3971_v27, %v3970_v57  ;;  %v4390_v57 = vld [vmem:[#allocation2 + $0xb9] sm:$0xff]  ;;  %v4391_v27 = vld [vmem:[#allocation2 + $0xc1] sm:$0xff] }
 0x4d1   : > { %13265 = vmatmul.mubr.msk.bf16.gmra.mrb[40].mxu0 %vm388_vm0, %v3177_v3  ;;  %v3973_v3 = vld [vmem:[#allocation2 + $0xe0] sm:$0xff] }
 0x4d2   : > { %13268 = vmatprep.mubr.msk.bf16.mxu0 %vm388_vm0, %v3178_v28  ;;  %v4010_v28 = vpack.c.bf16 %v3973_v3, %v3972_v18  ;;  %v4430_v3 = vpack.c.bf16 %v4391_v27, %v4390_v57 }
 0x4d9   : > { %13269 = vmatmul.mubr.msk.bf16.gmra.mrb[44].mxu0 %vm388_vm0, %v3179_v16  ;;  %v3974_v16 = vld [vmem:[#allocation2 + $0xe8] sm:$0xff] }
 0x4da   : > { %13274 = vmatprep.mubr.msk.bf16.mxu0 %vm388_vm0, %v21128_v36  ;;  %v3975_v36 = vld [vmem:[#allocation2 + $0xf0] sm:$0xff] }
 0x4e1   : > { %13275 = vmatmul.mubr.msk.bf16.vlgmr.msra.gmra.mrb[0].mxu0 %vm388_vm0, %v21129_v4  ;;  %v4011_v4 = vpack.c.bf16 %v3975_v36, %v3974_v16  ;;  %v4394_v16 = vld [vmem:[#allocation2 + $0xd9] sm:$0xff]  ;;  %v4395_v36 = vld [vmem:[#allocation2 + $0xe1] sm:$0xff] }
 0x4e2   : > { %13323 = vmatpush3.bf16.msra.mxu0 %v4099_v34  ;;  %13278 = vmatprep.mubr.msk.bf16.mxu0 %vm388_vm0, %v21130_v12  ;;  %v3976_v34 = vld [vmem:[#allocation2 + $0xf8] sm:$0xff] }
 0x4e3   : > { %14661 = vmatprep.subr.msk.bf16.mxu0 %vm1313_vm1, %v12130_v43  ;;  %v3977_v43 = vld [vmem:[#allocation2 + $0x100] sm:$0xff] }
 0x4e4   : > { %v4012_v12 = vpack.c.bf16 %v3977_v43, %v3976_v34  ;;  %v4432_v43 = vpack.c.bf16 %v4395_v36, %v4394_v16 }
 0x4e9   : > { %13279 = vmatmul.mubr.msk.bf16.gmra.mrb[4].mxu0 %vm388_vm0, %v21131_v38  ;;  %v3978_v38 = vld [vmem:[#allocation2 + $0x108] sm:$0xff] }
 0x4ea   : > { %13282 = vmatprep.mubr.msk.bf16.mxu0 %vm388_vm0, %v21132_v25  ;;  %v3979_v25 = vld [vmem:[#allocation2 + $0x110] sm:$0xff] }
 0x4f1   : > { %13283 = vmatmul.mubr.msk.bf16.gmra.mrb[8].mxu0 %vm388_vm0, %v21133_v52  ;;  %v3980_v52 = vld [vmem:[#allocation2 + $0x118] sm:$0xff] }
 0x4f2   : > { %13286 = vmatprep.mubr.msk.bf16.mxu0 %vm388_vm0, %v21134_v21  ;;  %v3981_v21 = vld [vmem:[#allocation2 + $0x120] sm:$0xff] }
 0x4f9   : > { %13287 = vmatmul.mubr.msk.bf16.gmra.mrb[12].mxu0 %vm388_vm0, %v21135_v61  ;;  %v4013_v61 = vpack.c.bf16 %v3979_v25, %v3978_v38  ;;  %v4398_v38 = vld [vmem:[#allocation2 + $0xf9] sm:$0xff]  ;;  %v4399_v25 = vld [vmem:[#allocation2 + $0x101] sm:$0xff] }
 0x4fa   : > { %13290 = vmatprep.mubr.msk.bf16.mxu0 %vm388_vm0, %v21136_v55  ;;  %v4014_v55 = vpack.c.bf16 %v3981_v21, %v3980_v52  ;;  %v4434_v21 = vpack.c.bf16 %v4399_v25, %v4398_v38 }
 0x501   : > { %13291 = vmatmul.mubr.msk.bf16.gmra.mrb[16].mxu0 %vm388_vm0, %v21137_v40  ;;  %v3982_v40 = vld [vmem:[#allocation2 + $0x128] sm:$0xff] }
 0x502   : > { %13294 = vmatprep.mubr.msk.bf16.mxu0 %vm388_vm0, %v21138_v9  ;;  %v3983_v9 = vld [vmem:[#allocation2 + $0x130] sm:$0xff] }
 0x509   : > { %13295 = vmatmul.mubr.msk.bf16.gmra.mrb[20].mxu0 %vm388_vm0, %v21139_v32  ;;  %v3984_v32 = vld [vmem:[#allocation2 + $0x138] sm:$0xff] }
 0x50a   : > { %13298 = vmatprep.mubr.msk.bf16.mxu0 %vm388_vm0, %v21140_v1  ;;  %v3985_v1 = vld [vmem:[#allocation2 + $0x140] sm:$0xff] }
 0x511   : > { %13299 = vmatmul.mubr.msk.bf16.gmra.mrb[24].mxu0 %vm388_vm0, %v21141_v42  ;;  %v4015_v42 = vpack.c.bf16 %v3983_v9, %v3982_v40  ;;  %v4402_v40 = vld [vmem:[#allocation2 + $0x119] sm:$0xff]  ;;  %v4403_v9 = vld [vmem:[#allocation2 + $0x121] sm:$0xff] }
 0x512   : > { %13302 = vmatprep.mubr.msk.bf16.mxu0 %vm388_vm0, %v21142_v45  ;;  %v4016_v45 = vpack.c.bf16 %v3985_v1, %v3984_v32  ;;  %v4436_v1 = vpack.c.bf16 %v4403_v9, %v4402_v40 }
 0x519   : > { %13303 = vmatmul.mubr.msk.bf16.gmra.mrb[28].mxu0 %vm388_vm0, %v21143_v37  ;;  %v3986_v37 = vld [vmem:[#allocation2 + $0x148] sm:$0xff] }
 0x51a   : > { %13306 = vmatprep.mubr.msk.bf16.mxu0 %vm388_vm0, %v21144_v51  ;;  %v3987_v51 = vld [vmem:[#allocation2 + $0x150] sm:$0xff] }
 0x521   : > { %13307 = vmatmul.mubr.msk.bf16.gmra.mrb[32].mxu0 %vm388_vm0, %v21145_v41  ;;  %v3988_v41 = vld [vmem:[#allocation2 + $0x158] sm:$0xff] }
 0x522   : > { %13310 = vmatprep.mubr.msk.bf16.mxu0 %vm388_vm0, %v21146_v50  ;;  %v3989_v50 = vld [vmem:[#allocation2 + $0x160] sm:$0xff] }
 0x529   : > { %13311 = vmatmul.mubr.msk.bf16.gmra.mrb[36].mxu0 %vm388_vm0, %v21147_v8  ;;  %v4017_v8 = vpack.c.bf16 %v3987_v51, %v3986_v37  ;;  %v4406_v37 = vld [vmem:[#allocation2 + $0x139] sm:$0xff]  ;;  %v4407_v51 = vld [vmem:[#allocation2 + $0x141] sm:$0xff] }
 0x52a   : > { %13314 = vmatprep.mubr.msk.bf16.mxu0 %vm388_vm0, %v21148_v47  ;;  %v4018_v47 = vpack.c.bf16 %v3989_v50, %v3988_v41  ;;  %v4438_v50 = vpack.c.bf16 %v4407_v51, %v4406_v37 }
 0x531   : > { %13315 = vmatmul.mubr.msk.bf16.gmra.mrb[40].mxu0 %vm388_vm0, %v3599_v44  ;;  %v4020_v44 = vpack.c.bf16 %v16581_v26, %v16579_v17  ;;  %v4376_v26 = vld [vmem:[#allocation2 + $0x49] sm:$0xff] }
 0x532   : > { %13318 = vmatprep.mubr.msk.bf16.mxu0 %vm388_vm0, %v3600_v30  ;;  %v3997_v30 = vld [vmem:[#allocation2 + $0x1a0] sm:$0xff] }
 0x533   : > { %v4022_v11 = vpack.c.bf16 %v3997_v30, %v16593_v15 }
 0x539   : > { %13319 = vmatmul.mubr.msk.bf16.gmra.mrb[44].mxu0 %vm388_vm0, %v3601_v14  ;;  %v3998_v14 = vld [vmem:[#allocation2 + $0x1a8] sm:$0xff] }
 0x53a   : > { %13324 = vmatprep.mubr.msk.bf16.mxu0 %vm388_vm0, %v4000_v20  ;;  %v3999_v20 = vld [vmem:[#allocation2 + $0x1b0] sm:$0xff] }
 0x53b   : > { %v4023_v2 = vpack.c.bf16 %v3999_v20, %v3998_v14  ;;  %v4413_v14 = vld [vmem:[#allocation2 + $0x171] sm:$0xff]  ;;  %v4414_v20 = vld [vmem:[#allocation2 + $0x179] sm:$0xff] }
 0x541   : > { %13325 = vmatmul.mubr.msk.bf16.vlgmr.msra.gmra.mrb[0].mxu0 %vm388_vm0, %v4001_v24  ;;  %v4375_v24 = vld [vmem:[#allocation2 + $0x41] sm:$0xff] }
 0x542   : > { %13373 = vmatpush3.bf16.msra.mxu0 %v4521_v31  ;;  %13328 = vmatprep.mubr.msk.bf16.mxu0 %vm388_vm0, %v4002_v0  ;;  %v4422_v17 = vpack.c.bf16 %v4375_v24, %v4374_v19  ;;  %v4377_v31 = vld [vmem:[#allocation2 + $0x51] sm:$0xff]  ;;  %v4378_v0 = vld [vmem:[#allocation2 + $0x59] sm:$0xff] }
 0x543   : > { %v4423_v6 = vpack.c.bf16 %v4377_v31, %v4376_v26  ;;  %v4424_v15 = vpack.c.bf16 %v4379_v53, %v4378_v0  ;;  %v4443_v26 = vpack.c.bf16 %v16675_v39, %v16667_v33  ;;  %v4420_v0 = vld [vmem:[#allocation2 + $0x1a9] sm:$0xff]  ;;  %v4421_v53 = vld [vmem:[#allocation2 + $0x1b1] sm:$0xff] }
 0x549   : > { %13329 = vmatmul.mubr.msk.bf16.gmra.mrb[4].mxu0 %vm388_vm0, %v4003_v56  ;;  %v4380_v56 = vld [vmem:[#allocation2 + $0x69] sm:$0xff] }
 0x54a   : > { %13332 = vmatprep.mubr.msk.bf16.mxu0 %vm388_vm0, %v4004_v22  ;;  %v4381_v22 = vld [vmem:[#allocation2 + $0x71] sm:$0xff] }
 0x54b   : > { %v4425_v29 = vpack.c.bf16 %v4381_v22, %v4380_v56  ;;  %v16809_v22 = vld [vmem:[%s20585_s6] ss:$0 sm:$0xff] }
 0x551   : > { %13333 = vmatmul.mubr.msk.bf16.gmra.mrb[8].mxu0 %vm388_vm0, %v4005_v63  ;;  %v4384_v63 = vld [vmem:[#allocation2 + $0x89] sm:$0xff] }
 0x552   : > { %13336 = vmatprep.mubr.msk.bf16.mxu0 %vm388_vm0, %v4006_v7  ;;  %v4385_v7 = vld [vmem:[#allocation2 + $0x91] sm:$0xff] }
 0x553   : > { %v4427_v48 = vpack.c.bf16 %v4385_v7, %v4384_v63 }
 0x559   : > { %13337 = vmatmul.mubr.msk.bf16.gmra.mrb[12].mxu0 %vm388_vm0, %v4007_v58  ;;  %v4388_v58 = vld [vmem:[#allocation2 + $0xa9] sm:$0xff] }
 0x55a   : > { %13340 = vmatprep.mubr.msk.bf16.mxu0 %vm388_vm0, %v4008_v5  ;;  %v4389_v5 = vld [vmem:[#allocation2 + $0xb1] sm:$0xff] }
 0x55b   : > { %v4429_v18 = vpack.c.bf16 %v4389_v5, %v4388_v58 }
 0x561   : > { %13341 = vmatmul.mubr.msk.bf16.gmra.mrb[16].mxu0 %vm388_vm0, %v4009_v54  ;;  %v4392_v54 = vld [vmem:[#allocation2 + $0xc9] sm:$0xff] }
 0x562   : > { %13344 = vmatprep.mubr.msk.bf16.mxu0 %vm388_vm0, %v4010_v28  ;;  %v4393_v28 = vld [vmem:[#allocation2 + $0xd1] sm:$0xff] }
 0x563   : > { %v4431_v34 = vpack.c.bf16 %v4393_v28, %v4392_v54 }
 0x569   : > { %13345 = vmatmul.mubr.msk.bf16.gmra.mrb[20].mxu0 %vm388_vm0, %v4011_v4  ;;  %v4396_v4 = vld [vmem:[#allocation2 + $0xe9] sm:$0xff] }
 0x56a   : > { %13348 = vmatprep.mubr.msk.bf16.mxu0 %vm388_vm0, %v4012_v12  ;;  %v4397_v12 = vld [vmem:[#allocation2 + $0xf1] sm:$0xff] }
 0x56b   : > { %v4433_v52 = vpack.c.bf16 %v4397_v12, %v4396_v4 }
 0x571   : > { %13349 = vmatmul.mubr.msk.bf16.gmra.mrb[24].mxu0 %vm388_vm0, %v4013_v61  ;;  %v4400_v61 = vld [vmem:[#allocation2 + $0x109] sm:$0xff] }
 0x572   : > { %13352 = vmatprep.mubr.msk.bf16.mxu0 %vm388_vm0, %v4014_v55  ;;  %v4401_v55 = vld [vmem:[#allocation2 + $0x111] sm:$0xff] }
 0x573   : > { %v4435_v32 = vpack.c.bf16 %v4401_v55, %v4400_v61 }
 0x579   : > { %13353 = vmatmul.mubr.msk.bf16.gmra.mrb[28].mxu0 %vm388_vm0, %v4015_v42  ;;  %v4404_v42 = vld [vmem:[#allocation2 + $0x129] sm:$0xff] }
 0x57a   : > { %13356 = vmatprep.mubr.msk.bf16.mxu0 %vm388_vm0, %v4016_v45  ;;  %v4405_v45 = vld [vmem:[#allocation2 + $0x131] sm:$0xff] }
 0x57b   : > { %v4437_v41 = vpack.c.bf16 %v4405_v45, %v4404_v42 }
 0x581   : > { %13357 = vmatmul.mubr.msk.bf16.gmra.mrb[32].mxu0 %vm388_vm0, %v4017_v8  ;;  %v4408_v8 = vld [vmem:[#allocation2 + $0x149] sm:$0xff] }
 0x582   : > { %13360 = vmatprep.mubr.msk.bf16.mxu0 %vm388_vm0, %v4018_v47  ;;  %v4409_v47 = vld [vmem:[#allocation2 + $0x151] sm:$0xff] }
 0x583   : > { %v4439_v30 = vpack.c.bf16 %v4409_v47, %v4408_v8 }
 0x589   : > { %13361 = vmatmul.mubr.msk.bf16.gmra.mrb[36].mxu0 %vm388_vm0, %v4019_v46  ;;  %v4410_v46 = vld [vmem:[#allocation2 + $0x159] sm:$0xff] }
 0x58a   : > { %13364 = vmatprep.mubr.msk.bf16.mxu0 %vm388_vm0, %v4020_v44  ;;  %v4411_v44 = vld [vmem:[#allocation2 + $0x161] sm:$0xff] }
 0x591   : > { %13365 = vmatmul.mubr.msk.bf16.gmra.mrb[40].mxu0 %vm388_vm0, %v4021_v10  ;;  %v4440_v10 = vpack.c.bf16 %v4411_v44, %v4410_v46 }
 0x592   : > { %13368 = vmatprep.mubr.msk.bf16.mxu0 %vm388_vm0, %v4022_v11  ;;  %v4412_v11 = vld [vmem:[#allocation2 + $0x169] sm:$0xff] }
 0x593   : > { %v4441_v19 = vpack.c.bf16 %v4413_v14, %v4412_v11 }
 0x599   : > { %13369 = vmatmul.mubr.msk.bf16.gmra.mrb[44].mxu0 %vm388_vm0, %v4023_v2  ;;  %v4415_v2 = vld [vmem:[#allocation2 + $0x181] sm:$0xff] }
 0x59a   : > { %13374 = vmatprep.mubr.msk.bf16.mxu0 %vm388_vm0, %v4422_v17  ;;  %v4442_v24 = vpack.c.bf16 %v4415_v2, %v4414_v20  ;;  %v4419_v17 = vld [vmem:[#allocation2 + $0x1a1] sm:$0xff] }
 0x59b   : > { %v4444_v31 = vpack.c.bf16 %v4419_v17, %v16677_v49 }
 0x5a1   : > { %13375 = vmatmul.mubr.msk.bf16.vlgmr.msra.gmra.mrb[0].mxu0 %vm388_vm0, %v4423_v6  ;;  %v4445_v6 = vpack.c.bf16 %v4421_v53, %v4420_v0 }
 0x5a2   : > { %13378 = vmatprep.mubr.msk.bf16.mxu0 %vm388_vm0, %v4424_v15  ;;  %v4851_v15 = vlaneseq }
 0x5a4   : > { %v16804_v56 = vshrl.u32 %v4851_v15, 7 }
 0x5a6   : > { %21149 = vst [vmem:[#allocation3_spill] sm:$0xff] %v16804_v56  ;;  %v16812_v33 = vadd.s32 16, %v16804_v56  ;;  %vm4855_vm2 = vcmp.ge.s32.totalorder %v16804_v56, 4 }
 0x5a8   : > { %vm4860_vm3 = vcmp.lt.s32.totalorder %v16812_v33, 20 }
 0x5a9   : > { %13379 = vmatmul.mubr.msk.bf16.gmra.mrb[4].mxu0 %vm388_vm0, %v4425_v29 }
 0x5aa   : > { %13382 = vmatprep.mubr.msk.bf16.mxu0 %vm388_vm0, %v4426_v60 }
 0x5b1   : > { %13383 = vmatmul.mubr.msk.bf16.gmra.mrb[8].mxu0 %vm388_vm0, %v4427_v48 }
 0x5b2   : > { %13386 = vmatprep.mubr.msk.bf16.mxu0 %vm388_vm0, %v4428_v59 }
 0x5b9   : > { %13387 = vmatmul.mubr.msk.bf16.gmra.mrb[12].mxu0 %vm388_vm0, %v4429_v18 }
 0x5ba   : > { %13390 = vmatprep.mubr.msk.bf16.mxu0 %vm388_vm0, %v4430_v3 }
 0x5c1   : > { %13391 = vmatmul.mubr.msk.bf16.gmra.mrb[16].mxu0 %vm388_vm0, %v4431_v34 }
 0x5c2   : > { %13394 = vmatprep.mubr.msk.bf16.mxu0 %vm388_vm0, %v4432_v43 }
 0x5c9   : > { %13395 = vmatmul.mubr.msk.bf16.gmra.mrb[20].mxu0 %vm388_vm0, %v4433_v52 }
 0x5ca   : > { %13398 = vmatprep.mubr.msk.bf16.mxu0 %vm388_vm0, %v4434_v21 }
 0x5d1   : > { %13399 = vmatmul.mubr.msk.bf16.gmra.mrb[24].mxu0 %vm388_vm0, %v4435_v32 }
 0x5d2   : > { %13402 = vmatprep.mubr.msk.bf16.mxu0 %vm388_vm0, %v4436_v1 }
 0x5d9   : > { %13403 = vmatmul.mubr.msk.bf16.gmra.mrb[28].mxu0 %vm388_vm0, %v4437_v41 }
 0x5da   : > { %13406 = vmatprep.mubr.msk.bf16.mxu0 %vm388_vm0, %v4438_v50 }
 0x5e1   : > { %13407 = vmatmul.mubr.msk.bf16.gmra.mrb[32].mxu0 %vm388_vm0, %v4439_v30 }
 0x5e2   : > { %13410 = vmatprep.mubr.msk.bf16.mxu0 %vm388_vm0, %v4440_v10 }
 0x5e9   : > { %13411 = vmatmul.mubr.msk.bf16.gmra.mrb[36].mxu0 %vm388_vm0, %v4441_v19 }
 0x5ea   : > { %13414 = vmatprep.mubr.msk.bf16.mxu0 %vm388_vm0, %v4442_v24 }
 0x5f1   : > { %13415 = vmatmul.mubr.msk.bf16.gmra.mrb[40].mxu0 %vm388_vm0, %v4443_v26 }
 0x5f2   : > { %13418 = vmatprep.mubr.msk.bf16.mxu0 %vm388_vm0, %v4444_v31 }
 0x5f9   : > { %13419 = vmatmul.mubr.msk.bf16.gmra.mrb[44].mxu0 %vm388_vm0, %v4445_v6 }
 0x674   : > { %v13376_v39 = vpop.f32.mrb[0].mxu0 }
 0x675   : > { %v4805_v49 = vadd.f32 %v13376_v39, %v16809_v22  ;;  %v4557_v35 = vpop.f32.mrb[1].mxu0 }
 0x676   : > { %v4803_v23 = vadd.f32 %v16809_v22, %v4557_v35  ;;  %v13377_v29 = vpop.f32.mrb[2].mxu0 }
 0x677   : > { %v4806_v60 = vadd.f32 %v13377_v29, %v16809_v22  ;;  %v4560_v63 = vpop.f32.mrb[3].mxu0  ;;  %v16828_v13 = vsel %vm4860_vm3, %v4805_v49, 0.0 }
 0x678   : > { %v16821_v7 = vsel %vm4855_vm2, %v4803_v23, 0.0  ;;  %v16824_v62 = vadd.f32 %v16809_v22, %v4560_v63  ;;  %v5011_v57 = vsel %vm388_vm0, %v16828_v13, 0.0 }
 0x679   : > { %v5008_v48 = vsel %vm388_vm0, %v16821_v7, 0.0  ;;  %v16836_v58 = vsel %vm4855_vm2, %v4806_v60, 0.0 }
 0x67a   : > { %v5009_v59 = vsel %vm388_vm0, %v16824_v62, 0.0  ;;  %v5013_v54 = vsel %vm388_vm0, %v16836_v58, 0.0 }
 0x67b   : > { %v5010_v5 = vadd.f32 %v5009_v59, %v5008_v48 }
 0x67c   : > { %v13380_v27 = vpop.f32.mrb[4].mxu0 }
 0x67d   : > { %v5012_v18 = vadd.f32 %v5011_v57, %v5010_v5  ;;  %v4573_v3 = vpop.f32.mrb[5].mxu0  ;;  %v4809_v28 = vadd.f32 %v13380_v27, %v16809_v22 }
 0x67e   : > { %v16844_v16 = vadd.f32 %v16809_v22, %v4573_v3  ;;  %v13381_v36 = vpop.f32.mrb[6].mxu0 }
 0x67f   : > { %v5014_v34 = vadd.f32 %v5013_v54, %v5012_v18  ;;  %v4576_v43 = vpop.f32.mrb[7].mxu0  ;;  %v16851_v25 = vsel %vm4855_vm2, %v4809_v28, 0.0  ;;  %v16858_v21 = vadd.f32 %v13381_v36, %v16809_v22 }
 0x680   : > { %v5015_v4 = vsel %vm388_vm0, %v16844_v16, 0.0  ;;  %v4808_v12 = vadd.f32 %v16809_v22, %v4576_v43  ;;  %v5019_v9 = vsel %vm388_vm0, %v16851_v25, 0.0 }
 0x681   : > { %v5016_v38 = vadd.f32 %v5015_v4, %v5014_v34  ;;  %v5021_v37 = vsel %vm388_vm0, %v16858_v21, 0.0 }
 0x682   : > { %v16855_v52 = vsel %vm4860_vm3, %v4808_v12, 0.0 }
 0x683   : > { %v5017_v61 = vsel %vm388_vm0, %v16855_v52, 0.0 }
 0x684   : > { %v5018_v55 = vadd.f32 %v5017_v61, %v5016_v38  ;;  %v13384_v40 = vpop.f32.mrb[8].mxu0 }
 0x685   : > { %v4589_v32 = vpop.f32.mrb[9].mxu0  ;;  %v16874_v46 = vadd.f32 %v13384_v40, %v16809_v22 }
 0x686   : > { %v5020_v1 = vadd.f32 %v5019_v9, %v5018_v55  ;;  %v4811_v42 = vadd.f32 %v16809_v22, %v4589_v32  ;;  %v13385_v45 = vpop.f32.mrb[10].mxu0 }
 0x687   : > { %v4592_v51 = vpop.f32.mrb[11].mxu0  ;;  %v4814_v8 = vadd.f32 %v13385_v45, %v16809_v22  ;;  %v5027_v19 = vsel %vm388_vm0, %v16874_v46, 0.0 }
 0x688   : > { %v16869_v41 = vsel %vm4860_vm3, %v4811_v42, 0.0  ;;  %v5022_v50 = vadd.f32 %v5021_v37, %v5020_v1  ;;  %v4812_v47 = vadd.f32 %v16809_v22, %v4592_v51 }
 0x689   : > { %v5023_v44 = vsel %vm388_vm0, %v16869_v41, 0.0  ;;  %v16886_v14 = vsel %vm4860_vm3, %v4814_v8, 0.0 }
 0x68a   : > { %v5024_v30 = vadd.f32 %v5023_v44, %v5022_v50  ;;  %v16880_v10 = vsel %vm4855_vm2, %v4812_v47, 0.0  ;;  %v5029_v53 = vsel %vm388_vm0, %v16886_v14, 0.0 }
 0x68b   : > { %v5025_v11 = vsel %vm388_vm0, %v16880_v10, 0.0 }
 0x68c   : > { %v5026_v20 = vadd.f32 %v5025_v11, %v5024_v30  ;;  %v13388_v2 = vpop.f32.mrb[12].mxu0 }
 0x68d   : > { %v4605_v24 = vpop.f32.mrb[13].mxu0  ;;  %v4817_v26 = vadd.f32 %v13388_v2, %v16809_v22 }
 0x68e   : > { %v5028_v17 = vadd.f32 %v5027_v19, %v5026_v20  ;;  %v4815_v31 = vadd.f32 %v16809_v22, %v4605_v24  ;;  %v13389_v0 = vpop.f32.mrb[14].mxu0 }
 0x68f   : > { %v4608_v6 = vpop.f32.mrb[15].mxu0  ;;  %v4818_v49 = vadd.f32 %v13389_v0, %v16809_v22  ;;  %v16906_v29 = vsel %vm4860_vm3, %v4817_v26, 0.0 }
 0x690   : > { %v16896_v15 = vsel %vm4855_vm2, %v4815_v31, 0.0  ;;  %v5030_v39 = vadd.f32 %v5029_v53, %v5028_v17  ;;  %v16900_v35 = vadd.f32 %v16809_v22, %v4608_v6  ;;  %v5035_v57 = vsel %vm388_vm0, %v16906_v29, 0.0 }
 0x691   : > { %v5031_v23 = vsel %vm388_vm0, %v16896_v15, 0.0  ;;  %v16912_v48 = vsel %vm4855_vm2, %v4818_v49, 0.0 }
 0x692   : > { %v5032_v60 = vadd.f32 %v5031_v23, %v5030_v39  ;;  %v5033_v63 = vsel %vm388_vm0, %v16900_v35, 0.0  ;;  %v5037_v36 = vsel %vm388_vm0, %v16912_v48, 0.0 }
 0x694   : > { %v5034_v59 = vadd.f32 %v5033_v63, %v5032_v60  ;;  %v13392_v5 = vpop.f32.mrb[16].mxu0 }
 0x695   : > { %v4621_v27 = vpop.f32.mrb[17].mxu0  ;;  %v4821_v3 = vadd.f32 %v13392_v5, %v16809_v22 }
 0x696   : > { %v5036_v18 = vadd.f32 %v5035_v57, %v5034_v59  ;;  %v16918_v54 = vadd.f32 %v16809_v22, %v4621_v27  ;;  %v13393_v28 = vpop.f32.mrb[18].mxu0 }
 0x697   : > { %v4624_v34 = vpop.f32.mrb[19].mxu0  ;;  %v16927_v38 = vsel %vm4855_vm2, %v4821_v3, 0.0  ;;  %v16934_v40 = vadd.f32 %v13393_v28, %v16809_v22 }
 0x698   : > { %v5038_v43 = vadd.f32 %v5037_v36, %v5036_v18  ;;  %v5039_v4 = vsel %vm388_vm0, %v16918_v54, 0.0  ;;  %v4820_v12 = vadd.f32 %v16809_v22, %v4624_v34  ;;  %v5043_v42 = vsel %vm388_vm0, %v16927_v38, 0.0 }
 0x699   : > { %v5045_v8 = vsel %vm388_vm0, %v16934_v40, 0.0 }
 0x69a   : > { %v5040_v61 = vadd.f32 %v5039_v4, %v5038_v43  ;;  %v16931_v55 = vsel %vm4860_vm3, %v4820_v12, 0.0 }
 0x69b   : > { %v5041_v9 = vsel %vm388_vm0, %v16931_v55, 0.0 }
 0x69c   : > { %v5042_v32 = vadd.f32 %v5041_v9, %v5040_v61  ;;  %v13396_v1 = vpop.f32.mrb[20].mxu0 }
 0x69d   : > { %v4637_v45 = vpop.f32.mrb[21].mxu0  ;;  %v16950_v2 = vadd.f32 %v13396_v1, %v16809_v22 }
 0x69e   : > { %v5044_v37 = vadd.f32 %v5043_v42, %v5042_v32  ;;  %v4823_v51 = vadd.f32 %v16809_v22, %v4637_v45  ;;  %v13397_v50 = vpop.f32.mrb[22].mxu0 }
 0x69f   : > { %v4640_v47 = vpop.f32.mrb[23].mxu0  ;;  %v4826_v11 = vadd.f32 %v13397_v50, %v16809_v22  ;;  %v5051_v6 = vsel %vm388_vm0, %v16950_v2, 0.0 }
 0x6a0   : > { %v16945_v44 = vsel %vm4860_vm3, %v4823_v51, 0.0  ;;  %v5046_v30 = vadd.f32 %v5045_v8, %v5044_v37  ;;  %v4824_v20 = vadd.f32 %v16809_v22, %v4640_v47 }
 0x6a1   : > { %v5047_v19 = vsel %vm388_vm0, %v16945_v44, 0.0  ;;  %v16962_v31 = vsel %vm4860_vm3, %v4826_v11, 0.0 }
 0x6a2   : > { %v5048_v24 = vadd.f32 %v5047_v19, %v5046_v30  ;;  %v16956_v17 = vsel %vm4855_vm2, %v4824_v20, 0.0  ;;  %v5053_v59 = vsel %vm388_vm0, %v16962_v31, 0.0 }
 0x6a3   : > { %v5049_v26 = vsel %vm388_vm0, %v16956_v17, 0.0 }
 0x6a4   : > { %v5050_v0 = vadd.f32 %v5049_v26, %v5048_v24  ;;  %v13400_v53 = vpop.f32.mrb[24].mxu0 }
 0x6a5   : > { %v4653_v39 = vpop.f32.mrb[25].mxu0  ;;  %v4829_v23 = vadd.f32 %v13400_v53, %v16809_v22 }
 0x6a6   : > { %v5052_v49 = vadd.f32 %v5051_v6, %v5050_v0  ;;  %v4827_v60 = vadd.f32 %v16809_v22, %v4653_v39  ;;  %v13401_v63 = vpop.f32.mrb[26].mxu0 }
 0x6a7   : > { %v4656_v5 = vpop.f32.mrb[27].mxu0  ;;  %v4830_v18 = vadd.f32 %v13401_v63, %v16809_v22  ;;  %v16982_v36 = vsel %vm4860_vm3, %v4829_v23, 0.0 }
 0x6a8   : > { %v16972_v57 = vsel %vm4855_vm2, %v4827_v60, 0.0  ;;  %v5054_v27 = vadd.f32 %v5053_v59, %v5052_v49  ;;  %v16976_v3 = vadd.f32 %v16809_v22, %v4656_v5  ;;  %v5059_v9 = vsel %vm388_vm0, %v16982_v36, 0.0 }
 0x6a9   : > { %v5055_v28 = vsel %vm388_vm0, %v16972_v57, 0.0  ;;  %v16988_v4 = vsel %vm4855_vm2, %v4830_v18, 0.0 }
 0x6aa   : > { %v5056_v34 = vadd.f32 %v5055_v28, %v5054_v27  ;;  %v5057_v43 = vsel %vm388_vm0, %v16976_v3, 0.0  ;;  %v5061_v51 = vsel %vm388_vm0, %v16988_v4, 0.0 }
 0x6ac   : > { %v5058_v12 = vadd.f32 %v5057_v43, %v5056_v34  ;;  %v13404_v61 = vpop.f32.mrb[28].mxu0 }
 0x6ad   : > { %v4669_v32 = vpop.f32.mrb[29].mxu0  ;;  %v4833_v42 = vadd.f32 %v13404_v61, %v16809_v22 }
 0x6ae   : > { %v5060_v1 = vadd.f32 %v5059_v9, %v5058_v12  ;;  %v16994_v45 = vadd.f32 %v16809_v22, %v4669_v32  ;;  %v13405_v37 = vpop.f32.mrb[30].mxu0 }
 0x6af   : > { %v4672_v50 = vpop.f32.mrb[31].mxu0  ;;  %v17003_v11 = vsel %vm4855_vm2, %v4833_v42, 0.0  ;;  %v17010_v24 = vadd.f32 %v13405_v37, %v16809_v22 }
 0x6b0   : > { %v5062_v8 = vadd.f32 %v5061_v51, %v5060_v1  ;;  %v5063_v47 = vsel %vm388_vm0, %v16994_v45, 0.0  ;;  %v4832_v30 = vadd.f32 %v16809_v22, %v4672_v50  ;;  %v5067_v6 = vsel %vm388_vm0, %v17003_v11, 0.0 }
 0x6b1   : > { %v5069_v63 = vsel %vm388_vm0, %v17010_v24, 0.0 }
 0x6b2   : > { %v5064_v20 = vadd.f32 %v5063_v47, %v5062_v8  ;;  %v17007_v19 = vsel %vm4860_vm3, %v4832_v30, 0.0 }
 0x6b3   : > { %v5065_v26 = vsel %vm388_vm0, %v17007_v19, 0.0 }
 0x6b4   : > { %v5066_v0 = vadd.f32 %v5065_v26, %v5064_v20  ;;  %v13408_v53 = vpop.f32.mrb[32].mxu0 }
 0x6b5   : > { %v4685_v39 = vpop.f32.mrb[33].mxu0  ;;  %v17026_v34 = vadd.f32 %v13408_v53, %v16809_v22 }
 0x6b6   : > { %v5068_v49 = vadd.f32 %v5067_v6, %v5066_v0  ;;  %v4835_v23 = vadd.f32 %v16809_v22, %v4685_v39  ;;  %v13409_v60 = vpop.f32.mrb[34].mxu0 }
 0x6b7   : > { %v4688_v59 = vpop.f32.mrb[35].mxu0  ;;  %v4838_v18 = vadd.f32 %v13409_v60, %v16809_v22  ;;  %v5075_v37 = vsel %vm388_vm0, %v17026_v34, 0.0 }
 0x6b8   : > { %v17021_v5 = vsel %vm4860_vm3, %v4835_v23, 0.0  ;;  %v5070_v27 = vadd.f32 %v5069_v63, %v5068_v49  ;;  %v4836_v28 = vadd.f32 %v16809_v22, %v4688_v59 }
 0x6b9   : > { %v5071_v43 = vsel %vm388_vm0, %v17021_v5, 0.0  ;;  %v17038_v32 = vsel %vm4860_vm3, %v4838_v18, 0.0 }
 0x6ba   : > { %v5072_v12 = vadd.f32 %v5071_v43, %v5070_v27  ;;  %v17032_v61 = vsel %vm4855_vm2, %v4836_v28, 0.0  ;;  %v5077_v20 = vsel %vm388_vm0, %v17038_v32, 0.0 }
 0x6bb   : > { %v5073_v9 = vsel %vm388_vm0, %v17032_v61, 0.0 }
 0x6bc   : > { %v5074_v1 = vadd.f32 %v5073_v9, %v5072_v12  ;;  %v13412_v42 = vpop.f32.mrb[36].mxu0 }
 0x6bd   : > { %v4701_v51 = vpop.f32.mrb[37].mxu0  ;;  %v4841_v8 = vadd.f32 %v13412_v42, %v16809_v22 }
 0x6be   : > { %v5076_v50 = vadd.f32 %v5075_v37, %v5074_v1  ;;  %v4839_v47 = vadd.f32 %v16809_v22, %v4701_v51  ;;  %v13413_v30 = vpop.f32.mrb[38].mxu0 }
 0x6bf   : > { %v4704_v26 = vpop.f32.mrb[39].mxu0  ;;  %v4842_v6 = vadd.f32 %v13413_v30, %v16809_v22  ;;  %v17058_v23 = vsel %vm4860_vm3, %v4841_v8, 0.0 }
 0x6c0   : > { %v17048_v0 = vsel %vm4855_vm2, %v4839_v47, 0.0  ;;  %v5078_v53 = vadd.f32 %v5077_v20, %v5076_v50  ;;  %v17052_v39 = vadd.f32 %v16809_v22, %v4704_v26  ;;  %v5083_v28 = vsel %vm388_vm0, %v17058_v23, 0.0 }
 0x6c1   : > { %v5079_v49 = vsel %vm388_vm0, %v17048_v0, 0.0  ;;  %v17064_v59 = vsel %vm4855_vm2, %v4842_v6, 0.0 }
 0x6c2   : > { %v5080_v60 = vadd.f32 %v5079_v49, %v5078_v53  ;;  %v5081_v63 = vsel %vm388_vm0, %v17052_v39, 0.0  ;;  %v5085_v37 = vsel %vm388_vm0, %v17064_v59, 0.0 }
 0x6c4   : > { %v5082_v27 = vadd.f32 %v5081_v63, %v5080_v60  ;;  %v13416_v18 = vpop.f32.mrb[40].mxu0 }
 0x6c5   : > { %v4717_v43 = vpop.f32.mrb[41].mxu0  ;;  %v4845_v9 = vadd.f32 %v13416_v18, %v16809_v22 }
 0x6c6   : > { %v5084_v12 = vadd.f32 %v5083_v28, %v5082_v27  ;;  %v17070_v1 = vadd.f32 %v16809_v22, %v4717_v43  ;;  %v13417_v42 = vpop.f32.mrb[42].mxu0  ;;  %v21151_v27 = vld [vmem:[#allocation60_spill] sm:$0xff] }
 0x6c7   : > { %v4720_v51 = vpop.f32.mrb[43].mxu0  ;;  %v17079_v30 = vsel %vm4855_vm2, %v4845_v9, 0.0  ;;  %v17090_v63 = vadd.f32 %v13417_v42, %v16809_v22 }
 0x6c8   : > { %v5086_v50 = vadd.f32 %v5085_v37, %v5084_v12  ;;  %v5087_v8 = vsel %vm388_vm0, %v17070_v1, 0.0  ;;  %v4844_v47 = vadd.f32 %v16809_v22, %v4720_v51  ;;  %21150 = vst [vmem:[#allocation4_spill] sm:$0xff] %v17079_v30  ;;  %v5091_v60 = vsel %vm388_vm0, %v17079_v30, 0.0  ;;  %v21152_v12 = vld [vmem:[#allocation61_spill] sm:$0xff]  ;;  %v21153_v51 = vld [vmem:[#allocation62_spill] sm:$0xff] }
 0x6c9   : > { %v5093_v30 = vsel %vm388_vm0, %v17090_v63, 0.0 }
 0x6ca   : > { %v5088_v20 = vadd.f32 %v5087_v8, %v5086_v50  ;;  %v17083_v26 = vsel %vm4860_vm3, %v4844_v47, 0.0 }
 0x6cb   : > { %v5089_v53 = vsel %vm388_vm0, %v17083_v26, 0.0 }
 0x6cc   : > { %v5090_v6 = vadd.f32 %v5089_v53, %v5088_v20  ;;  %v13420_v49 = vpop.f32.mrb[44].mxu0  ;;  %v21154_v20 = vld [vmem:[#allocation63_spill] sm:$0xff] }
 0x6cd   : > { %v13884_v18 = vadd.f32 %v13420_v49, %v21151_v27  ;;  %v4733_v28 = vpop.f32.mrb[45].mxu0 }
 0x6ce   : > { %v5092_v43 = vadd.f32 %v5091_v60, %v5090_v6  ;;  %v13885_v9 = vadd.f32 %v4733_v28, %v21152_v12  ;;  %v13421_v37 = vpop.f32.mrb[46].mxu0 }
 0x6cf   : > { %v13886_v50 = vadd.f32 %v13421_v37, %v21153_v51  ;;  %v4736_v8 = vpop.f32.mrb[47].mxu0  ;;  %v17106_v27 = vadd.f32 %v13884_v18, %v16809_v22 }
 0x6d0   : > { %v4847_v47 = vadd.f32 %v13885_v9, %v16809_v22  ;;  %v13887_v53 = vadd.f32 %v4736_v8, %v21154_v20  ;;  %v5094_v60 = vadd.f32 %v5093_v30, %v5092_v43 }
 0x6d1   : > { %v4850_v49 = vadd.f32 %v13886_v50, %v16809_v22 }
 0x6d2   : > { %v17101_v42 = vsel %vm4860_vm3, %v4847_v47, 0.0  ;;  %v4848_v6 = vadd.f32 %v13887_v53, %v16809_v22  ;;  %v5099_v22 = vsel %vm388_vm0, %v17106_v27, 0.0 }
 0x6d3   : > { %v5095_v28 = vsel %vm388_vm0, %v17101_v42, 0.0  ;;  %v17118_v51 = vsel %vm4860_vm3, %v4850_v49, 0.0 }
 0x6d4   : > { %v17112_v12 = vsel %vm4855_vm2, %v4848_v6, 0.0  ;;  %v5096_v9 = vadd.f32 %v5095_v28, %v5094_v60  ;;  %v5101_v18 = vsel %vm388_vm0, %v17118_v51, 0.0 }
 0x6d5   : > { %v5097_v37 = vsel %vm388_vm0, %v17112_v12, 0.0 }
 0x6d6   : > { %v5098_v50 = vadd.f32 %v5097_v37, %v5096_v9 }
 0x6d8   : > { %v5100_v30 = vadd.f32 %v5099_v22, %v5098_v50 }
 0x6da   : > { %v5102_v43 = vadd.f32 %v5101_v18, %v5100_v30 }
 0x6dc   : > { %5103 = vadd.xlane.f32.xlu1 %v5102_v43 }
 0x769   : > { %v5104_v8 = vpop.xlane.xlu1 %5103 }
 0x76a   : > { %v5105_v47 = vrot.slane %v5104_v8, 4 }
 0x76c   : > { %v5106_v20 = vadd.f32 %v5105_v47, %v5104_v8 }
 0x76e   : > { %v5107_v53 = vrot.slane %v5106_v20, 2 }
 0x770   : > { %v5108_v6 = vadd.f32 %v5107_v53, %v5106_v20 }
 0x772   : > { %v5109_v60 = vrot.slane %v5108_v6, 1 }
 0x774   : > { %v5110_v28 = vadd.f32 %v5109_v60, %v5108_v6 }
 0x776   : > { %14677 = vpush %v5110_v28 }
 0x7a7   : > { %s14678_s29 = spop %14677 }
 0x7a8   : > { %v5112_v33 = vstv %s14678_s29 }
 0x7a9   : > { %v17124_v49 = vmul.f32 0.0009765625, %v5112_v33 }
 0x7ab   : > { %v17128_v9 = vsub.f32 %v16821_v7, %v17124_v49  ;;  %v17132_v37 = vsub.f32 %v16824_v62, %v17124_v49  ;;  %v17136_v50 = vsub.f32 %v16828_v13, %v17124_v49  ;;  %v17140_v22 = vsub.f32 %v16836_v58, %v17124_v49 }
 0x7ac   : > { %v17148_v7 = vsub.f32 %v16844_v16, %v17124_v49  ;;  %v17154_v13 = vsub.f32 %v16855_v52, %v17124_v49  ;;  %v17162_v20 = vsub.f32 %v16851_v25, %v17124_v49  ;;  %v17169_v52 = vsub.f32 %v16858_v21, %v17124_v49 }
 0x7ad   : > { %v5162_v30 = vmul.f32 %v17128_v9, %v17128_v9  ;;  %v5163_v18 = vmul.f32 %v17132_v37, %v17132_v37  ;;  %v5164_v62 = vmul.f32 %v17136_v50, %v17136_v50  ;;  %v5165_v58 = vmul.f32 %v17140_v22, %v17140_v22 }
 0x7ae   : > { %v5166_v16 = vmul.f32 %v17148_v7, %v17148_v7  ;;  %v5167_v60 = vmul.f32 %v17154_v13, %v17154_v13  ;;  %v17176_v25 = vsub.f32 %v16869_v41, %v17124_v49  ;;  %v17183_v21 = vsub.f32 %v16880_v10, %v17124_v49 }
 0x7af   : > { %v5210_v43 = vsel %vm388_vm0, %v5162_v30, 0.0  ;;  %v5211_v8 = vsel %vm388_vm0, %v5163_v18, 0.0  ;;  %v5213_v53 = vsel %vm388_vm0, %v5164_v62, 0.0  ;;  %v5215_v28 = vsel %vm388_vm0, %v5165_v58, 0.0 }
 0x7b0   : > { %v5212_v47 = vadd.f32 %v5211_v8, %v5210_v43  ;;  %v5168_v30 = vmul.f32 %v17162_v20, %v17162_v20  ;;  %v5217_v18 = vsel %vm388_vm0, %v5166_v16, 0.0  ;;  %v5169_v43 = vmul.f32 %v17169_v52, %v17169_v52 }
 0x7b1   : > { %v5219_v58 = vsel %vm388_vm0, %v5167_v60, 0.0  ;;  %v17190_v41 = vsub.f32 %v16874_v46, %v17124_v49  ;;  %v17197_v10 = vsub.f32 %v16886_v14, %v17124_v49  ;;  %v17204_v46 = vsub.f32 %v16896_v15, %v17124_v49 }
 0x7b2   : > { %v5214_v6 = vadd.f32 %v5213_v53, %v5212_v47  ;;  %v5170_v47 = vmul.f32 %v17176_v25, %v17176_v25  ;;  %v5221_v16 = vsel %vm388_vm0, %v5168_v30, 0.0  ;;  %v5223_v60 = vsel %vm388_vm0, %v5169_v43, 0.0 }
 0x7b3   : > { %v17211_v14 = vsub.f32 %v16900_v35, %v17124_v49  ;;  %v17218_v15 = vsub.f32 %v16906_v29, %v17124_v49  ;;  %v17225_v35 = vsub.f32 %v16912_v48, %v17124_v49  ;;  %v17232_v29 = vsub.f32 %v16918_v54, %v17124_v49 }
 0x7b4   : > { %v5216_v33 = vadd.f32 %v5215_v28, %v5214_v6  ;;  %v5171_v6 = vmul.f32 %v17183_v21, %v17183_v21  ;;  %v5225_v30 = vsel %vm388_vm0, %v5170_v47, 0.0  ;;  %v17239_v48 = vsub.f32 %v16931_v55, %v17124_v49 }
 0x7b5   : > { %v17246_v54 = vsub.f32 %v16927_v38, %v17124_v49  ;;  %v17253_v55 = vsub.f32 %v16934_v40, %v17124_v49  ;;  %v17260_v38 = vsub.f32 %v16945_v44, %v17124_v49  ;;  %v17267_v40 = vsub.f32 %v16956_v17, %v17124_v49 }
 0x7b6   : > { %v5218_v62 = vadd.f32 %v5217_v18, %v5216_v33  ;;  %v5172_v33 = vmul.f32 %v17190_v41, %v17190_v41  ;;  %v5227_v43 = vsel %vm388_vm0, %v5171_v6, 0.0  ;;  %v17274_v44 = vsub.f32 %v16950_v2, %v17124_v49 }
 0x7b7   : > { %v17281_v17 = vsub.f32 %v16962_v31, %v17124_v49  ;;  %v17288_v2 = vsub.f32 %v16972_v57, %v17124_v49  ;;  %v17295_v31 = vsub.f32 %v16976_v3, %v17124_v49  ;;  %v17302_v57 = vsub.f32 %v16982_v36, %v17124_v49 }
 0x7b8   : > { %v5220_v8 = vadd.f32 %v5219_v58, %v5218_v62  ;;  %v5173_v62 = vmul.f32 %v17197_v10, %v17197_v10  ;;  %v5229_v47 = vsel %vm388_vm0, %v5172_v33, 0.0  ;;  %v17309_v3 = vsub.f32 %v16988_v4, %v17124_v49 }
 0x7b9   : > { %v17316_v36 = vsub.f32 %v16994_v45, %v17124_v49  ;;  %v17323_v4 = vsub.f32 %v17007_v19, %v17124_v49  ;;  %v17330_v45 = vsub.f32 %v17003_v11, %v17124_v49  ;;  %v17337_v19 = vsub.f32 %v17010_v24, %v17124_v49 }
 0x7ba   : > { %v5222_v53 = vadd.f32 %v5221_v16, %v5220_v8  ;;  %v5174_v8 = vmul.f32 %v17204_v46, %v17204_v46  ;;  %v5231_v6 = vsel %vm388_vm0, %v5173_v62, 0.0  ;;  %v17344_v11 = vsub.f32 %v17021_v5, %v17124_v49 }
 0x7bb   : > { %v17351_v24 = vsub.f32 %v17032_v61, %v17124_v49  ;;  %v17358_v5 = vsub.f32 %v17026_v34, %v17124_v49  ;;  %v17365_v61 = vsub.f32 %v17038_v32, %v17124_v49  ;;  %v17372_v34 = vsub.f32 %v17048_v0, %v17124_v49 }
 0x7bc   : > { %v5224_v28 = vadd.f32 %v5223_v60, %v5222_v53  ;;  %v5175_v53 = vmul.f32 %v17211_v14, %v17211_v14  ;;  %v5233_v33 = vsel %vm388_vm0, %v5174_v8, 0.0  ;;  %v17379_v32 = vsub.f32 %v17052_v39, %v17124_v49 }
 0x7bd   : > { %v17386_v0 = vsub.f32 %v17058_v23, %v17124_v49  ;;  %v17393_v39 = vsub.f32 %v17064_v59, %v17124_v49  ;;  %v17400_v23 = vsub.f32 %v17070_v1, %v17124_v49  ;;  %v17407_v59 = vsub.f32 %v17083_v26, %v17124_v49 }
 0x7be   : > { %v5226_v18 = vadd.f32 %v5225_v30, %v5224_v28  ;;  %v5176_v28 = vmul.f32 %v17218_v15, %v17218_v15  ;;  %v5235_v62 = vsel %vm388_vm0, %v5175_v53, 0.0  ;;  %v17421_v26 = vsub.f32 %v17090_v63, %v17124_v49 }
 0x7bf   : > { %v17435_v63 = vsub.f32 %v17112_v12, %v17124_v49  ;;  %v17449_v12 = vsub.f32 %v17118_v51, %v17124_v49 }
 0x7c0   : > { %v5228_v58 = vadd.f32 %v5227_v43, %v5226_v18  ;;  %v5177_v18 = vmul.f32 %v17225_v35, %v17225_v35  ;;  %v5237_v8 = vsel %vm388_vm0, %v5176_v28, 0.0 }
 0x7c1   : > { %21156 = vst [vmem:[#allocation5_spill] sm:$0xff] %v17435_v63 }
 0x7c2   : > { %v5230_v16 = vadd.f32 %v5229_v47, %v5228_v58  ;;  %v5178_v58 = vmul.f32 %v17232_v29, %v17232_v29  ;;  %v5239_v53 = vsel %vm388_vm0, %v5177_v18, 0.0 }
 0x7c4   : > { %v5232_v60 = vadd.f32 %v5231_v6, %v5230_v16  ;;  %v5179_v16 = vmul.f32 %v17239_v48, %v17239_v48  ;;  %v5241_v28 = vsel %vm388_vm0, %v5178_v58, 0.0 }
 0x7c6   : > { %v5234_v30 = vadd.f32 %v5233_v33, %v5232_v60  ;;  %v5180_v60 = vmul.f32 %v17246_v54, %v17246_v54  ;;  %v5243_v18 = vsel %vm388_vm0, %v5179_v16, 0.0 }
 0x7c8   : > { %v5236_v43 = vadd.f32 %v5235_v62, %v5234_v30  ;;  %v5181_v30 = vmul.f32 %v17253_v55, %v17253_v55  ;;  %v5245_v58 = vsel %vm388_vm0, %v5180_v60, 0.0 }
 0x7ca   : > { %v5238_v47 = vadd.f32 %v5237_v8, %v5236_v43  ;;  %v5182_v43 = vmul.f32 %v17260_v38, %v17260_v38  ;;  %v5247_v16 = vsel %vm388_vm0, %v5181_v30, 0.0 }
 0x7cc   : > { %v5240_v6 = vadd.f32 %v5239_v53, %v5238_v47  ;;  %v5183_v47 = vmul.f32 %v17267_v40, %v17267_v40  ;;  %v5249_v60 = vsel %vm388_vm0, %v5182_v43, 0.0 }
 0x7ce   : > { %v5242_v33 = vadd.f32 %v5241_v28, %v5240_v6  ;;  %v5184_v6 = vmul.f32 %v17274_v44, %v17274_v44  ;;  %v5251_v30 = vsel %vm388_vm0, %v5183_v47, 0.0 }
 0x7d0   : > { %v5244_v62 = vadd.f32 %v5243_v18, %v5242_v33  ;;  %v5185_v33 = vmul.f32 %v17281_v17, %v17281_v17  ;;  %v5253_v43 = vsel %vm388_vm0, %v5184_v6, 0.0 }
 0x7d2   : > { %v5246_v8 = vadd.f32 %v5245_v58, %v5244_v62  ;;  %v5186_v62 = vmul.f32 %v17288_v2, %v17288_v2  ;;  %v5255_v47 = vsel %vm388_vm0, %v5185_v33, 0.0 }
 0x7d4   : > { %v5248_v53 = vadd.f32 %v5247_v16, %v5246_v8  ;;  %v5187_v8 = vmul.f32 %v17295_v31, %v17295_v31  ;;  %v5257_v6 = vsel %vm388_vm0, %v5186_v62, 0.0 }
 0x7d6   : > { %v5250_v28 = vadd.f32 %v5249_v60, %v5248_v53  ;;  %v5188_v53 = vmul.f32 %v17302_v57, %v17302_v57  ;;  %v5259_v33 = vsel %vm388_vm0, %v5187_v8, 0.0 }
 0x7d8   : > { %v5252_v18 = vadd.f32 %v5251_v30, %v5250_v28  ;;  %v5189_v28 = vmul.f32 %v17309_v3, %v17309_v3  ;;  %v5261_v62 = vsel %vm388_vm0, %v5188_v53, 0.0 }
 0x7da   : > { %v5254_v58 = vadd.f32 %v5253_v43, %v5252_v18  ;;  %v5190_v18 = vmul.f32 %v17316_v36, %v17316_v36  ;;  %v5263_v8 = vsel %vm388_vm0, %v5189_v28, 0.0 }
 0x7dc   : > { %v5256_v16 = vadd.f32 %v5255_v47, %v5254_v58  ;;  %v5191_v58 = vmul.f32 %v17323_v4, %v17323_v4  ;;  %v5265_v53 = vsel %vm388_vm0, %v5190_v18, 0.0 }
 0x7de   : > { %v5258_v60 = vadd.f32 %v5257_v6, %v5256_v16  ;;  %v5192_v16 = vmul.f32 %v17330_v45, %v17330_v45  ;;  %v5267_v28 = vsel %vm388_vm0, %v5191_v58, 0.0 }
 0x7e0   : > { %v5260_v30 = vadd.f32 %v5259_v33, %v5258_v60  ;;  %v5193_v60 = vmul.f32 %v17337_v19, %v17337_v19  ;;  %v5269_v18 = vsel %vm388_vm0, %v5192_v16, 0.0 }
 0x7e2   : > { %v5262_v43 = vadd.f32 %v5261_v62, %v5260_v30  ;;  %v5194_v30 = vmul.f32 %v17344_v11, %v17344_v11  ;;  %v5271_v58 = vsel %vm388_vm0, %v5193_v60, 0.0 }
 0x7e4   : > { %v5264_v47 = vadd.f32 %v5263_v8, %v5262_v43  ;;  %v5195_v43 = vmul.f32 %v17351_v24, %v17351_v24  ;;  %v5273_v16 = vsel %vm388_vm0, %v5194_v30, 0.0 }
 0x7e6   : > { %v5266_v6 = vadd.f32 %v5265_v53, %v5264_v47  ;;  %v5196_v47 = vmul.f32 %v17358_v5, %v17358_v5  ;;  %v5275_v60 = vsel %vm388_vm0, %v5195_v43, 0.0 }
 0x7e8   : > { %v5268_v33 = vadd.f32 %v5267_v28, %v5266_v6  ;;  %v5197_v6 = vmul.f32 %v17365_v61, %v17365_v61  ;;  %v5277_v30 = vsel %vm388_vm0, %v5196_v47, 0.0 }
 0x7ea   : > { %v5270_v62 = vadd.f32 %v5269_v18, %v5268_v33  ;;  %v5198_v33 = vmul.f32 %v17372_v34, %v17372_v34  ;;  %v5279_v43 = vsel %vm388_vm0, %v5197_v6, 0.0 }
 0x7ec   : > { %v5272_v8 = vadd.f32 %v5271_v58, %v5270_v62  ;;  %v5199_v62 = vmul.f32 %v17379_v32, %v17379_v32  ;;  %v5281_v47 = vsel %vm388_vm0, %v5198_v33, 0.0 }
 0x7ee   : > { %v5274_v53 = vadd.f32 %v5273_v16, %v5272_v8  ;;  %v5200_v8 = vmul.f32 %v17386_v0, %v17386_v0  ;;  %v5283_v6 = vsel %vm388_vm0, %v5199_v62, 0.0 }
 0x7f0   : > { %v5276_v28 = vadd.f32 %v5275_v60, %v5274_v53  ;;  %v5201_v53 = vmul.f32 %v17393_v39, %v17393_v39  ;;  %v5285_v33 = vsel %vm388_vm0, %v5200_v8, 0.0 }
 0x7f2   : > { %v5278_v18 = vadd.f32 %v5277_v30, %v5276_v28  ;;  %v21155_v28 = vld [vmem:[#allocation4_spill] sm:$0xff]  ;;  %v5202_v30 = vmul.f32 %v17400_v23, %v17400_v23  ;;  %v5287_v62 = vsel %vm388_vm0, %v5201_v53, 0.0 }
 0x7f3   : > { %v17414_v1 = vsub.f32 %v21155_v28, %v17124_v49 }
 0x7f4   : > { %v5280_v58 = vadd.f32 %v5279_v43, %v5278_v18  ;;  %v5203_v43 = vmul.f32 %v17407_v59, %v17407_v59  ;;  %v5289_v8 = vsel %vm388_vm0, %v5202_v30, 0.0 }
 0x7f6   : > { %v5282_v16 = vadd.f32 %v5281_v47, %v5280_v58  ;;  %v17428_v47 = vsub.f32 %v17101_v42, %v17124_v49  ;;  %v5291_v53 = vsel %vm388_vm0, %v5203_v43, 0.0  ;;  %v17442_v42 = vsub.f32 %v17106_v27, %v17124_v49 }
 0x7f8   : > { %v5284_v60 = vadd.f32 %v5283_v6, %v5282_v16  ;;  %v5204_v16 = vmul.f32 %v17414_v1, %v17414_v1  ;;  %v5208_v27 = vmul.f32 %v17442_v42, %v17442_v42 }
 0x7fa   : > { %v5286_v18 = vadd.f32 %v5285_v33, %v5284_v60  ;;  %v5205_v60 = vmul.f32 %v17421_v26, %v17421_v26  ;;  %v5206_v33 = vmul.f32 %v17428_v47, %v17428_v47  ;;  %v5293_v30 = vsel %vm388_vm0, %v5204_v16, 0.0 }
 0x7fb   : > { %v5209_v16 = vmul.f32 %v17449_v12, %v17449_v12  ;;  %v5301_v51 = vsel %vm388_vm0, %v5208_v27, 0.0  ;;  %v17470_v27 = vld [vmem:[%s20586_s7] sm:$0xf] }
 0x7fc   : > { %v5288_v58 = vadd.f32 %v5287_v62, %v5286_v18  ;;  %v5207_v62 = vmul.f32 %v17435_v63, %v17435_v63  ;;  %v5295_v43 = vsel %vm388_vm0, %v5205_v60, 0.0  ;;  %21157 = vst [vmem:[#allocation6_spill] sm:$0xff] %v17470_v27 }
 0x7fd   : > { %v5303_v56 = vsel %vm388_vm0, %v5209_v16, 0.0 }
 0x7fe   : > { %v5290_v6 = vadd.f32 %v5289_v8, %v5288_v58  ;;  %v5297_v8 = vsel %vm388_vm0, %v5206_v33, 0.0 }
 0x800   : > { %v5292_v28 = vadd.f32 %v5291_v53, %v5290_v6  ;;  %v5299_v53 = vsel %vm388_vm0, %v5207_v62, 0.0  ;;  %v5635_v62 = vld [vmem:[#allocation2 + $0x10] sm:$0xff] }
 0x802   : > { %v5294_v18 = vadd.f32 %v5293_v30, %v5292_v28 }
 0x804   : > { %v5296_v58 = vadd.f32 %v5295_v43, %v5294_v18  ;;  %v12156_v18 = vld [vmem:[%s20586_s7 + $0x4] sm:$0xf] }
 0x805   : > { %14662 = vmatprep.subr.msk.bf16.mxu1 %vm1313_vm1, %v12156_v18  ;;  %v5781_v43 = vsel %vm1313_vm1, %v12156_v18, 0 }
 0x806   : > { %v5298_v6 = vadd.f32 %v5297_v8, %v5296_v58  ;;  %v5634_v58 = vld [vmem:[#allocation2 + $0x8] sm:$0xff]  ;;  %13423 = vmatpush3.bf16.msra.mxu1 %v5781_v43 }
 0x807   : > { %14663 = vmatprep.subr.msk.bf16.mxu1 %vm1313_vm1, %v17470_v27 }
 0x808   : > { %v5300_v28 = vadd.f32 %v5299_v53, %v5298_v6 }
 0x80a   : > { %v5302_v30 = vadd.f32 %v5301_v51, %v5300_v28  ;;  %v5315_v28 = vmul.f32 2048.0, %v17124_v49 }
 0x80c   : > { %v5304_v63 = vadd.f32 %v5303_v56, %v5302_v30  ;;  %v5682_v56 = vpack.c.bf16 %v5635_v62, %v5634_v58  ;;  %v5316_v51 = vmul.f32 %v5315_v28, %v17124_v49 }
 0x80e   : > { %5305 = vadd.xlane.f32.xlu1 %v5304_v63  ;;  %13424 = vmatprep.mubr.msk.bf16.mxu1 %vm388_vm0, %v5682_v56 }
 0x89b   : > { %v5306_v60 = vpop.xlane.xlu1 %5305 }
 0x89c   : > { %v5307_v33 = vrot.slane %v5306_v60, 4 }
 0x89e   : > { %v5308_v8 = vadd.f32 %v5307_v33, %v5306_v60 }
 0x8a0   : > { %v5309_v63 = vrot.slane %v5308_v8, 2 }
 0x8a2   : > { %v5310_v6 = vadd.f32 %v5309_v63, %v5308_v8 }
 0x8a4   : > { %v5311_v16 = vrot.slane %v5310_v6, 1 }
 0x8a6   : > { %v5312_v53 = vadd.f32 %v5311_v16, %v5310_v6 }
 0x8a8   : > { %14679 = vpush %v5312_v53  ;;  %v4918_v53 = vld [vmem:[%s20582_s3 + $0x30] sm:$0xff] }
 0x8d9   : > { %s14680_s15 = spop %14679 }
 0x8da   : > { %v5314_v30 = vstv %s14680_s15 }
 0x8db   : > { %v5317_v18 = vsub.f32 %v5314_v30, %v5316_v51 }
 0x8dd   : > { %v5318_v60 = vmul.f32 0.0009765625, %v5317_v18  ;;  %v4922_v18 = vld [vmem:[%s20582_s3 + $0x50] sm:$0xff] }
 0x8df   : > { %v5319_v33 = vadd.f32 1e-05, %v5318_v60 }
 0x8e1   : > { %14693 = vrsqrt.f32 %v5319_v33 }
 0x8eb   : > { %v17477_v43 = vpop.eup %14693 }
 0x8ec   : > { %v17481_v58 = vmul.f32 %v17477_v43, %v17128_v9  ;;  %v17485_v62 = vmul.f32 %v17477_v43, %v17132_v37  ;;  %v17489_v8 = vmul.f32 %v17477_v43, %v17136_v50  ;;  %v17493_v49 = vmul.f32 %v17477_v43, %v17140_v22 }
 0x8ed   : > { %v17497_v56 = vmul.f32 %v17477_v43, %v17148_v7  ;;  %v17501_v9 = vmul.f32 %v17477_v43, %v17154_v13  ;;  %v17505_v37 = vmul.f32 %v17477_v43, %v17162_v20  ;;  %v17509_v50 = vmul.f32 %v17477_v43, %v17169_v52 }
 0x8ee   : > { %v17513_v22 = vmul.f32 %v17477_v43, %v17176_v25  ;;  %v17517_v7 = vmul.f32 %v17477_v43, %v17183_v21  ;;  %v17521_v13 = vmul.f32 %v17477_v43, %v17190_v41  ;;  %v17525_v20 = vmul.f32 %v17477_v43, %v17197_v10 }
 0x8ef   : > { %v17529_v52 = vmul.f32 %v17477_v43, %v17204_v46  ;;  %v17533_v25 = vmul.f32 %v17477_v43, %v17211_v14  ;;  %v17537_v21 = vmul.f32 %v17477_v43, %v17218_v15  ;;  %v17541_v41 = vmul.f32 %v17477_v43, %v17225_v35 }
 0x8f0   : > { %v17545_v10 = vmul.f32 %v17477_v43, %v17232_v29  ;;  %v17549_v46 = vmul.f32 %v17477_v43, %v17239_v48  ;;  %v17553_v14 = vmul.f32 %v17477_v43, %v17246_v54  ;;  %v17557_v15 = vmul.f32 %v17477_v43, %v17253_v55 }
 0x8f1   : > { %v17561_v35 = vmul.f32 %v17477_v43, %v17260_v38  ;;  %v17565_v29 = vmul.f32 %v17477_v43, %v17267_v40  ;;  %v17569_v48 = vmul.f32 %v17477_v43, %v17274_v44  ;;  %v17573_v54 = vmul.f32 %v17477_v43, %v17281_v17  ;;  %v4914_v17 = vld [vmem:[%s20582_s3 + $0x10] sm:$0xff] }
 0x8f2   : > { %v17577_v55 = vmul.f32 %v17477_v43, %v17288_v2  ;;  %v17581_v38 = vmul.f32 %v17477_v43, %v17295_v31  ;;  %v17585_v40 = vmul.f32 %v17477_v43, %v17302_v57  ;;  %v17589_v44 = vmul.f32 %v17477_v43, %v17309_v3  ;;  %v4912_v2 = vld [vmem:[%s20582_s3] sm:$0xff]  ;;  %v4915_v31 = vld [vmem:[%s20582_s3 + $0x18] sm:$0xff]  ;;  %v4913_v57 = vld [vmem:[%s20582_s3 + $0x8] sm:$0xff] }
 0x8f3   : > { %v17605_v3 = vmul.f32 %v17477_v43, %v17316_v36  ;;  %v17609_v63 = vmul.f32 %v17477_v43, %v17323_v4  ;;  %v17613_v6 = vmul.f32 %v17477_v43, %v17330_v45  ;;  %v17617_v16 = vmul.f32 %v17477_v43, %v17337_v19  ;;  %v4916_v36 = vld [vmem:[%s20582_s3 + $0x20] sm:$0xff]  ;;  %v4919_v4 = vld [vmem:[%s20582_s3 + $0x38] sm:$0xff]  ;;  %v4917_v45 = vld [vmem:[%s20582_s3 + $0x28] sm:$0xff] }
 0x8f4   : > { %v17633_v19 = vmul.f32 %v17477_v43, %v17344_v11  ;;  %v17637_v28 = vmul.f32 %v17477_v43, %v17351_v24  ;;  %v17641_v51 = vmul.f32 %v17477_v43, %v17358_v5  ;;  %v17645_v30 = vmul.f32 %v17477_v43, %v17365_v61  ;;  %v4920_v11 = vld [vmem:[%s20582_s3 + $0x40] sm:$0xff]  ;;  %v4923_v24 = vld [vmem:[%s20582_s3 + $0x58] sm:$0xff]  ;;  %v4921_v5 = vld [vmem:[%s20582_s3 + $0x48] sm:$0xff] }
 0x8f5   : > { %v17661_v61 = vmul.f32 %v17477_v43, %v17372_v34  ;;  %v17665_v60 = vmul.f32 %v17477_v43, %v17379_v32  ;;  %v17669_v33 = vmul.f32 %v17477_v43, %v17386_v0  ;;  %v17673_v27 = vmul.f32 %v17477_v43, %v17393_v39  ;;  %v4924_v34 = vld [vmem:[%s20582_s3 + $0x60] sm:$0xff]  ;;  %v4927_v32 = vld [vmem:[%s20582_s3 + $0x78] sm:$0xff]  ;;  %v4925_v0 = vld [vmem:[%s20582_s3 + $0x68] sm:$0xff] }
 0x8f6   : > { %21158 = vst [vmem:[#allocation18_spill] sm:$0xff] %v17641_v51  ;;  %21159 = vst [vmem:[#allocation22_spill] sm:$0xff] %v17645_v30  ;;  %v4926_v30 = vld [vmem:[%s20582_s3 + $0x70] sm:$0xff]  ;;  %v17689_v39 = vmul.f32 %v17477_v43, %v17400_v23  ;;  %v4928_v23 = vld [vmem:[%s20582_s3 + $0x80] sm:$0xff] }
 0x8f7   : > { %21160 = vst [vmem:[#allocation7_spill] sm:$0xff] %v17661_v61  ;;  %21161 = vst [vmem:[#allocation20_spill] sm:$0xff] %v17665_v60  ;;  %v17701_v60 = vmul.f32 %v17477_v43, %v17421_v26  ;;  %v4930_v61 = vld [vmem:[%s20582_s3 + $0x90] sm:$0xff]  ;;  %v17717_v26 = vmul.f32 %v17477_v43, %v17428_v47  ;;  %v4932_v47 = vld [vmem:[%s20582_s3 + $0xa0] sm:$0xff] }
 0x8f8   : > { %21162 = vst [vmem:[#allocation8_spill] sm:$0xff] %v17669_v33  ;;  %21163 = vst [vmem:[#allocation9_spill] sm:$0xff] %v17673_v27  ;;  %v17693_v27 = vmul.f32 %v17477_v43, %v17407_v59  ;;  %v17697_v33 = vmul.f32 %v17477_v43, %v17414_v1  ;;  %v4931_v59 = vld [vmem:[%s20582_s3 + $0x98] sm:$0xff]  ;;  %v4929_v1 = vld [vmem:[%s20582_s3 + $0x88] sm:$0xff] }
 0x8f9   : > { %21164 = vst [vmem:[#allocation10_spill] sm:$0xff] %v17689_v39  ;;  %21167 = vst [vmem:[#allocation13_spill] sm:$0xff] %v17701_v60  ;;  %v21169_v60 = vld [vmem:[#allocation5_spill] sm:$0xff]  ;;  %v17729_v39 = vmul.f32 %v17477_v43, %v17449_v12  ;;  %v17747_v12 = vmul.f32 %v17485_v62, %v4913_v57  ;;  %v17765_v62 = vmul.f32 %v17497_v56, %v4916_v36  ;;  %v4940_v56 = vld [vmem:[%s20582_s3 + $0xe0] sm:$0xff] }
 0x8fa   : > { %21165 = vst [vmem:[#allocation11_spill] sm:$0xff] %v17693_v27  ;;  %21166 = vst [vmem:[#allocation12_spill] sm:$0xff] %v17697_v33  ;;  %v17721_v33 = vmul.f32 %v17477_v43, %v21169_v60  ;;  %v17725_v27 = vmul.f32 %v17477_v43, %v17442_v42  ;;  %v4934_v51 = vld [vmem:[%s20582_s3 + $0xb0] sm:$0xff]  ;;  %v4935_v60 = vld [vmem:[%s20582_s3 + $0xb8] sm:$0xff]  ;;  %v17750_v43 = vmul.f32 %v17489_v8, %v4914_v17 }
 0x8fb   : > { %21168 = vst [vmem:[#allocation14_spill] sm:$0xff] %v17717_v26  ;;  %21172 = vst [vmem:[#allocation17_spill] sm:$0xff] %v17729_v39  ;;  %v4933_v42 = vld [vmem:[%s20582_s3 + $0xa8] sm:$0xff]  ;;  %v17753_v39 = vmul.f32 %v17493_v49, %v4915_v31  ;;  %v4936_v26 = vld [vmem:[%s20582_s3 + $0xc0] sm:$0xff]  ;;  %v17768_v8 = vmul.f32 %v17501_v9, %v4917_v45  ;;  %v17771_v49 = vmul.f32 %v17505_v37, %v4918_v53 }
 0x8fc   : > { %21170 = vst [vmem:[#allocation15_spill] sm:$0xff] %v17721_v33  ;;  %21171 = vst [vmem:[#allocation16_spill] sm:$0xff] %v17725_v27  ;;  %v17744_v27 = vmul.f32 %v17481_v58, %v4912_v2  ;;  %v4938_v33 = vld [vmem:[%s20582_s3 + $0xd0] sm:$0xff]  ;;  %v4939_v58 = vld [vmem:[%s20582_s3 + $0xd8] sm:$0xff]  ;;  %v17774_v17 = vmul.f32 %v17509_v50, %v4919_v4  ;;  %v17786_v9 = vmul.f32 %v17513_v22, %v4920_v11 }
 0x8fd   : > { %v4937_v2 = vld [vmem:[%s20582_s3 + $0xc8] sm:$0xff]  ;;  %v4942_v31 = vld [vmem:[%s20582_s3 + $0xf0] sm:$0xff]  ;;  %v17789_v37 = vmul.f32 %v17517_v7, %v4921_v5  ;;  %v17792_v50 = vmul.f32 %v17521_v13, %v4922_v18  ;;  %v17795_v57 = vmul.f32 %v17525_v20, %v4923_v24  ;;  %v4943_v53 = vld [vmem:[%s20582_s3 + $0xf8] sm:$0xff]  ;;  %v17807_v7 = vmul.f32 %v17529_v52, %v4924_v34 }
 0x8fe   : > { %v4941_v36 = vld [vmem:[%s20582_s3 + $0xe8] sm:$0xff]  ;;  %v4946_v22 = vld [vmem:[%s20582_s3 + $0x110] sm:$0xff]  ;;  %v17810_v13 = vmul.f32 %v17533_v25, %v4925_v0  ;;  %v17813_v20 = vmul.f32 %v17537_v21, %v4926_v30  ;;  %v17816_v4 = vmul.f32 %v17541_v41, %v4927_v32  ;;  %v4944_v45 = vld [vmem:[%s20582_s3 + $0x100] sm:$0xff]  ;;  %v17828_v25 = vmul.f32 %v17545_v10, %v4928_v23 }
 0x8ff   : > { %v4947_v18 = vld [vmem:[%s20582_s3 + $0x118] sm:$0xff]  ;;  %v4945_v52 = vld [vmem:[%s20582_s3 + $0x108] sm:$0xff]  ;;  %v17831_v21 = vmul.f32 %v17549_v46, %v4929_v1  ;;  %v17834_v41 = vmul.f32 %v17553_v14, %v4930_v61  ;;  %v17837_v30 = vmul.f32 %v17557_v15, %v4931_v59  ;;  %v4950_v11 = vld [vmem:[%s20582_s3 + $0x130] sm:$0xff]  ;;  %v17849_v46 = vmul.f32 %v17561_v35, %v4932_v47 }
 0x900   : > { %v4948_v24 = vld [vmem:[%s20582_s3 + $0x120] sm:$0xff]  ;;  %v4951_v10 = vld [vmem:[%s20582_s3 + $0x138] sm:$0xff]  ;;  %v17852_v14 = vmul.f32 %v17565_v29, %v4933_v42  ;;  %v17855_v15 = vmul.f32 %v17569_v48, %v4934_v51  ;;  %v17858_v5 = vmul.f32 %v17573_v54, %v4935_v60  ;;  %v4949_v61 = vld [vmem:[%s20582_s3 + $0x128] sm:$0xff]  ;;  %v17870_v29 = vmul.f32 %v17577_v55, %v4936_v26 }
 0x901   : > { %v4954_v34 = vld [vmem:[%s20582_s3 + $0x150] sm:$0xff]  ;;  %v4952_v35 = vld [vmem:[%s20582_s3 + $0x140] sm:$0xff]  ;;  %v17873_v48 = vmul.f32 %v17581_v38, %v4937_v2  ;;  %v17876_v54 = vmul.f32 %v17585_v40, %v4938_v33  ;;  %v17879_v51 = vmul.f32 %v17589_v44, %v4939_v58  ;;  %v4963_v55 = vld [vmem:[%s20583_s4 + $0x18] sm:$0xff]  ;;  %v17903_v23 = vmul.f32 %v17605_v3, %v4940_v56 }
 0x902   : > { %v4962_v32 = vld [vmem:[%s20583_s4 + $0x10] sm:$0xff]  ;;  %v4960_v0 = vld [vmem:[%s20583_s4] sm:$0xff]  ;;  %v4961_v38 = vld [vmem:[%s20583_s4 + $0x8] sm:$0xff]  ;;  %v17906_v59 = vmul.f32 %v17609_v63, %v4941_v36  ;;  %v17909_v1 = vmul.f32 %v17613_v6, %v4942_v31  ;;  %v17912_v26 = vmul.f32 %v17617_v16, %v4943_v53  ;;  %v17936_v58 = vmul.f32 %v17633_v19, %v4944_v45 }
 0x903   : > { %v4955_v40 = vld [vmem:[%s20582_s3 + $0x158] sm:$0xff]  ;;  %v4953_v44 = vld [vmem:[%s20582_s3 + $0x148] sm:$0xff]  ;;  %v4958_v33 = vld [vmem:[%s20582_s3 + $0x170] sm:$0xff]  ;;  %v17939_v2 = vmul.f32 %v17637_v28, %v4945_v52 }
 0x904   : > { %21173 = vst [vmem:[#allocation19_spill] sm:$0xff] %v17909_v1  ;;  %21174 = vst [vmem:[#allocation21_spill] sm:$0xff] %v17912_v26  ;;  %v4966_v47 = vld [vmem:[%s20583_s4 + $0x30] sm:$0xff]  ;;  %v4964_v60 = vld [vmem:[%s20583_s4 + $0x20] sm:$0xff] }
 0x905   : > { %v4967_v3 = vld [vmem:[%s20583_s4 + $0x38] sm:$0xff]  ;;  %v4965_v63 = vld [vmem:[%s20583_s4 + $0x28] sm:$0xff]  ;;  %v4956_v6 = vld [vmem:[%s20582_s3 + $0x160] sm:$0xff]  ;;  %21175 = vst [vmem:[#allocation23_spill] sm:$0xff] %v17936_v58 }
 0x906   : > { %v4957_v16 = vld [vmem:[%s20582_s3 + $0x168] sm:$0xff]  ;;  %v4959_v42 = vld [vmem:[%s20582_s3 + $0x178] sm:$0xff]  ;;  %21176 = vst [vmem:[#allocation24_spill] sm:$0xff] %v17939_v2  ;;  %v4970_v26 = vld [vmem:[%s20583_s4 + $0x50] sm:$0xff] }
 0x907   : > { %v21177_v31 = vld [vmem:[#allocation18_spill] sm:$0xff]  ;;  %v4968_v1 = vld [vmem:[%s20583_s4 + $0x40] sm:$0xff]  ;;  %v4969_v28 = vld [vmem:[%s20583_s4 + $0x48] sm:$0xff] }
 0x908   : > { %v17942_v56 = vmul.f32 %v21177_v31, %v4946_v22  ;;  %v21179_v53 = vld [vmem:[#allocation22_spill] sm:$0xff]  ;;  %v21181_v22 = vld [vmem:[#allocation7_spill] sm:$0xff]  ;;  %v21185_v31 = vld [vmem:[#allocation8_spill] sm:$0xff] }
 0x909   : > { %v17945_v36 = vmul.f32 %v21179_v53, %v4947_v18  ;;  %v4971_v19 = vld [vmem:[%s20583_s4 + $0x58] sm:$0xff]  ;;  %v17960_v45 = vmul.f32 %v21181_v22, %v4948_v24  ;;  %v21183_v18 = vld [vmem:[#allocation20_spill] sm:$0xff]  ;;  %v17966_v53 = vmul.f32 %v21185_v31, %v4950_v11  ;;  %v4974_v2 = vld [vmem:[%s20583_s4 + $0x70] sm:$0xff] }
 0x90a   : > { %21178 = vst [vmem:[#allocation46_spill] sm:$0xff] %v17942_v56  ;;  %v17963_v52 = vmul.f32 %v21183_v18, %v4949_v61  ;;  %v4972_v58 = vld [vmem:[%s20583_s4 + $0x60] sm:$0xff]  ;;  %v4975_v24 = vld [vmem:[%s20583_s4 + $0x78] sm:$0xff]  ;;  %v4973_v11 = vld [vmem:[%s20583_s4 + $0x68] sm:$0xff] }
 0x90b   : > { %21180 = vst [vmem:[#allocation47_spill] sm:$0xff] %v17945_v36  ;;  %21182 = vst [vmem:[#allocation48_spill] sm:$0xff] %v17960_v45  ;;  %v21187_v36 = vld [vmem:[#allocation9_spill] sm:$0xff]  ;;  %v21189_v61 = vld [vmem:[#allocation10_spill] sm:$0xff] }
 0x90c   : > { %21184 = vst [vmem:[#allocation49_spill] sm:$0xff] %v17963_v52  ;;  %21186 = vst [vmem:[#allocation50_spill] sm:$0xff] %v17966_v53  ;;  %v17969_v56 = vmul.f32 %v21187_v36, %v4951_v10  ;;  %v17984_v22 = vmul.f32 %v21189_v61, %v4952_v35  ;;  %v21191_v10 = vld [vmem:[#allocation11_spill] sm:$0xff]  ;;  %v21193_v18 = vld [vmem:[#allocation12_spill] sm:$0xff] }
 0x90d   : > { %v17987_v36 = vmul.f32 %v21191_v10, %v4953_v44  ;;  %v17990_v31 = vmul.f32 %v21193_v18, %v4954_v34  ;;  %v4978_v52 = vld [vmem:[%s20583_s4 + $0x90] sm:$0xff]  ;;  %v4976_v45 = vld [vmem:[%s20583_s4 + $0x80] sm:$0xff]  ;;  %v4979_v35 = vld [vmem:[%s20583_s4 + $0x98] sm:$0xff] }
 0x90e   : > { %21188 = vst [vmem:[#allocation51_spill] sm:$0xff] %v17969_v56  ;;  %21190 = vst [vmem:[#allocation52_spill] sm:$0xff] %v17984_v22  ;;  %v21195_v56 = vld [vmem:[#allocation13_spill] sm:$0xff]  ;;  %v4977_v34 = vld [vmem:[%s20583_s4 + $0x88] sm:$0xff] }
 0x90f   : > { %21192 = vst [vmem:[#allocation53_spill] sm:$0xff] %v17987_v36  ;;  %21194 = vst [vmem:[#allocation54_spill] sm:$0xff] %v17990_v31  ;;  %v17993_v53 = vmul.f32 %v21195_v56, %v4955_v40  ;;  %v21197_v44 = vld [vmem:[#allocation14_spill] sm:$0xff]  ;;  %v21198_v40 = vld [vmem:[#allocation15_spill] sm:$0xff] }
 0x910   : > { %v18008_v61 = vmul.f32 %v21197_v44, %v4956_v6  ;;  %v18011_v56 = vmul.f32 %v21198_v40, %v4957_v16  ;;  %v21199_v10 = vld [vmem:[#allocation16_spill] sm:$0xff]  ;;  %v4982_v36 = vld [vmem:[%s20583_s4 + $0xb0] sm:$0xff]  ;;  %v4980_v22 = vld [vmem:[%s20583_s4 + $0xa0] sm:$0xff]  ;;  %v18032_v16 = vadd.f32 %v17744_v27, %v4960_v0  ;;  %v18041_v44 = vadd.f32 %v17753_v39, %v4963_v55 }
 0x911   : > { %21196 = vst [vmem:[#allocation55_spill] sm:$0xff] %v17993_v53  ;;  %v18014_v18 = vmul.f32 %v21199_v10, %v4958_v33  ;;  %v21200_v53 = vld [vmem:[#allocation17_spill] sm:$0xff]  ;;  %v4983_v6 = vld [vmem:[%s20583_s4 + $0xb8] sm:$0xff]  ;;  %v4981_v33 = vld [vmem:[%s20583_s4 + $0xa8] sm:$0xff]  ;;  %v18059_v39 = vadd.f32 %v17771_v49, %v4966_v47  ;;  %v18077_v49 = vadd.f32 %v17789_v37, %v4969_v28  ;;  %v18095_v37 = vadd.f32 %v17807_v7, %v4972_v58 }
 0x912   : > { %v18017_v31 = vmul.f32 %v21200_v53, %v4959_v42  ;;  %v18035_v42 = vadd.f32 %v17747_v12, %v4961_v38  ;;  %v18038_v53 = vadd.f32 %v17750_v43, %v4962_v32  ;;  %v4986_v40 = vld [vmem:[%s20583_s4 + $0xd0] sm:$0xff]  ;;  %v4984_v10 = vld [vmem:[%s20583_s4 + $0xc0] sm:$0xff]  ;;  %v4987_v27 = vld [vmem:[%s20583_s4 + $0xd8] sm:$0xff]  ;;  %v18053_v12 = vadd.f32 %v17765_v62, %v4964_v60 }
 0x913   : > { %v18056_v43 = vadd.f32 %v17768_v8, %v4965_v63  ;;  %v18062_v32 = vadd.f32 %v17774_v17, %v4967_v3  ;;  %v4985_v0 = vld [vmem:[%s20583_s4 + $0xc8] sm:$0xff]  ;;  %v4990_v55 = vld [vmem:[%s20583_s4 + $0xf0] sm:$0xff]  ;;  %v4988_v62 = vld [vmem:[%s20583_s4 + $0xe0] sm:$0xff]  ;;  %v18074_v8 = vadd.f32 %v17786_v9, %v4968_v1  ;;  %v18080_v17 = vadd.f32 %v17792_v50, %v4970_v26 }
 0x914   : > { %v18083_v38 = vadd.f32 %v17795_v57, %v4971_v19  ;;  %v4991_v47 = vld [vmem:[%s20583_s4 + $0xf8] sm:$0xff]  ;;  %v4989_v60 = vld [vmem:[%s20583_s4 + $0xe8] sm:$0xff]  ;;  %v4994_v9 = vld [vmem:[%s20583_s4 + $0x110] sm:$0xff]  ;;  %v18098_v50 = vadd.f32 %v17810_v13, %v4973_v11  ;;  %v18101_v57 = vadd.f32 %v17813_v20, %v4974_v2  ;;  %v18104_v1 = vadd.f32 %v17816_v4, %v4975_v24 }
 0x915   : > { %v4992_v26 = vld [vmem:[%s20583_s4 + $0x100] sm:$0xff]  ;;  %v4995_v3 = vld [vmem:[%s20583_s4 + $0x118] sm:$0xff]  ;;  %v4993_v7 = vld [vmem:[%s20583_s4 + $0x108] sm:$0xff]  ;;  %v18116_v13 = vadd.f32 %v17828_v25, %v4976_v45  ;;  %v18119_v20 = vadd.f32 %v17831_v21, %v4977_v34  ;;  %v18122_v4 = vadd.f32 %v17834_v41, %v4978_v52  ;;  %v18125_v63 = vadd.f32 %v17837_v30, %v4979_v35 }
 0x916   : > { %v4998_v58 = vld [vmem:[%s20583_s4 + $0x130] sm:$0xff]  ;;  %v4996_v2 = vld [vmem:[%s20583_s4 + $0x120] sm:$0xff]  ;;  %v4999_v25 = vld [vmem:[%s20583_s4 + $0x138] sm:$0xff]  ;;  %v18137_v21 = vadd.f32 %v17849_v46, %v4980_v22  ;;  %v18140_v41 = vadd.f32 %v17852_v14, %v4981_v33  ;;  %v18143_v30 = vadd.f32 %v17855_v15, %v4982_v36  ;;  %v18146_v19 = vadd.f32 %v17858_v5, %v4983_v6 }
 0x917   : > { %v4997_v28 = vld [vmem:[%s20583_s4 + $0x128] sm:$0xff]  ;;  %v5002_v45 = vld [vmem:[%s20583_s4 + $0x150] sm:$0xff]  ;;  %v5000_v46 = vld [vmem:[%s20583_s4 + $0x140] sm:$0xff]  ;;  %v18158_v14 = vadd.f32 %v17870_v29, %v4984_v10  ;;  %v18161_v15 = vadd.f32 %v17873_v48, %v4985_v0  ;;  %v18164_v5 = vadd.f32 %v17876_v54, %v4986_v40  ;;  %v18167_v52 = vadd.f32 %v17879_v51, %v4987_v27 }
 0x918   : > { %v5003_v24 = vld [vmem:[%s20583_s4 + $0x158] sm:$0xff]  ;;  %v5001_v11 = vld [vmem:[%s20583_s4 + $0x148] sm:$0xff]  ;;  %v5006_v29 = vld [vmem:[%s20583_s4 + $0x170] sm:$0xff]  ;;  %v18179_v48 = vadd.f32 %v17903_v23, %v4988_v62  ;;  %v18182_v54 = vadd.f32 %v17906_v59, %v4989_v60 }
 0x919   : > { %v21201_v51 = vld [vmem:[#allocation19_spill] sm:$0xff]  ;;  %v21203_v36 = vld [vmem:[#allocation21_spill] sm:$0xff]  ;;  %v5005_v6 = vld [vmem:[%s20583_s4 + $0x168] sm:$0xff] }
 0x91a   : > { %v18185_v22 = vadd.f32 %v21201_v51, %v4990_v55  ;;  %v18188_v35 = vadd.f32 %v21203_v36, %v4991_v47  ;;  %v5004_v34 = vld [vmem:[%s20583_s4 + $0x160] sm:$0xff]  ;;  %v5007_v23 = vld [vmem:[%s20583_s4 + $0x178] sm:$0xff]  ;;  %v21206_v40 = vld [vmem:[#allocation24_spill] sm:$0xff] }
 0x91b   : > { %v21205_v59 = vld [vmem:[#allocation23_spill] sm:$0xff]  ;;  %v18203_v10 = vadd.f32 %v21206_v40, %v4993_v7  ;;  %v21207_v27 = vld [vmem:[#allocation46_spill] sm:$0xff]  ;;  %v21209_v47 = vld [vmem:[#allocation48_spill] sm:$0xff] }
 0x91c   : > { %21202 = vst [vmem:[#allocation56_spill] sm:$0xff] %v18185_v22  ;;  %21204 = vst [vmem:[#allocation57_spill] sm:$0xff] %v18188_v35  ;;  %v18200_v33 = vadd.f32 %v21205_v59, %v4992_v26  ;;  %v18206_v0 = vadd.f32 %v21207_v27, %v4994_v9  ;;  %v21208_v55 = vld [vmem:[#allocation47_spill] sm:$0xff]  ;;  %v18212_v60 = vadd.f32 %v21209_v47, %v4996_v2  ;;  %v21210_v51 = vld [vmem:[#allocation49_spill] sm:$0xff] }
 0x91d   : > { %v18209_v62 = vadd.f32 %v21208_v55, %v4995_v3  ;;  %v18215_v36 = vadd.f32 %v21210_v51, %v4997_v28  ;;  %v21211_v35 = vld [vmem:[#allocation50_spill] sm:$0xff]  ;;  %v21212_v26 = vld [vmem:[#allocation51_spill] sm:$0xff]  ;;  %v21213_v7 = vld [vmem:[#allocation52_spill] sm:$0xff]  ;;  %v18236_v28 = vadd.f32 %v18008_v61, %v5004_v34  ;;  %v5469_v61 = vmax.f32 %v18053_v12, 0.0 }
 0x91e   : > { %v18218_v22 = vadd.f32 %v21211_v35, %v4998_v58  ;;  %v18221_v59 = vadd.f32 %v21212_v26, %v4999_v25  ;;  %v18224_v40 = vadd.f32 %v21213_v7, %v5000_v46  ;;  %v21214_v9 = vld [vmem:[#allocation53_spill] sm:$0xff]  ;;  %v21215_v3 = vld [vmem:[#allocation54_spill] sm:$0xff]  ;;  %v21216_v2 = vld [vmem:[#allocation55_spill] sm:$0xff]  ;;  %v18239_v58 = vadd.f32 %v18011_v56, %v5005_v6 }
 0x91f   : > { %v18227_v27 = vadd.f32 %v21214_v9, %v5001_v11  ;;  %v18230_v55 = vadd.f32 %v21215_v3, %v5002_v45  ;;  %v18233_v47 = vadd.f32 %v21216_v2, %v5003_v24  ;;  %v18242_v25 = vadd.f32 %v18014_v18, %v5006_v29  ;;  %5517 = vst.msk [vmem:[#allocation2 + $0x40] sm:$0xff] %vm388_vm0, %v5469_v61 }
 0x920   : > { %v18245_v46 = vadd.f32 %v18017_v31, %v5007_v23  ;;  %v5465_v11 = vmax.f32 %v18032_v16, 0.0  ;;  %v5466_v45 = vmax.f32 %v18035_v42, 0.0  ;;  %v5467_v35 = vmax.f32 %v18038_v53, 0.0 }
 0x921   : > { %v5468_v24 = vmax.f32 %v18041_v44, 0.0  ;;  %v5470_v34 = vmax.f32 %v18056_v43, 0.0  ;;  %v5471_v56 = vmax.f32 %v18059_v39, 0.0  ;;  %v5472_v18 = vmax.f32 %v18062_v32, 0.0 }
 0x922   : > { %v5473_v29 = vmax.f32 %v18074_v8, 0.0  ;;  %v5474_v31 = vmax.f32 %v18077_v49, 0.0  ;;  %v5475_v16 = vmax.f32 %v18080_v17, 0.0  ;;  %v5476_v42 = vmax.f32 %v18083_v38, 0.0  ;;  %5513 = vst.msk [vmem:[#allocation2 + $0x20] sm:$0xff] %vm388_vm0, %v5465_v11  ;;  %5514 = vst.msk [vmem:[#allocation2 + $0x28] sm:$0xff] %vm388_vm0, %v5466_v45 }
 0x923   : > { %5515 = vst.msk [vmem:[#allocation2 + $0x30] sm:$0xff] %vm388_vm0, %v5467_v35  ;;  %5516 = vst.msk [vmem:[#allocation2 + $0x38] sm:$0xff] %vm388_vm0, %v5468_v24  ;;  %v5477_v53 = vmax.f32 %v18095_v37, 0.0  ;;  %v5478_v44 = vmax.f32 %v18098_v50, 0.0  ;;  %v5479_v12 = vmax.f32 %v18101_v57, 0.0  ;;  %v5480_v43 = vmax.f32 %v18104_v1, 0.0 }
 0x924   : > { %5518 = vst.msk [vmem:[#allocation2 + $0x48] sm:$0xff] %vm388_vm0, %v5470_v34  ;;  %5519 = vst.msk [vmem:[#allocation2 + $0x50] sm:$0xff] %vm388_vm0, %v5471_v56  ;;  %v5481_v39 = vmax.f32 %v18116_v13, 0.0  ;;  %v5482_v32 = vmax.f32 %v18119_v20, 0.0  ;;  %v5483_v8 = vmax.f32 %v18122_v4, 0.0  ;;  %v5484_v49 = vmax.f32 %v18125_v63, 0.0 }
 0x925   : > { %5520 = vst.msk [vmem:[#allocation2 + $0x58] sm:$0xff] %vm388_vm0, %v5472_v18  ;;  %5521 = vst.msk [vmem:[#allocation2 + $0x60] sm:$0xff] %vm388_vm0, %v5473_v29  ;;  %v5485_v17 = vmax.f32 %v18137_v21, 0.0  ;;  %v5486_v38 = vmax.f32 %v18140_v41, 0.0  ;;  %v5487_v37 = vmax.f32 %v18143_v30, 0.0  ;;  %v5488_v50 = vmax.f32 %v18146_v19, 0.0 }
 0x926   : > { %5522 = vst.msk [vmem:[#allocation2 + $0x68] sm:$0xff] %vm388_vm0, %v5474_v31  ;;  %5523 = vst.msk [vmem:[#allocation2 + $0x70] sm:$0xff] %vm388_vm0, %v5475_v16  ;;  %v5489_v57 = vmax.f32 %v18158_v14, 0.0  ;;  %v5490_v1 = vmax.f32 %v18161_v15, 0.0  ;;  %v5491_v13 = vmax.f32 %v18164_v5, 0.0  ;;  %v5492_v20 = vmax.f32 %v18167_v52, 0.0 }
 0x927   : > { %5524 = vst.msk [vmem:[#allocation2 + $0x78] sm:$0xff] %vm388_vm0, %v5476_v42  ;;  %5525 = vst.msk [vmem:[#allocation2 + $0x80] sm:$0xff] %vm388_vm0, %v5477_v53  ;;  %v5493_v4 = vmax.f32 %v18179_v48, 0.0  ;;  %v5494_v63 = vmax.f32 %v18182_v54, 0.0  ;;  %v21217_v21 = vld [vmem:[#allocation56_spill] sm:$0xff]  ;;  %v21218_v30 = vld [vmem:[#allocation57_spill] sm:$0xff] }
 0x928   : > { %5526 = vst.msk [vmem:[#allocation2 + $0x88] sm:$0xff] %vm388_vm0, %v5478_v44  ;;  %5527 = vst.msk [vmem:[#allocation2 + $0x90] sm:$0xff] %vm388_vm0, %v5479_v12  ;;  %v5495_v41 = vmax.f32 %v21217_v21, 0.0  ;;  %v5496_v19 = vmax.f32 %v21218_v30, 0.0  ;;  %v5497_v14 = vmax.f32 %v18200_v33, 0.0  ;;  %v5498_v15 = vmax.f32 %v18203_v10, 0.0 }
 0x929   : > { %5528 = vst.msk [vmem:[#allocation2 + $0x98] sm:$0xff] %vm388_vm0, %v5480_v43  ;;  %5529 = vst.msk [vmem:[#allocation2 + $0xa0] sm:$0xff] %vm388_vm0, %v5481_v39  ;;  %v5499_v5 = vmax.f32 %v18206_v0, 0.0  ;;  %v5500_v52 = vmax.f32 %v18209_v62, 0.0  ;;  %v5636_v48 = vld [vmem:[#allocation2 + $0x18] sm:$0xff]  ;;  %v5501_v54 = vmax.f32 %v18212_v60, 0.0 }
 0x92a   : > { %5530 = vst.msk [vmem:[#allocation2 + $0xa8] sm:$0xff] %vm388_vm0, %v5482_v32  ;;  %5531 = vst.msk [vmem:[#allocation2 + $0xb0] sm:$0xff] %vm388_vm0, %v5483_v8  ;;  %v5502_v6 = vmax.f32 %v18215_v36, 0.0  ;;  %v5503_v23 = vmax.f32 %v18218_v22, 0.0  ;;  %v5504_v33 = vmax.f32 %v18221_v59, 0.0  ;;  %v18319_v10 = vld [vmem:[#allocation2 + $0x20] sm:$0xff] }
 0x92b   : > { %5532 = vst.msk [vmem:[#allocation2 + $0xb8] sm:$0xff] %vm388_vm0, %v5484_v49  ;;  %5533 = vst.msk [vmem:[#allocation2 + $0xc0] sm:$0xff] %vm388_vm0, %v5485_v17  ;;  %v18321_v0 = vld [vmem:[#allocation2 + $0x28] sm:$0xff]  ;;  %v5505_v62 = vmax.f32 %v18224_v40, 0.0  ;;  %v5506_v60 = vmax.f32 %v18227_v27, 0.0  ;;  %v5507_v22 = vmax.f32 %v18230_v55, 0.0  ;;  %v5683_v2 = vpack.c.bf16 %v18319_v10, %v5636_v48 }
 0x92c   : > { %5534 = vst.msk [vmem:[#allocation2 + $0xc8] sm:$0xff] %vm388_vm0, %v5486_v38  ;;  %5535 = vst.msk [vmem:[#allocation2 + $0xd0] sm:$0xff] %vm388_vm0, %v5487_v37  ;;  %v5508_v51 = vmax.f32 %v18233_v47, 0.0  ;;  %v18331_v36 = vld [vmem:[#allocation2 + $0x30] sm:$0xff]  ;;  %v18333_v26 = vld [vmem:[#allocation2 + $0x38] sm:$0xff]  ;;  %v5509_v59 = vmax.f32 %v18236_v28, 0.0 }
 0x92d   : > { %5536 = vst.msk [vmem:[#allocation2 + $0xd8] sm:$0xff] %vm388_vm0, %v5488_v50  ;;  %5537 = vst.msk [vmem:[#allocation2 + $0xe0] sm:$0xff] %vm388_vm0, %v5489_v57  ;;  %v5510_v7 = vmax.f32 %v18239_v58, 0.0  ;;  %v5511_v40 = vmax.f32 %v18242_v25, 0.0  ;;  %v5512_v9 = vmax.f32 %v18245_v46, 0.0  ;;  %v18343_v27 = vld [vmem:[#allocation2 + $0x40] sm:$0xff]  ;;  %v5684_v58 = vpack.c.bf16 %v18331_v36, %v18321_v0  ;;  %13425 = vmatmul.mubr.msk.bf16.vlgmr.msra.gmra.mrb[4].mxu1 %vm388_vm0, %v5683_v2 }
 0x92e   : > { %5538 = vst.msk [vmem:[#allocation2 + $0xe8] sm:$0xff] %vm388_vm0, %v5490_v1  ;;  %5539 = vst.msk [vmem:[#allocation2 + $0xf0] sm:$0xff] %vm388_vm0, %v5491_v13  ;;  %v18345_v3 = vld [vmem:[#allocation2 + $0x48] sm:$0xff]  ;;  %v21225_v47 = vld [vmem:[#allocation6_spill] sm:$0xff] }
 0x92f   : > { %5540 = vst.msk [vmem:[#allocation2 + $0xf8] sm:$0xff] %vm388_vm0, %v5492_v20  ;;  %5541 = vst.msk [vmem:[#allocation2 + $0x100] sm:$0xff] %vm388_vm0, %v5493_v4  ;;  %v18350_v55 = vld [vmem:[%s20586_s7 + $0x8] sm:$0xf]  ;;  %v6081_v28 = vsel %vm1313_vm1, %v21225_v47, 0  ;;  %v18361_v25 = vld [vmem:[#allocation2 + $0x50] sm:$0xff]  ;;  %13428 = vmatprep.mubr.msk.bf16.mxu1 %vm388_vm0, %v5684_v58 }
 0x930   : > { %5542 = vst.msk [vmem:[#allocation2 + $0x108] sm:$0xff] %vm388_vm0, %v5494_v63  ;;  %5543 = vst.msk [vmem:[#allocation2 + $0x110] sm:$0xff] %vm388_vm0, %v5495_v41  ;;  %v18363_v46 = vld [vmem:[#allocation2 + $0x58] sm:$0xff]  ;;  %v18365_v11 = vld [vmem:[#allocation2 + $0x60] sm:$0xff]  ;;  %13473 = vmatpush3.bf16.msra.mxu1 %v6081_v28 }
 0x931   : > { %5544 = vst.msk [vmem:[#allocation2 + $0x118] sm:$0xff] %vm388_vm0, %v5496_v19  ;;  %21219 = vst [vmem:[#allocation58_spill] sm:$0xff] %v18319_v10  ;;  %v18371_v45 = vld [vmem:[#allocation2 + $0x68] sm:$0xff]  ;;  %v18373_v35 = vld [vmem:[#allocation2 + $0x70] sm:$0xff]  ;;  %14664 = vmatprep.subr.msk.bf16.mxu1 %vm1313_vm1, %v18350_v55  ;;  %v5687_v49 = vpack.c.bf16 %v18365_v11, %v18363_v46 }
 0x932   : > { %21220 = vst [vmem:[#allocation59_spill] sm:$0xff] %v18321_v0  ;;  %5545 = vst.msk [vmem:[#allocation2 + $0x120] sm:$0xff] %vm388_vm0, %v5497_v14  ;;  %v18375_v24 = vld [vmem:[#allocation2 + $0x78] sm:$0xff]  ;;  %v18380_v34 = vld [vmem:[#allocation2 + $0x80] sm:$0xff]  ;;  %v5688_v29 = vpack.c.bf16 %v18373_v35, %v18371_v45 }
 0x933   : > { %5546 = vst.msk [vmem:[#allocation2 + $0x128] sm:$0xff] %vm388_vm0, %v5498_v15  ;;  %5547 = vst.msk [vmem:[#allocation2 + $0x130] sm:$0xff] %vm388_vm0, %v5499_v5  ;;  %v18382_v56 = vld [vmem:[#allocation2 + $0x88] sm:$0xff]  ;;  %v18384_v18 = vld [vmem:[#allocation2 + $0x90] sm:$0xff]  ;;  %v5685_v15 = vpack.c.bf16 %v18343_v27, %v18333_v26 }
 0x934   : > { %5548 = vst.msk [vmem:[#allocation2 + $0x138] sm:$0xff] %vm388_vm0, %v5500_v52  ;;  %21221 = vst [vmem:[#allocation64_spill] sm:$0xff] %v18331_v36  ;;  %v18393_v42 = vld [vmem:[#allocation2 + $0x98] sm:$0xff]  ;;  %v18395_v53 = vld [vmem:[#allocation2 + $0xa0] sm:$0xff] }
 0x935   : > { %21222 = vst [vmem:[#allocation65_spill] sm:$0xff] %v18333_v26  ;;  %5549 = vst.msk [vmem:[#allocation2 + $0x140] sm:$0xff] %vm388_vm0, %v5501_v54  ;;  %v18397_v44 = vld [vmem:[#allocation2 + $0xa8] sm:$0xff]  ;;  %v18401_v43 = vld [vmem:[#allocation2 + $0xb0] sm:$0xff]  ;;  %13429 = vmatmul.mubr.msk.bf16.gmra.mrb[8].mxu1 %vm388_vm0, %v5685_v15 }
 0x936   : > { %5550 = vst.msk [vmem:[#allocation2 + $0x148] sm:$0xff] %vm388_vm0, %v5502_v6  ;;  %5551 = vst.msk [vmem:[#allocation2 + $0x150] sm:$0xff] %vm388_vm0, %v5503_v23  ;;  %v18403_v39 = vld [vmem:[#allocation2 + $0xb8] sm:$0xff]  ;;  %v18405_v32 = vld [vmem:[#allocation2 + $0xc0] sm:$0xff]  ;;  %v5686_v23 = vpack.c.bf16 %v18361_v25, %v18345_v3 }
 0x937   : > { %5552 = vst.msk [vmem:[#allocation2 + $0x158] sm:$0xff] %vm388_vm0, %v5504_v33  ;;  %21223 = vst [vmem:[#allocation66_spill] sm:$0xff] %v18343_v27  ;;  %v18415_v38 = vld [vmem:[#allocation2 + $0xc8] sm:$0xff]  ;;  %v18417_v37 = vld [vmem:[#allocation2 + $0xd0] sm:$0xff] }
 0x938   : > { %21224 = vst [vmem:[#allocation67_spill] sm:$0xff] %v18345_v3  ;;  %5553 = vst.msk [vmem:[#allocation2 + $0x160] sm:$0xff] %vm388_vm0, %v5505_v62  ;;  %v18419_v50 = vld [vmem:[#allocation2 + $0xd8] sm:$0xff]  ;;  %v18425_v13 = vld [vmem:[#allocation2 + $0xe0] sm:$0xff]  ;;  %13432 = vmatprep.mubr.msk.bf16.mxu1 %vm388_vm0, %v5686_v23 }
 0x939   : > { %5554 = vst.msk [vmem:[#allocation2 + $0x168] sm:$0xff] %vm388_vm0, %v5506_v60  ;;  %5555 = vst.msk [vmem:[#allocation2 + $0x170] sm:$0xff] %vm388_vm0, %v5507_v22  ;;  %v18427_v20 = vld [vmem:[#allocation2 + $0xe8] sm:$0xff]  ;;  %v18429_v4 = vld [vmem:[#allocation2 + $0xf0] sm:$0xff] }
 0x93a   : > { %5556 = vst.msk [vmem:[#allocation2 + $0x178] sm:$0xff] %vm388_vm0, %v5508_v51  ;;  %21226 = vst [vmem:[#allocation68_spill] sm:$0xff] %v18361_v25  ;;  %v18435_v41 = vld [vmem:[#allocation2 + $0xf8] sm:$0xff]  ;;  %v18437_v30 = vld [vmem:[#allocation2 + $0x100] sm:$0xff] }
 0x93b   : > { %21227 = vst [vmem:[#allocation69_spill] sm:$0xff] %v18363_v46  ;;  %21228 = vst [vmem:[#allocation70_spill] sm:$0xff] %v18365_v11  ;;  %v18439_v19 = vld [vmem:[#allocation2 + $0x108] sm:$0xff]  ;;  %v18445_v5 = vld [vmem:[#allocation2 + $0x110] sm:$0xff] }
 0x93c   : > { %5557 = vst.msk [vmem:[#allocation2 + $0x180] sm:$0xff] %vm388_vm0, %v5509_v59  ;;  %5558 = vst.msk [vmem:[#allocation2 + $0x188] sm:$0xff] %vm388_vm0, %v5510_v7  ;;  %v18447_v52 = vld [vmem:[#allocation2 + $0x118] sm:$0xff]  ;;  %v18449_v48 = vld [vmem:[#allocation2 + $0x120] sm:$0xff] }
 0x93d   : > { %5559 = vst.msk [vmem:[#allocation2 + $0x190] sm:$0xff] %vm388_vm0, %v5511_v40  ;;  %5560 = vst.msk [vmem:[#allocation2 + $0x198] sm:$0xff] %vm388_vm0, %v5512_v9  ;;  %v18457_v33 = vld [vmem:[#allocation2 + $0x128] sm:$0xff]  ;;  %v18459_v62 = vld [vmem:[#allocation2 + $0x130] sm:$0xff]  ;;  %13433 = vmatmul.mubr.msk.bf16.gmra.mrb[12].mxu1 %vm388_vm0, %v5687_v49 }
 0x93e   : > { %21229 = vst [vmem:[#allocation71_spill] sm:$0xff] %v18371_v45  ;;  %21230 = vst [vmem:[#allocation72_spill] sm:$0xff] %v18373_v35  ;;  %v18461_v60 = vld [vmem:[#allocation2 + $0x138] sm:$0xff]  ;;  %v18466_v51 = vld [vmem:[#allocation2 + $0x140] sm:$0xff]  ;;  %13436 = vmatprep.mubr.msk.bf16.mxu1 %vm388_vm0, %v5688_v29 }
 0x93f   : > { %21231 = vst [vmem:[#allocation73_spill] sm:$0xff] %v18375_v24  ;;  %21232 = vst [vmem:[#allocation74_spill] sm:$0xff] %v18380_v34  ;;  %v18468_v59 = vld [vmem:[#allocation2 + $0x148] sm:$0xff]  ;;  %v18470_v7 = vld [vmem:[#allocation2 + $0x150] sm:$0xff] }
 0x940   : > { %21233 = vst [vmem:[#allocation75_spill] sm:$0xff] %v18382_v56  ;;  %21234 = vst [vmem:[#allocation76_spill] sm:$0xff] %v18384_v18  ;;  %v18477_v2 = vld [vmem:[#allocation2 + $0x158] sm:$0xff]  ;;  %v18479_v47 = vld [vmem:[#allocation2 + $0x160] sm:$0xff] }
 0x941   : > { %21235 = vst [vmem:[#allocation77_spill] sm:$0xff] %v18393_v42  ;;  %21236 = vst [vmem:[#allocation78_spill] sm:$0xff] %v18395_v53  ;;  %v18481_v28 = vld [vmem:[#allocation2 + $0x168] sm:$0xff]  ;;  %v18485_v15 = vld [vmem:[#allocation2 + $0x170] sm:$0xff] }
 0x942   : > { %21237 = vst [vmem:[#allocation79_spill] sm:$0xff] %v18397_v44  ;;  %21238 = vst [vmem:[#allocation80_spill] sm:$0xff] %v18401_v43  ;;  %v18487_v22 = vld [vmem:[#allocation2 + $0x178] sm:$0xff]  ;;  %v18495_v6 = vld [vmem:[#allocation2 + $0x27] sm:$0xff] }
 0x943   : > { %21239 = vst [vmem:[#allocation81_spill] sm:$0xff] %v18403_v39  ;;  %21240 = vst [vmem:[#allocation82_spill] sm:$0xff] %v18405_v32  ;;  %v18493_v23 = vld [vmem:[#allocation2 + $0x1f] sm:$0xff]  ;;  %v18497_v54 = vld [vmem:[#allocation2 + $0x2f] sm:$0xff] }
 0x944   : > { %21241 = vst [vmem:[#allocation83_spill] sm:$0xff] %v18415_v38  ;;  %21242 = vst [vmem:[#allocation84_spill] sm:$0xff] %v18417_v37  ;;  %v18501_v58 = vld [vmem:[#allocation2 + $0x37] sm:$0xff]  ;;  %v18503_v21 = vld [vmem:[#allocation2 + $0x3f] sm:$0xff] }
 0x945   : > { %21243 = vst [vmem:[#allocation85_spill] sm:$0xff] %v18419_v50  ;;  %21244 = vst [vmem:[#allocation86_spill] sm:$0xff] %v18425_v13  ;;  %v18505_v63 = vld [vmem:[#allocation2 + $0x47] sm:$0xff]  ;;  %v18509_v1 = vld [vmem:[#allocation2 + $0x4f] sm:$0xff] }
 0x946   : > { %21245 = vst [vmem:[#allocation87_spill] sm:$0xff] %v18427_v20  ;;  %21246 = vst [vmem:[#allocation88_spill] sm:$0xff] %v18429_v4  ;;  %v18511_v9 = vld [vmem:[#allocation2 + $0x57] sm:$0xff]  ;;  %v18513_v57 = vld [vmem:[#allocation2 + $0x5f] sm:$0xff] }
 0x947   : > { %21247 = vst [vmem:[#allocation25_spill] sm:$0xff] %v18435_v41  ;;  %21248 = vst [vmem:[#allocation26_spill] sm:$0xff] %v18437_v30  ;;  %v18521_v8 = vld [vmem:[#allocation2 + $0x67] sm:$0xff]  ;;  %v18523_v12 = vld [vmem:[#allocation2 + $0x6f] sm:$0xff] }
 0x948   : > { %21249 = vst [vmem:[#allocation27_spill] sm:$0xff] %v18439_v19  ;;  %21250 = vst [vmem:[#allocation28_spill] sm:$0xff] %v18445_v5  ;;  %v18525_v16 = vld [vmem:[#allocation2 + $0x77] sm:$0xff]  ;;  %v18531_v61 = vld [vmem:[#allocation2 + $0x7f] sm:$0xff] }
 0x949   : > { %21251 = vst [vmem:[#allocation29_spill] sm:$0xff] %v18447_v52  ;;  %21252 = vst [vmem:[#allocation30_spill] sm:$0xff] %v18449_v48  ;;  %v18533_v17 = vld [vmem:[#allocation2 + $0x87] sm:$0xff]  ;;  %v18535_v14 = vld [vmem:[#allocation2 + $0x8f] sm:$0xff] }
 0x94a   : > { %21253 = vst [vmem:[#allocation31_spill] sm:$0xff] %v18457_v33  ;;  %21254 = vst [vmem:[#allocation32_spill] sm:$0xff] %v18459_v62  ;;  %v18542_v25 = vld [vmem:[#allocation2 + $0x97] sm:$0xff]  ;;  %v18544_v31 = vld [vmem:[#allocation2 + $0x9f] sm:$0xff] }
 0x94b   : > { %21255 = vst [vmem:[#allocation33_spill] sm:$0xff] %v18461_v60  ;;  %21256 = vst [vmem:[#allocation34_spill] sm:$0xff] %v18466_v51  ;;  %v18546_v46 = vld [vmem:[#allocation2 + $0xa7] sm:$0xff]  ;;  %v18551_v45 = vld [vmem:[#allocation2 + $0xaf] sm:$0xff] }
 0x94c   : > { %21257 = vst [vmem:[#allocation35_spill] sm:$0xff] %v18468_v59  ;;  %21258 = vst [vmem:[#allocation36_spill] sm:$0xff] %v18470_v7  ;;  %v18553_v27 = vld [vmem:[#allocation2 + $0xb7] sm:$0xff]  ;;  %v18555_v40 = vld [vmem:[#allocation2 + $0xbf] sm:$0xff] }
 0x94d   : > { %21259 = vst [vmem:[#allocation37_spill] sm:$0xff] %v18477_v2  ;;  %21260 = vst [vmem:[#allocation38_spill] sm:$0xff] %v18479_v47  ;;  %v18561_v3 = vld [vmem:[#allocation2 + $0xc7] sm:$0xff]  ;;  %v18563_v36 = vld [vmem:[#allocation2 + $0xcf] sm:$0xff] }
 0x94e   : > { %21261 = vst [vmem:[#allocation39_spill] sm:$0xff] %v18481_v28  ;;  %21262 = vst [vmem:[#allocation40_spill] sm:$0xff] %v18485_v15  ;;  %v18565_v26 = vld [vmem:[#allocation2 + $0xd7] sm:$0xff]  ;;  %v18569_v35 = vld [vmem:[#allocation2 + $0xdf] sm:$0xff] }
 0x94f   : > { %21263 = vst [vmem:[#allocation41_spill] sm:$0xff] %v18487_v22  ;;  %21264 = vst [vmem:[#allocation42_spill] sm:$0xff] %v18535_v14  ;;  %v18571_v10 = vld [vmem:[#allocation2 + $0xe7] sm:$0xff]  ;;  %v18573_v0 = vld [vmem:[#allocation2 + $0xef] sm:$0xff] }
 0x950   : > { %21265 = vst [vmem:[#allocation43_spill] sm:$0xff] %v18542_v25  ;;  %21266 = vst [vmem:[#allocation44_spill] sm:$0xff] %v18544_v31  ;;  %v18581_v31 = vld [vmem:[#allocation2 + $0xff] sm:$0xff]  ;;  %v18583_v25 = vld [vmem:[#allocation2 + $0x107] sm:$0xff] }
 0x951   : > { %21267 = vst [vmem:[#allocation45_spill] sm:$0xff] %v18546_v46  ;;  %21268 = vst [vmem:[#allocation60_spill] sm:$0xff] %v18551_v45  ;;  %v18579_v46 = vld [vmem:[#allocation2 + $0xf7] sm:$0xff]  ;;  %v18591_v14 = vld [vmem:[#allocation2 + $0x11f] sm:$0xff] }
 0x952   : > { %21269 = vst [vmem:[#allocation61_spill] sm:$0xff] %v18553_v27  ;;  %21270 = vst [vmem:[#allocation62_spill] sm:$0xff] %v18555_v40  ;;  %v18587_v27 = vld [vmem:[#allocation2 + $0x10f] sm:$0xff]  ;;  %v18589_v45 = vld [vmem:[#allocation2 + $0x117] sm:$0xff] }
 0x953   : > { %21271 = vst [vmem:[#allocation63_spill] sm:$0xff] %v18561_v3  ;;  %21272 = vst [vmem:[#allocation4_spill] sm:$0xff] %v18563_v36  ;;  %v18599_v36 = vld [vmem:[#allocation2 + $0x127] sm:$0xff]  ;;  %v18601_v3 = vld [vmem:[#allocation2 + $0x12f] sm:$0xff] }
 0x954   : > { %21273 = vst [vmem:[#allocation5_spill] sm:$0xff] %v18565_v26  ;;  %21274 = vst [vmem:[#allocation18_spill] sm:$0xff] %v18569_v35  ;;  %v5689_v26 = vpack.c.bf16 %v18380_v34, %v18375_v24  ;;  %v18603_v29 = vld [vmem:[#allocation2 + $0x137] sm:$0xff]  ;;  %v5690_v35 = vpack.c.bf16 %v18384_v18, %v18382_v56  ;;  %v18609_v40 = vld [vmem:[#allocation2 + $0x13f] sm:$0xff] }
 0x955   : > { %21275 = vst [vmem:[#allocation22_spill] sm:$0xff] %v18571_v10  ;;  %21276 = vst [vmem:[#allocation7_spill] sm:$0xff] %v18583_v25  ;;  %v18611_v49 = vld [vmem:[#allocation2 + $0x147] sm:$0xff]  ;;  %v18613_v11 = vld [vmem:[#allocation2 + $0x14f] sm:$0xff] }
 0x956   : > { %21277 = vst [vmem:[#allocation20_spill] sm:$0xff] %v18587_v27  ;;  %21278 = vst [vmem:[#allocation8_spill] sm:$0xff] %v18589_v45  ;;  %13437 = vmatmul.mubr.msk.bf16.gmra.mrb[16].mxu1 %vm388_vm0, %v5689_v26  ;;  %v18620_v25 = vld [vmem:[#allocation2 + $0x157] sm:$0xff]  ;;  %v18622_v10 = vld [vmem:[#allocation2 + $0x15f] sm:$0xff] }
 0x957   : > { %21279 = vst [vmem:[#allocation9_spill] sm:$0xff] %v18599_v36  ;;  %21280 = vst [vmem:[#allocation10_spill] sm:$0xff] %v18601_v3  ;;  %v18624_v45 = vld [vmem:[#allocation2 + $0x167] sm:$0xff]  ;;  %13440 = vmatprep.mubr.msk.bf16.mxu1 %vm388_vm0, %v5690_v35  ;;  %v18629_v56 = vld [vmem:[#allocation2 + $0x16f] sm:$0xff] }
 0x958   : > { %21281 = vst [vmem:[#allocation11_spill] sm:$0xff] %v18603_v29  ;;  %21282 = vst [vmem:[#allocation12_spill] sm:$0xff] %v18609_v40  ;;  %v18631_v27 = vld [vmem:[#allocation2 + $0x177] sm:$0xff]  ;;  %v18637_v34 = vld [vmem:[#allocation2 + $0x21] sm:$0xff] }
 0x959   : > { %21283 = vst [vmem:[#allocation13_spill] sm:$0xff] %v18611_v49  ;;  %21284 = vst [vmem:[#allocation14_spill] sm:$0xff] %v18613_v11  ;;  %v18639_v29 = vld [vmem:[#allocation2 + $0x29] sm:$0xff]  ;;  %v18643_v18 = vld [vmem:[#allocation2 + $0x31] sm:$0xff] }
 0x95a   : > { %21285 = vst [vmem:[#allocation15_spill] sm:$0xff] %v18620_v25  ;;  %21286 = vst [vmem:[#allocation16_spill] sm:$0xff] %v18622_v10  ;;  %v18645_v35 = vld [vmem:[#allocation2 + $0x39] sm:$0xff]  ;;  %v18647_v49 = vld [vmem:[#allocation2 + $0x41] sm:$0xff] }
 0x95b   : > { %21287 = vst [vmem:[#allocation17_spill] sm:$0xff] %v18624_v45  ;;  %21288 = vst [vmem:[#allocation19_spill] sm:$0xff] %v18629_v56  ;;  %v18651_v24 = vld [vmem:[#allocation2 + $0x49] sm:$0xff]  ;;  %v18653_v25 = vld [vmem:[#allocation2 + $0x51] sm:$0xff] }
 0x95c   : > { %21289 = vst [vmem:[#allocation21_spill] sm:$0xff] %v18631_v27  ;;  %21290 = vst [vmem:[#allocation23_spill] sm:$0xff] %v18637_v34  ;;  %v18655_v26 = vld [vmem:[#allocation2 + $0x59] sm:$0xff]  ;;  %v18659_v10 = vld [vmem:[#allocation2 + $0x61] sm:$0xff] }
 0x95d   : > { %21291 = vst [vmem:[#allocation24_spill] sm:$0xff] %v18639_v29  ;;  %21292 = vst [vmem:[#allocation46_spill] sm:$0xff] %v18643_v18  ;;  %v18661_v3 = vld [vmem:[#allocation2 + $0x69] sm:$0xff]  ;;  %v18663_v27 = vld [vmem:[#allocation2 + $0x71] sm:$0xff]  ;;  %v5691_v29 = vpack.c.bf16 %v18395_v53, %v18393_v42  ;;  %v5692_v18 = vpack.c.bf16 %v18401_v43, %v18397_v44 }
 0x95e   : > { %21293 = vst [vmem:[#allocation47_spill] sm:$0xff] %v18645_v35  ;;  %21294 = vst [vmem:[#allocation48_spill] sm:$0xff] %v18647_v49  ;;  %v18671_v34 = vld [vmem:[#allocation2 + $0x79] sm:$0xff]  ;;  %v18673_v11 = vld [vmem:[#allocation2 + $0x81] sm:$0xff] }
 0x95f   : > { %21295 = vst [vmem:[#allocation49_spill] sm:$0xff] %v18651_v24  ;;  %21296 = vst [vmem:[#allocation50_spill] sm:$0xff] %v18653_v25  ;;  %v18675_v45 = vld [vmem:[#allocation2 + $0x89] sm:$0xff]  ;;  %v18681_v36 = vld [vmem:[#allocation2 + $0x91] sm:$0xff]  ;;  %13441 = vmatmul.mubr.msk.bf16.gmra.mrb[20].mxu1 %vm388_vm0, %v5691_v29 }
 0x960   : > { %21297 = vst [vmem:[#allocation51_spill] sm:$0xff] %v18655_v26  ;;  %21298 = vst [vmem:[#allocation52_spill] sm:$0xff] %v18659_v10  ;;  %v18683_v56 = vld [vmem:[#allocation2 + $0x99] sm:$0xff]  ;;  %v18685_v40 = vld [vmem:[#allocation2 + $0xa1] sm:$0xff]  ;;  %13444 = vmatprep.mubr.msk.bf16.mxu1 %vm388_vm0, %v5692_v18 }
 0x961   : > { %21299 = vst [vmem:[#allocation53_spill] sm:$0xff] %v18661_v3  ;;  %21300 = vst [vmem:[#allocation54_spill] sm:$0xff] %v18663_v27  ;;  %v18692_v26 = vld [vmem:[#allocation2 + $0xa9] sm:$0xff]  ;;  %v18694_v35 = vld [vmem:[#allocation2 + $0xb1] sm:$0xff] }
 0x962   : > { %21301 = vst [vmem:[#allocation55_spill] sm:$0xff] %v18671_v34  ;;  %21302 = vst [vmem:[#allocation56_spill] sm:$0xff] %v18673_v11  ;;  %v18696_v3 = vld [vmem:[#allocation2 + $0xb9] sm:$0xff]  ;;  %v18701_v44 = vld [vmem:[#allocation2 + $0xc1] sm:$0xff] }
 0x963   : > { %21303 = vst [vmem:[#allocation57_spill] sm:$0xff] %v18675_v45  ;;  %21304 = vst [vmem:[#allocation6_spill] sm:$0xff] %v18681_v36  ;;  %v18703_v10 = vld [vmem:[#allocation2 + $0xc9] sm:$0xff]  ;;  %v18705_v53 = vld [vmem:[#allocation2 + $0xd1] sm:$0xff] }
 0x964   : > { %21305 = vst [vmem:[#allocation89_spill] sm:$0xff] %v18683_v56  ;;  %21306 = vst [vmem:[#allocation90_spill] sm:$0xff] %v18685_v40  ;;  %v18711_v45 = vld [vmem:[#allocation2 + $0xd9] sm:$0xff]  ;;  %v18713_v11 = vld [vmem:[#allocation2 + $0xe1] sm:$0xff] }
 0x965   : > { %21307 = vst [vmem:[#allocation91_spill] sm:$0xff] %v18692_v26  ;;  %21308 = vst [vmem:[#allocation92_spill] sm:$0xff] %v18694_v35  ;;  %v18715_v34 = vld [vmem:[#allocation2 + $0xe9] sm:$0xff]  ;;  %v18719_v43 = vld [vmem:[#allocation2 + $0xf1] sm:$0xff] }
 0x966   : > { %21309 = vst [vmem:[#allocation93_spill] sm:$0xff] %v18696_v3  ;;  %21310 = vst [vmem:[#allocation94_spill] sm:$0xff] %v18701_v44  ;;  %v18721_v56 = vld [vmem:[#allocation2 + $0xf9] sm:$0xff]  ;;  %v18723_v36 = vld [vmem:[#allocation2 + $0x101] sm:$0xff] }
 0x967   : > { %21311 = vst [vmem:[#allocation95_spill] sm:$0xff] %v18703_v10  ;;  %21312 = vst [vmem:[#allocation96_spill] sm:$0xff] %v18705_v53  ;;  %v18729_v3 = vld [vmem:[#allocation2 + $0x109] sm:$0xff]  ;;  %v18731_v35 = vld [vmem:[#allocation2 + $0x111] sm:$0xff] }
 0x968   : > { %21313 = vst [vmem:[#allocation97_spill] sm:$0xff] %v18711_v45  ;;  %21314 = vst [vmem:[#allocation98_spill] sm:$0xff] %v18713_v11  ;;  %v18733_v26 = vld [vmem:[#allocation2 + $0x119] sm:$0xff]  ;;  %v18737_v10 = vld [vmem:[#allocation2 + $0x121] sm:$0xff] }
 0x969   : > { %21315 = vst [vmem:[#allocation99_spill] sm:$0xff] %v18715_v34  ;;  %21316 = vst [vmem:[#allocation100_spill] sm:$0xff] %v18719_v43  ;;  %v18739_v44 = vld [vmem:[#allocation2 + $0x129] sm:$0xff]  ;;  %v18741_v40 = vld [vmem:[#allocation2 + $0x131] sm:$0xff]  ;;  %v5693_v34 = vpack.c.bf16 %v18405_v32, %v18403_v39  ;;  %v5694_v43 = vpack.c.bf16 %v18417_v37, %v18415_v38  ;;  %v5695_v37 = vpack.c.bf16 %v18425_v13, %v18419_v50 }
 0x96a   : > { %21317 = vst [vmem:[#allocation101_spill] sm:$0xff] %v18721_v56  ;;  %21318 = vst [vmem:[#allocation102_spill] sm:$0xff] %v18723_v36  ;;  %v18749_v11 = vld [vmem:[#allocation2 + $0x139] sm:$0xff]  ;;  %v18751_v45 = vld [vmem:[#allocation2 + $0x141] sm:$0xff]  ;;  %v5698_v39 = vpack.c.bf16 %v18445_v5, %v18439_v19 }
 0x96b   : > { %21319 = vst [vmem:[#allocation103_spill] sm:$0xff] %v18731_v35  ;;  %21320 = vst [vmem:[#allocation104_spill] sm:$0xff] %v18733_v26  ;;  %v18753_v18 = vld [vmem:[#allocation2 + $0x149] sm:$0xff]  ;;  %v18759_v53 = vld [vmem:[#allocation2 + $0x151] sm:$0xff]  ;;  %13445 = vmatmul.mubr.msk.bf16.gmra.mrb[24].mxu1 %vm388_vm0, %v5693_v34  ;;  %v5697_v34 = vpack.c.bf16 %v18437_v30, %v18435_v41 }
 0x96c   : > { %21321 = vst [vmem:[#allocation105_spill] sm:$0xff] %v18737_v10  ;;  %21322 = vst [vmem:[#allocation106_spill] sm:$0xff] %v18739_v44  ;;  %v18761_v29 = vld [vmem:[#allocation2 + $0x159] sm:$0xff]  ;;  %v18763_v42 = vld [vmem:[#allocation2 + $0x161] sm:$0xff]  ;;  %13448 = vmatprep.mubr.msk.bf16.mxu1 %vm388_vm0, %v5694_v43  ;;  %v5699_v43 = vpack.c.bf16 %v18449_v48, %v18447_v52 }
 0x96d   : > { %21323 = vst [vmem:[#allocation107_spill] sm:$0xff] %v18741_v40  ;;  %21324 = vst [vmem:[#allocation108_spill] sm:$0xff] %v18751_v45  ;;  %v18770_v26 = vld [vmem:[#allocation2 + $0x169] sm:$0xff]  ;;  %v18772_v56 = vld [vmem:[#allocation2 + $0x171] sm:$0xff]  ;;  %v5700_v45 = vpack.c.bf16 %v18459_v62, %v18457_v33 }
 0x96e   : > { %21325 = vst [vmem:[#allocation109_spill] sm:$0xff] %v18753_v18  ;;  %21326 = vst [vmem:[#allocation110_spill] sm:$0xff] %v18761_v29  ;;  %v18774_v44 = vld [vmem:[#allocation2 + $0x179] sm:$0xff]  ;;  %v18779_v38 = vld [vmem:[#allocation2 + $0x187] sm:$0xff]  ;;  %v5696_v29 = vpack.c.bf16 %v18429_v4, %v18427_v20 }
 0x96f   : > { %21327 = vst [vmem:[#allocation111_spill] sm:$0xff] %v18779_v38  ;;  %v18781_v10 = vld [vmem:[#allocation2 + $0x18f] sm:$0xff]  ;;  %v21357_v62 = vld [vmem:[#allocation7_spill] sm:$0xff] }
 0x970   : > { %21328 = vst [vmem:[#allocation112_spill] sm:$0xff] %v18781_v10  ;;  %v18787_v32 = vld [vmem:[#allocation2 + $0x188] sm:$0xff]  ;;  %v18789_v18 = vld [vmem:[#allocation2 + $0x190] sm:$0xff]  ;;  %v21365_v52 = vld [vmem:[#allocation11_spill] sm:$0xff] }
 0x971   : > { %21329 = vst [vmem:[#allocation113_spill] sm:$0xff] %v18787_v32  ;;  %21330 = vst [vmem:[#allocation114_spill] sm:$0xff] %v18789_v18  ;;  %v18825_v18 = vld [vmem:[#allocation2 + $0x180] sm:$0xff]  ;;  %v21360_v48 = vld [vmem:[#allocation8_spill] sm:$0xff] }
 0x972   : > { %21331 = vst [vmem:[#allocation115_spill] sm:$0xff] %v18825_v18  ;;  %v21362_v33 = vld [vmem:[#allocation9_spill] sm:$0xff]  ;;  %v21366_v30 = vld [vmem:[#allocation12_spill] sm:$0xff]  ;;  %v21371_v41 = vld [vmem:[#allocation15_spill] sm:$0xff] }
 0x973   : > { %13449 = vmatmul.mubr.msk.bf16.gmra.mrb[28].mxu1 %vm388_vm0, %v5695_v37  ;;  %v5701_v37 = vpack.c.bf16 %v18466_v51, %v18461_v60  ;;  %v21352_v51 = vld [vmem:[#allocation18_spill] sm:$0xff]  ;;  %v21368_v19 = vld [vmem:[#allocation13_spill] sm:$0xff]  ;;  %v21372_v13 = vld [vmem:[#allocation16_spill] sm:$0xff] }
 0x974   : > { %13452 = vmatprep.mubr.msk.bf16.mxu1 %vm388_vm0, %v5696_v29  ;;  %v5702_v29 = vpack.c.bf16 %v18470_v7, %v18468_v59  ;;  %v21354_v59 = vld [vmem:[#allocation22_spill] sm:$0xff]  ;;  %v21374_v20 = vld [vmem:[#allocation17_spill] sm:$0xff] }
 0x975   : > { %v6308_v10 = vld [vmem:[#allocation2 + $0x9] sm:$0xff]  ;;  %v6309_v38 = vld [vmem:[#allocation2 + $0x11] sm:$0xff] }
 0x97b   : > { %13453 = vmatmul.mubr.msk.bf16.gmra.mrb[32].mxu1 %vm388_vm0, %v5697_v34  ;;  %v5704_v34 = vpack.c.bf16 %v18485_v15, %v18481_v28  ;;  %v21348_v28 = vld [vmem:[#allocation63_spill] sm:$0xff] }
 0x97c   : > { %13456 = vmatprep.mubr.msk.bf16.mxu1 %vm388_vm0, %v5698_v39  ;;  %v5703_v39 = vpack.c.bf16 %v18479_v47, %v18477_v2  ;;  %v21351_v2 = vld [vmem:[#allocation5_spill] sm:$0xff] }
 0x983   : > { %13457 = vmatmul.mubr.msk.bf16.gmra.mrb[36].mxu1 %vm388_vm0, %v5699_v43  ;;  %v5562_v43 = vld [vmem:[#allocation2 + $0xf] sm:$0xff] }
 0x984   : > { %13460 = vmatprep.mubr.msk.bf16.mxu1 %vm388_vm0, %v5700_v45  ;;  %v5561_v45 = vld [vmem:[#allocation2 + $0x7] sm:$0xff] }
 0x985   : > { %v5609_v32 = vpack.c.bf16 %v5562_v43, %v5561_v45  ;;  %v12230_v45 = vld [vmem:[%s20586_s7 + $0xc] sm:$0xf]  ;;  %v18860_v43 = vpack.c.bf16 %v18523_v12, %v18521_v8 }
 0x987   : > { %21335 = vst [vmem:[#allocation119_spill] sm:$0xff] %v18860_v43 }
 0x98b   : > { %13461 = vmatmul.mubr.msk.bf16.gmra.mrb[40].mxu1 %vm388_vm0, %v5701_v37  ;;  %v5705_v37 = vpack.c.bf16 %v18825_v18, %v18487_v22  ;;  %v21345_v22 = vld [vmem:[#allocation61_spill] sm:$0xff]  ;;  %v21346_v18 = vld [vmem:[#allocation62_spill] sm:$0xff] }
 0x98c   : > { %13464 = vmatprep.mubr.msk.bf16.mxu1 %vm388_vm0, %v5702_v29  ;;  %v5563_v29 = vld [vmem:[#allocation2 + $0x17] sm:$0xff] }
 0x98d   : > { %v5610_v47 = vpack.c.bf16 %v18493_v23, %v5563_v29  ;;  %v21337_v29 = vld [vmem:[#allocation42_spill] sm:$0xff] }
 0x993   : > { %13465 = vmatmul.mubr.msk.bf16.gmra.mrb[44].mxu1 %vm388_vm0, %v5703_v39  ;;  %v6455_v39 = vsel %vm1313_vm1, %v18350_v55, 0  ;;  %v18848_v55 = vpack.c.bf16 %v18509_v1, %v18505_v63 }
 0x994   : > { %13468 = vmatprep.mubr.msk.bf16.mxu1 %vm388_vm0, %v5704_v34  ;;  %v5611_v34 = vpack.c.bf16 %v18497_v54, %v18495_v6 }
 0x995   : > { %21333 = vst [vmem:[#allocation117_spill] sm:$0xff] %v18848_v55 }
 0x99b   : > { %13469 = vmatmul.mubr.msk.bf16.gmra.mrb[48].mxu1 %vm388_vm0, %v5705_v37  ;;  %v18868_v37 = vpack.c.bf16 %v18531_v61, %v18525_v16 }
 0x99c   : > { %13474 = vmatprep.mubr.msk.bf16.mxu1 %vm388_vm0, %v5609_v32  ;;  %v18844_v32 = vpack.c.bf16 %v18503_v21, %v18501_v58 }
 0x99d   : > { %21336 = vst [vmem:[#allocation120_spill] sm:$0xff] %v18868_v37 }
 0x99e   : > { %21332 = vst [vmem:[#allocation116_spill] sm:$0xff] %v18844_v32 }
 0x9a3   : > { %13475 = vmatmul.mubr.msk.bf16.vlgmr.msra.gmra.mrb[4].mxu1 %vm388_vm0, %v5610_v47  ;;  %v18856_v47 = vpack.c.bf16 %v18513_v57, %v18511_v9 }
 0x9a4   : > { %13523 = vmatpush3.bf16.msra.mxu1 %v6455_v39  ;;  %13478 = vmatprep.mubr.msk.bf16.mxu1 %vm388_vm0, %v5611_v34  ;;  %v18872_v39 = vpack.c.bf16 %v21337_v29, %v18533_v17  ;;  %v21339_v34 = vld [vmem:[#allocation43_spill] sm:$0xff] }
 0x9a5   : > { %14665 = vmatprep.subr.msk.bf16.mxu1 %vm1313_vm1, %v12230_v45  ;;  %21334 = vst [vmem:[#allocation118_spill] sm:$0xff] %v18856_v47 }
 0x9a6   : > { %21338 = vst [vmem:[#allocation42_spill] sm:$0xff] %v18872_v39 }
 0x9ab   : > { %13479 = vmatmul.mubr.msk.bf16.gmra.mrb[8].mxu1 %vm388_vm0, %v18844_v32  ;;  %v21342_v32 = vld [vmem:[#allocation45_spill] sm:$0xff] }
 0x9ac   : > { %13482 = vmatprep.mubr.msk.bf16.mxu1 %vm388_vm0, %v18848_v55  ;;  %v21340_v55 = vld [vmem:[#allocation44_spill] sm:$0xff] }
 0x9b3   : > { %13483 = vmatmul.mubr.msk.bf16.gmra.mrb[12].mxu1 %vm388_vm0, %v18856_v47  ;;  %v18880_v47 = vpack.c.bf16 %v21340_v55, %v21339_v34 }
 0x9b4   : > { %13486 = vmatprep.mubr.msk.bf16.mxu1 %vm388_vm0, %v18860_v43  ;;  %v21343_v43 = vld [vmem:[#allocation60_spill] sm:$0xff] }
 0x9b5   : > { %21341 = vst [vmem:[#allocation43_spill] sm:$0xff] %v18880_v47  ;;  %v18884_v15 = vpack.c.bf16 %v21343_v43, %v21342_v32 }
 0x9b7   : > { %21344 = vst [vmem:[#allocation44_spill] sm:$0xff] %v18884_v15 }
 0x9bb   : > { %13487 = vmatmul.mubr.msk.bf16.gmra.mrb[16].mxu1 %vm388_vm0, %v18868_v37  ;;  %v18892_v37 = vpack.c.bf16 %v21346_v18, %v21345_v22 }
 0x9bc   : > { %13490 = vmatprep.mubr.msk.bf16.mxu1 %vm388_vm0, %v18872_v39  ;;  %v21349_v39 = vld [vmem:[#allocation4_spill] sm:$0xff] }
 0x9bd   : > { %21347 = vst [vmem:[#allocation45_spill] sm:$0xff] %v18892_v37  ;;  %v18896_v7 = vpack.c.bf16 %v21349_v39, %v21348_v28 }
 0x9bf   : > { %21350 = vst [vmem:[#allocation60_spill] sm:$0xff] %v18896_v7 }
 0x9c3   : > { %13491 = vmatmul.mubr.msk.bf16.gmra.mrb[20].mxu1 %vm388_vm0, %v18880_v47  ;;  %v18904_v47 = vpack.c.bf16 %v21352_v51, %v21351_v2 }
 0x9c4   : > { %13494 = vmatprep.mubr.msk.bf16.mxu1 %vm388_vm0, %v18884_v15  ;;  %v18908_v15 = vpack.c.bf16 %v18573_v0, %v21354_v59 }
 0x9c5   : > { %21353 = vst [vmem:[#allocation61_spill] sm:$0xff] %v18904_v47 }
 0x9c6   : > { %21355 = vst [vmem:[#allocation62_spill] sm:$0xff] %v18908_v15 }
 0x9cb   : > { %13495 = vmatmul.mubr.msk.bf16.gmra.mrb[24].mxu1 %vm388_vm0, %v18892_v37  ;;  %v18916_v37 = vpack.c.bf16 %v18581_v31, %v18579_v46 }
 0x9cc   : > { %13498 = vmatprep.mubr.msk.bf16.mxu1 %vm388_vm0, %v18896_v7  ;;  %v21358_v7 = vld [vmem:[#allocation20_spill] sm:$0xff] }
 0x9cd   : > { %21356 = vst [vmem:[#allocation63_spill] sm:$0xff] %v18916_v37  ;;  %v18920_v60 = vpack.c.bf16 %v21358_v7, %v21357_v62 }
 0x9cf   : > { %21359 = vst [vmem:[#allocation4_spill] sm:$0xff] %v18920_v60 }
 0x9d3   : > { %13499 = vmatmul.mubr.msk.bf16.gmra.mrb[28].mxu1 %vm388_vm0, %v18904_v47  ;;  %v18928_v47 = vpack.c.bf16 %v18591_v14, %v21360_v48 }
 0x9d4   : > { %13502 = vmatprep.mubr.msk.bf16.mxu1 %vm388_vm0, %v18908_v15  ;;  %v21363_v15 = vld [vmem:[#allocation10_spill] sm:$0xff] }
 0x9d5   : > { %21361 = vst [vmem:[#allocation5_spill] sm:$0xff] %v18928_v47  ;;  %v18932_v5 = vpack.c.bf16 %v21363_v15, %v21362_v33 }
 0x9d7   : > { %21364 = vst [vmem:[#allocation18_spill] sm:$0xff] %v18932_v5 }
 0x9db   : > { %13503 = vmatmul.mubr.msk.bf16.gmra.mrb[32].mxu1 %vm388_vm0, %v18916_v37  ;;  %v18940_v37 = vpack.c.bf16 %v21366_v30, %v21365_v52 }
 0x9dc   : > { %13506 = vmatprep.mubr.msk.bf16.mxu1 %vm388_vm0, %v18920_v60  ;;  %v21369_v60 = vld [vmem:[#allocation14_spill] sm:$0xff] }
 0x9dd   : > { %21367 = vst [vmem:[#allocation22_spill] sm:$0xff] %v18940_v37  ;;  %v18944_v4 = vpack.c.bf16 %v21369_v60, %v21368_v19  ;;  %v6356_v60 = vpack.c.bf16 %v6309_v38, %v6308_v10  ;;  %v12255_v10 = vld [vmem:[%s20586_s7 + $0x10] sm:$0xf]  ;;  %v21382_v38 = vld [vmem:[#allocation47_spill] sm:$0xff] }
 0x9df   : > { %21370 = vst [vmem:[#allocation7_spill] sm:$0xff] %v18944_v4 }
 0x9e3   : > { %13507 = vmatmul.mubr.msk.bf16.gmra.mrb[36].mxu1 %vm388_vm0, %v18928_v47  ;;  %v18952_v47 = vpack.c.bf16 %v21372_v13, %v21371_v41  ;;  %v21379_v13 = vld [vmem:[#allocation23_spill] sm:$0xff]  ;;  %v21381_v41 = vld [vmem:[#allocation46_spill] sm:$0xff] }
 0x9e4   : > { %13510 = vmatprep.mubr.msk.bf16.mxu1 %vm388_vm0, %v18932_v5  ;;  %v21375_v5 = vld [vmem:[#allocation19_spill] sm:$0xff] }
 0x9e5   : > { %21373 = vst [vmem:[#allocation20_spill] sm:$0xff] %v18952_v47  ;;  %v18956_v50 = vpack.c.bf16 %v21375_v5, %v21374_v20  ;;  %v6310_v5 = vld [vmem:[#allocation2 + $0x19] sm:$0xff]  ;;  %v6877_v20 = vsel %vm1313_vm1, %v12230_v45, 0 }
 0x9e6   : > { %v21383_v45 = vld [vmem:[#allocation51_spill] sm:$0xff] }
 0x9e7   : > { %21376 = vst [vmem:[#allocation8_spill] sm:$0xff] %v18956_v50 }
 0x9eb   : > { %13511 = vmatmul.mubr.msk.bf16.gmra.mrb[40].mxu1 %vm388_vm0, %v18940_v37  ;;  %v18962_v37 = vld [vmem:[#allocation2 + $0x17f] sm:$0xff] }
 0x9ec   : > { %13514 = vmatprep.mubr.msk.bf16.mxu1 %vm388_vm0, %v18944_v4  ;;  %v21377_v4 = vld [vmem:[#allocation21_spill] sm:$0xff] }
 0x9ed   : > { %v18966_v30 = vpack.c.bf16 %v18962_v37, %v21377_v4 }
 0x9ef   : > { %21378 = vst [vmem:[#allocation9_spill] sm:$0xff] %v18966_v30 }
 0x9f3   : > { %13515 = vmatmul.mubr.msk.bf16.gmra.mrb[44].mxu1 %vm388_vm0, %v18952_v47  ;;  %v6357_v47 = vpack.c.bf16 %v21379_v13, %v6310_v5  ;;  %v6360_v5 = vpack.c.bf16 %v18653_v25, %v18651_v24  ;;  %v21385_v13 = vld [vmem:[#allocation53_spill] sm:$0xff]  ;;  %v21393_v24 = vld [vmem:[#allocation92_spill] sm:$0xff] }
 0x9f4   : > { %13518 = vmatprep.mubr.msk.bf16.mxu1 %vm388_vm0, %v18956_v50  ;;  %v21380_v50 = vld [vmem:[#allocation24_spill] sm:$0xff] }
 0x9f5   : > { %v6358_v19 = vpack.c.bf16 %v21381_v41, %v21380_v50  ;;  %v21389_v50 = vld [vmem:[#allocation6_spill] sm:$0xff] }
 0x9fb   : > { %13519 = vmatmul.mubr.msk.bf16.gmra.mrb[48].mxu1 %vm388_vm0, %v18966_v30  ;;  %v21384_v30 = vld [vmem:[#allocation52_spill] sm:$0xff] }
 0x9fc   : > { %13524 = vmatprep.mubr.msk.bf16.mxu1 %vm388_vm0, %v6356_v60  ;;  %v6359_v60 = vpack.c.bf16 %v18647_v49, %v21382_v38  ;;  %v6361_v41 = vpack.c.bf16 %v21384_v30, %v21383_v45  ;;  %v21388_v38 = vld [vmem:[#allocation57_spill] sm:$0xff]  ;;  %v21392_v45 = vld [vmem:[#allocation91_spill] sm:$0xff] }
 0x9fd   : > { %v6364_v25 = vpack.c.bf16 %v21389_v50, %v21388_v38  ;;  %v21401_v38 = vld [vmem:[#allocation100_spill] sm:$0xff] }
 0xa03   : > { %13525 = vmatmul.mubr.msk.bf16.vlgmr.msra.gmra.mrb[4].mxu1 %vm388_vm0, %v6357_v47  ;;  %v21387_v47 = vld [vmem:[#allocation56_spill] sm:$0xff] }
 0xa04   : > { %13573 = vmatpush3.bf16.msra.mxu1 %v6877_v20  ;;  %13528 = vmatprep.mubr.msk.bf16.mxu1 %vm388_vm0, %v6358_v19  ;;  %v6362_v20 = vpack.c.bf16 %v18663_v27, %v21385_v13  ;;  %v21386_v19 = vld [vmem:[#allocation55_spill] sm:$0xff]  ;;  %v6366_v27 = vpack.c.bf16 %v21393_v24, %v21392_v45  ;;  %v21397_v13 = vld [vmem:[#allocation96_spill] sm:$0xff] }
 0xa05   : > { %14666 = vmatprep.subr.msk.bf16.mxu1 %vm1313_vm1, %v12255_v10  ;;  %v6363_v49 = vpack.c.bf16 %v21387_v47, %v21386_v19  ;;  %v21396_v19 = vld [vmem:[#allocation95_spill] sm:$0xff] }
 0xa06   : > { %v6368_v50 = vpack.c.bf16 %v21397_v13, %v21396_v19  ;;  %v6372_v13 = vpack.c.bf16 %v18731_v35, %v18729_v3 }
 0xa0b   : > { %13529 = vmatmul.mubr.msk.bf16.gmra.mrb[8].mxu1 %vm388_vm0, %v6359_v60  ;;  %v21390_v60 = vld [vmem:[#allocation89_spill] sm:$0xff] }
 0xa0c   : > { %13532 = vmatprep.mubr.msk.bf16.mxu1 %vm388_vm0, %v6360_v5  ;;  %v21391_v5 = vld [vmem:[#allocation90_spill] sm:$0xff] }
 0xa0d   : > { %v6365_v30 = vpack.c.bf16 %v21391_v5, %v21390_v60  ;;  %v21400_v60 = vld [vmem:[#allocation99_spill] sm:$0xff] }
 0xa0e   : > { %v6370_v24 = vpack.c.bf16 %v21401_v38, %v21400_v60 }
 0xa13   : > { %13533 = vmatmul.mubr.msk.bf16.gmra.mrb[12].mxu1 %vm388_vm0, %v6361_v41  ;;  %v21394_v41 = vld [vmem:[#allocation93_spill] sm:$0xff] }
 0xa14   : > { %13536 = vmatprep.mubr.msk.bf16.mxu1 %vm388_vm0, %v6362_v20  ;;  %v21395_v20 = vld [vmem:[#allocation94_spill] sm:$0xff] }
 0xa15   : > { %v6367_v47 = vpack.c.bf16 %v21395_v20, %v21394_v41 }
 0xa1b   : > { %13537 = vmatmul.mubr.msk.bf16.gmra.mrb[16].mxu1 %vm388_vm0, %v6363_v49  ;;  %v21399_v49 = vld [vmem:[#allocation98_spill] sm:$0xff] }
 0xa1c   : > { %13540 = vmatprep.mubr.msk.bf16.mxu1 %vm388_vm0, %v6364_v25  ;;  %v21398_v25 = vld [vmem:[#allocation97_spill] sm:$0xff] }
 0xa1d   : > { %v6369_v5 = vpack.c.bf16 %v21399_v49, %v21398_v25  ;;  %v21405_v25 = vld [vmem:[#allocation106_spill] sm:$0xff] }
 0xa1e   : > { %v6374_v38 = vpack.c.bf16 %v18741_v40, %v21405_v25  ;;  %v6378_v40 = vpack.c.bf16 %v18772_v56, %v18770_v26 }
 0xa23   : > { %13541 = vmatmul.mubr.msk.bf16.gmra.mrb[20].mxu1 %vm388_vm0, %v6365_v30 }
 0xa24   : > { %13544 = vmatprep.mubr.msk.bf16.mxu1 %vm388_vm0, %v6366_v27  ;;  %v21402_v27 = vld [vmem:[#allocation101_spill] sm:$0xff] }
 0xa25   : > { %v6371_v30 = vpack.c.bf16 %v18723_v36, %v21402_v27  ;;  %v21407_v36 = vld [vmem:[#allocation109_spill] sm:$0xff] }
 0xa26   : > { %v6376_v35 = vpack.c.bf16 %v18759_v53, %v21407_v36 }
 0xa2b   : > { %13545 = vmatmul.mubr.msk.bf16.gmra.mrb[24].mxu1 %vm388_vm0, %v6367_v47  ;;  %v21404_v47 = vld [vmem:[#allocation105_spill] sm:$0xff] }
 0xa2c   : > { %13548 = vmatprep.mubr.msk.bf16.mxu1 %vm388_vm0, %v6368_v50  ;;  %v21403_v50 = vld [vmem:[#allocation104_spill] sm:$0xff] }
 0xa2d   : > { %v6373_v49 = vpack.c.bf16 %v21404_v47, %v21403_v50 }
 0xa33   : > { %13549 = vmatmul.mubr.msk.bf16.gmra.mrb[28].mxu1 %vm388_vm0, %v6369_v5 }
 0xa34   : > { %13552 = vmatprep.mubr.msk.bf16.mxu1 %vm388_vm0, %v6370_v24  ;;  %v21406_v24 = vld [vmem:[#allocation108_spill] sm:$0xff] }
 0xa35   : > { %v6375_v5 = vpack.c.bf16 %v21406_v24, %v18749_v11 }
 0xa3b   : > { %13553 = vmatmul.mubr.msk.bf16.gmra.mrb[32].mxu1 %vm388_vm0, %v6371_v30 }
 0xa3c   : > { %13556 = vmatprep.mubr.msk.bf16.mxu1 %vm388_vm0, %v6372_v13  ;;  %v21408_v13 = vld [vmem:[#allocation110_spill] sm:$0xff] }
 0xa3d   : > { %v6377_v30 = vpack.c.bf16 %v18763_v42, %v21408_v13 }
 0xa43   : > { %13557 = vmatmul.mubr.msk.bf16.gmra.mrb[36].mxu1 %vm388_vm0, %v6373_v49 }
 0xa44   : > { %13560 = vmatprep.mubr.msk.bf16.mxu1 %vm388_vm0, %v6374_v38  ;;  %v19041_v38 = vld [vmem:[#allocation2 + $0x181] sm:$0xff] }
 0xa45   : > { %v6379_v49 = vpack.c.bf16 %v19041_v38, %v18774_v44 }
 0xa4b   : > { %13561 = vmatmul.mubr.msk.bf16.gmra.mrb[40].mxu1 %vm388_vm0, %v6375_v5  ;;  %v7299_v5 = vsel %vm1313_vm1, %v12255_v10, 0 }
 0xa4c   : > { %13564 = vmatprep.mubr.msk.bf16.mxu1 %vm388_vm0, %v6376_v35  ;;  %v21409_v35 = vpack.c.bf16 %v18495_v6, %v18493_v23  ;;  %v21412_v6 = vpack.c.bf16 %v18511_v9, %v18509_v1  ;;  %v21413_v23 = vpack.c.bf16 %v18521_v8, %v18513_v57  ;;  %v21416_v1 = vpack.c.bf16 %v21339_v34, %v21337_v29  ;;  %v21431_v9 = vld [vmem:[#allocation14_spill] sm:$0xff]  ;;  %v21444_v34 = vld [vmem:[#allocation64_spill] sm:$0xff] }
 0xa4d   : > { %v21417_v8 = vpack.c.bf16 %v21342_v32, %v21340_v55  ;;  %v21422_v57 = vpack.c.bf16 %v18579_v46, %v18573_v0  ;;  %v21426_v0 = vpack.c.bf16 %v21365_v52, %v21363_v15  ;;  %v21427_v46 = vld [vmem:[#allocation13_spill] sm:$0xff]  ;;  %v21440_v55 = vld [vmem:[#allocation59_spill] sm:$0xff] }
 0xa4e   : > { %v19142_v15 = vld [vmem:[#allocation2 + $0x197] sm:$0xff] }
 0xa53   : > { %13565 = vmatmul.mubr.msk.bf16.gmra.mrb[44].mxu1 %vm388_vm0, %v6377_v30  ;;  %v12280_v30 = vld [vmem:[%s20586_s7 + $0x14] sm:$0xf] }
 0xa54   : > { %13568 = vmatprep.mubr.msk.bf16.mxu1 %vm388_vm0, %v6378_v40  ;;  %v21410_v40 = vpack.c.bf16 %v18501_v58, %v18497_v54  ;;  %v21414_v54 = vpack.c.bf16 %v18525_v16, %v18523_v12  ;;  %v21418_v16 = vpack.c.bf16 %v21345_v22, %v21343_v43  ;;  %v21420_v12 = vpack.c.bf16 %v21351_v2, %v21349_v39  ;;  %v21434_v2 = vld [vmem:[#allocation16_spill] sm:$0xff]  ;;  %v21441_v43 = vld [vmem:[#allocation58_spill] sm:$0xff]  ;;  %v21443_v39 = vld [vmem:[#allocation65_spill] sm:$0xff] }
 0xa55   : > { %v21424_v22 = vpack.c.bf16 %v21360_v48, %v21358_v7  ;;  %v21433_v7 = vld [vmem:[#allocation17_spill] sm:$0xff]  ;;  %v21442_v29 = vpack.c.bf16 %v21440_v55, %v21441_v43  ;;  %v21445_v10 = vpack.c.bf16 %v21443_v39, %v21444_v34  ;;  %v21480_v43 = vld [vmem:[#allocation88_spill] sm:$0xff]  ;;  %v21483_v39 = vld [vmem:[#allocation26_spill] sm:$0xff] }
 0xa56   : > { %v21479_v55 = vld [vmem:[#allocation25_spill] sm:$0xff] }
 0xa5b   : > { %13569 = vmatmul.mubr.msk.bf16.gmra.mrb[48].mxu1 %vm388_vm0, %v6379_v49  ;;  %v21411_v49 = vpack.c.bf16 %v18505_v63, %v18503_v21  ;;  %v21415_v63 = vpack.c.bf16 %v18533_v17, %v18531_v61  ;;  %v21419_v61 = vpack.c.bf16 %v21348_v28, %v21346_v18  ;;  %v21421_v17 = vpack.c.bf16 %v21354_v59, %v21352_v51  ;;  %v21428_v59 = vld [vmem:[#allocation12_spill] sm:$0xff]  ;;  %v21437_v28 = vld [vmem:[#allocation19_spill] sm:$0xff] }
 0xa5c   : > { %13574 = vmatprep.mubr.msk.bf16.mxu1 %vm388_vm0, %v21409_v35  ;;  %v21423_v21 = vpack.c.bf16 %v21357_v62, %v18581_v31  ;;  %v21425_v51 = vpack.c.bf16 %v21362_v33, %v18591_v14  ;;  %v21429_v31 = vpack.c.bf16 %v21427_v46, %v21428_v59  ;;  %v21430_v62 = vld [vmem:[#allocation15_spill] sm:$0xff]  ;;  %v21435_v14 = vpack.c.bf16 %v21433_v7, %v21434_v2  ;;  %v21439_v18 = vld [vmem:[#allocation112_spill] sm:$0xff]  ;;  %v21467_v59 = vld [vmem:[#allocation81_spill] sm:$0xff] }
 0xa5d   : > { %v21432_v48 = vpack.c.bf16 %v21430_v62, %v21431_v9  ;;  %v21436_v33 = vld [vmem:[#allocation111_spill] sm:$0xff]  ;;  %v21438_v58 = vpack.c.bf16 %v21377_v4, %v21437_v28  ;;  %v6801_v32 = vpack.c.bf16 %v19142_v15, %v21439_v18  ;;  %v12305_v4 = vld [vmem:[%s20586_s7 + $0x18] sm:$0xf]  ;;  %v21473_v2 = vld [vmem:[#allocation85_spill] sm:$0xff] }
 0xa5e   : > { %v6800_v52 = vpack.c.bf16 %v21436_v33, %v18962_v37  ;;  %v7721_v37 = vsel %vm1313_vm1, %v12280_v30, 0  ;;  %v21446_v35 = vld [vmem:[#allocation67_spill] sm:$0xff] }
 0xa5f   : > { %v21470_v9 = vld [vmem:[#allocation83_spill] sm:$0xff] }
 0xa60   : > { %v21476_v28 = vld [vmem:[#allocation87_spill] sm:$0xff] }
 0xa63   : > { %13575 = vmatmul.mubr.msk.bf16.vlgmr.msra.gmra.mrb[4].mxu1 %vm388_vm0, %v21410_v40 }
 0xa64   : > { %13623 = vmatpush3.bf16.msra.mxu1 %v7299_v5  ;;  %13578 = vmatprep.mubr.msk.bf16.mxu1 %vm388_vm0, %v21411_v49  ;;  %v21447_v5 = vld [vmem:[#allocation66_spill] sm:$0xff]  ;;  %v21449_v49 = vld [vmem:[#allocation69_spill] sm:$0xff] }
 0xa65   : > { %14667 = vmatprep.subr.msk.bf16.mxu1 %vm1313_vm1, %v12280_v30  ;;  %v21448_v40 = vpack.c.bf16 %v21446_v35, %v21447_v5  ;;  %v21486_v35 = vld [vmem:[#allocation28_spill] sm:$0xff] }
 0xa6b   : > { %13579 = vmatmul.mubr.msk.bf16.gmra.mrb[8].mxu1 %vm388_vm0, %v21412_v6  ;;  %v21450_v6 = vld [vmem:[#allocation68_spill] sm:$0xff] }
 0xa6c   : > { %13582 = vmatprep.mubr.msk.bf16.mxu1 %vm388_vm0, %v21413_v23  ;;  %v21451_v30 = vpack.c.bf16 %v21449_v49, %v21450_v6  ;;  %v21452_v23 = vld [vmem:[#allocation71_spill] sm:$0xff]  ;;  %v21489_v49 = vld [vmem:[#allocation30_spill] sm:$0xff] }
 0xa73   : > { %13583 = vmatmul.mubr.msk.bf16.gmra.mrb[12].mxu1 %vm388_vm0, %v21414_v54  ;;  %v21453_v54 = vld [vmem:[#allocation70_spill] sm:$0xff] }
 0xa74   : > { %13586 = vmatprep.mubr.msk.bf16.mxu1 %vm388_vm0, %v21415_v63  ;;  %v21454_v63 = vpack.c.bf16 %v21452_v23, %v21453_v54  ;;  %v21492_v23 = vld [vmem:[#allocation32_spill] sm:$0xff] }
 0xa7b   : > { %13587 = vmatmul.mubr.msk.bf16.gmra.mrb[16].mxu1 %vm388_vm0, %v21416_v1  ;;  %v21455_v1 = vld [vmem:[#allocation73_spill] sm:$0xff] }
 0xa7c   : > { %13590 = vmatprep.mubr.msk.bf16.mxu1 %vm388_vm0, %v21417_v8  ;;  %v21456_v8 = vld [vmem:[#allocation72_spill] sm:$0xff] }
 0xa83   : > { %13591 = vmatmul.mubr.msk.bf16.gmra.mrb[20].mxu1 %vm388_vm0, %v21418_v16  ;;  %v21457_v16 = vpack.c.bf16 %v21455_v1, %v21456_v8  ;;  %v21495_v1 = vld [vmem:[#allocation34_spill] sm:$0xff] }
 0xa84   : > { %13594 = vmatprep.mubr.msk.bf16.mxu1 %vm388_vm0, %v21419_v61  ;;  %v21458_v61 = vld [vmem:[#allocation75_spill] sm:$0xff] }
 0xa8b   : > { %13595 = vmatmul.mubr.msk.bf16.gmra.mrb[24].mxu1 %vm388_vm0, %v21420_v12  ;;  %v21459_v12 = vld [vmem:[#allocation74_spill] sm:$0xff] }
 0xa8c   : > { %13598 = vmatprep.mubr.msk.bf16.mxu1 %vm388_vm0, %v21421_v17  ;;  %v21460_v17 = vpack.c.bf16 %v21458_v61, %v21459_v12  ;;  %v21498_v61 = vld [vmem:[#allocation36_spill] sm:$0xff] }
 0xa93   : > { %13599 = vmatmul.mubr.msk.bf16.gmra.mrb[28].mxu1 %vm388_vm0, %v21422_v57  ;;  %v21461_v57 = vld [vmem:[#allocation77_spill] sm:$0xff] }
 0xa94   : > { %13602 = vmatprep.mubr.msk.bf16.mxu1 %vm388_vm0, %v21423_v21  ;;  %v21462_v21 = vld [vmem:[#allocation76_spill] sm:$0xff] }
 0xa9b   : > { %13603 = vmatmul.mubr.msk.bf16.gmra.mrb[32].mxu1 %vm388_vm0, %v21424_v22  ;;  %v21463_v22 = vpack.c.bf16 %v21461_v57, %v21462_v21  ;;  %v21501_v57 = vld [vmem:[#allocation38_spill] sm:$0xff] }
 0xa9c   : > { %13606 = vmatprep.mubr.msk.bf16.mxu1 %vm388_vm0, %v21425_v51  ;;  %v21464_v51 = vld [vmem:[#allocation79_spill] sm:$0xff] }
 0xaa3   : > { %13607 = vmatmul.mubr.msk.bf16.gmra.mrb[36].mxu1 %vm388_vm0, %v21426_v0  ;;  %v21465_v0 = vld [vmem:[#allocation78_spill] sm:$0xff] }
 0xaa4   : > { %13610 = vmatprep.mubr.msk.bf16.mxu1 %vm388_vm0, %v21429_v31  ;;  %v21466_v46 = vpack.c.bf16 %v21464_v51, %v21465_v0  ;;  %v21468_v31 = vld [vmem:[#allocation80_spill] sm:$0xff]  ;;  %v21504_v51 = vld [vmem:[#allocation113_spill] sm:$0xff] }
 0xaa5   : > { %v21469_v62 = vpack.c.bf16 %v21467_v59, %v21468_v31  ;;  %v21506_v59 = vld [vmem:[#allocation40_spill] sm:$0xff] }
 0xaab   : > { %13611 = vmatmul.mubr.msk.bf16.gmra.mrb[40].mxu1 %vm388_vm0, %v21432_v48  ;;  %v21471_v48 = vld [vmem:[#allocation82_spill] sm:$0xff] }
 0xaac   : > { %13614 = vmatprep.mubr.msk.bf16.mxu1 %vm388_vm0, %v21435_v14  ;;  %v21472_v7 = vpack.c.bf16 %v21470_v9, %v21471_v48  ;;  %v21474_v14 = vld [vmem:[#allocation84_spill] sm:$0xff]  ;;  %v21509_v9 = vld [vmem:[#allocation114_spill] sm:$0xff] }
 0xab3   : > { %13615 = vmatmul.mubr.msk.bf16.gmra.mrb[44].mxu1 %vm388_vm0, %v21438_v58  ;;  %v21477_v58 = vld [vmem:[#allocation86_spill] sm:$0xff] }
 0xab4   : > { %13618 = vmatprep.mubr.msk.bf16.mxu1 %vm388_vm0, %v6800_v52  ;;  %v21475_v52 = vpack.c.bf16 %v21473_v2, %v21474_v14  ;;  %v21511_v2 = vld [vmem:[#allocation23_spill] sm:$0xff] }
 0xabb   : > { %13619 = vmatmul.mubr.msk.bf16.gmra.mrb[48].mxu1 %vm388_vm0, %v6801_v32  ;;  %v21478_v32 = vpack.c.bf16 %v21476_v28, %v21477_v58  ;;  %v12330_v28 = vld [vmem:[%s20586_s7 + $0x1c] sm:$0xf]  ;;  %v21513_v58 = vld [vmem:[#allocation47_spill] sm:$0xff] }
 0xabc   : > { %13624 = vmatprep.mubr.msk.bf16.mxu1 %vm388_vm0, %v21442_v29  ;;  %v21481_v29 = vpack.c.bf16 %v21479_v55, %v21480_v43  ;;  %v21516_v43 = vld [vmem:[#allocation49_spill] sm:$0xff] }
 0xac3   : > { %13625 = vmatmul.mubr.msk.bf16.vlgmr.msra.gmra.mrb[4].mxu1 %vm388_vm0, %v21445_v10  ;;  %v21485_v10 = vld [vmem:[#allocation29_spill] sm:$0xff] }
 0xac4   : > { %13673 = vmatpush3.bf16.msra.mxu1 %v7721_v37  ;;  %13628 = vmatprep.mubr.msk.bf16.mxu1 %vm388_vm0, %v21448_v40  ;;  %v21482_v37 = vld [vmem:[#allocation27_spill] sm:$0xff]  ;;  %v21487_v5 = vpack.c.bf16 %v21485_v10, %v21486_v35  ;;  %v21522_v10 = vld [vmem:[#allocation53_spill] sm:$0xff]  ;;  %v21523_v35 = vld [vmem:[#allocation52_spill] sm:$0xff] }
 0xac5   : > { %14668 = vmatprep.subr.msk.bf16.mxu1 %vm1313_vm1, %v12305_v4  ;;  %v21484_v34 = vpack.c.bf16 %v21482_v37, %v21483_v39  ;;  %v21488_v40 = vld [vmem:[#allocation31_spill] sm:$0xff] }
 0xac6   : > { %v21490_v6 = vpack.c.bf16 %v21488_v40, %v21489_v49  ;;  %v21519_v39 = vld [vmem:[#allocation51_spill] sm:$0xff]  ;;  %v21526_v49 = vld [vmem:[#allocation54_spill] sm:$0xff] }
 0xac7   : > { %v21525_v40 = vld [vmem:[#allocation55_spill] sm:$0xff] }
 0xacb   : > { %13629 = vmatmul.mubr.msk.bf16.gmra.mrb[8].mxu1 %vm388_vm0, %v21451_v30  ;;  %v21491_v30 = vld [vmem:[#allocation33_spill] sm:$0xff] }
 0xacc   : > { %13632 = vmatprep.mubr.msk.bf16.mxu1 %vm388_vm0, %v21454_v63  ;;  %v21493_v54 = vpack.c.bf16 %v21491_v30, %v21492_v23  ;;  %v21494_v63 = vld [vmem:[#allocation35_spill] sm:$0xff]  ;;  %v21528_v30 = vld [vmem:[#allocation57_spill] sm:$0xff]  ;;  %v21529_v23 = vld [vmem:[#allocation56_spill] sm:$0xff] }
 0xacd   : > { %v21496_v8 = vpack.c.bf16 %v21494_v63, %v21495_v1  ;;  %v21531_v63 = vld [vmem:[#allocation89_spill] sm:$0xff]  ;;  %v21532_v1 = vld [vmem:[#allocation6_spill] sm:$0xff] }
 0xad3   : > { %13633 = vmatmul.mubr.msk.bf16.gmra.mrb[12].mxu1 %vm388_vm0, %v21457_v16  ;;  %v21497_v16 = vld [vmem:[#allocation37_spill] sm:$0xff] }
 0xad4   : > { %13636 = vmatprep.mubr.msk.bf16.mxu1 %vm388_vm0, %v21460_v17  ;;  %v21499_v12 = vpack.c.bf16 %v21497_v16, %v21498_v61  ;;  %v21500_v17 = vld [vmem:[#allocation39_spill] sm:$0xff]  ;;  %v21534_v16 = vld [vmem:[#allocation90_spill] sm:$0xff] }
 0xad5   : > { %v21502_v21 = vpack.c.bf16 %v21500_v17, %v21501_v57  ;;  %v21535_v61 = vpack.c.bf16 %v21392_v45, %v21534_v16  ;;  %v21538_v57 = vpack.c.bf16 %v21396_v19, %v21395_v20  ;;  %v21548_v20 = vld [vmem:[#allocation103_spill] sm:$0xff]  ;;  %v14700_v16 = vld [vmem:[%s14828_s22 + $0x178] sm:$0xff] }
 0xadb   : > { %13637 = vmatmul.mubr.msk.bf16.gmra.mrb[16].mxu1 %vm388_vm0, %v21463_v22  ;;  %v21503_v22 = vld [vmem:[#allocation115_spill] sm:$0xff] }
 0xadc   : > { %13640 = vmatprep.mubr.msk.bf16.mxu1 %vm388_vm0, %v21466_v46  ;;  %v7222_v0 = vpack.c.bf16 %v21504_v51, %v21503_v22  ;;  %v21505_v46 = vld [vmem:[#allocation41_spill] sm:$0xff]  ;;  %v21540_v22 = vld [vmem:[#allocation96_spill] sm:$0xff] }
 0xadd   : > { %v21507_v31 = vpack.c.bf16 %v21505_v46, %v21506_v59  ;;  %v21542_v46 = vld [vmem:[#allocation98_spill] sm:$0xff]  ;;  %v21544_v59 = vld [vmem:[#allocation100_spill] sm:$0xff] }
 0xade   : > { %v21543_v45 = vpack.c.bf16 %v21400_v60, %v21542_v46  ;;  %v21550_v60 = vpack.c.bf16 %v21405_v25, %v21404_v47  ;;  %v21555_v25 = vpack.c.bf16 %v18770_v26, %v18763_v42  ;;  %v7619_v47 = vld [vmem:[#allocation2 + $0x189] sm:$0xff]  ;;  %v8565_v42 = vsel %vm1313_vm1, %v12330_v28, 0  ;;  %v21559_v26 = vld [vmem:[#allocation118_spill] sm:$0xff] }
 0xae3   : > { %13641 = vmatmul.mubr.msk.bf16.gmra.mrb[20].mxu1 %vm388_vm0, %v21469_v62  ;;  %v19243_v62 = vld [vmem:[#allocation2 + $0x198] sm:$0xff] }
 0xae4   : > { %13644 = vmatprep.mubr.msk.bf16.mxu1 %vm388_vm0, %v21472_v7  ;;  %21508 = vst [vmem:[#allocation10_spill] sm:$0xff] %v19243_v62  ;;  %v7223_v48 = vpack.c.bf16 %v19243_v62, %v21509_v9  ;;  %v21510_v7 = vld [vmem:[#allocation24_spill] sm:$0xff]  ;;  %v19601_v9 = vld [vmem:[#allocation2 + $0x1b0] sm:$0xff] }
 0xae5   : > { %v21512_v14 = vpack.c.bf16 %v21510_v7, %v21511_v2  ;;  %v21551_v7 = vld [vmem:[#allocation107_spill] sm:$0xff]  ;;  %v21556_v2 = vpack.c.bf16 %v18774_v44, %v18772_v56  ;;  %v21558_v44 = vld [vmem:[#allocation117_spill] sm:$0xff]  ;;  %21627 = vst [vmem:[#allocation88_spill] sm:$0xff] %v19601_v9 }
 0xae6   : > { %v19350_v56 = vld [vmem:[%s20586_s7 + $0x20] sm:$0xf] }
 0xae7   : > { %v19581_v62 = vld [vmem:[#allocation2 + $0x41] sm:$0xff]  ;;  %v19625_v51 = vsel %vm1313_vm1, %v19350_v56, 0 }
 0xae8   : > { %21625 = vst [vmem:[#allocation86_spill] sm:$0xff] %v19581_v62  ;;  %v14718_v62 = vld [vmem:[%s14828_s22 + $0x50] sm:$0xff] }
 0xaeb   : > { %13645 = vmatmul.mubr.msk.bf16.gmra.mrb[24].mxu1 %vm388_vm0, %v21475_v52  ;;  %v8143_v52 = vsel %vm1313_vm1, %v12305_v4, 0 }
 0xaec   : > { %13648 = vmatprep.mubr.msk.bf16.mxu1 %vm388_vm0, %v21478_v32  ;;  %v21514_v32 = vld [vmem:[#allocation46_spill] sm:$0xff] }
 0xaed   : > { %v21515_v55 = vpack.c.bf16 %v21513_v58, %v21514_v32  ;;  %v21564_v58 = vld [vmem:[#allocation44_spill] sm:$0xff]  ;;  %v21565_v32 = vld [vmem:[#allocation45_spill] sm:$0xff] }
 0xaf3   : > { %13649 = vmatmul.mubr.msk.bf16.gmra.mrb[28].mxu1 %vm388_vm0, %v21481_v29  ;;  %v21517_v29 = vld [vmem:[#allocation48_spill] sm:$0xff] }
 0xaf4   : > { %13652 = vmatprep.mubr.msk.bf16.mxu1 %vm388_vm0, %v21484_v34  ;;  %v21518_v37 = vpack.c.bf16 %v21516_v43, %v21517_v29  ;;  %v21520_v34 = vld [vmem:[#allocation50_spill] sm:$0xff]  ;;  %v14695_v29 = vld [vmem:[%s14828_s22 + $0x150] sm:$0xff] }
 0xaf5   : > { %v21521_v4 = vpack.c.bf16 %v21519_v39, %v21520_v34 }
 0xafb   : > { %13653 = vmatmul.mubr.msk.bf16.gmra.mrb[32].mxu1 %vm388_vm0, %v21487_v5  ;;  %v21524_v5 = vpack.c.bf16 %v21522_v10, %v21523_v35  ;;  %v21567_v35 = vld [vmem:[#allocation61_spill] sm:$0xff] }
 0xafc   : > { %13656 = vmatprep.mubr.msk.bf16.mxu1 %vm388_vm0, %v21490_v6  ;;  %v21527_v6 = vpack.c.bf16 %v21525_v40, %v21526_v49  ;;  %v14698_v40 = vld [vmem:[%s14828_s22 + $0x170] sm:$0xff] }
 0xb03   : > { %13657 = vmatmul.mubr.msk.bf16.gmra.mrb[36].mxu1 %vm388_vm0, %v21493_v54  ;;  %v21530_v54 = vpack.c.bf16 %v21528_v30, %v21529_v23 }
 0xb04   : > { %13660 = vmatprep.mubr.msk.bf16.mxu1 %vm388_vm0, %v21496_v8  ;;  %v21533_v8 = vpack.c.bf16 %v21531_v63, %v21532_v1  ;;  %v21569_v1 = vld [vmem:[#allocation62_spill] sm:$0xff] }
 0xb0b   : > { %13661 = vmatmul.mubr.msk.bf16.gmra.mrb[40].mxu1 %vm388_vm0, %v21499_v12  ;;  %v21536_v12 = vld [vmem:[#allocation92_spill] sm:$0xff] }
 0xb0c   : > { %13664 = vmatprep.mubr.msk.bf16.mxu1 %vm388_vm0, %v21502_v21  ;;  %v21537_v17 = vpack.c.bf16 %v21394_v41, %v21536_v12  ;;  %v21539_v21 = vld [vmem:[#allocation97_spill] sm:$0xff]  ;;  %v21545_v41 = vpack.c.bf16 %v21402_v27, %v21544_v59  ;;  %v21552_v27 = vpack.c.bf16 %v18749_v11, %v21551_v7  ;;  %v7644_v11 = vpack.c.bf16 %v7619_v47, %v19041_v38  ;;  %v21560_v38 = vld [vmem:[#allocation119_spill] sm:$0xff]  ;;  %v14703_v47 = vld [vmem:[%s14828_s22 + $0x128] sm:$0xff] }
 0xb13   : > { %13665 = vmatmul.mubr.msk.bf16.gmra.mrb[44].mxu1 %vm388_vm0, %v21507_v31  ;;  %v21546_v31 = vld [vmem:[#allocation102_spill] sm:$0xff] }
 0xb14   : > { %13668 = vmatprep.mubr.msk.bf16.mxu1 %vm388_vm0, %v7222_v0  ;;  %v21541_v0 = vpack.c.bf16 %v21539_v21, %v21540_v22  ;;  %v21547_v19 = vpack.c.bf16 %v18729_v3, %v21546_v31  ;;  %v21553_v3 = vpack.c.bf16 %v21407_v36, %v21406_v24  ;;  %v7620_v36 = vld [vmem:[#allocation2 + $0x191] sm:$0xff]  ;;  %v7621_v24 = vld [vmem:[#allocation2 + $0x199] sm:$0xff] }
 0xb1b   : > { %13669 = vmatmul.mubr.msk.bf16.gmra.mrb[48].mxu1 %vm388_vm0, %v7223_v48  ;;  %v21549_v48 = vpack.c.bf16 %v21403_v50, %v21548_v20  ;;  %v21554_v50 = vpack.c.bf16 %v21408_v13, %v18759_v53  ;;  %v7645_v53 = vpack.c.bf16 %v7621_v24, %v7620_v36  ;;  %v21557_v13 = vld [vmem:[#allocation116_spill] sm:$0xff] }
 0xb1c   : > { %13674 = vmatprep.mubr.msk.bf16.mxu1 %vm388_vm0, %v21512_v14  ;;  %v21561_v14 = vld [vmem:[#allocation120_spill] sm:$0xff] }
 0xb23   : > { %13675 = vmatmul.mubr.msk.bf16.vlgmr.msra.gmra.mrb[4].mxu1 %vm388_vm0, %v21515_v55  ;;  %v14753_v55 = vmov 1983009808  }
 0xb24   : > { %13723 = vmatpush3.bf16.msra.mxu1 %v8143_v52  ;;  %13678 = vmatprep.mubr.msk.bf16.mxu1 %vm388_vm0, %v21518_v37  ;;  %v21562_v52 = vld [vmem:[#allocation42_spill] sm:$0xff]  ;;  %v9312_v43 = vunpack.c.l.s4 %v14753_v55  ;;  %v14696_v37 = vld [vmem:[%s14828_s22 + $0x168] sm:$0xff] }
 0xb25   : > { %14669 = vmatprep.subr.msk.bf16.mxu1 %vm1313_vm1, %v12330_v28  ;;  %v21563_v28 = vld [vmem:[#allocation43_spill] sm:$0xff]  ;;  %v10086_v39 = vadd.f32 %v14696_v37, %v14695_v29  ;;  %v21575_v29 = vld [vmem:[#allocation22_spill] sm:$0xff] }
 0xb26   : > { %v9313_v34 = vunpack.c.0.s8 %v9312_v43  ;;  %v10833_v37 = vld [vmem:[%s20588_s9] sm:$0xf] }
 0xb27   : > { %v10351_v10 = vcombine.high %v10086_v39, %v10086_v39  ;;  %14671 = vmatprep.subr.msk.bf16.mxu0 %vm1313_vm1, %v10833_v37 }
 0xb2b   : > { %13679 = vmatmul.mubr.msk.bf16.gmra.mrb[8].mxu1 %vm388_vm0, %v21521_v4  ;;  %v21566_v4 = vld [vmem:[#allocation60_spill] sm:$0xff] }
 0xb2c   : > { %13682 = vmatprep.mubr.msk.bf16.mxu1 %vm388_vm0, %v21524_v5  ;;  %v14697_v5 = vld [vmem:[%s14828_s22 + $0x158] sm:$0xff] }
 0xb2d   : > { %v10087_v49 = vadd.f32 %v14698_v40, %v14697_v5  ;;  %v14706_v5 = vld [vmem:[%s14828_s22 + $0x108] sm:$0xff] }
 0xb33   : > { %13683 = vmatmul.mubr.msk.bf16.gmra.mrb[12].mxu1 %vm388_vm0, %v21527_v6  ;;  %v21568_v6 = vld [vmem:[#allocation3_spill] sm:$0xff] }
 0xb34   : > { %13686 = vmatprep.mubr.msk.bf16.mxu1 %vm388_vm0, %v21530_v54  ;;  %v19379_v30 = vsub.s32 %v9313_v34, %v21568_v6  ;;  %v10360_v54 = vcombine.high %v10087_v49, %v10087_v49  ;;  %v19535_v6 = vld [vmem:[#allocation2 + $0x150] sm:$0xff] }
 0xb35   : > { %21617 = vst [vmem:[#allocation78_spill] sm:$0xff] %v19535_v6 }
 0xb36   : > { %v10358_v23 = vrot.slane %v10351_v10, %v19379_v30  ;;  %v10367_v63 = vrot.slane %v10087_v49, %v19379_v30  ;;  %v11105_v10 = vsel %vm1313_vm1, %v10833_v37, 0  ;;  %v14707_v49 = vld [vmem:[%s14828_s22 + $0x130] sm:$0xff]  ;;  %v19495_v37 = vld [vmem:[#allocation2 + $0xe0] sm:$0xff] }
 0xb37   : > { %13873 = vmatpush3.bf16.msra.mxu0 %v11105_v10  ;;  %21599 = vst [vmem:[#allocation59_spill] sm:$0xff] %v19495_v37  ;;  %v21603_v10 = vld [vmem:[#allocation20_spill] sm:$0xff] }
 0xb38   : > { %v10359_v12 = vcombine.high %v10358_v23, %v10358_v23  ;;  %v10375_v21 = vcombine.high %v10367_v63, %v10367_v63  ;;  %v12503_v46 = vrot.slane %v10367_v63, 9  ;;  %v12501_v31 = vrot.slane %v10358_v23, 9 }
 0xb3a   : > { %v10697_v24 = vadd.f32 %v12501_v31, %v10358_v23  ;;  %v14708_v23 = vld [vmem:[%s14828_s22 + $0x148] sm:$0xff] }
 0xb3b   : > { %13687 = vmatmul.mubr.msk.bf16.gmra.mrb[16].mxu1 %vm388_vm0, %v21533_v8  ;;  %v14699_v8 = vld [vmem:[%s14828_s22 + $0x160] sm:$0xff]  ;;  %v19437_v31 = vld [vmem:[#allocation2 + $0x48] sm:$0xff] }
 0xb3c   : > { %13690 = vmatprep.mubr.msk.bf16.mxu1 %vm388_vm0, %v21535_v61  ;;  %v10088_v61 = vadd.f32 %v14700_v16, %v14699_v8 }
 0xb3e   : > { %v10383_v22 = vrot.slane %v10088_v61, %v19379_v30 }
 0xb43   : > { %13691 = vmatmul.mubr.msk.bf16.gmra.mrb[20].mxu1 %vm388_vm0, %v21537_v17  ;;  %v21570_v17 = vld [vmem:[#allocation63_spill] sm:$0xff] }
 0xb44   : > { %13694 = vmatprep.mubr.msk.bf16.mxu1 %vm388_vm0, %v21538_v57  ;;  %v10374_v57 = vrot.slane %v10360_v54, %v19379_v30  ;;  %v10085_v54 = vadd.f32 %v14708_v23, %v14707_v49  ;;  %v19510_v49 = vld [vmem:[#allocation2 + $0xf8] sm:$0xff]  ;;  %v19512_v23 = vld [vmem:[#allocation2 + $0x100] sm:$0xff] }
 0xb45   : > { %21606 = vst [vmem:[#allocation69_spill] sm:$0xff] %v19510_v49  ;;  %21607 = vst [vmem:[#allocation68_spill] sm:$0xff] %v19512_v23 }
 0xb46   : > { %v12505_v59 = vrot.slane %v10374_v57, 9  ;;  %v10376_v36 = vcombine.high %v10374_v57, %v10374_v57 }
 0xb4b   : > { %13695 = vmatmul.mubr.msk.bf16.gmra.mrb[24].mxu1 %vm388_vm0, %v21541_v0  ;;  %v12502_v0 = vrot.slane %v10359_v12, 9 }
 0xb4c   : > { %13698 = vmatprep.mubr.msk.bf16.mxu1 %vm388_vm0, %v21543_v45  ;;  %v12504_v45 = vrot.slane %v10375_v21, 9 }
 0xb4d   : > { %v10698_v20 = vadd.f32 %v12502_v0, %v10359_v12 }
 0xb4e   : > { %v10700_v7 = vadd.f32 %v12504_v45, %v10375_v21  ;;  %v19423_v21 = vld [vmem:[#allocation2 + $0x1a0] sm:$0xff] }
 0xb4f   : > { %21579 = vst [vmem:[#allocation94_spill] sm:$0xff] %v19423_v21  ;;  %v19431_v45 = vld [vmem:[#allocation2 + $0x19f] sm:$0xff]  ;;  %v14713_v21 = vld [vmem:[%s14828_s22 + $0x10] sm:$0xff] }
 0xb53   : > { %13699 = vmatmul.mubr.msk.bf16.gmra.mrb[28].mxu1 %vm388_vm0, %v21545_v41  ;;  %v21571_v41 = vld [vmem:[#allocation4_spill] sm:$0xff] }
 0xb54   : > { %13702 = vmatprep.mubr.msk.bf16.mxu1 %vm388_vm0, %v21547_v19  ;;  %v12507_v19 = vrot.slane %v10383_v22, 9 }
 0xb5b   : > { %13703 = vmatmul.mubr.msk.bf16.gmra.mrb[32].mxu1 %vm388_vm0, %v21549_v48  ;;  %v21572_v48 = vld [vmem:[#allocation5_spill] sm:$0xff] }
 0xb5c   : > { %13706 = vmatprep.mubr.msk.bf16.mxu1 %vm388_vm0, %v21550_v60  ;;  %v10699_v60 = vadd.f32 %v12503_v46, %v10367_v63 }
 0xb63   : > { %13707 = vmatmul.mubr.msk.bf16.gmra.mrb[36].mxu1 %vm388_vm0, %v21552_v27  ;;  %v10701_v27 = vadd.f32 %v12505_v59, %v10374_v57  ;;  %v19433_v59 = vld [vmem:[#allocation2 + $0x38] sm:$0xff] }
 0xb64   : > { %13710 = vmatprep.mubr.msk.bf16.mxu1 %vm388_vm0, %v21553_v3  ;;  %v14701_v3 = vld [vmem:[%s14828_s22 + $0x120] sm:$0xff] }
 0xb6b   : > { %13711 = vmatmul.mubr.msk.bf16.gmra.mrb[40].mxu1 %vm388_vm0, %v21554_v50  ;;  %v14702_v50 = vld [vmem:[%s14828_s22 + $0x138] sm:$0xff] }
 0xb6c   : > { %13714 = vmatprep.mubr.msk.bf16.mxu1 %vm388_vm0, %v21555_v25  ;;  %v10083_v25 = vadd.f32 %v14702_v50, %v14701_v3  ;;  %v19453_v3 = vld [vmem:[#allocation2 + $0x68] sm:$0xff]  ;;  %v19455_v50 = vld [vmem:[#allocation2 + $0x70] sm:$0xff] }
 0xb73   : > { %13715 = vmatmul.mubr.msk.bf16.gmra.mrb[44].mxu1 %vm388_vm0, %v21556_v2 }
 0xb74   : > { %13718 = vmatprep.mubr.msk.bf16.mxu1 %vm388_vm0, %v7644_v11  ;;  %v14704_v11 = vld [vmem:[%s14828_s22 + $0x140] sm:$0xff] }
 0xb75   : > { %v10084_v2 = vadd.f32 %v14704_v11, %v14703_v47  ;;  %v19459_v47 = vld [vmem:[#allocation2 + $0x80] sm:$0xff]  ;;  %v19461_v11 = vld [vmem:[#allocation2 + $0x88] sm:$0xff] }
 0xb76   : > { %21585 = vst [vmem:[#allocation106_spill] sm:$0xff] %v19461_v11 }
 0xb77   : > { %v10326_v63 = vcombine.high %v10084_v2, %v10084_v2 }
 0xb7b   : > { %13719 = vmatmul.mubr.msk.bf16.gmra.mrb[48].mxu1 %vm388_vm0, %v7645_v53  ;;  %v10703_v53 = vadd.f32 %v12507_v19, %v10383_v22  ;;  %v19439_v19 = vld [vmem:[#allocation2 + $0x50] sm:$0xff] }
 0xb7c   : > { %13724 = vmatprep.mubr.msk.bf16.mxu1 %vm388_vm0, %v21557_v13  ;;  %v10762_v13 = vmul.f32 0.25, %v10698_v20  ;;  %v19441_v20 = vld [vmem:[#allocation2 + $0x58] sm:$0xff] }
 0xb7d   : > { %v10767_v55 = vmul.f32 0.25, %v10703_v53 }
 0xb7e   : > { %v10826_v43 = vpack.c.bf16 %v10762_v13, %v10762_v13  ;;  %v19531_v13 = vld [vmem:[#allocation2 + $0x140] sm:$0xff] }
 0xb7f   : > { %21615 = vst [vmem:[#allocation76_spill] sm:$0xff] %v19531_v13 }
 0xb80   : > { %v19421_v57 = vunpack.c.l.b16 %v10826_v43  ;;  %v19491_v43 = vld [vmem:[#allocation2 + $0xd0] sm:$0xff] }
 0xb81   : > { %21597 = vst [vmem:[#allocation19_spill] sm:$0xff] %v19491_v43 }
 0xb82   : > { %21578 = vst [vmem:[#allocation93_spill] sm:$0xff] %v19421_v57  ;;  %v19537_v57 = vld [vmem:[#allocation2 + $0x158] sm:$0xff] }
 0xb83   : > { %13725 = vmatmul.mubr.msk.bf16.vlgmr.msra.gmra.mrb[4].mxu1 %vm388_vm0, %v21558_v44  ;;  %v10764_v44 = vmul.f32 0.25, %v10700_v7  ;;  %v19448_v7 = vrot.slane %v10326_v63, %v19379_v30  ;;  %v19516_v63 = vld [vmem:[#allocation2 + $0x110] sm:$0xff]  ;;  %21618 = vst [vmem:[#allocation81_spill] sm:$0xff] %v19537_v57 }
 0xb84   : > { %13773 = vmatpush3.bf16.msra.mxu1 %v8565_v42  ;;  %13728 = vmatprep.mubr.msk.bf16.mxu1 %vm388_vm0, %v21559_v26  ;;  %v10763_v42 = vmul.f32 0.25, %v10699_v60  ;;  %v10765_v26 = vmul.f32 0.25, %v10701_v27  ;;  %v19451_v27 = vrot.slane %v10085_v54, %v19379_v30  ;;  %v19514_v54 = vld [vmem:[#allocation2 + $0x108] sm:$0xff]  ;;  %21609 = vst [vmem:[#allocation70_spill] sm:$0xff] %v19516_v63 }
 0xb85   : > { %14670 = vmatprep.subr.msk.bf16.mxu1 %vm1313_vm1, %v19350_v56  ;;  %v10828_v34 = vpack.c.bf16 %v10764_v44, %v10764_v44  ;;  %21583 = vst [vmem:[#allocation104_spill] sm:$0xff] %v19448_v7  ;;  %21608 = vst [vmem:[#allocation71_spill] sm:$0xff] %v19514_v54  ;;  %v19533_v60 = vld [vmem:[#allocation2 + $0x148] sm:$0xff] }
 0xb86   : > { %v10827_v39 = vpack.c.bf16 %v10763_v42, %v10763_v42  ;;  %21584 = vst [vmem:[#allocation105_spill] sm:$0xff] %v19451_v27  ;;  %21616 = vst [vmem:[#allocation79_spill] sm:$0xff] %v19533_v60  ;;  %v14709_v27 = vld [vmem:[%s14828_s22] sm:$0xff] }
 0xb87   : > { %v19427_v0 = vunpack.c.l.b16 %v10828_v34 }
 0xb89   : > { %21581 = vst [vmem:[#allocation99_spill] sm:$0xff] %v19427_v0  ;;  %v19565_v0 = vld [vmem:[#allocation2 + $0x180] sm:$0xff] }
 0xb8a   : > { %21623 = vst [vmem:[#allocation84_spill] sm:$0xff] %v19565_v0 }
 0xb8b   : > { %13729 = vmatmul.mubr.msk.bf16.gmra.mrb[8].mxu1 %vm388_vm0, %v21560_v38  ;;  %v10317_v38 = vcombine.high %v10083_v25, %v10083_v25  ;;  %v19457_v25 = vld [vmem:[#allocation2 + $0x78] sm:$0xff] }
 0xb8c   : > { %13732 = vmatprep.mubr.msk.bf16.mxu1 %vm388_vm0, %v21561_v14  ;;  %v19400_v14 = vrot.slane %v10084_v2, %v19379_v30  ;;  %v19463_v2 = vld [vmem:[#allocation2 + $0x90] sm:$0xff] }
 0xb8e   : > { %21573 = vst [vmem:[#allocation11_spill] sm:$0xff] %v19400_v14  ;;  %v12495_v8 = vrot.slane %v19400_v14, 9 }
 0xb90   : > { %v19475_v42 = vadd.f32 %v12495_v8, %v19400_v14  ;;  %v19518_v8 = vld [vmem:[#allocation2 + $0x118] sm:$0xff]  ;;  %v14712_v14 = vld [vmem:[%s14828_s22 + $0x20] sm:$0xff] }
 0xb91   : > { %21610 = vst [vmem:[#allocation73_spill] sm:$0xff] %v19518_v8 }
 0xb92   : > { %21589 = vst [vmem:[#allocation13_spill] sm:$0xff] %v19475_v42  ;;  %v19569_v42 = vld [vmem:[#allocation2 + $0x1a7] sm:$0xff] }
 0xb93   : > { %13733 = vmatmul.mubr.msk.bf16.gmra.mrb[12].mxu1 %vm388_vm0, %v21562_v52  ;;  %v10384_v52 = vcombine.high %v10383_v22, %v10383_v22  ;;  %v19425_v22 = vunpack.c.l.b16 %v10827_v39 }
 0xb94   : > { %13736 = vmatprep.mubr.msk.bf16.mxu1 %vm388_vm0, %v21563_v28  ;;  %v21574_v28 = vld [vmem:[#allocation18_spill] sm:$0xff] }
 0xb95   : > { %v12508_v16 = vrot.slane %v10384_v52, 9  ;;  %21580 = vst [vmem:[#allocation95_spill] sm:$0xff] %v19425_v22  ;;  %v19549_v22 = vld [vmem:[#allocation2 + $0x160] sm:$0xff] }
 0xb96   : > { %21619 = vst [vmem:[#allocation80_spill] sm:$0xff] %v19549_v22  ;;  %v14720_v22 = vld [vmem:[%s14828_s22 + $0x58] sm:$0xff] }
 0xb97   : > { %v19477_v44 = vadd.f32 %v12508_v16, %v10384_v52  ;;  %v19520_v16 = vld [vmem:[#allocation2 + $0x120] sm:$0xff] }
 0xb98   : > { %21611 = vst [vmem:[#allocation72_spill] sm:$0xff] %v19520_v16 }
 0xb99   : > { %21590 = vst [vmem:[#allocation12_spill] sm:$0xff] %v19477_v44  ;;  %v19567_v44 = vld [vmem:[#allocation2 + $0x39] sm:$0xff] }
 0xb9a   : > { %21624 = vst [vmem:[#allocation87_spill] sm:$0xff] %v19567_v44  ;;  %v14717_v44 = vld [vmem:[%s14828_s22 + $0x38] sm:$0xff] }
 0xb9b   : > { %13737 = vmatmul.mubr.msk.bf16.gmra.mrb[16].mxu1 %vm388_vm0, %v21564_v58  ;;  %v12506_v58 = vrot.slane %v10376_v36, 9 }
 0xb9c   : > { %13740 = vmatprep.mubr.msk.bf16.mxu1 %vm388_vm0, %v21565_v32  ;;  %v10761_v32 = vmul.f32 0.25, %v10697_v24  ;;  %v19467_v24 = vld [vmem:[#allocation2 + $0xa0] sm:$0xff] }
 0xb9d   : > { %v10702_v61 = vadd.f32 %v12506_v58, %v10376_v36  ;;  %v19465_v36 = vld [vmem:[#allocation2 + $0x98] sm:$0xff]  ;;  %21587 = vst [vmem:[#allocation109_spill] sm:$0xff] %v19467_v24 }
 0xb9e   : > { %v10825_v12 = vpack.c.bf16 %v10761_v32, %v10761_v32  ;;  %21586 = vst [vmem:[#allocation108_spill] sm:$0xff] %v19465_v36  ;;  %v19485_v58 = vld [vmem:[#allocation2 + $0xb8] sm:$0xff]  ;;  %v19487_v32 = vld [vmem:[#allocation2 + $0xc0] sm:$0xff] }
 0xb9f   : > { %21594 = vst [vmem:[#allocation17_spill] sm:$0xff] %v19485_v58  ;;  %21595 = vst [vmem:[#allocation16_spill] sm:$0xff] %v19487_v32  ;;  %v19497_v52 = vmul.f32 0.25, %v10702_v61  ;;  %v19599_v61 = vld [vmem:[#allocation2 + $0x1a8] sm:$0xff] }
 0xba0   : > { %v19499_v39 = vunpack.c.l.b16 %v10825_v12  ;;  %21626 = vst [vmem:[#allocation25_spill] sm:$0xff] %v19599_v61  ;;  %v14711_v12 = vld [vmem:[%s14828_s22 + $0x8] sm:$0xff] }
 0xba1   : > { %21600 = vst [vmem:[#allocation58_spill] sm:$0xff] %v19497_v52  ;;  %v19563_v52 = vld [vmem:[#allocation2 + $0x178] sm:$0xff]  ;;  %v10066_v57 = vadd.f32 %v14712_v14, %v14711_v12 }
 0xba2   : > { %21601 = vst [vmem:[#allocation65_spill] sm:$0xff] %v19499_v39  ;;  %v19551_v39 = vld [vmem:[#allocation2 + $0x168] sm:$0xff]  ;;  %21622 = vst [vmem:[#allocation85_spill] sm:$0xff] %v19563_v52 }
 0xba3   : > { %13741 = vmatmul.mubr.msk.bf16.gmra.mrb[20].mxu1 %vm388_vm0, %v21566_v4  ;;  %v10829_v4 = vpack.c.bf16 %v10765_v26, %v10765_v26  ;;  %v21591_v26 = vld [vmem:[#allocation7_spill] sm:$0xff]  ;;  %21620 = vst [vmem:[#allocation83_spill] sm:$0xff] %v19551_v39  ;;  %v14714_v39 = vld [vmem:[%s14828_s22 + $0x28] sm:$0xff]  ;;  %v10122_v12 = vcombine.high %v10066_v57, %v10066_v57 }
 0xba4   : > { %13744 = vmatprep.mubr.msk.bf16.mxu1 %vm388_vm0, %v21567_v35  ;;  %v14705_v35 = vld [vmem:[%s14828_s22 + $0xf0] sm:$0xff]  ;;  %v14716_v52 = vld [vmem:[%s14828_s22 + $0x48] sm:$0xff] }
 0xba5   : > { %v19413_v40 = vadd.f32 %v14706_v5, %v14705_v35  ;;  %v19429_v46 = vunpack.c.l.b16 %v10829_v4  ;;  %v19506_v35 = vld [vmem:[#allocation2 + $0xe8] sm:$0xff]  ;;  %v19508_v5 = vld [vmem:[#allocation2 + $0xf0] sm:$0xff]  ;;  %v19529_v4 = vld [vmem:[#allocation2 + $0x138] sm:$0xff]  ;;  %v10136_v61 = vrot.slane %v10122_v12, %v19379_v30 }
 0xba6   : > { %21604 = vst [vmem:[#allocation67_spill] sm:$0xff] %v19506_v35  ;;  %21605 = vst [vmem:[#allocation66_spill] sm:$0xff] %v19508_v5 }
 0xba7   : > { %21576 = vst [vmem:[#allocation21_spill] sm:$0xff] %v19413_v40  ;;  %21582 = vst [vmem:[#allocation101_spill] sm:$0xff] %v19429_v46  ;;  %v14715_v46 = vld [vmem:[%s14828_s22 + $0x30] sm:$0xff]  ;;  %v12449_v13 = vrot.slane %v10136_v61, 9 }
 0xba8   : > { %21614 = vst [vmem:[#allocation77_spill] sm:$0xff] %v19529_v4  ;;  %v10068_v0 = vadd.f32 %v14716_v52, %v14715_v46 }
 0xba9   : > { %v10645_v37 = vadd.f32 %v12449_v13, %v10136_v61 }
 0xbaa   : > { %v10147_v46 = vcombine.high %v10068_v0, %v10068_v0 }
 0xbab   : > { %13745 = vmatmul.mubr.msk.bf16.gmra.mrb[24].mxu1 %vm388_vm0, %v21569_v1  ;;  %v19418_v1 = vrot.slane %v10317_v38, %v19379_v30  ;;  %v19481_v38 = vld [vmem:[#allocation2 + $0xa8] sm:$0xff] }
 0xbac   : > { %13748 = vmatprep.mubr.msk.bf16.mxu1 %vm388_vm0, %v21570_v17  ;;  %v10831_v17 = vpack.c.bf16 %v10767_v55, %v10767_v55  ;;  %21592 = vst [vmem:[#allocation15_spill] sm:$0xff] %v19481_v38  ;;  %v19489_v55 = vld [vmem:[#allocation2 + $0xc8] sm:$0xff] }
 0xbad   : > { %21577 = vst [vmem:[#allocation91_spill] sm:$0xff] %v19418_v1  ;;  %v19471_v53 = vcombine.high %v19418_v1, %v19418_v1  ;;  %21596 = vst [vmem:[#allocation111_spill] sm:$0xff] %v19489_v55  ;;  %v19571_v1 = vld [vmem:[#allocation2 + $0x1af] sm:$0xff] }
 0xbae   : > { %v19501_v34 = vunpack.c.l.b16 %v10831_v17  ;;  %v21628_v17 = vld [vmem:[#allocation8_spill] sm:$0xff]  ;;  %v21632_v11 = vpack.c.bf16 %v19571_v1, %v19569_v42 }
 0xbaf   : > { %21588 = vst [vmem:[#allocation110_spill] sm:$0xff] %v19471_v53  ;;  %v21629_v53 = vld [vmem:[#allocation9_spill] sm:$0xff] }
 0xbb0   : > { %21602 = vst [vmem:[#allocation64_spill] sm:$0xff] %v19501_v34  ;;  %v19553_v34 = vld [vmem:[#allocation2 + $0x170] sm:$0xff] }
 0xbb1   : > { %21621 = vst [vmem:[#allocation82_spill] sm:$0xff] %v19553_v34  ;;  %v10067_v34 = vadd.f32 %v14714_v39, %v14713_v21  ;;  %v10129_v21 = vrot.slane %v10066_v57, %v19379_v30 }
 0xbb3   : > { %13749 = vmatmul.mubr.msk.bf16.gmra.mrb[28].mxu1 %vm388_vm0, %v21571_v41  ;;  %v19435_v41 = vld [vmem:[#allocation2 + $0x40] sm:$0xff]  ;;  %v10145_v39 = vrot.slane %v10067_v34, %v19379_v30  ;;  %v10138_v34 = vcombine.high %v10136_v61, %v10136_v61  ;;  %v12447_v4 = vrot.slane %v10129_v21, 9 }
 0xbb4   : > { %13752 = vmatprep.mubr.msk.bf16.mxu1 %vm388_vm0, %v21572_v48  ;;  %v19443_v48 = vld [vmem:[#allocation2 + $0x60] sm:$0xff] }
 0xbb5   : > { %v10643_v5 = vadd.f32 %v12447_v4, %v10129_v21 }
 0xbbb   : > { %13753 = vmatmul.mubr.msk.bf16.gmra.mrb[32].mxu1 %vm388_vm0, %v21574_v28  ;;  %v19483_v28 = vld [vmem:[#allocation2 + $0xb0] sm:$0xff] }
 0xbbc   : > { %13756 = vmatprep.mubr.msk.bf16.mxu1 %vm388_vm0, %v21575_v29  ;;  %21593 = vst [vmem:[#allocation14_spill] sm:$0xff] %v19483_v28  ;;  %v19493_v29 = vld [vmem:[#allocation2 + $0xd8] sm:$0xff] }
 0xbbd   : > { %21598 = vst [vmem:[#allocation112_spill] sm:$0xff] %v19493_v29 }
 0xbc3   : > { %13757 = vmatmul.mubr.msk.bf16.gmra.mrb[36].mxu1 %vm388_vm0, %v21591_v26  ;;  %v19525_v26 = vld [vmem:[#allocation2 + $0x128] sm:$0xff] }
 0xbc4   : > { %13760 = vmatprep.mubr.msk.bf16.mxu1 %vm388_vm0, %v21603_v10  ;;  %21612 = vst [vmem:[#allocation75_spill] sm:$0xff] %v19525_v26  ;;  %v19527_v10 = vld [vmem:[#allocation2 + $0x130] sm:$0xff]  ;;  %v12450_v26 = vrot.slane %v10138_v34, 9 }
 0xbc5   : > { %21613 = vst [vmem:[#allocation74_spill] sm:$0xff] %v19527_v10  ;;  %v12451_v10 = vrot.slane %v10145_v39, 9 }
 0xbcb   : > { %13761 = vmatmul.mubr.msk.bf16.gmra.mrb[40].mxu1 %vm388_vm0, %v21628_v17  ;;  %v14710_v17 = vld [vmem:[%s14828_s22 + $0x18] sm:$0xff] }
 0xbcc   : > { %13764 = vmatprep.mubr.msk.bf16.mxu1 %vm388_vm0, %v21629_v53  ;;  %v10065_v7 = vadd.f32 %v14710_v17, %v14709_v27  ;;  %v10069_v27 = vadd.f32 %v14718_v62, %v14717_v44  ;;  %v14719_v17 = vld [vmem:[%s14828_s22 + $0x40] sm:$0xff]  ;;  %v10137_v62 = vcombine.high %v10129_v21, %v10129_v21  ;;  %v10146_v44 = vcombine.high %v10145_v39, %v10145_v39 }
 0xbcd   : > { %v10070_v60 = vadd.f32 %v14720_v22, %v14719_v17  ;;  %v10154_v22 = vrot.slane %v10147_v46, %v19379_v30  ;;  %v21631_v46 = vpack.c.bf16 %v19431_v45, %v19142_v15  ;;  %v10646_v15 = vadd.f32 %v12450_v26, %v10138_v34 }
 0xbce   : > { %v10113_v14 = vcombine.high %v10065_v7, %v10065_v7  ;;  %v10156_v52 = vcombine.high %v10069_v27, %v10069_v27  ;;  %v10163_v56 = vrot.slane %v10069_v27, %v19379_v30  ;;  %v21630_v27 = vpack.c.bf16 %v21439_v18, %v21436_v33 }
 0xbcf   : > { %v10179_v6 = vrot.slane %v10070_v60, %v19379_v30  ;;  %v10155_v60 = vcombine.high %v10154_v22, %v10154_v22  ;;  %v12448_v12 = vrot.slane %v10137_v62, 9  ;;  %v12452_v8 = vrot.slane %v10146_v44, 9 }
 0xbd0   : > { %v10120_v53 = vrot.slane %v10113_v14, %v19379_v30  ;;  %v10170_v7 = vrot.slane %v10156_v52, %v19379_v30  ;;  %v10171_v17 = vcombine.high %v10163_v56, %v10163_v56  ;;  %v12453_v16 = vrot.slane %v10154_v22, 9 }
 0xbd1   : > { %v10180_v57 = vcombine.high %v10179_v6, %v10179_v6  ;;  %v12454_v40 = vrot.slane %v10155_v60, 9  ;;  %v12455_v54 = vrot.slane %v10163_v56, 9  ;;  %v10644_v29 = vadd.f32 %v12448_v12, %v10137_v62 }
 0xbd2   : > { %v10121_v9 = vcombine.high %v10120_v53, %v10120_v53  ;;  %v12445_v0 = vrot.slane %v10120_v53, 9  ;;  %v10172_v14 = vcombine.high %v10170_v7, %v10170_v7  ;;  %v12456_v63 = vrot.slane %v10171_v17, 9 }
 0xbd3   : > { %13765 = vmatmul.mubr.msk.bf16.gmra.mrb[44].mxu1 %vm388_vm0, %v21630_v27  ;;  %v12457_v33 = vrot.slane %v10170_v7, 9  ;;  %v12459_v27 = vrot.slane %v10179_v6, 9  ;;  %v12460_v49 = vrot.slane %v10180_v57, 9  ;;  %v10647_v45 = vadd.f32 %v12451_v10, %v10145_v39 }
 0xbd4   : > { %13768 = vmatprep.mubr.msk.bf16.mxu1 %vm388_vm0, %v21631_v46  ;;  %v12446_v52 = vrot.slane %v10121_v9, 9  ;;  %v12458_v18 = vrot.slane %v10172_v14, 9  ;;  %v10641_v23 = vadd.f32 %v12445_v0, %v10120_v53  ;;  %v10648_v46 = vadd.f32 %v12452_v8, %v10146_v44 }
 0xbd5   : > { %v10649_v55 = vadd.f32 %v12453_v16, %v10154_v22  ;;  %v10650_v43 = vadd.f32 %v12454_v40, %v10155_v60  ;;  %v10651_v58 = vadd.f32 %v12455_v54, %v10163_v56  ;;  %v10652_v32 = vadd.f32 %v12456_v63, %v10171_v17 }
 0xbd6   : > { %v10642_v35 = vadd.f32 %v12446_v52, %v10121_v9  ;;  %v10653_v38 = vadd.f32 %v12457_v33, %v10170_v7  ;;  %v10654_v28 = vadd.f32 %v12458_v18, %v10172_v14  ;;  %v10655_v36 = vadd.f32 %v12459_v27, %v10179_v6 }
 0xbd7   : > { %v10656_v24 = vadd.f32 %v12460_v49, %v10180_v57  ;;  %v10705_v9 = vmul.f32 0.25, %v10641_v23  ;;  %v10707_v53 = vmul.f32 0.25, %v10643_v5  ;;  %v10708_v13 = vmul.f32 0.25, %v10644_v29 }
 0xbd8   : > { %v10706_v4 = vmul.f32 0.25, %v10642_v35  ;;  %v21633_v8 = vpack.c.bf16 %v19435_v41, %v19433_v59  ;;  %v10709_v40 = vmul.f32 0.25, %v10645_v37  ;;  %v10710_v54 = vmul.f32 0.25, %v10646_v15 }
 0xbd9   : > { %v10711_v63 = vmul.f32 0.25, %v10647_v45  ;;  %v10712_v16 = vmul.f32 0.25, %v10648_v46  ;;  %v10713_v6 = vmul.f32 0.25, %v10649_v55  ;;  %v10714_v49 = vmul.f32 0.25, %v10650_v43 }
 0xbda   : > { %v10715_v61 = vmul.f32 0.25, %v10651_v58  ;;  %v10716_v26 = vmul.f32 0.25, %v10652_v32  ;;  %v10717_v1 = vmul.f32 0.25, %v10653_v38  ;;  %v10718_v42 = vmul.f32 0.25, %v10654_v28 }
 0xbdb   : > { %13769 = vmatmul.mubr.msk.bf16.gmra.mrb[48].mxu1 %vm388_vm0, %v21632_v11  ;;  %v10719_v11 = vmul.f32 0.25, %v10655_v36  ;;  %v10720_v23 = vmul.f32 0.25, %v10656_v24  ;;  %v10769_v35 = vpack.c.bf16 %v10705_v9, %v10705_v9  ;;  %v10770_v29 = vpack.c.bf16 %v10706_v4, %v10706_v4 }
 0xbdc   : > { %13774 = vmatprep.mubr.msk.bf16.mxu1 %vm388_vm0, %v21633_v8  ;;  %v10771_v5 = vpack.c.bf16 %v10707_v53, %v10707_v53  ;;  %v10772_v10 = vpack.c.bf16 %v10708_v13, %v10708_v13  ;;  %v10773_v59 = vpack.c.bf16 %v10709_v40, %v10709_v40  ;;  %v10774_v41 = vpack.c.bf16 %v10710_v54, %v10710_v54 }
 0xbdd   : > { %v10775_v37 = vpack.c.bf16 %v10711_v63, %v10711_v63  ;;  %v10776_v21 = vpack.c.bf16 %v10712_v16, %v10712_v16  ;;  %v10777_v39 = vpack.c.bf16 %v10713_v6, %v10713_v6  ;;  %v10778_v56 = vpack.c.bf16 %v10714_v49, %v10714_v49 }
 0xbde   : > { %v10779_v55 = vpack.c.bf16 %v10715_v61, %v10715_v61  ;;  %v10780_v43 = vpack.c.bf16 %v10716_v26, %v10716_v26  ;;  %v10781_v58 = vpack.c.bf16 %v10717_v1, %v10717_v1  ;;  %v10782_v32 = vpack.c.bf16 %v10718_v42, %v10718_v42  ;;  %v14721_v42 = vld [vmem:[%s14828_s22 + $0x60] sm:$0xff] }
 0xbdf   : > { %v10783_v38 = vpack.c.bf16 %v10719_v11, %v10719_v11  ;;  %v10784_v28 = vpack.c.bf16 %v10720_v23, %v10720_v23  ;;  %v21634_v36 = vpack.c.bf16 %v19439_v19, %v19437_v31  ;;  %v10905_v24 = vunpack.c.l.b16 %v10769_v35  ;;  %v14722_v11 = vld [vmem:[%s14828_s22 + $0x78] sm:$0xff]  ;;  %v14724_v23 = vld [vmem:[%s14828_s22 + $0x80] sm:$0xff] }
 0xbe0   : > { %v10906_v62 = vunpack.c.l.b16 %v10770_v29  ;;  %v10907_v44 = vunpack.c.l.b16 %v10771_v5  ;;  %v10908_v22 = vunpack.c.l.b16 %v10772_v10  ;;  %v21635_v7 = vpack.c.bf16 %v19443_v48, %v19441_v20  ;;  %v14725_v10 = vld [vmem:[%s14828_s22 + $0x70] sm:$0xff] }
 0xbe1   : > { %v10909_v17 = vunpack.c.l.b16 %v10773_v59  ;;  %v10910_v57 = vunpack.c.l.b16 %v10774_v41  ;;  %v10911_v34 = vunpack.c.l.b16 %v10775_v37  ;;  %v10912_v0 = vunpack.c.l.b16 %v10776_v21  ;;  %v14726_v59 = vld [vmem:[%s14828_s22 + $0x88] sm:$0xff]  ;;  %v14727_v37 = vld [vmem:[%s14828_s22 + $0x90] sm:$0xff] }
 0xbe2   : > { %v10913_v60 = vunpack.c.l.b16 %v10777_v39  ;;  %v10914_v14 = vunpack.c.l.b16 %v10778_v56  ;;  %v10915_v31 = vunpack.c.l.b16 %v10779_v55  ;;  %v10916_v19 = vunpack.c.l.b16 %v10780_v43  ;;  %v14728_v21 = vld [vmem:[%s14828_s22 + $0xa8] sm:$0xff]  ;;  %v14729_v43 = vld [vmem:[%s14828_s22 + $0x98] sm:$0xff] }
 0xbe3   : > { %13775 = vmatmul.mubr.msk.bf16.vlgmr.msra.gmra.mrb[4].mxu1 %vm388_vm0, %v21634_v36  ;;  %v10917_v12 = vunpack.c.l.b16 %v10781_v58  ;;  %v10918_v52 = vunpack.c.l.b16 %v10782_v32  ;;  %v10919_v33 = vunpack.c.l.b16 %v10783_v38  ;;  %v10920_v18 = vunpack.c.l.b16 %v10784_v28  ;;  %v14730_v58 = vld [vmem:[%s14828_s22 + $0xb0] sm:$0xff]  ;;  %v14731_v38 = vld [vmem:[%s14828_s22 + $0xa0] sm:$0xff]  ;;  %v14732_v28 = vld [vmem:[%s14828_s22 + $0xb8] sm:$0xff] }
 0xbe4   : > { %13823 = vmatpush3.bf16.msra.mxu1 %v19625_v51  ;;  %13778 = vmatprep.mubr.msk.bf16.mxu1 %vm388_vm0, %v21635_v7  ;;  %v10969_v27 = vrot.slane %v10906_v62, 7  ;;  %v10972_v15 = vrot.slane %v10907_v44, 6  ;;  %v10975_v51 = vrot.slane %v10908_v22, 5  ;;  %v10978_v45 = vrot.slane %v10909_v17, 4 }
 0xbe5   : > { %v10981_v20 = vrot.slane %v10910_v57, 3  ;;  %v10984_v46 = vrot.slane %v10911_v34, 2  ;;  %v10987_v9 = vrot.slane %v10912_v0, 1  ;;  %v10990_v53 = vrot.slane %v10914_v14, 7 }
 0xbe6   : > { %v10971_v48 = vsel %vm10970_vm4, %v10969_v27, %v10905_v24  ;;  %v10992_v13 = vrot.slane %v10915_v31, 6  ;;  %v21636_v8 = vpack.c.bf16 %v19455_v50, %v19453_v3  ;;  %v10994_v54 = vrot.slane %v10916_v19, 5  ;;  %v21638_v19 = vld [vmem:[#allocation106_spill] sm:$0xff] }
 0xbe7   : > { %v10974_v4 = vsel %vm10973_vm5, %v10972_v15, %v10971_v48  ;;  %v10996_v63 = vrot.slane %v10917_v12, 4  ;;  %v10998_v16 = vrot.slane %v10918_v52, 3  ;;  %v21637_v6 = vpack.c.bf16 %v19459_v47, %v19457_v25  ;;  %v14723_v47 = vld [vmem:[%s14828_s22 + $0x68] sm:$0xff]  ;;  %v21640_v15 = vld [vmem:[#allocation109_spill] sm:$0xff] }
 0xbe8   : > { %v10977_v40 = vsel %vm10976_vm6, %v10975_v51, %v10974_v4  ;;  %v10991_v3 = vsel %vm10970_vm4, %v10990_v53, %v10913_v60  ;;  %v11000_v50 = vrot.slane %v10919_v33, 2  ;;  %v11002_v61 = vrot.slane %v10920_v18, 1  ;;  %v21641_v51 = vld [vmem:[#allocation108_spill] sm:$0xff] }
 0xbe9   : > { %v10980_v49 = vsel %vm10979_vm7, %v10978_v45, %v10977_v40  ;;  %v10993_v1 = vsel %vm10973_vm5, %v10992_v13, %v10991_v3  ;;  %v10071_v25 = vadd.f32 %v14722_v11, %v14721_v42  ;;  %v10072_v35 = vadd.f32 %v14724_v23, %v14723_v47 }
 0xbea   : > { %v10983_v26 = vsel %vm10982_vm8, %v10981_v20, %v10980_v49  ;;  %v10995_v5 = vsel %vm10976_vm6, %v10994_v54, %v10993_v1  ;;  %v10073_v41 = vadd.f32 %v14726_v59, %v14725_v10  ;;  %v10074_v39 = vadd.f32 %v14728_v21, %v14727_v37  ;;  %v21643_v10 = vld [vmem:[#allocation14_spill] sm:$0xff]  ;;  %v21644_v59 = vld [vmem:[#allocation15_spill] sm:$0xff] }
 0xbeb   : > { %13779 = vmatmul.mubr.msk.bf16.gmra.mrb[8].mxu1 %vm388_vm0, %v21636_v8  ;;  %v10986_v29 = vsel %vm10985_vm9, %v10984_v46, %v10983_v26  ;;  %v10997_v55 = vsel %vm10979_vm7, %v10996_v63, %v10995_v5  ;;  %v10075_v32 = vadd.f32 %v14730_v58, %v14729_v43  ;;  %v10076_v36 = vadd.f32 %v14732_v28, %v14731_v38  ;;  %v21647_v43 = vld [vmem:[#allocation17_spill] sm:$0xff] }
 0xbec   : > { %13782 = vmatprep.mubr.msk.bf16.mxu1 %vm388_vm0, %v21637_v6  ;;  %v10989_v56 = vsel %vm10988_vm10, %v10987_v9, %v10986_v29  ;;  %v10999_v24 = vsel %vm10982_vm8, %v10998_v16, %v10997_v55  ;;  %v10181_v62 = vcombine.high %v10071_v25, %v10071_v25  ;;  %v10190_v44 = vcombine.high %v10072_v35, %v10072_v35  ;;  %v21646_v55 = vld [vmem:[#allocation16_spill] sm:$0xff] }
 0xbed   : > { %v10197_v22 = vrot.slane %v10072_v35, %v19379_v30  ;;  %v11001_v7 = vsel %vm10985_vm9, %v11000_v50, %v10999_v24  ;;  %v10213_v17 = vrot.slane %v10073_v41, %v19379_v30  ;;  %v10215_v57 = vcombine.high %v10074_v39, %v10074_v39 }
 0xbee   : > { %v10224_v34 = vcombine.high %v10075_v32, %v10075_v32  ;;  %v11003_v0 = vsel %vm10988_vm10, %v11002_v61, %v11001_v7  ;;  %v10188_v60 = vrot.slane %v10181_v62, %v19379_v30  ;;  %v10204_v14 = vrot.slane %v10190_v44, %v19379_v30 }
 0xbef   : > { %v10205_v31 = vcombine.high %v10197_v22, %v10197_v22  ;;  %v21639_v12 = vpack.c.bf16 %v19463_v2, %v21638_v19  ;;  %v11088_v52 = vpack.c.b16 %v11003_v0, %v10989_v56  ;;  %v10214_v33 = vcombine.high %v10213_v17, %v10213_v17 }
 0xbf0   : > { %v10222_v18 = vrot.slane %v10215_v57, %v19379_v30  ;;  %v10231_v27 = vrot.slane %v10075_v32, %v19379_v30  ;;  %v21642_v45 = vpack.c.bf16 %v21640_v15, %v21641_v51  ;;  %v10189_v20 = vcombine.high %v10188_v60, %v10188_v60 }
 0xbf1   : > { %v10206_v48 = vcombine.high %v10204_v14, %v10204_v14  ;;  %v10238_v46 = vrot.slane %v10224_v34, %v19379_v30  ;;  %v10247_v9 = vrot.slane %v10076_v36, %v19379_v30  ;;  %13874 = vmatprep.mubr.msk.bf16.mxu0 %vm388_vm0, %v11088_v52  ;;  %v12461_v53 = vrot.slane %v10188_v60, 9 }
 0xbf2   : > { %v10223_v2 = vcombine.high %v10222_v18, %v10222_v18  ;;  %v10239_v4 = vcombine.high %v10231_v27, %v10231_v27  ;;  %v12463_v13 = vrot.slane %v10197_v22, 9  ;;  %v12462_v54 = vrot.slane %v10189_v20, 9 }
 0xbf3   : > { %13783 = vmatmul.mubr.msk.bf16.gmra.mrb[12].mxu1 %vm388_vm0, %v21639_v12  ;;  %v10240_v8 = vcombine.high %v10238_v46, %v10238_v46  ;;  %v10248_v40 = vcombine.high %v10247_v9, %v10247_v9  ;;  %v12464_v63 = vrot.slane %v10205_v31, 9  ;;  %v12465_v16 = vrot.slane %v10204_v14, 9 }
 0xbf4   : > { %13786 = vmatprep.mubr.msk.bf16.mxu1 %vm388_vm0, %v21642_v45  ;;  %v12466_v6 = vrot.slane %v10206_v48, 9  ;;  %v12467_v49 = vrot.slane %v10213_v17, 9  ;;  %v12468_v3 = vrot.slane %v10214_v33, 9  ;;  %v12469_v50 = vrot.slane %v10222_v18, 9 }
 0xbf5   : > { %v12470_v61 = vrot.slane %v10223_v2, 9  ;;  %v12471_v26 = vrot.slane %v10231_v27, 9  ;;  %v12472_v1 = vrot.slane %v10239_v4, 9  ;;  %v12473_v42 = vrot.slane %v10238_v46, 9 }
 0xbf6   : > { %v12474_v11 = vrot.slane %v10240_v8, 9  ;;  %v12475_v25 = vrot.slane %v10247_v9, 9  ;;  %v12476_v47 = vrot.slane %v10248_v40, 9  ;;  %v10657_v23 = vadd.f32 %v12461_v53, %v10188_v60 }
 0xbf7   : > { %v10658_v35 = vadd.f32 %v12462_v54, %v10189_v20  ;;  %v10659_v29 = vadd.f32 %v12463_v13, %v10197_v22  ;;  %v10660_v5 = vadd.f32 %v12464_v63, %v10205_v31  ;;  %v21645_v41 = vpack.c.bf16 %v21643_v10, %v21644_v59  ;;  %v21652_v54 = vld [vmem:[#allocation59_spill] sm:$0xff]  ;;  %v21653_v63 = vld [vmem:[#allocation112_spill] sm:$0xff] }
 0xbf8   : > { %v10661_v37 = vadd.f32 %v12465_v16, %v10204_v14  ;;  %v10662_v21 = vadd.f32 %v12466_v6, %v10206_v48  ;;  %v10663_v39 = vadd.f32 %v12467_v49, %v10213_v17  ;;  %v10664_v56 = vadd.f32 %v12468_v3, %v10214_v33 }
 0xbf9   : > { %v21648_v58 = vpack.c.bf16 %v21646_v55, %v21647_v43  ;;  %v10665_v32 = vadd.f32 %v12469_v50, %v10222_v18  ;;  %v10666_v38 = vadd.f32 %v12470_v61, %v10223_v2  ;;  %v10667_v28 = vadd.f32 %v12471_v26, %v10231_v27  ;;  %v21650_v2 = vld [vmem:[#allocation111_spill] sm:$0xff] }
 0xbfa   : > { %v10668_v36 = vadd.f32 %v12472_v1, %v10239_v4  ;;  %v10669_v24 = vadd.f32 %v12473_v42, %v10238_v46  ;;  %v10670_v62 = vadd.f32 %v12474_v11, %v10240_v8  ;;  %v10671_v44 = vadd.f32 %v12475_v25, %v10247_v9  ;;  %v21649_v9 = vld [vmem:[#allocation19_spill] sm:$0xff] }
 0xbfb   : > { %13787 = vmatmul.mubr.msk.bf16.gmra.mrb[16].mxu1 %vm388_vm0, %v21645_v41  ;;  %v10672_v22 = vadd.f32 %v12476_v47, %v10248_v40  ;;  %v10721_v7 = vmul.f32 0.25, %v10657_v23  ;;  %v10722_v57 = vmul.f32 0.25, %v10658_v35  ;;  %v10723_v34 = vmul.f32 0.25, %v10659_v29 }
 0xbfc   : > { %13790 = vmatprep.mubr.msk.bf16.mxu1 %vm388_vm0, %v21648_v58  ;;  %v10724_v0 = vmul.f32 0.25, %v10660_v5  ;;  %v10725_v60 = vmul.f32 0.25, %v10661_v37  ;;  %v10726_v17 = vmul.f32 0.25, %v10662_v21  ;;  %v10727_v14 = vmul.f32 0.25, %v10663_v39 }
 0xbfd   : > { %v10728_v31 = vmul.f32 0.25, %v10664_v56  ;;  %v10729_v19 = vmul.f32 0.25, %v10665_v32  ;;  %v10730_v12 = vmul.f32 0.25, %v10666_v38  ;;  %v10731_v52 = vmul.f32 0.25, %v10667_v28 }
 0xbfe   : > { %v10732_v33 = vmul.f32 0.25, %v10668_v36  ;;  %v10733_v18 = vmul.f32 0.25, %v10669_v24  ;;  %v10734_v15 = vmul.f32 0.25, %v10670_v62  ;;  %v10735_v27 = vmul.f32 0.25, %v10671_v44  ;;  %v21655_v36 = vld [vmem:[#allocation66_spill] sm:$0xff]  ;;  %v21656_v24 = vld [vmem:[#allocation67_spill] sm:$0xff] }
 0xbff   : > { %v10736_v51 = vmul.f32 0.25, %v10672_v22  ;;  %v10785_v45 = vpack.c.bf16 %v10721_v7, %v10721_v7  ;;  %v10786_v20 = vpack.c.bf16 %v10722_v57, %v10722_v57  ;;  %v10787_v48 = vpack.c.bf16 %v10723_v34, %v10723_v34  ;;  %v21658_v34 = vld [vmem:[#allocation68_spill] sm:$0xff] }
 0xc00   : > { %v10788_v46 = vpack.c.bf16 %v10724_v0, %v10724_v0  ;;  %v21651_v4 = vpack.c.bf16 %v21649_v9, %v21650_v2  ;;  %v10789_v53 = vpack.c.bf16 %v10725_v60, %v10725_v60  ;;  %v10790_v13 = vpack.c.bf16 %v10726_v17, %v10726_v17  ;;  %v21659_v0 = vld [vmem:[#allocation69_spill] sm:$0xff]  ;;  %v14735_v2 = vld [vmem:[%s14828_s22 + $0xc8] sm:$0xff] }
 0xc01   : > { %v10791_v8 = vpack.c.bf16 %v10727_v14, %v10727_v14  ;;  %v10792_v40 = vpack.c.bf16 %v10728_v31, %v10728_v31  ;;  %v21654_v16 = vpack.c.bf16 %v21652_v54, %v21653_v63  ;;  %v10793_v6 = vpack.c.bf16 %v10729_v19, %v10729_v19 }
 0xc02   : > { %v10794_v49 = vpack.c.bf16 %v10730_v12, %v10730_v12  ;;  %v10795_v3 = vpack.c.bf16 %v10731_v52, %v10731_v52  ;;  %v10796_v50 = vpack.c.bf16 %v10732_v33, %v10732_v33  ;;  %v10797_v61 = vpack.c.bf16 %v10733_v18, %v10733_v18 }
 0xc03   : > { %13791 = vmatmul.mubr.msk.bf16.gmra.mrb[20].mxu1 %vm388_vm0, %v21651_v4  ;;  %v10798_v26 = vpack.c.bf16 %v10734_v15, %v10734_v15  ;;  %v10799_v1 = vpack.c.bf16 %v10735_v27, %v10735_v27  ;;  %v10800_v42 = vpack.c.bf16 %v10736_v51, %v10736_v51  ;;  %v10921_v11 = vunpack.c.l.b16 %v10785_v45  ;;  %v14733_v45 = vld [vmem:[%s14828_s22 + $0xc0] sm:$0xff] }
 0xc04   : > { %13794 = vmatprep.mubr.msk.bf16.mxu1 %vm388_vm0, %v21654_v16  ;;  %v10922_v25 = vunpack.c.l.b16 %v10786_v20  ;;  %v10923_v47 = vunpack.c.l.b16 %v10787_v48  ;;  %v10924_v23 = vunpack.c.l.b16 %v10788_v46  ;;  %v10925_v35 = vunpack.c.l.b16 %v10789_v53  ;;  %v14734_v20 = vld [vmem:[%s14828_s22 + $0xd8] sm:$0xff]  ;;  %v14736_v4 = vld [vmem:[%s14828_s22 + $0xe0] sm:$0xff] }
 0xc05   : > { %v10926_v29 = vunpack.c.l.b16 %v10790_v13  ;;  %v10927_v5 = vunpack.c.l.b16 %v10791_v8  ;;  %v10928_v10 = vunpack.c.l.b16 %v10792_v40  ;;  %v10929_v59 = vunpack.c.l.b16 %v10793_v6  ;;  %v14737_v13 = vld [vmem:[%s14828_s22 + $0xd0] sm:$0xff]  ;;  %v14738_v8 = vld [vmem:[%s14828_s22 + $0xe8] sm:$0xff]  ;;  %v14739_v16 = vld [vmem:[%s14828_s22 + $0xf8] sm:$0xff] }
 0xc06   : > { %v10930_v41 = vunpack.c.l.b16 %v10794_v49  ;;  %v10931_v37 = vunpack.c.l.b16 %v10795_v3  ;;  %v10932_v21 = vunpack.c.l.b16 %v10796_v50  ;;  %v10933_v39 = vunpack.c.l.b16 %v10797_v61  ;;  %v14740_v6 = vld [vmem:[%s14828_s22 + $0x110] sm:$0xff]  ;;  %v14741_v3 = vld [vmem:[%s14828_s22 + $0x100] sm:$0xff]  ;;  %v14742_v50 = vld [vmem:[%s14828_s22 + $0x118] sm:$0xff] }
 0xc07   : > { %v10934_v56 = vunpack.c.l.b16 %v10798_v26  ;;  %v10935_v55 = vunpack.c.l.b16 %v10799_v1  ;;  %v10936_v43 = vunpack.c.l.b16 %v10800_v42  ;;  %v11004_v58 = vrot.slane %v10922_v25, 7 }
 0xc08   : > { %v11006_v32 = vrot.slane %v10923_v47, 6  ;;  %v11008_v38 = vrot.slane %v10924_v23, 5  ;;  %v11010_v28 = vrot.slane %v10925_v35, 4  ;;  %v21657_v62 = vpack.c.bf16 %v21655_v36, %v21656_v24 }
 0xc09   : > { %v11012_v44 = vrot.slane %v10926_v29, 3  ;;  %v11014_v22 = vrot.slane %v10927_v5, 2  ;;  %v11016_v7 = vrot.slane %v10928_v10, 1  ;;  %v11018_v57 = vrot.slane %v10930_v41, 7  ;;  %v21661_v29 = vld [vmem:[#allocation70_spill] sm:$0xff]  ;;  %v21662_v5 = vld [vmem:[#allocation71_spill] sm:$0xff] }
 0xc0a   : > { %v21660_v60 = vpack.c.bf16 %v21658_v34, %v21659_v0  ;;  %v11005_v17 = vsel %vm10970_vm4, %v11004_v58, %v10921_v11  ;;  %v11020_v14 = vrot.slane %v10931_v37, 6  ;;  %v11022_v31 = vrot.slane %v10932_v21, 5  ;;  %v21664_v21 = vld [vmem:[#allocation21_spill] sm:$0xff] }
 0xc0b   : > { %13795 = vmatmul.mubr.msk.bf16.gmra.mrb[24].mxu1 %vm388_vm0, %v21657_v62  ;;  %v11024_v19 = vrot.slane %v10933_v39, 4  ;;  %v11007_v12 = vsel %vm10973_vm5, %v11006_v32, %v11005_v17  ;;  %v11019_v52 = vsel %vm10970_vm4, %v11018_v57, %v10929_v59  ;;  %v11026_v33 = vrot.slane %v10934_v56, 3 }
 0xc0c   : > { %13798 = vmatprep.mubr.msk.bf16.mxu1 %vm388_vm0, %v21660_v60  ;;  %v11028_v18 = vrot.slane %v10935_v55, 2  ;;  %v11009_v15 = vsel %vm10976_vm6, %v11008_v38, %v11007_v12  ;;  %v11021_v27 = vsel %vm10973_vm5, %v11020_v14, %v11019_v52  ;;  %v11030_v51 = vrot.slane %v10936_v43, 1  ;;  %v21666_v55 = vld [vmem:[#allocation72_spill] sm:$0xff]  ;;  %v21667_v43 = vld [vmem:[#allocation73_spill] sm:$0xff] }
 0xc0d   : > { %v10077_v48 = vadd.f32 %v14734_v20, %v14733_v45  ;;  %v11011_v46 = vsel %vm10979_vm7, %v11010_v28, %v11009_v15  ;;  %v11023_v9 = vsel %vm10976_vm6, %v11022_v31, %v11021_v27  ;;  %v10078_v53 = vadd.f32 %v14736_v4, %v14735_v2  ;;  %v21670_v2 = vld [vmem:[#allocation75_spill] sm:$0xff] }
 0xc0e   : > { %v10079_v40 = vadd.f32 %v14738_v8, %v14737_v13  ;;  %v11013_v54 = vsel %vm10982_vm8, %v11012_v44, %v11011_v46  ;;  %v11025_v63 = vsel %vm10979_vm7, %v11024_v19, %v11023_v9  ;;  %v10081_v49 = vadd.f32 %v14740_v6, %v14739_v16  ;;  %v21669_v9 = vld [vmem:[#allocation74_spill] sm:$0xff] }
 0xc0f   : > { %v10082_v61 = vadd.f32 %v14742_v50, %v14741_v3  ;;  %v11015_v26 = vsel %vm10985_vm9, %v11014_v22, %v11013_v54  ;;  %v11027_v1 = vsel %vm10982_vm8, %v11026_v33, %v11025_v63  ;;  %v10249_v42 = vcombine.high %v10077_v48, %v10077_v48  ;;  %v21672_v54 = vld [vmem:[#allocation76_spill] sm:$0xff]  ;;  %v21673_v63 = vld [vmem:[#allocation77_spill] sm:$0xff] }
 0xc10   : > { %v10258_v11 = vcombine.high %v10078_v53, %v10078_v53  ;;  %v11017_v25 = vsel %vm10988_vm10, %v11016_v7, %v11015_v26  ;;  %v11029_v47 = vsel %vm10985_vm9, %v11028_v18, %v11027_v1  ;;  %v10265_v23 = vrot.slane %v10078_v53, %v19379_v30 }
 0xc11   : > { %v10281_v35 = vrot.slane %v10079_v40, %v19379_v30  ;;  %v21663_v10 = vpack.c.bf16 %v21661_v29, %v21662_v5  ;;  %v11031_v59 = vsel %vm10988_vm10, %v11030_v51, %v11029_v47  ;;  %v10256_v41 = vrot.slane %v10249_v42, %v19379_v30 }
 0xc12   : > { %v10272_v37 = vrot.slane %v10258_v11, %v19379_v30  ;;  %v21665_v39 = vcombine.high %v21664_v21, %v21664_v21  ;;  %v21668_v58 = vpack.c.bf16 %v21666_v55, %v21667_v43  ;;  %v11089_v32 = vpack.c.b16 %v11031_v59, %v11017_v25 }
 0xc13   : > { %13799 = vmatmul.mubr.msk.bf16.gmra.mrb[28].mxu1 %vm388_vm0, %v21663_v10  ;;  %v10273_v38 = vcombine.high %v10265_v23, %v10265_v23  ;;  %v10282_v28 = vcombine.high %v10281_v35, %v10281_v35  ;;  %v10292_v36 = vcombine.high %v10081_v49, %v10081_v49  ;;  %v10257_v24 = vcombine.high %v10256_v41, %v10256_v41 }
 0xc14   : > { %v10290_v56 = vrot.slane %v21665_v39, %v19379_v30  ;;  %13802 = vmatprep.mubr.msk.bf16.mxu1 %vm388_vm0, %v21668_v58  ;;  %v10274_v62 = vcombine.high %v10272_v37, %v10272_v37  ;;  %v10299_v22 = vrot.slane %v10081_v49, %v19379_v30  ;;  %13875 = vmatmul.mubr.msk.bf16.vlgmr.msra.gmra.mrb[48].mxu0 %vm388_vm0, %v11089_v32  ;;  %v12477_v34 = vrot.slane %v10256_v41, 9 }
 0xc15   : > { %v10306_v7 = vrot.slane %v10292_v36, %v19379_v30  ;;  %v10315_v57 = vrot.slane %v10082_v61, %v19379_v30  ;;  %v12479_v0 = vrot.slane %v10265_v23, 9  ;;  %v12478_v17 = vrot.slane %v10257_v24, 9  ;;  %v21675_v36 = vld [vmem:[#allocation78_spill] sm:$0xff] }
 0xc16   : > { %v10291_v44 = vcombine.high %v10290_v56, %v10290_v56  ;;  %v10307_v60 = vcombine.high %v10299_v22, %v10299_v22  ;;  %v12480_v14 = vrot.slane %v10273_v38, 9  ;;  %v12481_v31 = vrot.slane %v10272_v37, 9 }
 0xc17   : > { %v10308_v19 = vcombine.high %v10306_v7, %v10306_v7  ;;  %v10316_v12 = vcombine.high %v10315_v57, %v10315_v57  ;;  %v12482_v52 = vrot.slane %v10274_v62, 9  ;;  %v12483_v33 = vrot.slane %v10281_v35, 9 }
 0xc18   : > { %v12484_v18 = vrot.slane %v10282_v28, 9  ;;  %v12485_v15 = vrot.slane %v10290_v56, 9  ;;  %v12486_v27 = vrot.slane %v10291_v44, 9  ;;  %v12487_v51 = vrot.slane %v10299_v22, 9 }
 0xc19   : > { %v12488_v45 = vrot.slane %v10307_v60, 9  ;;  %v12489_v20 = vrot.slane %v10306_v7, 9  ;;  %v12490_v48 = vrot.slane %v10308_v19, 9  ;;  %v12491_v46 = vrot.slane %v10315_v57, 9 }
 0xc1a   : > { %v21671_v4 = vpack.c.bf16 %v21669_v9, %v21670_v2  ;;  %v12492_v53 = vrot.slane %v10316_v12, 9  ;;  %v10673_v13 = vadd.f32 %v12477_v34, %v10256_v41  ;;  %v10674_v8 = vadd.f32 %v12478_v17, %v10257_v24  ;;  %v21676_v24 = vld [vmem:[#allocation79_spill] sm:$0xff]  ;;  %v21678_v34 = vld [vmem:[#allocation80_spill] sm:$0xff] }
 0xc1b   : > { %v10675_v40 = vadd.f32 %v12479_v0, %v10265_v23  ;;  %v21674_v16 = vpack.c.bf16 %v21672_v54, %v21673_v63  ;;  %v10676_v6 = vadd.f32 %v12480_v14, %v10273_v38  ;;  %v10677_v49 = vadd.f32 %v12481_v31, %v10272_v37  ;;  %v21679_v0 = vld [vmem:[#allocation81_spill] sm:$0xff] }
 0xc1c   : > { %13803 = vmatmul.mubr.msk.bf16.gmra.mrb[32].mxu1 %vm388_vm0, %v21671_v4  ;;  %v10678_v3 = vadd.f32 %v12482_v52, %v10274_v62  ;;  %v10679_v50 = vadd.f32 %v12483_v33, %v10281_v35  ;;  %v10680_v61 = vadd.f32 %v12484_v18, %v10282_v28  ;;  %v10681_v26 = vadd.f32 %v12485_v15, %v10290_v56 }
 0xc1d   : > { %13806 = vmatprep.mubr.msk.bf16.mxu1 %vm388_vm0, %v21674_v16  ;;  %v10682_v1 = vadd.f32 %v12486_v27, %v10291_v44  ;;  %v10683_v42 = vadd.f32 %v12487_v51, %v10299_v22  ;;  %v10684_v11 = vadd.f32 %v12488_v45, %v10307_v60  ;;  %v10685_v25 = vadd.f32 %v12489_v20, %v10306_v7 }
 0xc1e   : > { %v10686_v47 = vadd.f32 %v12490_v48, %v10308_v19  ;;  %v10687_v29 = vadd.f32 %v12491_v46, %v10315_v57  ;;  %v10688_v5 = vadd.f32 %v12492_v53, %v10316_v12  ;;  %v10737_v10 = vmul.f32 0.25, %v10673_v13 }
 0xc1f   : > { %v10738_v23 = vmul.f32 0.25, %v10674_v8  ;;  %v10739_v59 = vmul.f32 0.25, %v10675_v40  ;;  %v10740_v41 = vmul.f32 0.25, %v10676_v6  ;;  %v10741_v21 = vmul.f32 0.25, %v10677_v49 }
 0xc20   : > { %v10742_v39 = vmul.f32 0.25, %v10678_v3  ;;  %v10743_v55 = vmul.f32 0.25, %v10679_v50  ;;  %v10744_v43 = vmul.f32 0.25, %v10680_v61  ;;  %v10745_v37 = vmul.f32 0.25, %v10681_v26  ;;  %v21681_v50 = vld [vmem:[#allocation82_spill] sm:$0xff]  ;;  %v21682_v61 = vld [vmem:[#allocation83_spill] sm:$0xff] }
 0xc21   : > { %v10746_v58 = vmul.f32 0.25, %v10682_v1  ;;  %v10747_v35 = vmul.f32 0.25, %v10683_v42  ;;  %v10748_v32 = vmul.f32 0.25, %v10684_v11  ;;  %v10749_v56 = vmul.f32 0.25, %v10685_v25 }
 0xc22   : > { %v10750_v38 = vmul.f32 0.25, %v10686_v47  ;;  %v10751_v28 = vmul.f32 0.25, %v10687_v29  ;;  %v21677_v62 = vpack.c.bf16 %v21675_v36, %v21676_v24  ;;  %v10752_v44 = vmul.f32 0.25, %v10688_v5  ;;  %v21684_v47 = vld [vmem:[#allocation84_spill] sm:$0xff]  ;;  %v21685_v29 = vld [vmem:[#allocation85_spill] sm:$0xff]  ;;  %v21687_v36 = vld [vmem:[#allocation11_spill] sm:$0xff] }
 0xc23   : > { %v10801_v22 = vpack.c.bf16 %v10737_v10, %v10737_v10  ;;  %v10802_v7 = vpack.c.bf16 %v10738_v23, %v10738_v23  ;;  %v10803_v57 = vpack.c.bf16 %v10739_v59, %v10739_v59  ;;  %v21680_v60 = vpack.c.bf16 %v21678_v34, %v21679_v0 }
 0xc24   : > { %13807 = vmatmul.mubr.msk.bf16.gmra.mrb[36].mxu1 %vm388_vm0, %v21677_v62  ;;  %v10804_v17 = vpack.c.bf16 %v10740_v41, %v10740_v41  ;;  %v10805_v14 = vpack.c.bf16 %v10741_v21, %v10741_v21  ;;  %v10806_v31 = vpack.c.bf16 %v10742_v39, %v10742_v39  ;;  %v10807_v19 = vpack.c.bf16 %v10743_v55, %v10743_v55 }
 0xc25   : > { %13810 = vmatprep.mubr.msk.bf16.mxu1 %vm388_vm0, %v21680_v60  ;;  %v10808_v12 = vpack.c.bf16 %v10744_v43, %v10744_v43  ;;  %v10809_v52 = vpack.c.bf16 %v10745_v37, %v10745_v37  ;;  %v10810_v33 = vpack.c.bf16 %v10746_v58, %v10746_v58  ;;  %v10811_v18 = vpack.c.bf16 %v10747_v35, %v10747_v35 }
 0xc26   : > { %v10812_v15 = vpack.c.bf16 %v10748_v32, %v10748_v32  ;;  %v10813_v27 = vpack.c.bf16 %v10749_v56, %v10749_v56  ;;  %v10814_v51 = vpack.c.bf16 %v10750_v38, %v10750_v38  ;;  %v10815_v45 = vpack.c.bf16 %v10751_v28, %v10751_v28 }
 0xc27   : > { %v10816_v20 = vpack.c.bf16 %v10752_v44, %v10752_v44  ;;  %v10937_v48 = vunpack.c.l.b16 %v10801_v22  ;;  %v10938_v46 = vunpack.c.l.b16 %v10802_v7  ;;  %v10939_v9 = vunpack.c.l.b16 %v10803_v57  ;;  %v21688_v22 = vld [vmem:[#allocation104_spill] sm:$0xff]  ;;  %v21689_v57 = vld [vmem:[#allocation105_spill] sm:$0xff] }
 0xc28   : > { %v10940_v2 = vunpack.c.l.b16 %v10804_v17  ;;  %v10941_v4 = vunpack.c.l.b16 %v10805_v14  ;;  %v10942_v53 = vunpack.c.l.b16 %v10806_v31  ;;  %v10943_v13 = vunpack.c.l.b16 %v10807_v19  ;;  %v21690_v17 = vld [vmem:[#allocation110_spill] sm:$0xff] }
 0xc29   : > { %v10944_v8 = vunpack.c.l.b16 %v10808_v12  ;;  %v10945_v40 = vunpack.c.l.b16 %v10809_v52  ;;  %v10946_v54 = vunpack.c.l.b16 %v10810_v33  ;;  %v10947_v63 = vunpack.c.l.b16 %v10811_v18  ;;  %v21691_v18 = vld [vmem:[#allocation114_spill] sm:$0xff] }
 0xc2a   : > { %v10948_v16 = vunpack.c.l.b16 %v10812_v15  ;;  %v10949_v6 = vunpack.c.l.b16 %v10813_v27  ;;  %v10950_v49 = vunpack.c.l.b16 %v10814_v51  ;;  %v10951_v3 = vunpack.c.l.b16 %v10815_v45  ;;  %v21692_v15 = vld [vmem:[#allocation113_spill] sm:$0xff] }
 0xc2b   : > { %v21683_v26 = vpack.c.bf16 %v21681_v50, %v21682_v61  ;;  %v10952_v1 = vunpack.c.l.b16 %v10816_v20  ;;  %v11032_v42 = vrot.slane %v10938_v46, 7  ;;  %v11034_v11 = vrot.slane %v10939_v9, 6  ;;  %v21694_v46 = vld [vmem:[#allocation94_spill] sm:$0xff] }
 0xc2c   : > { %v11036_v25 = vrot.slane %v10940_v2, 5  ;;  %v21686_v5 = vpack.c.bf16 %v21684_v47, %v21685_v29  ;;  %v11038_v10 = vrot.slane %v10941_v4, 4  ;;  %v11040_v23 = vrot.slane %v10942_v53, 3  ;;  %v21695_v9 = vld [vmem:[#allocation10_spill] sm:$0xff]  ;;  %v21697_v53 = vld [vmem:[#allocation91_spill] sm:$0xff] }
 0xc2d   : > { %13811 = vmatmul.mubr.msk.bf16.gmra.mrb[40].mxu1 %vm388_vm0, %v21683_v26  ;;  %v11042_v59 = vrot.slane %v10943_v13, 2  ;;  %v11044_v41 = vrot.slane %v10944_v8, 1  ;;  %v11033_v21 = vsel %vm10970_vm4, %v11032_v42, %v10937_v48  ;;  %v11046_v39 = vrot.slane %v10946_v54, 7 }
 0xc2e   : > { %13814 = vmatprep.mubr.msk.bf16.mxu1 %vm388_vm0, %v21686_v5  ;;  %v11048_v55 = vrot.slane %v10947_v63, 6  ;;  %v11050_v43 = vrot.slane %v10948_v16, 5  ;;  %v11035_v37 = vsel %vm10973_vm5, %v11034_v11, %v11033_v21  ;;  %v11052_v58 = vrot.slane %v10949_v6, 4 }
 0xc2f   : > { %v11054_v35 = vrot.slane %v10950_v49, 3  ;;  %v11056_v32 = vrot.slane %v10951_v3, 2  ;;  %v11037_v56 = vsel %vm10976_vm6, %v11036_v25, %v11035_v37  ;;  %v11047_v38 = vsel %vm10970_vm4, %v11046_v39, %v10945_v40 }
 0xc30   : > { %v11058_v28 = vrot.slane %v10952_v1, 1  ;;  %v10341_v24 = vcombine.high %v21687_v36, %v21687_v36  ;;  %v11039_v62 = vsel %vm10979_vm7, %v11038_v10, %v11037_v56  ;;  %v11049_v44 = vsel %vm10973_vm5, %v11048_v55, %v11047_v38  ;;  %v21699_v1 = vld [vmem:[#allocation13_spill] sm:$0xff]  ;;  %v21700_v10 = vld [vmem:[#allocation12_spill] sm:$0xff] }
 0xc31   : > { %v10342_v7 = vcombine.high %v21688_v22, %v21688_v22  ;;  %v10350_v34 = vcombine.high %v21689_v57, %v21689_v57  ;;  %v11041_v0 = vsel %vm10982_vm8, %v11040_v23, %v11039_v62  ;;  %v11051_v60 = vsel %vm10976_vm6, %v11050_v43, %v11049_v44  ;;  %v21702_v56 = vld [vmem:[#allocation88_spill] sm:$0xff]  ;;  %v21703_v38 = vld [vmem:[#allocation25_spill] sm:$0xff] }
 0xc32   : > { %v12494_v14 = vrot.slane %v21690_v17, 9  ;;  %v12496_v31 = vrot.slane %v10341_v24, 9  ;;  %v11043_v19 = vsel %vm10985_vm9, %v11042_v59, %v11041_v0  ;;  %v11053_v12 = vsel %vm10979_vm7, %v11052_v58, %v11051_v60  ;;  %v8843_v0 = vld [vmem:[#allocation2 + $0x51] sm:$0xff] }
 0xc33   : > { %v12497_v52 = vrot.slane %v21688_v22, 9  ;;  %v12498_v33 = vrot.slane %v10342_v7, 9  ;;  %v21693_v27 = vpack.c.bf16 %v21691_v18, %v21692_v15  ;;  %v11045_v51 = vsel %vm10988_vm10, %v11044_v41, %v11043_v19  ;;  %v21708_v18 = vld [vmem:[#allocation64_spill] sm:$0xff] }
 0xc34   : > { %v11055_v45 = vsel %vm10982_vm8, %v11054_v35, %v11053_v12  ;;  %v12499_v20 = vrot.slane %v21689_v57, 9  ;;  %v12500_v48 = vrot.slane %v10350_v34, 9  ;;  %v21696_v2 = vpack.c.bf16 %v21694_v46, %v21695_v9  ;;  %v21701_v35 = vld [vmem:[#allocation58_spill] sm:$0xff]  ;;  %v8845_v46 = vld [vmem:[#allocation2 + $0x61] sm:$0xff] }
 0xc35   : > { %13815 = vmatmul.mubr.msk.bf16.gmra.mrb[44].mxu1 %vm388_vm0, %v21693_v27  ;;  %v11057_v4 = vsel %vm10985_vm9, %v11056_v32, %v11055_v45  ;;  %v21698_v13 = vrot.slane %v21697_v53, 9  ;;  %v10690_v40 = vadd.f32 %v12494_v14, %v21690_v17  ;;  %v10692_v54 = vadd.f32 %v12496_v31, %v10341_v24 }
 0xc36   : > { %13818 = vmatprep.mubr.msk.bf16.mxu1 %vm388_vm0, %v21696_v2  ;;  %v11059_v63 = vsel %vm10988_vm10, %v11058_v28, %v11057_v4  ;;  %v10693_v16 = vadd.f32 %v12497_v52, %v21688_v22  ;;  %v10694_v6 = vadd.f32 %v12498_v33, %v10342_v7  ;;  %v10695_v49 = vadd.f32 %v12499_v20, %v21689_v57  ;;  %v21705_v22 = vld [vmem:[#allocation86_spill] sm:$0xff]  ;;  %v21706_v7 = vld [vmem:[#allocation87_spill] sm:$0xff]  ;;  %v21709_v4 = vld [vmem:[#allocation65_spill] sm:$0xff] }
 0xc37   : > { %v10689_v8 = vadd.f32 %v21698_v13, %v21697_v53  ;;  %v11090_v3 = vpack.c.b16 %v11059_v63, %v11045_v51  ;;  %v10696_v50 = vadd.f32 %v12500_v48, %v10350_v34  ;;  %v10754_v26 = vmul.f32 0.25, %v10690_v40  ;;  %v8842_v34 = vld [vmem:[#allocation2 + $0x49] sm:$0xff]  ;;  %v8844_v48 = vld [vmem:[#allocation2 + $0x59] sm:$0xff] }
 0xc38   : > { %v10755_v42 = vmul.f32 0.25, %v21699_v1  ;;  %v10756_v11 = vmul.f32 0.25, %v10692_v54  ;;  %v10757_v25 = vmul.f32 0.25, %v10693_v16  ;;  %v10758_v47 = vmul.f32 0.25, %v10694_v6  ;;  %v21710_v53 = vld [vmem:[#allocation93_spill] sm:$0xff]  ;;  %v21712_v63 = vld [vmem:[#allocation95_spill] sm:$0xff] }
 0xc39   : > { %v10753_v61 = vmul.f32 0.25, %v10689_v8  ;;  %13878 = vmatprep.mubr.msk.bf16.mxu0 %vm388_vm0, %v11090_v3  ;;  %v10759_v29 = vmul.f32 0.25, %v10695_v49  ;;  %v10760_v5 = vmul.f32 0.25, %v10696_v50  ;;  %v10768_v23 = vmul.f32 0.25, %v21700_v10 }
 0xc3a   : > { %v10818_v41 = vpack.c.bf16 %v10754_v26, %v10754_v26  ;;  %v10819_v21 = vpack.c.bf16 %v10755_v42, %v10755_v42  ;;  %v10820_v39 = vpack.c.bf16 %v10756_v11, %v10756_v11  ;;  %v10821_v55 = vpack.c.bf16 %v10757_v25, %v10757_v25 }
 0xc3b   : > { %v10817_v59 = vpack.c.bf16 %v10753_v61, %v10753_v61  ;;  %v10822_v43 = vpack.c.bf16 %v10758_v47, %v10758_v47  ;;  %v10823_v37 = vpack.c.bf16 %v10759_v29, %v10759_v29  ;;  %v10824_v58 = vpack.c.bf16 %v10760_v5, %v10760_v5  ;;  %v21714_v61 = vld [vmem:[#allocation99_spill] sm:$0xff]  ;;  %v21716_v47 = vld [vmem:[#allocation101_spill] sm:$0xff] }
 0xc3c   : > { %v10830_v32 = vpack.c.bf16 %v21701_v35, %v21701_v35  ;;  %v21704_v28 = vpack.c.bf16 %v21702_v56, %v21703_v38  ;;  %v10832_v36 = vpack.c.bf16 %v10768_v23, %v10768_v23  ;;  %v10954_v62 = vunpack.c.l.b16 %v10818_v41  ;;  %v8849_v35 = vld [vmem:[#allocation2 + $0x81] sm:$0xff]  ;;  %v8850_v38 = vld [vmem:[#allocation2 + $0x89] sm:$0xff] }
 0xc3d   : > { %v10953_v24 = vunpack.c.l.b16 %v10817_v59  ;;  %v10955_v44 = vunpack.c.l.b16 %v10819_v21  ;;  %v21707_v57 = vpack.c.bf16 %v21705_v22, %v21706_v7  ;;  %v10956_v60 = vunpack.c.l.b16 %v10820_v39  ;;  %v8854_v22 = vld [vmem:[#allocation2 + $0xa9] sm:$0xff]  ;;  %v8855_v7 = vld [vmem:[#allocation2 + $0xb1] sm:$0xff] }
 0xc3e   : > { %13819 = vmatmul.mubr.msk.bf16.gmra.mrb[48].mxu1 %vm388_vm0, %v21704_v28  ;;  %v10957_v17 = vunpack.c.l.b16 %v10821_v55  ;;  %v10958_v14 = vunpack.c.l.b16 %v10822_v43  ;;  %v10959_v31 = vunpack.c.l.b16 %v10823_v37  ;;  %v10960_v19 = vunpack.c.l.b16 %v10824_v58  ;;  %v8846_v55 = vld [vmem:[#allocation2 + $0x69] sm:$0xff]  ;;  %v8847_v43 = vld [vmem:[#allocation2 + $0x71] sm:$0xff]  ;;  %v8848_v58 = vld [vmem:[#allocation2 + $0x79] sm:$0xff] }
 0xc3f   : > { %13824 = vmatprep.mubr.msk.bf16.mxu1 %vm388_vm0, %v21707_v57  ;;  %v10966_v12 = vunpack.c.l.b16 %v10830_v32  ;;  %v10968_v52 = vunpack.c.l.b16 %v10832_v36  ;;  %v11060_v33 = vrot.slane %v10954_v62, 7  ;;  %v11084_v15 = vrot.slane %v21708_v18, 2  ;;  %v8851_v28 = vld [vmem:[#allocation2 + $0x91] sm:$0xff]  ;;  %v8852_v36 = vld [vmem:[#allocation2 + $0x99] sm:$0xff] }
 0xc40   : > { %v11062_v27 = vrot.slane %v10955_v44, 6  ;;  %v11064_v51 = vrot.slane %v10956_v60, 5  ;;  %v11066_v45 = vrot.slane %v10957_v17, 4  ;;  %v8889_v20 = vpack.c.bf16 %v8843_v0, %v8842_v34  ;;  %v8856_v57 = vld [vmem:[#allocation2 + $0xb9] sm:$0xff]  ;;  %v8857_v34 = vld [vmem:[#allocation2 + $0xc1] sm:$0xff]  ;;  %v8858_v17 = vld [vmem:[#allocation2 + $0xc9] sm:$0xff] }
 0xc41   : > { %v11061_v9 = vsel %vm10970_vm4, %v11060_v33, %v10953_v24  ;;  %v11068_v2 = vrot.slane %v10958_v14, 3  ;;  %v21711_v13 = vrot.slane %v21710_v53, 7  ;;  %v11070_v54 = vrot.slane %v10959_v31, 2  ;;  %v8853_v24 = vld [vmem:[#allocation2 + $0xa1] sm:$0xff]  ;;  %v8859_v14 = vld [vmem:[#allocation2 + $0xd1] sm:$0xff]  ;;  %v8860_v31 = vld [vmem:[#allocation2 + $0xd9] sm:$0xff] }
 0xc42   : > { %v11063_v40 = vsel %vm10973_vm5, %v11062_v27, %v11061_v9  ;;  %v21713_v16 = vrot.slane %v21712_v63, 6  ;;  %v11082_v49 = vrot.slane %v10966_v12, 3  ;;  %v11072_v50 = vrot.slane %v10960_v19, 1  ;;  %v8861_v19 = vld [vmem:[#allocation2 + $0xe1] sm:$0xff]  ;;  %v8862_v33 = vld [vmem:[#allocation2 + $0xe9] sm:$0xff]  ;;  %v8863_v18 = vld [vmem:[#allocation2 + $0xf1] sm:$0xff] }
 0xc43   : > { %v11075_v8 = vsel %vm10970_vm4, %v21711_v13, %v21709_v4  ;;  %v11065_v3 = vsel %vm10976_vm6, %v11064_v51, %v11063_v40  ;;  %v21715_v26 = vrot.slane %v21714_v61, 5  ;;  %v11086_v42 = vrot.slane %v10968_v52, 1  ;;  %v8865_v27 = vld [vmem:[#allocation2 + $0x101] sm:$0xff]  ;;  %v8870_v53 = vld [vmem:[#allocation2 + $0x129] sm:$0xff]  ;;  %v8871_v13 = vld [vmem:[#allocation2 + $0x131] sm:$0xff] }
 0xc44   : > { %v11077_v6 = vsel %vm10973_vm5, %v21713_v16, %v11075_v8  ;;  %v8890_v11 = vpack.c.bf16 %v8845_v46, %v8844_v48  ;;  %v11067_v25 = vsel %vm10979_vm7, %v11066_v45, %v11065_v3  ;;  %v21717_v29 = vrot.slane %v21716_v47, 4  ;;  %v8867_v48 = vld [vmem:[#allocation2 + $0x111] sm:$0xff]  ;;  %v8868_v46 = vld [vmem:[#allocation2 + $0x119] sm:$0xff]  ;;  %v8869_v9 = vld [vmem:[#allocation2 + $0x121] sm:$0xff] }
 0xc45   : > { %v11079_v1 = vsel %vm10976_vm6, %v21715_v26, %v11077_v6  ;;  %v11069_v10 = vsel %vm10982_vm8, %v11068_v2, %v11067_v25  ;;  %v8891_v32 = vpack.c.bf16 %v8847_v43, %v8846_v55  ;;  %v8892_v56 = vpack.c.bf16 %v8849_v35, %v8848_v58  ;;  %v8872_v8 = vld [vmem:[#allocation2 + $0x139] sm:$0xff]  ;;  %v8873_v40 = vld [vmem:[#allocation2 + $0x141] sm:$0xff]  ;;  %v8874_v16 = vld [vmem:[#allocation2 + $0x149] sm:$0xff] }
 0xc46   : > { %v11081_v5 = vsel %vm10979_vm7, %v21717_v29, %v11079_v1  ;;  %13825 = vmatmul.mubr.msk.bf16.vlgmr.msra.gmra.mrb[4].mxu1 %vm388_vm0, %v8889_v20  ;;  %v11071_v59 = vsel %vm10985_vm9, %v11070_v54, %v11069_v10  ;;  %v8893_v62 = vpack.c.bf16 %v8851_v28, %v8850_v38  ;;  %v8894_v44 = vpack.c.bf16 %v8853_v24, %v8852_v36  ;;  %v8866_v20 = vld [vmem:[#allocation2 + $0x109] sm:$0xff]  ;;  %v8875_v6 = vld [vmem:[#allocation2 + $0x151] sm:$0xff]  ;;  %v8877_v3 = vld [vmem:[#allocation2 + $0x161] sm:$0xff] }
 0xc47   : > { %v11083_v23 = vsel %vm10982_vm8, %v11082_v49, %v11081_v5  ;;  %13828 = vmatprep.mubr.msk.bf16.mxu1 %vm388_vm0, %v8890_v11  ;;  %v11073_v21 = vsel %vm10988_vm10, %v11072_v50, %v11071_v59  ;;  %v8895_v0 = vpack.c.bf16 %v8855_v7, %v8854_v22  ;;  %v8896_v60 = vpack.c.bf16 %v8857_v34, %v8856_v57  ;;  %v8876_v49 = vld [vmem:[#allocation2 + $0x159] sm:$0xff]  ;;  %v8878_v26 = vld [vmem:[#allocation2 + $0x169] sm:$0xff]  ;;  %v8879_v1 = vld [vmem:[#allocation2 + $0x171] sm:$0xff] }
 0xc48   : > { %v11085_v41 = vsel %vm10985_vm9, %v11084_v15, %v11083_v23  ;;  %v8897_v12 = vpack.c.bf16 %v8859_v14, %v8858_v17  ;;  %v8898_v52 = vpack.c.bf16 %v8861_v19, %v8860_v31  ;;  %v8864_v15 = vld [vmem:[#allocation2 + $0xf9] sm:$0xff]  ;;  %v8899_v51 = vpack.c.bf16 %v8863_v18, %v8862_v33  ;;  %v8881_v11 = vld [vmem:[#allocation2 + $0x181] sm:$0xff]  ;;  %v8882_v29 = vld [vmem:[#allocation2 + $0x189] sm:$0xff] }
 0xc49   : > { %v11087_v39 = vsel %vm10988_vm10, %v11086_v42, %v11085_v41  ;;  %v8900_v45 = vpack.c.bf16 %v8865_v27, %v8864_v15  ;;  %v8901_v2 = vpack.c.bf16 %v8867_v48, %v8866_v20  ;;  %v8902_v4 = vpack.c.bf16 %v8869_v9, %v8868_v46  ;;  %v8880_v42 = vld [vmem:[#allocation2 + $0x179] sm:$0xff]  ;;  %v8883_v5 = vld [vmem:[#allocation2 + $0x191] sm:$0xff]  ;;  %v8885_v23 = vld [vmem:[#allocation2 + $0x1a1] sm:$0xff] }
 0xc4a   : > { %v11091_v37 = vpack.c.b16 %v11087_v39, %v11073_v21  ;;  %v8903_v54 = vpack.c.bf16 %v8871_v13, %v8870_v53  ;;  %v8904_v63 = vpack.c.bf16 %v8873_v40, %v8872_v8  ;;  %v8905_v50 = vpack.c.bf16 %v8875_v6, %v8874_v16  ;;  %v8884_v10 = vld [vmem:[#allocation2 + $0x199] sm:$0xff]  ;;  %v8886_v21 = vld [vmem:[#allocation2 + $0x1a9] sm:$0xff]  ;;  %v8887_v39 = vld [vmem:[#allocation2 + $0x1b1] sm:$0xff] }
 0xc4b   : > { %v8906_v61 = vpack.c.bf16 %v8877_v3, %v8876_v49  ;;  %v8907_v25 = vpack.c.bf16 %v8879_v1, %v8878_v26  ;;  %v8908_v47 = vpack.c.bf16 %v8881_v11, %v8880_v42  ;;  %v8909_v59 = vpack.c.bf16 %v8883_v5, %v8882_v29 }
 0xc4c   : > { %13879 = vmatmul.mubr.msk.bf16.gmra.mrb[52].mxu0 %vm388_vm0, %v11091_v37  ;;  %v8910_v41 = vpack.c.bf16 %v8885_v23, %v8884_v10  ;;  %v8911_v55 = vpack.c.bf16 %v8887_v39, %v8886_v21 }
 0xc4e   : > { %13829 = vmatmul.mubr.msk.bf16.gmra.mrb[8].mxu1 %vm388_vm0, %v8891_v32  ;;  %v12444_v32 = vld [vmem:[%s20587_s8] ss:$0 sm:$0xff] }
 0xc4f   : > { %13832 = vmatprep.mubr.msk.bf16.mxu1 %vm388_vm0, %v8892_v56  ;;  %v19913_v56 = vld [vmem:[%s20589_s10] ss:$0 sm:$0xff]  ;;  %v9972_v38 = vcombine.high %v12444_v32, %v12444_v32  ;;  %v19920_v22 = vrot.slane %v12444_v32, %v19379_v30 }
 0xc51   : > { %v19923_v7 = vrot.slane %v9972_v38, %v19379_v30 }
 0xc53   : > { %v19937_v31 = vcombine.high %v19923_v7, %v19923_v7  ;;  %v19973_v9 = vrot.slane %v19923_v7, 1 }
 0xc55   : > { %v19982_v8 = vrot.slane %v19937_v31, 1 }
 0xc56   : > { %13833 = vmatmul.mubr.msk.bf16.gmra.mrb[12].mxu1 %vm388_vm0, %v8893_v62 }
 0xc57   : > { %13836 = vmatprep.mubr.msk.bf16.mxu1 %vm388_vm0, %v8894_v44 }
 0xc5e   : > { %13837 = vmatmul.mubr.msk.bf16.gmra.mrb[16].mxu1 %vm388_vm0, %v8895_v0  ;;  %v19927_v0 = vcombine.high %v19920_v22, %v19920_v22 }
 0xc5f   : > { %13840 = vmatprep.mubr.msk.bf16.mxu1 %vm388_vm0, %v8896_v60 }
 0xc60   : > { %v19956_v27 = vrot.slane %v19927_v0, 1 }
 0xc66   : > { %13841 = vmatmul.mubr.msk.bf16.gmra.mrb[20].mxu1 %vm388_vm0, %v8897_v12 }
 0xc67   : > { %13844 = vmatprep.mubr.msk.bf16.mxu1 %vm388_vm0, %v8898_v52 }
 0xc6e   : > { %13845 = vmatmul.mubr.msk.bf16.gmra.mrb[24].mxu1 %vm388_vm0, %v8899_v51  ;;  %v19959_v51 = vrot.slane %v19920_v22, 1 }
 0xc6f   : > { %13848 = vmatprep.mubr.msk.bf16.mxu1 %vm388_vm0, %v8900_v45 }
 0xc76   : > { %13849 = vmatmul.mubr.msk.bf16.gmra.mrb[28].mxu1 %vm388_vm0, %v8901_v2  ;;  %v21718_v2 = vld [vmem:[#allocation3_spill] sm:$0xff] }
 0xc77   : > { %13852 = vmatprep.mubr.msk.bf16.mxu1 %vm388_vm0, %v8902_v4  ;;  %v19976_v4 = vsub.s32 0, %v21718_v2 }
 0xc7e   : > { %13853 = vmatmul.mubr.msk.bf16.gmra.mrb[32].mxu1 %vm388_vm0, %v8903_v54 }
 0xc7f   : > { %13856 = vmatprep.mubr.msk.bf16.mxu1 %vm388_vm0, %v8904_v63 }
 0xc86   : > { %13857 = vmatmul.mubr.msk.bf16.gmra.mrb[36].mxu1 %vm388_vm0, %v8905_v50 }
 0xc87   : > { %13860 = vmatprep.mubr.msk.bf16.mxu1 %vm388_vm0, %v8906_v61 }
 0xc8e   : > { %13861 = vmatmul.mubr.msk.bf16.gmra.mrb[40].mxu1 %vm388_vm0, %v8907_v25 }
 0xc8f   : > { %13864 = vmatprep.mubr.msk.bf16.mxu1 %vm388_vm0, %v8908_v47 }
 0xc96   : > { %13865 = vmatmul.mubr.msk.bf16.gmra.mrb[44].mxu1 %vm388_vm0, %v8909_v59 }
 0xc97   : > { %13868 = vmatprep.mubr.msk.bf16.mxu1 %vm388_vm0, %v8910_v41 }
 0xc9e   : > { %13869 = vmatmul.mubr.msk.bf16.gmra.mrb[48].mxu1 %vm388_vm0, %v8911_v55 }
 0xce7   : > { %v13876_v43 = vpop.f32.mrb[48].mxu0 }
 0xce8   : > { %v11141_v37 = vpop.f32.mrb[49].mxu0  ;;  %v11150_v28 = vadd.f32 %v13876_v43, %v19913_v56 }
 0xce9   : > { %v13877_v58 = vpop.f32.mrb[50].mxu0  ;;  %v11142_v24 = vadd.f32 %v19913_v56, %v11141_v37 }
 0xcea   : > { %v11144_v35 = vpop.f32.mrb[51].mxu0  ;;  %v11153_v36 = vadd.f32 %v13877_v58, %v19913_v56  ;;  %v11214_v62 = vcombine.high %v11150_v28, %v11150_v28  ;;  %v19930_v60 = vrot.slane %v11150_v28, %v19379_v30 }
 0xceb   : > { %v11145_v44 = vadd.f32 %v19913_v56, %v11144_v35  ;;  %v11180_v57 = vcombine.high %v11142_v24, %v11142_v24  ;;  %v19940_v19 = vrot.slane %v11142_v24, %v19379_v30 }
 0xcec   : > { %v11231_v34 = vcombine.high %v11153_v36, %v11153_v36  ;;  %v19933_v17 = vrot.slane %v11214_v62, %v19379_v30  ;;  %v19946_v52 = vrot.slane %v11153_v36, %v19379_v30  ;;  %v19950_v33 = vcombine.high %v19930_v60, %v19930_v60 }
 0xced   : > { %v11197_v14 = vcombine.high %v11145_v44, %v11145_v44  ;;  %v19943_v12 = vrot.slane %v11180_v57, %v19379_v30  ;;  %v19963_v45 = vcombine.high %v19940_v19, %v19940_v19  ;;  %v19966_v20 = vrot.slane %v11145_v44, %v19379_v30 }
 0xcee   : > { %v19953_v18 = vrot.slane %v11231_v34, %v19379_v30  ;;  %v19970_v46 = vcombine.high %v19933_v17, %v19933_v17  ;;  %v19991_v63 = vcombine.high %v19946_v52, %v19946_v52  ;;  %v11316_v3 = vrot.slane %v19940_v19, 1 }
 0xcef   : > { %v19979_v53 = vrot.slane %v11197_v14, %v19379_v30  ;;  %v19987_v54 = vcombine.high %v19943_v12, %v19943_v12  ;;  %v20004_v42 = vcombine.high %v19966_v20, %v19966_v20 }
 0xcf0   : > { %v19997_v50 = vcombine.high %v19953_v18, %v19953_v18 }
 0xcf1   : > { %v20010_v29 = vcombine.high %v19979_v53, %v19979_v53 }
 0xd19   : > { %v13826_v15 = vpop.f32.mrb[4].mxu1 }
 0xd1a   : > { %v9023_v48 = vpop.f32.mrb[5].mxu1 }
 0xd1b   : > { %v13827_v13 = vpop.f32.mrb[6].mxu1 }
 0xd1c   : > { %v9262_v16 = vadd.f32 %v13827_v13, %v9023_v48  ;;  %v9026_v6 = vpop.f32.mrb[7].mxu1 }
 0xd1e   : > { %v9310_v11 = vcombine.high %v9262_v16, %v9262_v16 }
 0xd1f   : > { %v13880_v5 = vpop.f32.mrb[52].mxu0 }
 0xd20   : > { %v11166_v41 = vadd.f32 %v13880_v5, %v19913_v56  ;;  %v11157_v21 = vpop.f32.mrb[53].mxu0  ;;  %v9317_v39 = vrot.slane %v9310_v11, %v19379_v30 }
 0xd21   : > { %v11158_v37 = vadd.f32 %v19913_v56, %v11157_v21  ;;  %v13881_v58 = vpop.f32.mrb[54].mxu0  ;;  %v20020_v35 = vpop.f32.mrb[8].mxu1 }
 0xd22   : > { %v11282_v28 = vcombine.high %v11166_v41, %v11166_v41  ;;  %v20025_v36 = vrot.slane %v11166_v41, %v19379_v30  ;;  %v20027_v24 = vpop.f32.mrb[55].mxu0  ;;  %v9318_v62 = vcombine.high %v9317_v39, %v9317_v39  ;;  %v12380_v44 = vrot.slane %v9317_v39, 9  ;;  %v9039_v57 = vpop.f32.mrb[9].mxu1 }
 0xd23   : > { %21720 = vst [vmem:[#allocation26_spill] sm:$0xff] %v20027_v24  ;;  %v11248_v14 = vcombine.high %v11158_v37, %v11158_v37  ;;  %v9263_v48 = vadd.f32 %v9039_v57, %v9026_v6  ;;  %v13831_v2 = vpop.f32.mrb[10].mxu1  ;;  %v20034_v16 = vrot.slane %v11158_v37, %v19379_v30  ;;  %v20037_v11 = vadd.f32 %v13881_v58, %v19913_v56 }
 0xd24   : > { %21719 = vst [vmem:[#allocation27_spill] sm:$0xff] %v20025_v36  ;;  %v20031_v13 = vrot.slane %v11282_v28, %v19379_v30  ;;  %v12381_v5 = vrot.slane %v9318_v62, 9  ;;  %v9838_v41 = vadd.f32 %v12380_v44, %v9317_v39  ;;  %v9042_v21 = vpop.f32.mrb[11].mxu1  ;;  %v20041_v47 = vcombine.high %v20025_v36, %v20025_v36 }
 0xd25   : > { %v20044_v55 = vrot.slane %v11248_v14, %v19379_v30  ;;  %v9319_v6 = vcombine.high %v9263_v48, %v9263_v48  ;;  %v9326_v28 = vrot.slane %v9263_v48, %v19379_v30  ;;  %v9264_v57 = vadd.f32 %v13826_v15, %v9042_v21 }
 0xd26   : > { %21721 = vst [vmem:[#allocation29_spill] sm:$0xff] %v20041_v47  ;;  %v9839_v59 = vadd.f32 %v12381_v5, %v9318_v62  ;;  %v9902_v23 = vmul.f32 0.25, %v9838_v41  ;;  %v20050_v56 = vcombine.high %v20031_v13, %v20031_v13  ;;  %v20054_v39 = vcombine.high %v20034_v16, %v20034_v16 }
 0xd27   : > { %v9333_v58 = vrot.slane %v9319_v6, %v19379_v30  ;;  %v9334_v44 = vcombine.high %v9326_v28, %v9326_v28  ;;  %v12382_v14 = vrot.slane %v9326_v28, 9  ;;  %v9342_v25 = vrot.slane %v9264_v57, %v19379_v30 }
 0xd28   : > { %21722 = vst [vmem:[#allocation28_spill] sm:$0xff] %v20050_v56  ;;  %v9903_v48 = vmul.f32 0.25, %v9839_v59  ;;  %v10001_v15 = vadd.f32 %v19920_v22, %v9902_v23  ;;  %v20062_v5 = vcombine.high %v20044_v55, %v20044_v55 }
 0xd29   : > { %v9335_v41 = vcombine.high %v9333_v58, %v9333_v58  ;;  %v12383_v21 = vrot.slane %v9334_v44, 9  ;;  %v12384_v37 = vrot.slane %v9333_v58, 9  ;;  %v9840_v61 = vadd.f32 %v12382_v14, %v9326_v28  ;;  %v13834_v49 = vpop.f32.mrb[12].mxu1 }
 0xd2a   : > { %v9343_v40 = vcombine.high %v9342_v25, %v9342_v25  ;;  %v12386_v6 = vrot.slane %v9342_v25, 9  ;;  %v10002_v43 = vadd.f32 %v19959_v51, %v9903_v48  ;;  %v11412_v57 = vadd.f32 %v19940_v19, %v10001_v15  ;;  %v9055_v59 = vpop.f32.mrb[13].mxu1 }
 0xd2b   : > { %v12385_v34 = vrot.slane %v9335_v41, 9  ;;  %v9841_v23 = vadd.f32 %v12383_v21, %v9334_v44  ;;  %v9842_v38 = vadd.f32 %v12384_v37, %v9333_v58  ;;  %v9904_v62 = vmul.f32 0.25, %v9840_v61  ;;  %v13835_v32 = vpop.f32.mrb[14].mxu1 }
 0xd2c   : > { %v12387_v10 = vrot.slane %v9343_v40, 9  ;;  %v9844_v1 = vadd.f32 %v12386_v6, %v9342_v25  ;;  %v11413_v26 = vadd.f32 %v11316_v3, %v10002_v43  ;;  %v11543_v28 = vrot.slane %v11412_v57, %v19976_v4  ;;  %v9058_v14 = vpop.f32.mrb[15].mxu1 }
 0xd2d   : > { %v9843_v47 = vadd.f32 %v12385_v34, %v9335_v41  ;;  %v9905_v36 = vmul.f32 0.25, %v9841_v23  ;;  %v9906_v24 = vmul.f32 0.25, %v9842_v38  ;;  %v10003_v48 = vadd.f32 %v19927_v0, %v9904_v62 }
 0xd2e   : > { %v9845_v15 = vadd.f32 %v12387_v10, %v9343_v40  ;;  %v9908_v56 = vmul.f32 0.25, %v9844_v1  ;;  %v11547_v44 = vrot.slane %v11413_v26, %v19976_v4  ;;  %v9266_v37 = vadd.f32 %v13834_v49, %v13831_v2 }
 0xd2f   : > { %v9907_v61 = vmul.f32 0.25, %v9843_v47  ;;  %v10004_v58 = vadd.f32 %v19956_v27, %v9905_v36  ;;  %v10005_v25 = vadd.f32 %v19923_v7, %v9906_v24  ;;  %v11414_v19 = vadd.f32 %v19963_v45, %v10003_v48 }
 0xd30   : > { %v9909_v3 = vmul.f32 0.25, %v9845_v15  ;;  %v10007_v43 = vadd.f32 %v19937_v31, %v9908_v56  ;;  %v11796_v34 = vsel %vm10970_vm4, %v11547_v44, %v11543_v28  ;;  %v9353_v38 = vcombine.high %v9266_v37, %v9266_v37 }
 0xd31   : > { %v10006_v40 = vadd.f32 %v19973_v9, %v9907_v61  ;;  %v21723_v1 = vrot.slane %v19963_v45, 1  ;;  %v11416_v49 = vadd.f32 %v19943_v12, %v10005_v25  ;;  %v11551_v47 = vrot.slane %v11414_v19, %v19976_v4  ;;  %v20081_v10 = vpop.f32.mrb[16].mxu1 }
 0xd32   : > { %v10008_v36 = vadd.f32 %v19982_v8, %v9909_v3  ;;  %v11418_v24 = vadd.f32 %v19987_v54, %v10007_v43  ;;  %v9360_v2 = vrot.slane %v9266_v37, %v19379_v30  ;;  %v9367_v56 = vrot.slane %v9353_v38, %v19379_v30  ;;  %v9071_v62 = vpop.f32.mrb[17].mxu1 }
 0xd33   : > { %v11415_v26 = vadd.f32 %v21723_v1, %v10004_v58  ;;  %v21724_v41 = vrot.slane %v19943_v12, 1  ;;  %v11559_v6 = vrot.slane %v11416_v49, %v19976_v4  ;;  %v11797_v57 = vsel %vm10973_vm5, %v11551_v47, %v11796_v34  ;;  %v13839_v23 = vpop.f32.mrb[18].mxu1 }
 0xd34   : > { %v21725_v28 = vrot.slane %v19987_v54, 1  ;;  %v11567_v15 = vrot.slane %v11418_v24, %v19976_v4  ;;  %v9368_v44 = vcombine.high %v9360_v2, %v9360_v2  ;;  %v9369_v37 = vcombine.high %v9367_v56, %v9367_v56  ;;  %v9074_v61 = vpop.f32.mrb[19].mxu1 }
 0xd35   : > { %v11417_v21 = vadd.f32 %v21724_v41, %v10006_v40  ;;  %v11555_v45 = vrot.slane %v11415_v26, %v19976_v4  ;;  %v12390_v25 = vrot.slane %v9360_v2, 9  ;;  %v12392_v19 = vrot.slane %v9367_v56, 9 }
 0xd36   : > { %v11419_v48 = vadd.f32 %v21725_v28, %v10008_v36  ;;  %v12391_v34 = vrot.slane %v9368_v44, 9  ;;  %v12393_v38 = vrot.slane %v9369_v37, 9  ;;  %v9267_v26 = vadd.f32 %v13835_v32, %v9055_v59 }
 0xd37   : > { %v11563_v58 = vrot.slane %v11417_v21, %v19976_v4  ;;  %v11798_v12 = vsel %vm10976_vm6, %v11555_v45, %v11797_v57  ;;  %v9848_v40 = vadd.f32 %v12390_v25, %v9360_v2  ;;  %v9850_v1 = vadd.f32 %v12392_v19, %v9367_v56 }
 0xd38   : > { %v11571_v3 = vrot.slane %v11419_v48, %v19976_v4  ;;  %v11799_v43 = vsel %vm10979_vm7, %v11559_v6, %v11798_v12  ;;  %v9849_v47 = vadd.f32 %v12391_v34, %v9368_v44  ;;  %v9851_v36 = vadd.f32 %v12393_v38, %v9369_v37 }
 0xd39   : > { %v11800_v54 = vsel %vm10982_vm8, %v11563_v58, %v11799_v43  ;;  %v9265_v24 = vadd.f32 %v20020_v35, %v9058_v14  ;;  %v9912_v21 = vmul.f32 0.25, %v9848_v40  ;;  %v9914_v45 = vmul.f32 0.25, %v9850_v1  ;;  %v20110_v57 = vpop.f32.mrb[20].mxu1 }
 0xd3a   : > { %v11801_v49 = vsel %vm10985_vm9, %v11567_v15, %v11800_v54  ;;  %v9376_v6 = vrot.slane %v9267_v26, %v19379_v30  ;;  %v9913_v28 = vmul.f32 0.25, %v9849_v47  ;;  %v9915_v2 = vmul.f32 0.25, %v9851_v36  ;;  %v9087_v59 = vpop.f32.mrb[21].mxu1 }
 0xd3b   : > { %v11802_v41 = vsel %vm10988_vm10, %v11571_v3, %v11801_v49  ;;  %v9344_v56 = vcombine.high %v9265_v24, %v9265_v24  ;;  %v9268_v32 = vadd.f32 %v13839_v23, %v9071_v62  ;;  %v10011_v48 = vadd.f32 %v19927_v0, %v9912_v21  ;;  %v13843_v14 = vpop.f32.mrb[22].mxu1 }
 0xd3c   : > { %11860 = vst.msk [vmem:[%s20103_s24] sm:$0xff] %vm388_vm0, %v11802_v41  ;;  %v9377_v15 = vcombine.high %v9376_v6, %v9376_v6  ;;  %v12394_v44 = vrot.slane %v9376_v6, 9  ;;  %v10013_v35 = vadd.f32 %v19923_v7, %v9914_v45  ;;  %v10012_v37 = vadd.f32 %v19956_v27, %v9913_v28  ;;  %v9090_v19 = vpop.f32.mrb[23].mxu1 }
 0xd3d   : > { %v9351_v58 = vrot.slane %v9344_v56, %v19379_v30  ;;  %v10014_v12 = vadd.f32 %v19973_v9, %v9915_v2  ;;  %v9378_v25 = vcombine.high %v9268_v32, %v9268_v32  ;;  %v20120_v62 = vadd.f32 %v20004_v42, %v10011_v48 }
 0xd3e   : > { %v12395_v3 = vrot.slane %v9377_v15, 9  ;;  %v9852_v43 = vadd.f32 %v12394_v44, %v9376_v6  ;;  %v20123_v23 = vadd.f32 %v19979_v53, %v10013_v35  ;;  %v21726_v54 = vrot.slane %v20004_v42, 1 }
 0xd3f   : > { %v9352_v34 = vcombine.high %v9351_v58, %v9351_v58  ;;  %v12388_v38 = vrot.slane %v9351_v58, 9  ;;  %v21727_v1 = vrot.slane %v19979_v53, 1  ;;  %v11583_v36 = vrot.slane %v20120_v62, %v19976_v4 }
 0xd40   : > { %v20127_v40 = vadd.f32 %v21726_v54, %v10012_v37  ;;  %v9853_v49 = vadd.f32 %v12395_v3, %v9377_v15  ;;  %v9916_v47 = vmul.f32 0.25, %v9852_v43  ;;  %v11591_v24 = vrot.slane %v20123_v23, %v19976_v4 }
 0xd41   : > { %v20131_v26 = vadd.f32 %v21727_v1, %v10014_v12  ;;  %v12389_v41 = vrot.slane %v9352_v34, 9  ;;  %v9846_v21 = vadd.f32 %v12388_v38, %v9351_v58  ;;  %v9385_v28 = vrot.slane %v9378_v25, %v19379_v30  ;;  %v13846_v56 = vpop.f32.mrb[24].mxu1 }
 0xd42   : > { %v11587_v45 = vrot.slane %v20127_v40, %v19976_v4  ;;  %v9917_v6 = vmul.f32 0.25, %v9853_v49  ;;  %v10015_v53 = vadd.f32 %v19937_v31, %v9916_v47  ;;  %v9269_v2 = vadd.f32 %v9087_v59, %v9074_v61  ;;  %v20146_v35 = vpop.f32.mrb[25].mxu1 }
 0xd43   : > { %v9847_v32 = vadd.f32 %v12389_v41, %v9352_v34  ;;  %v9910_v48 = vmul.f32 0.25, %v9846_v21  ;;  %v9270_v15 = vadd.f32 %v20081_v10, %v9090_v19  ;;  %v20144_v44 = vadd.f32 %v13846_v56, %v13843_v14  ;;  %v20152_v43 = vpop.f32.mrb[26].mxu1 }
 0xd44   : > { %v10016_v37 = vadd.f32 %v19982_v8, %v9917_v6  ;;  %v20150_v58 = vadd.f32 %v20010_v29, %v10015_v53  ;;  %v9386_v12 = vcombine.high %v9385_v28, %v9385_v28  ;;  %v12396_v3 = vrot.slane %v9385_v28, 9  ;;  %v20156_v10 = vpop.f32.mrb[27].mxu1 }
 0xd45   : > { %v9911_v25 = vmul.f32 0.25, %v9847_v32  ;;  %v10009_v61 = vadd.f32 %v19920_v22, %v9910_v48  ;;  %v9387_v59 = vcombine.high %v9269_v2, %v9269_v2  ;;  %v9394_v34 = vrot.slane %v9269_v2, %v19379_v30 }
 0xd46   : > { %v21728_v14 = vrot.slane %v20010_v29, 1  ;;  %v11599_v38 = vrot.slane %v20150_v58, %v19976_v4  ;;  %v12397_v54 = vrot.slane %v9386_v12, 9  ;;  %v9854_v1 = vadd.f32 %v12396_v3, %v9385_v28 }
 0xd47   : > { %v10010_v49 = vadd.f32 %v19959_v51, %v9911_v25  ;;  %v11420_v47 = vadd.f32 %v19966_v20, %v10009_v61  ;;  %v9401_v41 = vrot.slane %v9387_v59, %v19379_v30  ;;  %v9402_v21 = vcombine.high %v9394_v34, %v9394_v34 }
 0xd48   : > { %v11427_v19 = vadd.f32 %v21728_v14, %v10016_v37  ;;  %v9855_v53 = vadd.f32 %v12397_v54, %v9386_v12  ;;  %v9918_v2 = vmul.f32 0.25, %v9854_v1  ;;  %v12398_v56 = vrot.slane %v9394_v34, 9 }
 0xd49   : > { %v21729_v29 = vrot.slane %v19966_v20, 1  ;;  %v11575_v48 = vrot.slane %v11420_v47, %v19976_v4  ;;  %v9403_v37 = vcombine.high %v9401_v41, %v9401_v41  ;;  %v12399_v58 = vrot.slane %v9402_v21, 9  ;;  %v20170_v14 = vpop.f32.mrb[28].mxu1 }
 0xd4a   : > { %v11603_v6 = vrot.slane %v11427_v19, %v19976_v4  ;;  %v9919_v28 = vmul.f32 0.25, %v9855_v53  ;;  %v10017_v3 = vadd.f32 %v19920_v22, %v9918_v2  ;;  %v12400_v25 = vrot.slane %v9401_v41, 9  ;;  %v20174_v1 = vpop.f32.mrb[29].mxu1 }
 0xd4b   : > { %v11421_v32 = vadd.f32 %v21729_v29, %v10010_v49  ;;  %v9856_v61 = vadd.f32 %v12398_v56, %v9394_v34  ;;  %v12401_v19 = vrot.slane %v9403_v37, 9  ;;  %v9857_v12 = vadd.f32 %v12399_v58, %v9402_v21  ;;  %v20178_v29 = vpop.f32.mrb[30].mxu1 }
 0xd4c   : > { %v9410_v54 = vrot.slane %v9270_v15, %v19379_v30  ;;  %v10018_v20 = vadd.f32 %v19959_v51, %v9919_v28  ;;  %v11428_v49 = vadd.f32 %v19930_v60, %v10017_v3  ;;  %v9858_v47 = vadd.f32 %v12400_v25, %v9401_v41 }
 0xd4d   : > { %v11579_v59 = vrot.slane %v11421_v32, %v19976_v4  ;;  %v9920_v53 = vmul.f32 0.25, %v9856_v61  ;;  %v9859_v2 = vadd.f32 %v12401_v19, %v9403_v37  ;;  %v9921_v56 = vmul.f32 0.25, %v9857_v12  ;;  %v20181_v32 = vpop.f32.mrb[31].mxu1 }
 0xd4e   : > { %v9411_v42 = vcombine.high %v9410_v54, %v9410_v54  ;;  %v21730_v21 = vrot.slane %v19930_v60, 1  ;;  %v11607_v41 = vrot.slane %v11428_v49, %v19976_v4  ;;  %v9922_v28 = vmul.f32 0.25, %v9858_v47 }
 0xd4f   : > { %v11803_v34 = vsel %vm10970_vm4, %v11579_v59, %v11575_v48  ;;  %v9923_v37 = vmul.f32 0.25, %v9859_v2  ;;  %v10019_v3 = vadd.f32 %v19927_v0, %v9920_v53  ;;  %v10020_v25 = vadd.f32 %v19956_v27, %v9921_v56 }
 0xd50   : > { %v11804_v15 = vsel %vm10973_vm5, %v11583_v36, %v11803_v34  ;;  %v11429_v58 = vadd.f32 %v21730_v21, %v10018_v20  ;;  %v10021_v36 = vadd.f32 %v19923_v7, %v9922_v28  ;;  %v12402_v61 = vrot.slane %v9410_v54, 9 }
 0xd51   : > { %v11805_v48 = vsel %vm10976_vm6, %v11587_v45, %v11804_v15  ;;  %v21731_v40 = vrot.slane %v20131_v26, %v19976_v4  ;;  %v10022_v59 = vadd.f32 %v19973_v9, %v9923_v37  ;;  %v11430_v19 = vadd.f32 %v19950_v33, %v10019_v3  ;;  %v20213_v53 = vpop.f32.mrb[32].mxu1 }
 0xd52   : > { %v11806_v62 = vsel %vm10979_vm7, %v11591_v24, %v11805_v48  ;;  %v11611_v60 = vrot.slane %v11429_v58, %v19976_v4  ;;  %v21732_v12 = vrot.slane %v19950_v33, 1  ;;  %v11432_v49 = vadd.f32 %v19933_v17, %v10021_v36  ;;  %v20220_v33 = vpop.f32.mrb[33].mxu1 }
 0xd53   : > { %v11807_v45 = vsel %vm10982_vm8, %v21731_v40, %v11806_v62  ;;  %v12403_v47 = vrot.slane %v9411_v42, 9  ;;  %v21733_v34 = vrot.slane %v19933_v17, 1  ;;  %v11615_v56 = vrot.slane %v11430_v19, %v19976_v4  ;;  %v20227_v28 = vpop.f32.mrb[34].mxu1 }
 0xd54   : > { %v11431_v23 = vadd.f32 %v21732_v12, %v10020_v25  ;;  %v11808_v24 = vsel %vm10985_vm9, %v11599_v38, %v11807_v45  ;;  %v11810_v20 = vsel %vm10970_vm4, %v11611_v60, %v11607_v41  ;;  %v11623_v38 = vrot.slane %v11432_v49, %v19976_v4  ;;  %v20235_v3 = vpop.f32.mrb[35].mxu1 }
 0xd55   : > { %v11809_v26 = vsel %vm10988_vm10, %v11603_v6, %v11808_v24  ;;  %v11433_v2 = vadd.f32 %v21733_v34, %v10022_v59  ;;  %v9860_v21 = vadd.f32 %v12402_v61, %v9410_v54  ;;  %v9861_v58 = vadd.f32 %v12403_v47, %v9411_v42 }
 0xd56   : > { %v11619_v15 = vrot.slane %v11431_v23, %v19976_v4  ;;  %11861 = vst.msk [vmem:[%s20103_s24 + $0x8] sm:$0xff] %vm388_vm0, %v11809_v26  ;;  %v9421_v41 = vcombine.high %v20144_v44, %v20144_v44  ;;  %v11811_v6 = vsel %vm10973_vm5, %v11615_v56, %v11810_v20  ;;  %v9428_v48 = vrot.slane %v20144_v44, %v19379_v30 }
 0xd57   : > { %v11627_v17 = vrot.slane %v11433_v2, %v19976_v4  ;;  %v9273_v37 = vadd.f32 %v20152_v43, %v20146_v35  ;;  %v9924_v42 = vmul.f32 0.25, %v9860_v21  ;;  %v9925_v25 = vmul.f32 0.25, %v9861_v58 }
 0xd58   : > { %v11812_v54 = vsel %vm10976_vm6, %v11619_v15, %v11811_v6  ;;  %v9435_v62 = vrot.slane %v9421_v41, %v19379_v30  ;;  %v9436_v36 = vcombine.high %v9428_v48, %v9428_v48  ;;  %v12406_v61 = vrot.slane %v9428_v48, 9 }
 0xd59   : > { %v11813_v60 = vsel %vm10979_vm7, %v11623_v38, %v11812_v54  ;;  %v9444_v40 = vrot.slane %v9273_v37, %v19379_v30  ;;  %v10023_v45 = vadd.f32 %v19937_v31, %v9924_v42  ;;  %v10024_v44 = vadd.f32 %v19982_v8, %v9925_v25  ;;  %v20247_v34 = vpop.f32.mrb[36].mxu1 }
 0xd5a   : > { %v11814_v35 = vsel %vm10982_vm8, %v11627_v17, %v11813_v60  ;;  %v9437_v43 = vcombine.high %v9435_v62, %v9435_v62  ;;  %v12407_v59 = vrot.slane %v9436_v36, 9  ;;  %v12408_v19 = vrot.slane %v9435_v62, 9  ;;  %v20249_v21 = vpop.f32.mrb[37].mxu1 }
 0xd5b   : > { %v9864_v12 = vadd.f32 %v12406_v61, %v9428_v48  ;;  %v9445_v23 = vcombine.high %v9444_v40, %v9444_v40  ;;  %v11434_v24 = vadd.f32 %v19970_v46, %v10023_v45  ;;  %v21734_v20 = vrot.slane %v19970_v46, 1  ;;  %v20253_v48 = vpop.f32.mrb[38].mxu1 }
 0xd5c   : > { %v12409_v47 = vrot.slane %v9437_v43, 9  ;;  %v12410_v26 = vrot.slane %v9444_v40, 9  ;;  %v9865_v2 = vadd.f32 %v12407_v59, %v9436_v36  ;;  %v9866_v56 = vadd.f32 %v12408_v19, %v9435_v62  ;;  %v20256_v25 = vpop.f32.mrb[39].mxu1 }
 0xd5d   : > { %v11435_v49 = vadd.f32 %v21734_v20, %v10024_v44  ;;  %v9928_v15 = vmul.f32 0.25, %v9864_v12  ;;  %v12411_v38 = vrot.slane %v9445_v23, 9  ;;  %v11631_v58 = vrot.slane %v11434_v24, %v19976_v4 }
 0xd5e   : > { %v9867_v17 = vadd.f32 %v12409_v47, %v9437_v43  ;;  %v9868_v6 = vadd.f32 %v12410_v26, %v9444_v40  ;;  %v9929_v46 = vmul.f32 0.25, %v9865_v2  ;;  %v9930_v37 = vmul.f32 0.25, %v9866_v56 }
 0xd5f   : > { %v11635_v41 = vrot.slane %v11435_v49, %v19976_v4  ;;  %v10027_v54 = vadd.f32 %v19927_v0, %v9928_v15  ;;  %v9869_v42 = vadd.f32 %v12411_v38, %v9445_v23  ;;  %v11815_v62 = vsel %vm10985_vm9, %v11631_v58, %v11814_v35 }
 0xd60   : > { %v9931_v60 = vmul.f32 0.25, %v9867_v17  ;;  %v9932_v36 = vmul.f32 0.25, %v9868_v6  ;;  %v9271_v61 = vadd.f32 %v20110_v57, %v20156_v10  ;;  %v10028_v40 = vadd.f32 %v19956_v27, %v9929_v46 }
 0xd61   : > { %v11816_v45 = vsel %vm10988_vm10, %v11635_v41, %v11815_v62  ;;  %v10029_v44 = vadd.f32 %v19923_v7, %v9930_v37  ;;  %v20265_v43 = vadd.f32 %v19991_v63, %v10027_v54  ;;  %v9933_v19 = vmul.f32 0.25, %v9869_v42  ;;  %v20291_v56 = vpop.f32.mrb[40].mxu1 }
 0xd62   : > { %11862 = vst.msk [vmem:[%s20103_s24 + $0x10] sm:$0xff] %vm388_vm0, %v11816_v45  ;;  %v10030_v59 = vadd.f32 %v19973_v9, %v9931_v60  ;;  %v10031_v35 = vadd.f32 %v19937_v31, %v9932_v36  ;;  %v9412_v12 = vcombine.high %v9271_v61, %v9271_v61  ;;  %v21735_v23 = vrot.slane %v19991_v63, 1 }
 0xd63   : > { %v20276_v10 = vadd.f32 %v19953_v18, %v10029_v44  ;;  %v11647_v24 = vrot.slane %v20265_v43, %v19976_v4  ;;  %v9274_v20 = vadd.f32 %v20178_v29, %v20174_v1  ;;  %v21736_v49 = vrot.slane %v19953_v18, 1  ;;  %v20299_v29 = vpop.f32.mrb[41].mxu1 }
 0xd64   : > { %v20273_v57 = vadd.f32 %v21735_v23, %v10028_v40  ;;  %v10032_v26 = vadd.f32 %v19982_v8, %v9933_v19  ;;  %v20288_v2 = vadd.f32 %v19997_v50, %v10031_v35  ;;  %v9419_v63 = vrot.slane %v9412_v12, %v19379_v30  ;;  %v20309_v37 = vpop.f32.mrb[42].mxu1 }
 0xd65   : > { %v20284_v47 = vadd.f32 %v21736_v49, %v10030_v59  ;;  %v9446_v1 = vcombine.high %v9274_v20, %v9274_v20  ;;  %v9275_v18 = vadd.f32 %v20220_v33, %v20181_v32  ;;  %v21737_v41 = vrot.slane %v19997_v50, 1  ;;  %v20313_v33 = vpop.f32.mrb[43].mxu1 }
 0xd66   : > { %v9420_v46 = vcombine.high %v9419_v63, %v9419_v63  ;;  %v12404_v54 = vrot.slane %v9419_v63, 9  ;;  %v9276_v36 = vadd.f32 %v20170_v14, %v20235_v3  ;;  %v11332_v61 = vrot.slane %v20034_v16, 1 }
 0xd67   : > { %v20305_v17 = vadd.f32 %v21737_v41, %v10032_v26  ;;  %v9453_v42 = vrot.slane %v9446_v1, %v19379_v30  ;;  %v9455_v62 = vcombine.high %v9275_v18, %v9275_v18  ;;  %v9462_v32 = vrot.slane %v9275_v18, %v19379_v30 }
 0xd68   : > { %v12405_v50 = vrot.slane %v9420_v46, 9  ;;  %v9862_v45 = vadd.f32 %v12404_v54, %v9419_v63  ;;  %v9478_v23 = vrot.slane %v9276_v36, %v19379_v30  ;;  %v21740_v43 = vrot.slane %v20276_v10, %v19976_v4 }
 0xd69   : > { %v9454_v40 = vcombine.high %v9453_v42, %v9453_v42  ;;  %v12412_v44 = vrot.slane %v9453_v42, 9  ;;  %v9469_v59 = vrot.slane %v9455_v62, %v19379_v30  ;;  %v9470_v35 = vcombine.high %v9462_v32, %v9462_v32  ;;  %v20322_v3 = vpop.f32.mrb[44].mxu1 }
 0xd6a   : > { %v9863_v19 = vadd.f32 %v12405_v50, %v9420_v46  ;;  %v12414_v12 = vrot.slane %v9462_v32, 9  ;;  %v9926_v20 = vmul.f32 0.25, %v9862_v45  ;;  %v20325_v46 = vpop.f32.mrb[45].mxu1 }
 0xd6b   : > { %v12413_v49 = vrot.slane %v9454_v40, 9  ;;  %v9870_v26 = vadd.f32 %v12412_v44, %v9453_v42  ;;  %v9471_v1 = vcombine.high %v9469_v59, %v9469_v59  ;;  %v12415_v41 = vrot.slane %v9470_v35, 9  ;;  %v20328_v42 = vpop.f32.mrb[46].mxu1 }
 0xd6c   : > { %v9927_v18 = vmul.f32 0.25, %v9863_v19  ;;  %v12416_v60 = vrot.slane %v9469_v59, 9  ;;  %v9872_v14 = vadd.f32 %v12414_v12, %v9462_v32  ;;  %v10025_v63 = vadd.f32 %v19920_v22, %v9926_v20  ;;  %v20331_v38 = vpop.f32.mrb[47].mxu1 }
 0xd6d   : > { %v9871_v54 = vadd.f32 %v12413_v49, %v9454_v40  ;;  %v9934_v6 = vmul.f32 0.25, %v9870_v26  ;;  %v12417_v62 = vrot.slane %v9471_v1, 9  ;;  %v9873_v36 = vadd.f32 %v12415_v41, %v9470_v35 }
 0xd6e   : > { %v10026_v50 = vadd.f32 %v19959_v51, %v9927_v18  ;;  %v9874_v45 = vadd.f32 %v12416_v60, %v9469_v59  ;;  %v9936_v58 = vmul.f32 0.25, %v9872_v14  ;;  %v11436_v44 = vadd.f32 %v19946_v52, %v10025_v63 }
 0xd6f   : > { %v9935_v19 = vmul.f32 0.25, %v9871_v54  ;;  %v9875_v32 = vadd.f32 %v12417_v62, %v9471_v1  ;;  %v9479_v12 = vcombine.high %v9478_v23, %v9478_v23  ;;  %v21738_v40 = vrot.slane %v19946_v52, 1 }
 0xd70   : > { %v9937_v49 = vmul.f32 0.25, %v9873_v36  ;;  %v9938_v26 = vmul.f32 0.25, %v9874_v45  ;;  %v10035_v15 = vadd.f32 %v19927_v0, %v9936_v58  ;;  %v11639_v35 = vrot.slane %v11436_v44, %v19976_v4 }
 0xd71   : > { %v11437_v20 = vadd.f32 %v21738_v40, %v10026_v50  ;;  %v9939_v60 = vmul.f32 0.25, %v9875_v32  ;;  %v12418_v59 = vrot.slane %v9478_v23, 9  ;;  %v12419_v18 = vrot.slane %v9479_v12, 9  ;;  %v20347_v32 = vpop.f32.mrb[48].mxu1 }
 0xd72   : > { %v10036_v14 = vadd.f32 %v19956_v27, %v9937_v49  ;;  %v10033_v1 = vadd.f32 %v19920_v22, %v9934_v6  ;;  %v10034_v63 = vadd.f32 %v19959_v51, %v9935_v19  ;;  %v10037_v62 = vadd.f32 %v19923_v7, %v9938_v26  ;;  %v20354_v40 = vpop.f32.mrb[49].mxu1 }
 0xd73   : > { %v11643_v41 = vrot.slane %v11437_v20, %v19976_v4  ;;  %v9876_v54 = vadd.f32 %v12418_v59, %v9478_v23  ;;  %v9877_v52 = vadd.f32 %v12419_v18, %v9479_v12  ;;  %v10038_v50 = vadd.f32 %v19973_v9, %v9939_v60  ;;  %v20361_v59 = vpop.f32.mrb[50].mxu1 }
 0xd74   : > { %v11333_v36 = vrot.slane %v20054_v39, 1  ;;  %v11334_v45 = vrot.slane %v20044_v55, 1  ;;  %v11335_v44 = vrot.slane %v20062_v5, 1  ;;  %v11444_v12 = vadd.f32 %v20034_v16, %v10033_v1 }
 0xd75   : > { %v11817_v58 = vsel %vm10970_vm4, %v11643_v41, %v11639_v35  ;;  %v9940_v23 = vmul.f32 0.25, %v9876_v54  ;;  %v9941_v19 = vmul.f32 0.25, %v9877_v52  ;;  %v21739_v20 = vrot.slane %v20273_v57, %v19976_v4  ;;  %v20370_v41 = vpop.f32.mrb[51].mxu1 }
 0xd76   : > { %v11818_v6 = vsel %vm10973_vm5, %v11647_v24, %v11817_v58  ;;  %v11445_v26 = vadd.f32 %v11332_v61, %v10034_v63  ;;  %v11446_v35 = vadd.f32 %v20054_v39, %v10035_v15  ;;  %v11447_v60 = vadd.f32 %v11333_v36, %v10036_v14 }
 0xd77   : > { %v11819_v49 = vsel %vm10976_vm6, %v21739_v20, %v11818_v6  ;;  %v10039_v16 = vadd.f32 %v19937_v31, %v9940_v23  ;;  %v10040_v18 = vadd.f32 %v19982_v8, %v9941_v19  ;;  %v11448_v57 = vadd.f32 %v20044_v55, %v10037_v62 }
 0xd78   : > { %v11820_v24 = vsel %vm10979_vm7, %v21740_v43, %v11819_v49  ;;  %v21741_v39 = vrot.slane %v20284_v47, %v19976_v4  ;;  %v11449_v61 = vadd.f32 %v11334_v45, %v10038_v50  ;;  %v11671_v14 = vrot.slane %v11444_v12, %v19976_v4 }
 0xd79   : > { %v11675_v10 = vrot.slane %v11445_v26, %v19976_v4  ;;  %v21742_v1 = vrot.slane %v20288_v2, %v19976_v4  ;;  %v11450_v54 = vadd.f32 %v20062_v5, %v10039_v16  ;;  %v11451_v55 = vadd.f32 %v11335_v44, %v10040_v18 }
 0xd7a   : > { %v11821_v15 = vsel %vm10982_vm8, %v21741_v39, %v11820_v24  ;;  %v11679_v52 = vrot.slane %v11446_v35, %v19976_v4  ;;  %v21743_v47 = vrot.slane %v20305_v17, %v19976_v4  ;;  %v11342_v50 = vrot.slane %v20031_v13, 1 }
 0xd7b   : > { %v11822_v63 = vsel %vm10985_vm9, %v21742_v1, %v11821_v15  ;;  %v11683_v58 = vrot.slane %v11447_v60, %v19976_v4  ;;  %v11687_v36 = vrot.slane %v11448_v57, %v19976_v4  ;;  %v11691_v2 = vrot.slane %v11449_v61, %v19976_v4 }
 0xd7c   : > { %v11823_v62 = vsel %vm10988_vm10, %v21743_v47, %v11822_v63  ;;  %v11695_v5 = vrot.slane %v11450_v54, %v19976_v4  ;;  %v11824_v45 = vsel %vm10970_vm4, %v11675_v10, %v11671_v14  ;;  %v9278_v44 = vadd.f32 %v20247_v34, %v20227_v28 }
 0xd7d   : > { %11863 = vst.msk [vmem:[%s20103_s24 + $0x18] sm:$0xff] %vm388_vm0, %v11823_v62  ;;  %v11699_v17 = vrot.slane %v11451_v55, %v19976_v4  ;;  %v11825_v6 = vsel %vm10973_vm5, %v11679_v52, %v11824_v45  ;;  %v9279_v23 = vadd.f32 %v20253_v48, %v20249_v21  ;;  %v9277_v19 = vadd.f32 %v20213_v53, %v20256_v25 }
 0xd7e   : > { %v11826_v12 = vsel %vm10976_vm6, %v11683_v58, %v11825_v6  ;;  %v9489_v20 = vcombine.high %v9278_v44, %v9278_v44  ;;  %v9496_v49 = vrot.slane %v9278_v44, %v19379_v30  ;;  %v11299_v26 = vcombine.high %v20037_v11, %v20037_v11 }
 0xd7f   : > { %v11827_v28 = vsel %vm10979_vm7, %v11687_v36, %v11826_v12  ;;  %v9512_v34 = vrot.slane %v9279_v23, %v19379_v30  ;;  %v9480_v35 = vcombine.high %v9277_v19, %v9277_v19  ;;  %v20412_v21 = vrot.slane %v20037_v11, %v19379_v30 }
 0xd80   : > { %v11828_v53 = vsel %vm10982_vm8, %v11691_v2, %v11827_v28  ;;  %v9503_v48 = vrot.slane %v9489_v20, %v19379_v30  ;;  %v9504_v25 = vcombine.high %v9496_v49, %v9496_v49  ;;  %v12422_v60 = vrot.slane %v9496_v49, 9 }
 0xd81   : > { %v11829_v43 = vsel %vm10985_vm9, %v11695_v5, %v11828_v53  ;;  %v9513_v24 = vcombine.high %v9512_v34, %v9512_v34  ;;  %v12426_v16 = vrot.slane %v9512_v34, 9  ;;  %v9487_v18 = vrot.slane %v9480_v35, %v19379_v30 }
 0xd82   : > { %v11830_v57 = vsel %vm10988_vm10, %v11699_v17, %v11829_v43  ;;  %v9505_v39 = vcombine.high %v9503_v48, %v9503_v48  ;;  %v12423_v15 = vrot.slane %v9504_v25, 9  ;;  %v12424_v61 = vrot.slane %v9503_v48, 9  ;;  %v21744_v17 = vld [vmem:[#allocation28_spill] sm:$0xff] }
 0xd83   : > { %11864 = vst.msk [vmem:[%s20103_s24 + $0x20] sm:$0xff] %vm388_vm0, %v11830_v57  ;;  %v9880_v11 = vadd.f32 %v12422_v60, %v9496_v49  ;;  %v12427_v14 = vrot.slane %v9513_v24, 9  ;;  %v9884_v10 = vadd.f32 %v12426_v16, %v9512_v34  ;;  %v9488_v1 = vcombine.high %v9487_v18, %v9487_v18 }
 0xd84   : > { %v12425_v63 = vrot.slane %v9505_v39, 9  ;;  %v9881_v54 = vadd.f32 %v12423_v15, %v9504_v25  ;;  %v9882_v55 = vadd.f32 %v12424_v61, %v9503_v48  ;;  %v12420_v52 = vrot.slane %v9487_v18, 9  ;;  %v21745_v15 = vld [vmem:[#allocation26_spill] sm:$0xff] }
 0xd85   : > { %v9944_v47 = vmul.f32 0.25, %v9880_v11  ;;  %v9885_v62 = vadd.f32 %v12427_v14, %v9513_v24  ;;  %v9948_v58 = vmul.f32 0.25, %v9884_v10  ;;  %v12421_v36 = vrot.slane %v9488_v1, 9 }
 0xd86   : > { %v9883_v2 = vadd.f32 %v12425_v63, %v9505_v39  ;;  %v9945_v5 = vmul.f32 0.25, %v9881_v54  ;;  %v9878_v45 = vadd.f32 %v12420_v52, %v9487_v18  ;;  %v20422_v44 = vrot.slane %v11299_v26, %v19379_v30  ;;  %v14743_v39 = vld [vmem:[%s20589_s10] ss:$0 sm:$0xff] }
 0xd87   : > { %v11343_v6 = vrot.slane %v21744_v17, 1  ;;  %v9946_v23 = vmul.f32 0.25, %v9882_v55  ;;  %v9949_v19 = vmul.f32 0.25, %v9885_v62  ;;  %v9879_v12 = vadd.f32 %v12421_v36, %v9488_v1 }
 0xd88   : > { %v9947_v20 = vmul.f32 0.25, %v9883_v2  ;;  %v10043_v49 = vadd.f32 %v19927_v0, %v9944_v47  ;;  %v9942_v28 = vmul.f32 0.25, %v9878_v45  ;;  %v20428_v34 = vcombine.high %v20412_v21, %v20412_v21 }
 0xd89   : > { %v10044_v35 = vadd.f32 %v19956_v27, %v9945_v5  ;;  %v10047_v53 = vadd.f32 %v19937_v31, %v9948_v58  ;;  %v10048_v26 = vadd.f32 %v19982_v8, %v9949_v19  ;;  %v9943_v48 = vmul.f32 0.25, %v9879_v12 }
 0xd8a   : > { %v20435_v25 = vcombine.high %v20422_v44, %v20422_v44  ;;  %v11345_v60 = vrot.slane %v20428_v34, 1  ;;  %v11346_v43 = vrot.slane %v20422_v44, 1  ;;  %v10041_v24 = vadd.f32 %v19920_v22, %v9942_v28 }
 0xd8b   : > { %v10042_v16 = vadd.f32 %v19959_v51, %v9943_v48  ;;  %v10045_v18 = vadd.f32 %v19923_v7, %v9946_v23  ;;  %v10046_v57 = vadd.f32 %v19973_v9, %v9947_v20  ;;  %v11161_v61 = vadd.f32 %v14743_v39, %v21745_v15 }
 0xd8c   : > { %v9280_v11 = vadd.f32 %v20309_v37, %v20299_v29  ;;  %v9281_v14 = vadd.f32 %v20325_v46, %v20313_v33  ;;  %v9282_v10 = vadd.f32 %v20291_v56, %v20331_v38  ;;  %v20455_v1 = vadd.f32 %v20347_v32, %v20328_v42 }
 0xd8d   : > { %v11265_v63 = vcombine.high %v11161_v61, %v11161_v61  ;;  %v11272_v54 = vrot.slane %v11161_v61, %v19379_v30  ;;  %v20460_v55 = vadd.f32 %v20361_v59, %v20354_v40  ;;  %v20464_v29 = vadd.f32 %v20322_v3, %v20370_v41 }
 0xd8e   : > { %v9514_v37 = vcombine.high %v9280_v11, %v9280_v11  ;;  %v9523_v33 = vcombine.high %v9281_v14, %v9281_v14  ;;  %v9530_v46 = vrot.slane %v9281_v14, %v19379_v30  ;;  %v20468_v56 = vrot.slane %v9282_v10, %v19379_v30 }
 0xd8f   : > { %v11279_v38 = vrot.slane %v11265_v63, %v19379_v30  ;;  %v11280_v42 = vcombine.high %v11272_v54, %v11272_v54  ;;  %v11336_v32 = vrot.slane %v11272_v54, 1  ;;  %v11452_v52 = vadd.f32 %v11272_v54, %v10041_v24 }
 0xd90   : > { %v9521_v47 = vrot.slane %v9514_v37, %v19379_v30  ;;  %v9537_v40 = vrot.slane %v9523_v33, %v19379_v30  ;;  %v9538_v59 = vcombine.high %v9530_v46, %v9530_v46  ;;  %v12430_v62 = vrot.slane %v9530_v46, 9 }
 0xd91   : > { %v11281_v3 = vcombine.high %v11279_v38, %v11279_v38  ;;  %v11337_v41 = vrot.slane %v11280_v42, 1  ;;  %v11338_v58 = vrot.slane %v11279_v38, 1  ;;  %v11453_v36 = vadd.f32 %v11336_v32, %v10042_v16 }
 0xd92   : > { %v11454_v2 = vadd.f32 %v11280_v42, %v10043_v49  ;;  %v11456_v5 = vadd.f32 %v11279_v38, %v10045_v18  ;;  %v11703_v45 = vrot.slane %v11452_v52, %v19976_v4  ;;  %v9522_v23 = vcombine.high %v9521_v47, %v9521_v47 }
 0xd93   : > { %v11339_v19 = vrot.slane %v11281_v3, 1  ;;  %v11455_v12 = vadd.f32 %v11337_v41, %v10044_v35  ;;  %v11457_v20 = vadd.f32 %v11338_v58, %v10046_v57  ;;  %v11458_v28 = vadd.f32 %v11281_v3, %v10047_v53 }
 0xd94   : > { %v11707_v48 = vrot.slane %v11453_v36, %v19976_v4  ;;  %v11711_v24 = vrot.slane %v11454_v2, %v19976_v4  ;;  %v11719_v39 = vrot.slane %v11456_v5, %v19976_v4  ;;  %v12428_v15 = vrot.slane %v9521_v47, 9 }
 0xd95   : > { %v11459_v61 = vadd.f32 %v11339_v19, %v10048_v26  ;;  %v11715_v11 = vrot.slane %v11455_v12, %v19976_v4  ;;  %v11723_v49 = vrot.slane %v11457_v20, %v19976_v4  ;;  %v11727_v16 = vrot.slane %v11458_v28, %v19976_v4  ;;  %v21746_v20 = vld [vmem:[#allocation27_spill] sm:$0xff] }
 0xd96   : > { %v11831_v18 = vsel %vm10970_vm4, %v11707_v48, %v11703_v45  ;;  %v12429_v14 = vrot.slane %v9522_v23, 9  ;;  %v9886_v35 = vadd.f32 %v12428_v15, %v9521_v47  ;;  %v9539_v57 = vcombine.high %v9537_v40, %v9537_v40 }
 0xd97   : > { %v11731_v53 = vrot.slane %v11459_v61, %v19976_v4  ;;  %v11832_v10 = vsel %vm10973_vm5, %v11711_v24, %v11831_v18  ;;  %v12431_v63 = vrot.slane %v9538_v59, 9  ;;  %v12432_v54 = vrot.slane %v9537_v40, 9 }
 0xd98   : > { %v11833_v37 = vsel %vm10976_vm6, %v11715_v11, %v11832_v10  ;;  %v9887_v26 = vadd.f32 %v12429_v14, %v9522_v23  ;;  %v9950_v33 = vmul.f32 0.25, %v9886_v35  ;;  %v12433_v38 = vrot.slane %v9539_v57, 9 }
 0xd99   : > { %v11834_v42 = vsel %vm10979_vm7, %v11719_v39, %v11833_v37  ;;  %v9888_v32 = vadd.f32 %v12430_v62, %v9530_v46  ;;  %v9889_v52 = vadd.f32 %v12431_v63, %v9538_v59  ;;  %v9890_v3 = vadd.f32 %v12432_v54, %v9537_v40 }
 0xd9a   : > { %v11835_v47 = vsel %vm10982_vm8, %v11723_v49, %v11834_v42  ;;  %v9951_v41 = vmul.f32 0.25, %v9887_v26  ;;  %v10049_v58 = vadd.f32 %v19920_v22, %v9950_v33  ;;  %v9891_v36 = vadd.f32 %v12433_v38, %v9539_v57  ;;  %v21748_v49 = vld [vmem:[#allocation29_spill] sm:$0xff] }
 0xd9b   : > { %v11836_v2 = vsel %vm10985_vm9, %v11727_v16, %v11835_v47  ;;  %v9952_v5 = vmul.f32 0.25, %v9888_v32  ;;  %v9953_v45 = vmul.f32 0.25, %v9889_v52  ;;  %v9954_v19 = vmul.f32 0.25, %v9890_v3 }
 0xd9c   : > { %v11837_v23 = vsel %vm10988_vm10, %v11731_v53, %v11836_v2  ;;  %v10050_v12 = vadd.f32 %v19959_v51, %v9951_v41  ;;  %v11460_v28 = vadd.f32 %v21746_v20, %v10049_v58  ;;  %v9955_v46 = vmul.f32 0.25, %v9891_v36 }
 0xd9d   : > { %11865 = vst.msk [vmem:[%s20103_s24 + $0x28] sm:$0xff] %vm388_vm0, %v11837_v23  ;;  %v10051_v40 = vadd.f32 %v19927_v0, %v9952_v5  ;;  %v10052_v59 = vadd.f32 %v19956_v27, %v9953_v45  ;;  %v10053_v62 = vadd.f32 %v19923_v7, %v9954_v19  ;;  %v9547_v48 = vcombine.high %v20468_v56, %v20468_v56 }
 0xd9e   : > { %v21747_v24 = vrot.slane %v21746_v20, 1  ;;  %v11735_v15 = vrot.slane %v11460_v28, %v19976_v4  ;;  %v10054_v61 = vadd.f32 %v19973_v9, %v9955_v46  ;;  %v12434_v11 = vrot.slane %v20468_v56, 9 }
 0xd9f   : > { %v11462_v16 = vadd.f32 %v21748_v49, %v10051_v40  ;;  %v21749_v18 = vrot.slane %v21748_v49, 1  ;;  %v11464_v35 = vadd.f32 %v20031_v13, %v10053_v62  ;;  %v12435_v57 = vrot.slane %v9547_v48, 9 }
 0xda0   : > { %v11461_v39 = vadd.f32 %v21747_v24, %v10050_v12  ;;  %v11465_v10 = vadd.f32 %v11342_v50, %v10054_v61  ;;  %v9892_v63 = vadd.f32 %v12434_v11, %v20468_v56  ;;  %v9557_v54 = vcombine.high %v20455_v1, %v20455_v1 }
 0xda1   : > { %v11463_v14 = vadd.f32 %v21749_v18, %v10052_v59  ;;  %v11743_v37 = vrot.slane %v11462_v16, %v19976_v4  ;;  %v11751_v33 = vrot.slane %v11464_v35, %v19976_v4  ;;  %v9893_v38 = vadd.f32 %v12435_v57, %v9547_v48 }
 0xda2   : > { %v11739_v53 = vrot.slane %v11461_v39, %v19976_v4  ;;  %v11755_v32 = vrot.slane %v11465_v10, %v19976_v4  ;;  %v9956_v52 = vmul.f32 0.25, %v9892_v63  ;;  %v9564_v13 = vrot.slane %v20455_v1, %v19379_v30 }
 0xda3   : > { %v11747_v26 = vrot.slane %v11463_v14, %v19976_v4  ;;  %v9957_v56 = vmul.f32 0.25, %v9893_v38  ;;  %v9571_v3 = vrot.slane %v9557_v54, %v19379_v30  ;;  %v9580_v47 = vrot.slane %v20460_v55, %v19379_v30 }
 0xda4   : > { %v11838_v42 = vsel %vm10970_vm4, %v11739_v53, %v11735_v15  ;;  %v10055_v58 = vadd.f32 %v19937_v31, %v9956_v52  ;;  %v9572_v36 = vcombine.high %v9564_v13, %v9564_v13  ;;  %v12438_v2 = vrot.slane %v9564_v13, 9 }
 0xda5   : > { %v11839_v50 = vsel %vm10973_vm5, %v11743_v37, %v11838_v42  ;;  %v10056_v45 = vadd.f32 %v19982_v8, %v9957_v56  ;;  %v9573_v19 = vcombine.high %v9571_v3, %v9571_v3  ;;  %v12440_v1 = vrot.slane %v9571_v3, 9 }
 0xda6   : > { %v11840_v41 = vsel %vm10976_vm6, %v11747_v26, %v11839_v50  ;;  %v11466_v23 = vadd.f32 %v21744_v17, %v10055_v58  ;;  %v12439_v20 = vrot.slane %v9572_v36, 9  ;;  %v9896_v28 = vadd.f32 %v12438_v2, %v9564_v13 }
 0xda7   : > { %v11841_v5 = vsel %vm10979_vm7, %v11751_v33, %v11840_v41  ;;  %v11467_v55 = vadd.f32 %v11343_v6, %v10056_v45  ;;  %v12441_v46 = vrot.slane %v9573_v19, 9  ;;  %v9898_v40 = vadd.f32 %v12440_v1, %v9571_v3 }
 0xda8   : > { %v11842_v12 = vsel %vm10982_vm8, %v11755_v32, %v11841_v5  ;;  %v9581_v59 = vcombine.high %v9580_v47, %v9580_v47  ;;  %v11759_v62 = vrot.slane %v11466_v23, %v19976_v4  ;;  %v9897_v48 = vadd.f32 %v12439_v20, %v9572_v36 }
 0xda9   : > { %v9960_v24 = vmul.f32 0.25, %v9896_v28  ;;  %v12442_v39 = vrot.slane %v9580_v47, 9  ;;  %v11763_v15 = vrot.slane %v11467_v55, %v19976_v4  ;;  %v9899_v61 = vadd.f32 %v12441_v46, %v9573_v19 }
 0xdaa   : > { %v9962_v11 = vmul.f32 0.25, %v9898_v40  ;;  %v12443_v49 = vrot.slane %v9581_v59, 9  ;;  %v11843_v16 = vsel %vm10985_vm9, %v11759_v62, %v11842_v12  ;;  %v9961_v18 = vmul.f32 0.25, %v9897_v48 }
 0xdab   : > { %v10059_v17 = vadd.f32 %v19927_v0, %v9960_v24  ;;  %v9900_v6 = vadd.f32 %v12442_v39, %v9580_v47  ;;  %v11844_v14 = vsel %vm10988_vm10, %v11763_v15, %v11843_v16  ;;  %v9963_v35 = vmul.f32 0.25, %v9899_v61 }
 0xdac   : > { %v10061_v57 = vadd.f32 %v19923_v7, %v9962_v11  ;;  %v9901_v53 = vadd.f32 %v12443_v49, %v9581_v59  ;;  %11866 = vst.msk [vmem:[%s20103_s24 + $0x30] sm:$0xff] %vm388_vm0, %v11844_v14  ;;  %v10060_v10 = vadd.f32 %v19956_v27, %v9961_v18  ;;  %v9548_v37 = vcombine.high %v20464_v29, %v20464_v29 }
 0xdad   : > { %v11470_v63 = vadd.f32 %v20428_v34, %v10059_v17  ;;  %v9964_v54 = vmul.f32 0.25, %v9900_v6  ;;  %v11347_v26 = vrot.slane %v20435_v25, 1  ;;  %v10062_v0 = vadd.f32 %v19973_v9, %v9963_v35 }
 0xdae   : > { %v11472_v33 = vadd.f32 %v20422_v44, %v10061_v57  ;;  %v9965_v38 = vmul.f32 0.25, %v9901_v53  ;;  %v11471_v7 = vadd.f32 %v11345_v60, %v10060_v10  ;;  %v9555_v27 = vrot.slane %v9548_v37, %v19379_v30 }
 0xdaf   : > { %v10063_v42 = vadd.f32 %v19937_v31, %v9964_v54  ;;  %v11473_v32 = vadd.f32 %v11346_v43, %v10062_v0  ;;  %v11344_v31 = vrot.slane %v20412_v21, 1  ;;  %v11775_v58 = vrot.slane %v11470_v63, %v19976_v4 }
 0xdb0   : > { %v10064_v52 = vadd.f32 %v19982_v8, %v9965_v38  ;;  %v9556_v13 = vcombine.high %v9555_v27, %v9555_v27  ;;  %v12436_v50 = vrot.slane %v9555_v27, 9  ;;  %v11779_v36 = vrot.slane %v11471_v7, %v19976_v4 }
 0xdb1   : > { %v11474_v29 = vadd.f32 %v20435_v25, %v10063_v42 }
 0xdb2   : > { %v11475_v9 = vadd.f32 %v11347_v26, %v10064_v52  ;;  %v12437_v56 = vrot.slane %v9556_v13, 9  ;;  %v9894_v3 = vadd.f32 %v12436_v50, %v9555_v27 }
 0xdb3   : > { %v11791_v45 = vrot.slane %v11474_v29, %v19976_v4 }
 0xdb4   : > { %v9895_v47 = vadd.f32 %v12437_v56, %v9556_v13  ;;  %v9958_v41 = vmul.f32 0.25, %v9894_v3  ;;  %v11795_v1 = vrot.slane %v11475_v9, %v19976_v4 }
 0xdb6   : > { %v9959_v34 = vmul.f32 0.25, %v9895_v47  ;;  %v10057_v60 = vadd.f32 %v19920_v22, %v9958_v41  ;;  %v11783_v22 = vrot.slane %v11472_v33, %v19976_v4 }
 0xdb8   : > { %v10058_v30 = vadd.f32 %v19959_v51, %v9959_v34  ;;  %v11468_v44 = vadd.f32 %v20412_v21, %v10057_v60  ;;  %v11787_v51 = vrot.slane %v11473_v32, %v19976_v4 }
 0xdba   : > { %v11469_v43 = vadd.f32 %v11344_v31, %v10058_v30  ;;  %v11767_v8 = vrot.slane %v11468_v44, %v19976_v4 }
 0xdbc   : > { %v11771_v25 = vrot.slane %v11469_v43, %v19976_v4 }
 0xdbe   : > { %v11845_v2 = vsel %vm10970_vm4, %v11771_v25, %v11767_v8 }
 0xdbf   : > { %v11846_v5 = vsel %vm10973_vm5, %v11775_v58, %v11845_v2 }
 0xdc0   : > { %v11847_v21 = vsel %vm10976_vm6, %v11779_v36, %v11846_v5 }
 0xdc1   : > { %v11848_v19 = vsel %vm10979_vm7, %v11783_v22, %v11847_v21 }
 0xdc2   : > { %v11849_v23 = vsel %vm10982_vm8, %v11787_v51, %v11848_v19 }
 0xdc3   : > { %v11850_v12 = vsel %vm10985_vm9, %v11791_v45, %v11849_v23 }
 0xdc4   : > { %v11851_v20 = vsel %vm10988_vm10, %v11795_v1, %v11850_v12 }
 0xdc5   : > { %11867 = vst.msk [vmem:[%s20103_s24 + $0x38] sm:$0xff] %vm388_vm0, %v11851_v20 }
 0xdc6 PF: > { %s21_s17 = sadd.s32 1, %s14750_s17  }
 0xdc7   : > { %p18_p4 = scmp.ge.s32.totalorder %s21_s17, 4  }
 0xdc9   :  { %20 = sbr.rel (!%p18_p4) target bundleno = 1 (0x1), region = 110 }

</bundles_post_ra>
